<compile_context>
chip_gen: v6e
topology: v6e:2x2x1
jax: 0.10.0
libtpu: 0.0.40
codegen_flags: <defaults>
</compile_context>

<pallas_src>
import functools

import jax
import jax.numpy as jnp
from jax.experimental import pallas as pl
from jax.experimental.pallas import tpu as pltpu


def _residual_block_kernel(x_ref, w1_ref, w2_ref, s1_ref, t1_ref, s2_ref,
                           t2_ref, o_ref, xpad_ref, hpad_ref, col_ref):
    # x_ref   : (bt, H, W, C)         unpadded input tile (f32)
    # w1/w2   : (9*C, C)              im2col-reshaped conv weights (bf16)
    # s*/t*   : (1, C)                folded BN scale / shift (f32)
    # o_ref   : (bt, H, W, C)         output tile
    # xpad_ref/hpad_ref : (bt, H+2, W+2, C) bf16 VMEM halo scratches
    # col_ref : (bt*H*W, 9*C)         bf16 im2col scratch (reused by both convs)
    bt, Hp2, Wp2, C = xpad_ref.shape
    H, W = Hp2 - 2, Wp2 - 2
    M = bt * H * W

    def zero_border(pad_ref):
        # Only the 1-pixel border; the interior is fully overwritten below.
        row = jnp.zeros((bt, 1, Wp2, C), pad_ref.dtype)
        col = jnp.zeros((bt, H, 1, C), pad_ref.dtype)
        pad_ref[:, 0:1, :, :] = row
        pad_ref[:, H + 1:H + 2, :, :] = row
        pad_ref[:, 1:H + 1, 0:1, :] = col
        pad_ref[:, 1:H + 1, W + 1:W + 2, :] = col

    def im2col(pad_ref):
        # 9 shifted windows -> dense, lane-aligned columns of col_ref.
        for dy in range(3):
            for dx in range(3):
                tap = dy * 3 + dx
                win = pad_ref[:, dy:dy + H, dx:dx + W, :].reshape(M, C)
                col_ref[:, tap * C:(tap + 1) * C] = win

    # ---- stage 1: conv1 -> bn1 -> relu (single im2col MXU matmul) ----------
    zero_border(xpad_ref)
    xpad_ref[:, 1:H + 1, 1:W + 1, :] = x_ref[...].astype(xpad_ref.dtype)
    im2col(xpad_ref)
    c1 = jnp.dot(col_ref[...], w1_ref[...],
                 preferred_element_type=jnp.float32)          # (M, C) f32
    h = jnp.maximum(c1 * s1_ref[0] + t1_ref[0], 0.0)

    # ---- stage 2: conv2 -> bn2 -> +residual -> relu (h never leaves VMEM) --
    zero_border(hpad_ref)
    hpad_ref[:, 1:H + 1, 1:W + 1, :] = h.reshape(bt, H, W, C).astype(
        hpad_ref.dtype)
    im2col(hpad_ref)
    c2 = jnp.dot(col_ref[...], w2_ref[...],
                 preferred_element_type=jnp.float32)          # (M, C) f32
    resid = x_ref[...].astype(jnp.float32).reshape(M, C)      # exact f32 x
    y = jnp.maximum(c2 * s2_ref[0] + t2_ref[0] + resid, 0.0)
    o_ref[...] = y.reshape(bt, H, W, C).astype(o_ref.dtype)


def _vmem_info():
    """(tile-picking budget, vmem_limit_bytes) derived from the chip's VMEM."""
    try:
        cap = int(pltpu.get_tpu_info().vmem_capacity_bytes)
    except Exception:
        cap = 64 << 20  # conservative: v7x per-core VMEM
    budget = int(cap * 0.7)
    limit = max(32 << 20, min(cap - (8 << 20), 112 << 20))
    return budget, limit


def _tile_vmem_bytes(bt, H, W, C):
    """Pessimistic per-step VMEM estimate for a batch tile of size bt."""
    M = bt * H * W
    halo = bt * (H + 2) * (W + 2) * C * 2          # bf16 halo (x2: xpad+hpad)
    col = M * 9 * C * 2                            # im2col scratch, bf16
    io_tile = bt * H * W * C * 4                   # f32 in/out tile
    weights = 2 * 9 * C * C * 2                    # two (9C, C) bf16 matrices
    scale = 4 * C * 4
    # in/out tiles double-buffered by the pipeline; weights counted x2 too
    # (drop to x1 if single-buffered via pipeline_mode=pl.Buffered(1)).
    return 2 * halo + col + 2 * 2 * io_tile + 2 * weights + scale


def _pick_batch_tile(N, H, W, C, budget, min_grid_steps=1):
    """Largest bt dividing N that fits the VMEM budget.  Single-TC chips
    (v5e/v6e) want min_grid_steps=1 (grid is a serial loop); pass 2 on v7x so
    both TensorCores get work."""
    best = 1
    for bt in range(1, N + 1):
        if N % bt:
            continue
        if N // bt < min_grid_steps:
            continue
        if _tile_vmem_bytes(bt, H, W, C) <= budget:
            best = bt
    return best


def residual_block_nhwc(x, w1, w2, s1, t1, s2, t2, batch_tile=None,
                        min_grid_steps=1):
    """Fused residual block. x: (N, H, W, C) f32; w*: (3,3,C,C);
    s*/t*: (C,) f32 folded BN scale/shift."""
    N, H, W, Cin = x.shape
    C = w1.shape[-1]
    assert Cin == C, (Cin, C)
    budget, vmem_limit = _vmem_info()
    bt = (_pick_batch_tile(N, H, W, C, budget, min_grid_steps)
          if batch_tile is None else batch_tile)
    assert N % bt == 0, (N, bt)

    # im2col weight layout: (dy, dx, cin) flattened row-major -> (9*C, C)
    w1_mat = w1.reshape(9 * C, C).astype(jnp.bfloat16)
    w2_mat = w2.reshape(9 * C, C).astype(jnp.bfloat16)
    s1_2 = s1.reshape(1, C).astype(jnp.float32)
    t1_2 = t1.reshape(1, C).astype(jnp.float32)
    s2_2 = s2.reshape(1, C).astype(jnp.float32)
    t2_2 = t2.reshape(1, C).astype(jnp.float32)

    # NOTE: w/scale/shift index_maps are constant; on VMEM-tight v7x consider
    #       pipeline_mode=pl.Buffered(1) on those specs to skip double-buffering.
    return pl.pallas_call(
        _residual_block_kernel,
        out_shape=jax.ShapeDtypeStruct((N, H, W, C), x.dtype),
        grid_spec=pltpu.PrefetchScalarGridSpec(
            num_scalar_prefetch=0,
            grid=(N // bt,),
            in_specs=[
                pl.BlockSpec((bt, H, W, C), lambda n: (n, 0, 0, 0)),
                pl.BlockSpec((9 * C, C), lambda n: (0, 0)),
                pl.BlockSpec((9 * C, C), lambda n: (0, 0)),
                pl.BlockSpec((1, C), lambda n: (0, 0)),
                pl.BlockSpec((1, C), lambda n: (0, 0)),
                pl.BlockSpec((1, C), lambda n: (0, 0)),
                pl.BlockSpec((1, C), lambda n: (0, 0)),
            ],
            out_specs=pl.BlockSpec((bt, H, W, C), lambda n: (n, 0, 0, 0)),
            scratch_shapes=[
                pltpu.VMEM((bt, H + 2, W + 2, C), jnp.bfloat16),   # padded x
                pltpu.VMEM((bt, H + 2, W + 2, C), jnp.bfloat16),   # padded h
                pltpu.VMEM((bt * H * W, 9 * C), jnp.bfloat16),     # im2col
            ],
        ),
        compiler_params=pltpu.CompilerParams(
            dimension_semantics=("parallel",),
            vmem_limit_bytes=vmem_limit,
        ),
    )(x, w1_mat, w2_mat, s1_2, t1_2, s2_2, t2_2)


def _fold_bn(conv_bias, gamma, beta, running_mean, running_var, eps=1e-5):
    """Fold conv bias + eval-mode BatchNorm into per-channel scale/shift."""
    inv_std = 1.0 / jnp.sqrt(running_var + eps)
    scale = gamma * inv_std
    shift = beta + (conv_bias - running_mean) * scale
    return scale, shift


class ResidualBlockPallas:
    """Deterministic-parameter port of the PyTorch ResidualBlock (eval mode)."""

    def __init__(self, key, channels=256):
        k = jax.random.split(key, 6)
        c = channels
        fan_in = c * 3 * 3
        bound = 1.0 / jnp.sqrt(fan_in)
        # conv weights stored as (3, 3, Cin, Cout) bf16 for the NHWC MXU kernel
        self.w1 = jax.random.uniform(k[0], (3, 3, c, c), jnp.float32,
                                     -bound, bound).astype(jnp.bfloat16)
        self.b1 = jax.random.uniform(k[1], (c,), jnp.float32, -bound, bound)
        self.w2 = jax.random.uniform(k[2], (3, 3, c, c), jnp.float32,
                                     -bound, bound).astype(jnp.bfloat16)
        self.b2 = jax.random.uniform(k[3], (c,), jnp.float32, -bound, bound)
        # BatchNorm params (gamma/beta randomized a bit, running stats default)
        self.g1 = 1.0 + 0.1 * jax.random.normal(k[4], (c,), jnp.float32)
        self.be1 = 0.1 * jax.random.normal(k[5], (c,), jnp.float32)
        self.g2 = jnp.ones((c,), jnp.float32)
        self.be2 = jnp.zeros((c,), jnp.float32)
        self.rm1 = jnp.zeros((c,), jnp.float32)
        self.rv1 = jnp.ones((c,), jnp.float32)
        self.rm2 = jnp.zeros((c,), jnp.float32)
        self.rv2 = jnp.ones((c,), jnp.float32)

    def forward_nhwc(self, x_nhwc):
        """Preferred path: keep activations NHWC end-to-end (no transposes)."""
        s1, t1 = _fold_bn(self.b1, self.g1, self.be1, self.rm1, self.rv1)
        s2, t2 = _fold_bn(self.b2, self.g2, self.be2, self.rm2, self.rv2)
        return residual_block_nhwc(x_nhwc, self.w1, self.w2, s1, t1, s2, t2)

    @functools.partial(jax.jit, static_argnums=0)
    def __call__(self, x_nchw):
        # NCHW (PyTorch API parity) -> NHWC kernel layout and back. For real
        # networks keep NHWC end-to-end via forward_nhwc to skip these copies.
        x = jnp.transpose(x_nchw, (0, 2, 3, 1))
        y = self.forward_nhwc(x)
        return jnp.transpose(y, (0, 3, 1, 2))


def _reference(block, x_nchw):
    """Pure-JAX reference with matching precision (bf16 matmuls, f32 acc)."""
    x = jnp.transpose(x_nchw, (0, 2, 3, 1))
    xb = x.astype(jnp.bfloat16)
    s1, t1 = _fold_bn(block.b1, block.g1, block.be1, block.rm1, block.rv1)
    s2, t2 = _fold_bn(block.b2, block.g2, block.be2, block.rm2, block.rv2)
    dn = jax.lax.conv_dimension_numbers(x.shape, block.w1.shape,
                                        ("NHWC", "HWIO", "NHWC"))
    c1 = jax.lax.conv_general_dilated(xb, block.w1, (1, 1), "SAME",
                                      dimension_numbers=dn,
                                      preferred_element_type=jnp.float32)
    h = jnp.maximum(c1 * s1 + t1, 0.0)
    c2 = jax.lax.conv_general_dilated(h.astype(jnp.bfloat16), block.w2,
                                      (1, 1), "SAME", dimension_numbers=dn,
                                      preferred_element_type=jnp.float32)
    y = jnp.maximum(c2 * s2 + t2 + x, 0.0)
    return jnp.transpose(y, (0, 3, 1, 2))


if __name__ == "__main__":
    key = jax.random.PRNGKey(0)
    kp, kx = jax.random.split(key)
    block = ResidualBlockPallas(kp, channels=256)

    # Small spatial size; channels fixed at 256 by the module definition.
    x = jax.random.normal(kx, (2, 256, 8, 8), jnp.float32)  # NCHW like PyTorch

    out = jax.block_until_ready(block(x))

    ref = _reference(block, x)
    assert out.shape == x.shape, out.shape
    max_err = float(jnp.max(jnp.abs(out - ref)))
    assert jnp.allclose(out, ref, atol=1e-2, rtol=1e-2), max_err

    print("KERNEL_OK")
</pallas_src>

<mosaic_0001>
module attributes {stable_mosaic.version = 11 : i64} {
  func.func @_residual_block_kernel(%arg0: i32, %arg1: memref<2x8x8x256xf32, #tpu.memory_space<vmem>>, %arg2: memref<2304x256xbf16, #tpu.memory_space<vmem>>, %arg3: memref<2304x256xbf16, #tpu.memory_space<vmem>>, %arg4: memref<1x256xf32, #tpu.memory_space<vmem>>, %arg5: memref<1x256xf32, #tpu.memory_space<vmem>>, %arg6: memref<1x256xf32, #tpu.memory_space<vmem>>, %arg7: memref<1x256xf32, #tpu.memory_space<vmem>>, %arg8: memref<2x8x8x256xf32, #tpu.memory_space<vmem>>, %arg9: memref<2x10x10x256xbf16, #tpu.memory_space<vmem>>, %arg10: memref<2x10x10x256xbf16, #tpu.memory_space<vmem>>, %arg11: memref<128x2304xbf16, #tpu.memory_space<vmem>>) attributes {dimension_semantics = [#tpu.dimension_semantics<parallel>], iteration_bounds = array<i64: 1>, scalar_prefetch = 0 : i64, scratch_operands = 3 : i64, tpu.core_type = #tpu.core_type<tc>, window_params = [{transform_indices = @transform_0, window_bounds = array<i64: 2, 8, 8, 256>}, {pipeline_mode = #tpu.pipeline_mode<synchronous>, transform_indices = @transform_1, window_bounds = array<i64: 2304, 256>}, {pipeline_mode = #tpu.pipeline_mode<synchronous>, transform_indices = @transform_2, window_bounds = array<i64: 2304, 256>}, {pipeline_mode = #tpu.pipeline_mode<synchronous>, transform_indices = @transform_3, window_bounds = array<i64: 1, 256>}, {pipeline_mode = #tpu.pipeline_mode<synchronous>, transform_indices = @transform_4, window_bounds = array<i64: 1, 256>}, {pipeline_mode = #tpu.pipeline_mode<synchronous>, transform_indices = @transform_5, window_bounds = array<i64: 1, 256>}, {pipeline_mode = #tpu.pipeline_mode<synchronous>, transform_indices = @transform_6, window_bounds = array<i64: 1, 256>}, {transform_indices = @transform_7, window_bounds = array<i64: 2, 8, 8, 256>}]} {
    %cst = arith.constant 0.000000e+00 : bf16
    %0 = vector.broadcast %cst : bf16 to vector<2x1x10x256xbf16>
    %cst_0 = arith.constant 0.000000e+00 : bf16
    %1 = vector.broadcast %cst_0 : bf16 to vector<2x8x1x256xbf16>
    %c0 = arith.constant 0 : index
    %c0_1 = arith.constant 0 : index
    %c0_2 = arith.constant 0 : index
    %c0_3 = arith.constant 0 : index
    %2 = vector.load %arg9[%c0, %c0_1, %c0_2, %c0_3] : memref<2x10x10x256xbf16, #tpu.memory_space<vmem>>, vector<2x1x10x256xbf16>
    tpu.vector_store %arg9[%c0, %c0_1, %c0_2, %c0_3], %0 {strides = array<i32>} : memref<2x10x10x256xbf16, #tpu.memory_space<vmem>>, vector<2x1x10x256xbf16>,
    %c0_4 = arith.constant 0 : index
    %c9 = arith.constant 9 : index
    %c0_5 = arith.constant 0 : index
    %c0_6 = arith.constant 0 : index
    %3 = vector.load %arg9[%c0_4, %c9, %c0_5, %c0_6] : memref<2x10x10x256xbf16, #tpu.memory_space<vmem>>, vector<2x1x10x256xbf16>
    tpu.vector_store %arg9[%c0_4, %c9, %c0_5, %c0_6], %0 {strides = array<i32>} : memref<2x10x10x256xbf16, #tpu.memory_space<vmem>>, vector<2x1x10x256xbf16>,
    %c0_7 = arith.constant 0 : index
    %c1 = arith.constant 1 : index
    %c0_8 = arith.constant 0 : index
    %c0_9 = arith.constant 0 : index
    %4 = vector.load %arg9[%c0_7, %c1, %c0_8, %c0_9] : memref<2x10x10x256xbf16, #tpu.memory_space<vmem>>, vector<2x8x1x256xbf16>
    tpu.vector_store %arg9[%c0_7, %c1, %c0_8, %c0_9], %1 {strides = array<i32>} : memref<2x10x10x256xbf16, #tpu.memory_space<vmem>>, vector<2x8x1x256xbf16>,
    %c0_10 = arith.constant 0 : index
    %c1_11 = arith.constant 1 : index
    %c9_12 = arith.constant 9 : index
    %c0_13 = arith.constant 0 : index
    %5 = vector.load %arg9[%c0_10, %c1_11, %c9_12, %c0_13] : memref<2x10x10x256xbf16, #tpu.memory_space<vmem>>, vector<2x8x1x256xbf16>
    tpu.vector_store %arg9[%c0_10, %c1_11, %c9_12, %c0_13], %1 {strides = array<i32>} : memref<2x10x10x256xbf16, #tpu.memory_space<vmem>>, vector<2x8x1x256xbf16>,
    %c0_14 = arith.constant 0 : index
    %c0_15 = arith.constant 0 : index
    %c0_16 = arith.constant 0 : index
    %c0_17 = arith.constant 0 : index
    %6 = vector.load %arg1[%c0_14, %c0_15, %c0_16, %c0_17] : memref<2x8x8x256xf32, #tpu.memory_space<vmem>>, vector<2x8x8x256xf32>
    %7 = arith.truncf %6 : vector<2x8x8x256xf32> to vector<2x8x8x256xbf16>
    %c0_18 = arith.constant 0 : index
    %c1_19 = arith.constant 1 : index
    %c1_20 = arith.constant 1 : index
    %c0_21 = arith.constant 0 : index
    %8 = vector.load %arg9[%c0_18, %c1_19, %c1_20, %c0_21] : memref<2x10x10x256xbf16, #tpu.memory_space<vmem>>, vector<2x8x8x256xbf16>
    tpu.vector_store %arg9[%c0_18, %c1_19, %c1_20, %c0_21], %7 {strides = array<i32>} : memref<2x10x10x256xbf16, #tpu.memory_space<vmem>>, vector<2x8x8x256xbf16>,
    %c0_22 = arith.constant 0 : index
    %c0_23 = arith.constant 0 : index
    %c0_24 = arith.constant 0 : index
    %c0_25 = arith.constant 0 : index
    %9 = vector.load %arg9[%c0_22, %c0_23, %c0_24, %c0_25] : memref<2x10x10x256xbf16, #tpu.memory_space<vmem>>, vector<2x8x8x256xbf16>
    %10 = vector.shape_cast %9 : vector<2x8x8x256xbf16> to vector<128x256xbf16>
    %c0_26 = arith.constant 0 : index
    %c0_27 = arith.constant 0 : index
    %11 = vector.load %arg11[%c0_26, %c0_27] : memref<128x2304xbf16, #tpu.memory_space<vmem>>, vector<128x256xbf16>
    tpu.vector_store %arg11[%c0_26, %c0_27], %10 {strides = array<i32>} : memref<128x2304xbf16, #tpu.memory_space<vmem>>, vector<128x256xbf16>,
    %c0_28 = arith.constant 0 : index
    %c0_29 = arith.constant 0 : index
    %c1_30 = arith.constant 1 : index
    %c0_31 = arith.constant 0 : index
    %12 = vector.load %arg9[%c0_28, %c0_29, %c1_30, %c0_31] : memref<2x10x10x256xbf16, #tpu.memory_space<vmem>>, vector<2x8x8x256xbf16>
    %13 = vector.shape_cast %12 : vector<2x8x8x256xbf16> to vector<128x256xbf16>
    %c0_32 = arith.constant 0 : index
    %c256 = arith.constant 256 : index
    %14 = vector.load %arg11[%c0_32, %c256] : memref<128x2304xbf16, #tpu.memory_space<vmem>>, vector<128x256xbf16>
    tpu.vector_store %arg11[%c0_32, %c256], %13 {strides = array<i32>} : memref<128x2304xbf16, #tpu.memory_space<vmem>>, vector<128x256xbf16>,
    %c0_33 = arith.constant 0 : index
    %c0_34 = arith.constant 0 : index
    %c2 = arith.constant 2 : index
    %c0_35 = arith.constant 0 : index
    %15 = vector.load %arg9[%c0_33, %c0_34, %c2, %c0_35] : memref<2x10x10x256xbf16, #tpu.memory_space<vmem>>, vector<2x8x8x256xbf16>
    %16 = vector.shape_cast %15 : vector<2x8x8x256xbf16> to vector<128x256xbf16>
    %c0_36 = arith.constant 0 : index
    %c512 = arith.constant 512 : index
    %17 = vector.load %arg11[%c0_36, %c512] : memref<128x2304xbf16, #tpu.memory_space<vmem>>, vector<128x256xbf16>
    tpu.vector_store %arg11[%c0_36, %c512], %16 {strides = array<i32>} : memref<128x2304xbf16, #tpu.memory_space<vmem>>, vector<128x256xbf16>,
    %c0_37 = arith.constant 0 : index
    %c1_38 = arith.constant 1 : index
    %c0_39 = arith.constant 0 : index
    %c0_40 = arith.constant 0 : index
    %18 = vector.load %arg9[%c0_37, %c1_38, %c0_39, %c0_40] : memref<2x10x10x256xbf16, #tpu.memory_space<vmem>>, vector<2x8x8x256xbf16>
    %19 = vector.shape_cast %18 : vector<2x8x8x256xbf16> to vector<128x256xbf16>
    %c0_41 = arith.constant 0 : index
    %c768 = arith.constant 768 : index
    %20 = vector.load %arg11[%c0_41, %c768] : memref<128x2304xbf16, #tpu.memory_space<vmem>>, vector<128x256xbf16>
    tpu.vector_store %arg11[%c0_41, %c768], %19 {strides = array<i32>} : memref<128x2304xbf16, #tpu.memory_space<vmem>>, vector<128x256xbf16>,
    %c0_42 = arith.constant 0 : index
    %c1_43 = arith.constant 1 : index
    %c1_44 = arith.constant 1 : index
    %c0_45 = arith.constant 0 : index
    %21 = vector.load %arg9[%c0_42, %c1_43, %c1_44, %c0_45] : memref<2x10x10x256xbf16, #tpu.memory_space<vmem>>, vector<2x8x8x256xbf16>
    %22 = vector.shape_cast %21 : vector<2x8x8x256xbf16> to vector<128x256xbf16>
    %c0_46 = arith.constant 0 : index
    %c1024 = arith.constant 1024 : index
    %23 = vector.load %arg11[%c0_46, %c1024] : memref<128x2304xbf16, #tpu.memory_space<vmem>>, vector<128x256xbf16>
    tpu.vector_store %arg11[%c0_46, %c1024], %22 {strides = array<i32>} : memref<128x2304xbf16, #tpu.memory_space<vmem>>, vector<128x256xbf16>,
    %c0_47 = arith.constant 0 : index
    %c1_48 = arith.constant 1 : index
    %c2_49 = arith.constant 2 : index
    %c0_50 = arith.constant 0 : index
    %24 = vector.load %arg9[%c0_47, %c1_48, %c2_49, %c0_50] : memref<2x10x10x256xbf16, #tpu.memory_space<vmem>>, vector<2x8x8x256xbf16>
    %25 = vector.shape_cast %24 : vector<2x8x8x256xbf16> to vector<128x256xbf16>
    %c0_51 = arith.constant 0 : index
    %c1280 = arith.constant 1280 : index
    %26 = vector.load %arg11[%c0_51, %c1280] : memref<128x2304xbf16, #tpu.memory_space<vmem>>, vector<128x256xbf16>
    tpu.vector_store %arg11[%c0_51, %c1280], %25 {strides = array<i32>} : memref<128x2304xbf16, #tpu.memory_space<vmem>>, vector<128x256xbf16>,
    %c0_52 = arith.constant 0 : index
    %c2_53 = arith.constant 2 : index
    %c0_54 = arith.constant 0 : index
    %c0_55 = arith.constant 0 : index
    %27 = vector.load %arg9[%c0_52, %c2_53, %c0_54, %c0_55] : memref<2x10x10x256xbf16, #tpu.memory_space<vmem>>, vector<2x8x8x256xbf16>
    %28 = vector.shape_cast %27 : vector<2x8x8x256xbf16> to vector<128x256xbf16>
    %c0_56 = arith.constant 0 : index
    %c1536 = arith.constant 1536 : index
    %29 = vector.load %arg11[%c0_56, %c1536] : memref<128x2304xbf16, #tpu.memory_space<vmem>>, vector<128x256xbf16>
    tpu.vector_store %arg11[%c0_56, %c1536], %28 {strides = array<i32>} : memref<128x2304xbf16, #tpu.memory_space<vmem>>, vector<128x256xbf16>,
    %c0_57 = arith.constant 0 : index
    %c2_58 = arith.constant 2 : index
    %c1_59 = arith.constant 1 : index
    %c0_60 = arith.constant 0 : index
    %30 = vector.load %arg9[%c0_57, %c2_58, %c1_59, %c0_60] : memref<2x10x10x256xbf16, #tpu.memory_space<vmem>>, vector<2x8x8x256xbf16>
    %31 = vector.shape_cast %30 : vector<2x8x8x256xbf16> to vector<128x256xbf16>
    %c0_61 = arith.constant 0 : index
    %c1792 = arith.constant 1792 : index
    %32 = vector.load %arg11[%c0_61, %c1792] : memref<128x2304xbf16, #tpu.memory_space<vmem>>, vector<128x256xbf16>
    tpu.vector_store %arg11[%c0_61, %c1792], %31 {strides = array<i32>} : memref<128x2304xbf16, #tpu.memory_space<vmem>>, vector<128x256xbf16>,
    %c0_62 = arith.constant 0 : index
    %c2_63 = arith.constant 2 : index
    %c2_64 = arith.constant 2 : index
    %c0_65 = arith.constant 0 : index
    %33 = vector.load %arg9[%c0_62, %c2_63, %c2_64, %c0_65] : memref<2x10x10x256xbf16, #tpu.memory_space<vmem>>, vector<2x8x8x256xbf16>
    %34 = vector.shape_cast %33 : vector<2x8x8x256xbf16> to vector<128x256xbf16>
    %c0_66 = arith.constant 0 : index
    %c2048 = arith.constant 2048 : index
    %35 = vector.load %arg11[%c0_66, %c2048] : memref<128x2304xbf16, #tpu.memory_space<vmem>>, vector<128x256xbf16>
    tpu.vector_store %arg11[%c0_66, %c2048], %34 {strides = array<i32>} : memref<128x2304xbf16, #tpu.memory_space<vmem>>, vector<128x256xbf16>,
    %c0_67 = arith.constant 0 : index
    %c0_68 = arith.constant 0 : index
    %36 = vector.load %arg11[%c0_67, %c0_68] : memref<128x2304xbf16, #tpu.memory_space<vmem>>, vector<128x2304xbf16>
    %c0_69 = arith.constant 0 : index
    %c0_70 = arith.constant 0 : index
    %37 = vector.load %arg2[%c0_69, %c0_70] : memref<2304x256xbf16, #tpu.memory_space<vmem>>, vector<2304x256xbf16>
    %cst_71 = arith.constant dense<0.000000e+00> : vector<128x256xf32>
    %38 = tpu.matmul %36, %37, %cst_71 {dimension_numbers = #tpu.dot_dimension_numbers<[1], [0], [0], [1], [0, 0, 1, 1], [], []>} : vector<128x2304xbf16>, vector<2304x256xbf16>, vector<128x256xf32> -> vector<128x256xf32>
    %c0_72 = arith.constant 0 : index
    %c0_73 = arith.constant 0 : index
    %39 = vector.load %arg4[%c0_72, %c0_73] : memref<1x256xf32, #tpu.memory_space<vmem>>, vector<1x256xf32>
    %40 = vector.shape_cast %39 : vector<1x256xf32> to vector<256xf32>
    %41 = vector.shape_cast %40 : vector<256xf32> to vector<1x256xf32>
    %42 = vector.broadcast %41 : vector<1x256xf32> to vector<128x256xf32>
    %43 = arith.mulf %38, %42 : vector<128x256xf32>
    %c0_74 = arith.constant 0 : index
    %c0_75 = arith.constant 0 : index
    %44 = vector.load %arg5[%c0_74, %c0_75] : memref<1x256xf32, #tpu.memory_space<vmem>>, vector<1x256xf32>
    %45 = vector.shape_cast %44 : vector<1x256xf32> to vector<256xf32>
    %46 = vector.shape_cast %45 : vector<256xf32> to vector<1x256xf32>
    %47 = vector.broadcast %46 : vector<1x256xf32> to vector<128x256xf32>
    %48 = arith.addf %43, %47 : vector<128x256xf32>
    %cst_76 = arith.constant 0.000000e+00 : f32
    %49 = vector.broadcast %cst_76 : f32 to vector<128x256xf32>
    %50 = arith.maximumf %48, %49 : vector<128x256xf32>
    %cst_77 = arith.constant 0.000000e+00 : bf16
    %51 = vector.broadcast %cst_77 : bf16 to vector<2x1x10x256xbf16>
    %cst_78 = arith.constant 0.000000e+00 : bf16
    %52 = vector.broadcast %cst_78 : bf16 to vector<2x8x1x256xbf16>
    %c0_79 = arith.constant 0 : index
    %c0_80 = arith.constant 0 : index
    %c0_81 = arith.constant 0 : index
    %c0_82 = arith.constant 0 : index
    %53 = vector.load %arg10[%c0_79, %c0_80, %c0_81, %c0_82] : memref<2x10x10x256xbf16, #tpu.memory_space<vmem>>, vector<2x1x10x256xbf16>
    tpu.vector_store %arg10[%c0_79, %c0_80, %c0_81, %c0_82], %51 {strides = array<i32>} : memref<2x10x10x256xbf16, #tpu.memory_space<vmem>>, vector<2x1x10x256xbf16>,
    %c0_83 = arith.constant 0 : index
    %c9_84 = arith.constant 9 : index
    %c0_85 = arith.constant 0 : index
    %c0_86 = arith.constant 0 : index
    %54 = vector.load %arg10[%c0_83, %c9_84, %c0_85, %c0_86] : memref<2x10x10x256xbf16, #tpu.memory_space<vmem>>, vector<2x1x10x256xbf16>
    tpu.vector_store %arg10[%c0_83, %c9_84, %c0_85, %c0_86], %51 {strides = array<i32>} : memref<2x10x10x256xbf16, #tpu.memory_space<vmem>>, vector<2x1x10x256xbf16>,
    %c0_87 = arith.constant 0 : index
    %c1_88 = arith.constant 1 : index
    %c0_89 = arith.constant 0 : index
    %c0_90 = arith.constant 0 : index
    %55 = vector.load %arg10[%c0_87, %c1_88, %c0_89, %c0_90] : memref<2x10x10x256xbf16, #tpu.memory_space<vmem>>, vector<2x8x1x256xbf16>
    tpu.vector_store %arg10[%c0_87, %c1_88, %c0_89, %c0_90], %52 {strides = array<i32>} : memref<2x10x10x256xbf16, #tpu.memory_space<vmem>>, vector<2x8x1x256xbf16>,
    %c0_91 = arith.constant 0 : index
    %c1_92 = arith.constant 1 : index
    %c9_93 = arith.constant 9 : index
    %c0_94 = arith.constant 0 : index
    %56 = vector.load %arg10[%c0_91, %c1_92, %c9_93, %c0_94] : memref<2x10x10x256xbf16, #tpu.memory_space<vmem>>, vector<2x8x1x256xbf16>
    tpu.vector_store %arg10[%c0_91, %c1_92, %c9_93, %c0_94], %52 {strides = array<i32>} : memref<2x10x10x256xbf16, #tpu.memory_space<vmem>>, vector<2x8x1x256xbf16>,
    %57 = vector.shape_cast %50 : vector<128x256xf32> to vector<2x8x8x256xf32>
    %58 = arith.truncf %57 : vector<2x8x8x256xf32> to vector<2x8x8x256xbf16>
    %c0_95 = arith.constant 0 : index
    %c1_96 = arith.constant 1 : index
    %c1_97 = arith.constant 1 : index
    %c0_98 = arith.constant 0 : index
    %59 = vector.load %arg10[%c0_95, %c1_96, %c1_97, %c0_98] : memref<2x10x10x256xbf16, #tpu.memory_space<vmem>>, vector<2x8x8x256xbf16>
    tpu.vector_store %arg10[%c0_95, %c1_96, %c1_97, %c0_98], %58 {strides = array<i32>} : memref<2x10x10x256xbf16, #tpu.memory_space<vmem>>, vector<2x8x8x256xbf16>,
    %c0_99 = arith.constant 0 : index
    %c0_100 = arith.constant 0 : index
    %c0_101 = arith.constant 0 : index
    %c0_102 = arith.constant 0 : index
    %60 = vector.load %arg10[%c0_99, %c0_100, %c0_101, %c0_102] : memref<2x10x10x256xbf16, #tpu.memory_space<vmem>>, vector<2x8x8x256xbf16>
    %61 = vector.shape_cast %60 : vector<2x8x8x256xbf16> to vector<128x256xbf16>
    %c0_103 = arith.constant 0 : index
    %c0_104 = arith.constant 0 : index
    %62 = vector.load %arg11[%c0_103, %c0_104] : memref<128x2304xbf16, #tpu.memory_space<vmem>>, vector<128x256xbf16>
    tpu.vector_store %arg11[%c0_103, %c0_104], %61 {strides = array<i32>} : memref<128x2304xbf16, #tpu.memory_space<vmem>>, vector<128x256xbf16>,
    %c0_105 = arith.constant 0 : index
    %c0_106 = arith.constant 0 : index
    %c1_107 = arith.constant 1 : index
    %c0_108 = arith.constant 0 : index
    %63 = vector.load %arg10[%c0_105, %c0_106, %c1_107, %c0_108] : memref<2x10x10x256xbf16, #tpu.memory_space<vmem>>, vector<2x8x8x256xbf16>
    %64 = vector.shape_cast %63 : vector<2x8x8x256xbf16> to vector<128x256xbf16>
    %c0_109 = arith.constant 0 : index
    %c256_110 = arith.constant 256 : index
    %65 = vector.load %arg11[%c0_109, %c256_110] : memref<128x2304xbf16, #tpu.memory_space<vmem>>, vector<128x256xbf16>
    tpu.vector_store %arg11[%c0_109, %c256_110], %64 {strides = array<i32>} : memref<128x2304xbf16, #tpu.memory_space<vmem>>, vector<128x256xbf16>,
    %c0_111 = arith.constant 0 : index
    %c0_112 = arith.constant 0 : index
    %c2_113 = arith.constant 2 : index
    %c0_114 = arith.constant 0 : index
    %66 = vector.load %arg10[%c0_111, %c0_112, %c2_113, %c0_114] : memref<2x10x10x256xbf16, #tpu.memory_space<vmem>>, vector<2x8x8x256xbf16>
    %67 = vector.shape_cast %66 : vector<2x8x8x256xbf16> to vector<128x256xbf16>
    %c0_115 = arith.constant 0 : index
    %c512_116 = arith.constant 512 : index
    %68 = vector.load %arg11[%c0_115, %c512_116] : memref<128x2304xbf16, #tpu.memory_space<vmem>>, vector<128x256xbf16>
    tpu.vector_store %arg11[%c0_115, %c512_116], %67 {strides = array<i32>} : memref<128x2304xbf16, #tpu.memory_space<vmem>>, vector<128x256xbf16>,
    %c0_117 = arith.constant 0 : index
    %c1_118 = arith.constant 1 : index
    %c0_119 = arith.constant 0 : index
    %c0_120 = arith.constant 0 : index
    %69 = vector.load %arg10[%c0_117, %c1_118, %c0_119, %c0_120] : memref<2x10x10x256xbf16, #tpu.memory_space<vmem>>, vector<2x8x8x256xbf16>
    %70 = vector.shape_cast %69 : vector<2x8x8x256xbf16> to vector<128x256xbf16>
    %c0_121 = arith.constant 0 : index
    %c768_122 = arith.constant 768 : index
    %71 = vector.load %arg11[%c0_121, %c768_122] : memref<128x2304xbf16, #tpu.memory_space<vmem>>, vector<128x256xbf16>
    tpu.vector_store %arg11[%c0_121, %c768_122], %70 {strides = array<i32>} : memref<128x2304xbf16, #tpu.memory_space<vmem>>, vector<128x256xbf16>,
    %c0_123 = arith.constant 0 : index
    %c1_124 = arith.constant 1 : index
    %c1_125 = arith.constant 1 : index
    %c0_126 = arith.constant 0 : index
    %72 = vector.load %arg10[%c0_123, %c1_124, %c1_125, %c0_126] : memref<2x10x10x256xbf16, #tpu.memory_space<vmem>>, vector<2x8x8x256xbf16>
    %73 = vector.shape_cast %72 : vector<2x8x8x256xbf16> to vector<128x256xbf16>
    %c0_127 = arith.constant 0 : index
    %c1024_128 = arith.constant 1024 : index
    %74 = vector.load %arg11[%c0_127, %c1024_128] : memref<128x2304xbf16, #tpu.memory_space<vmem>>, vector<128x256xbf16>
    tpu.vector_store %arg11[%c0_127, %c1024_128], %73 {strides = array<i32>} : memref<128x2304xbf16, #tpu.memory_space<vmem>>, vector<128x256xbf16>,
    %c0_129 = arith.constant 0 : index
    %c1_130 = arith.constant 1 : index
    %c2_131 = arith.constant 2 : index
    %c0_132 = arith.constant 0 : index
    %75 = vector.load %arg10[%c0_129, %c1_130, %c2_131, %c0_132] : memref<2x10x10x256xbf16, #tpu.memory_space<vmem>>, vector<2x8x8x256xbf16>
    %76 = vector.shape_cast %75 : vector<2x8x8x256xbf16> to vector<128x256xbf16>
    %c0_133 = arith.constant 0 : index
    %c1280_134 = arith.constant 1280 : index
    %77 = vector.load %arg11[%c0_133, %c1280_134] : memref<128x2304xbf16, #tpu.memory_space<vmem>>, vector<128x256xbf16>
    tpu.vector_store %arg11[%c0_133, %c1280_134], %76 {strides = array<i32>} : memref<128x2304xbf16, #tpu.memory_space<vmem>>, vector<128x256xbf16>,
    %c0_135 = arith.constant 0 : index
    %c2_136 = arith.constant 2 : index
    %c0_137 = arith.constant 0 : index
    %c0_138 = arith.constant 0 : index
    %78 = vector.load %arg10[%c0_135, %c2_136, %c0_137, %c0_138] : memref<2x10x10x256xbf16, #tpu.memory_space<vmem>>, vector<2x8x8x256xbf16>
    %79 = vector.shape_cast %78 : vector<2x8x8x256xbf16> to vector<128x256xbf16>
    %c0_139 = arith.constant 0 : index
    %c1536_140 = arith.constant 1536 : index
    %80 = vector.load %arg11[%c0_139, %c1536_140] : memref<128x2304xbf16, #tpu.memory_space<vmem>>, vector<128x256xbf16>
    tpu.vector_store %arg11[%c0_139, %c1536_140], %79 {strides = array<i32>} : memref<128x2304xbf16, #tpu.memory_space<vmem>>, vector<128x256xbf16>,
    %c0_141 = arith.constant 0 : index
    %c2_142 = arith.constant 2 : index
    %c1_143 = arith.constant 1 : index
    %c0_144 = arith.constant 0 : index
    %81 = vector.load %arg10[%c0_141, %c2_142, %c1_143, %c0_144] : memref<2x10x10x256xbf16, #tpu.memory_space<vmem>>, vector<2x8x8x256xbf16>
    %82 = vector.shape_cast %81 : vector<2x8x8x256xbf16> to vector<128x256xbf16>
    %c0_145 = arith.constant 0 : index
    %c1792_146 = arith.constant 1792 : index
    %83 = vector.load %arg11[%c0_145, %c1792_146] : memref<128x2304xbf16, #tpu.memory_space<vmem>>, vector<128x256xbf16>
    tpu.vector_store %arg11[%c0_145, %c1792_146], %82 {strides = array<i32>} : memref<128x2304xbf16, #tpu.memory_space<vmem>>, vector<128x256xbf16>,
    %c0_147 = arith.constant 0 : index
    %c2_148 = arith.constant 2 : index
    %c2_149 = arith.constant 2 : index
    %c0_150 = arith.constant 0 : index
    %84 = vector.load %arg10[%c0_147, %c2_148, %c2_149, %c0_150] : memref<2x10x10x256xbf16, #tpu.memory_space<vmem>>, vector<2x8x8x256xbf16>
    %85 = vector.shape_cast %84 : vector<2x8x8x256xbf16> to vector<128x256xbf16>
    %c0_151 = arith.constant 0 : index
    %c2048_152 = arith.constant 2048 : index
    %86 = vector.load %arg11[%c0_151, %c2048_152] : memref<128x2304xbf16, #tpu.memory_space<vmem>>, vector<128x256xbf16>
    tpu.vector_store %arg11[%c0_151, %c2048_152], %85 {strides = array<i32>} : memref<128x2304xbf16, #tpu.memory_space<vmem>>, vector<128x256xbf16>,
    %c0_153 = arith.constant 0 : index
    %c0_154 = arith.constant 0 : index
    %87 = vector.load %arg11[%c0_153, %c0_154] : memref<128x2304xbf16, #tpu.memory_space<vmem>>, vector<128x2304xbf16>
    %c0_155 = arith.constant 0 : index
    %c0_156 = arith.constant 0 : index
    %88 = vector.load %arg3[%c0_155, %c0_156] : memref<2304x256xbf16, #tpu.memory_space<vmem>>, vector<2304x256xbf16>
    %cst_157 = arith.constant dense<0.000000e+00> : vector<128x256xf32>
    %89 = tpu.matmul %87, %88, %cst_157 {dimension_numbers = #tpu.dot_dimension_numbers<[1], [0], [0], [1], [0, 0, 1, 1], [], []>} : vector<128x2304xbf16>, vector<2304x256xbf16>, vector<128x256xf32> -> vector<128x256xf32>
    %c0_158 = arith.constant 0 : index
    %c0_159 = arith.constant 0 : index
    %c0_160 = arith.constant 0 : index
    %c0_161 = arith.constant 0 : index
    %90 = vector.load %arg1[%c0_158, %c0_159, %c0_160, %c0_161] : memref<2x8x8x256xf32, #tpu.memory_space<vmem>>, vector<2x8x8x256xf32>
    %91 = vector.shape_cast %90 : vector<2x8x8x256xf32> to vector<128x256xf32>
    %c0_162 = arith.constant 0 : index
    %c0_163 = arith.constant 0 : index
    %92 = vector.load %arg6[%c0_162, %c0_163] : memref<1x256xf32, #tpu.memory_space<vmem>>, vector<1x256xf32>
    %93 = vector.shape_cast %92 : vector<1x256xf32> to vector<256xf32>
    %94 = vector.shape_cast %93 : vector<256xf32> to vector<1x256xf32>
    %95 = vector.broadcast %94 : vector<1x256xf32> to vector<128x256xf32>
    %96 = arith.mulf %89, %95 : vector<128x256xf32>
    %c0_164 = arith.constant 0 : index
    %c0_165 = arith.constant 0 : index
    %97 = vector.load %arg7[%c0_164, %c0_165] : memref<1x256xf32, #tpu.memory_space<vmem>>, vector<1x256xf32>
    %98 = vector.shape_cast %97 : vector<1x256xf32> to vector<256xf32>
    %99 = vector.shape_cast %98 : vector<256xf32> to vector<1x256xf32>
    %100 = vector.broadcast %99 : vector<1x256xf32> to vector<128x256xf32>
    %101 = arith.addf %96, %100 : vector<128x256xf32>
    %102 = arith.addf %101, %91 : vector<128x256xf32>
    %cst_166 = arith.constant 0.000000e+00 : f32
    %103 = vector.broadcast %cst_166 : f32 to vector<128x256xf32>
    %104 = arith.maximumf %102, %103 : vector<128x256xf32>
    %105 = vector.shape_cast %104 : vector<128x256xf32> to vector<2x8x8x256xf32>
    %c0_167 = arith.constant 0 : index
    %c0_168 = arith.constant 0 : index
    %c0_169 = arith.constant 0 : index
    %c0_170 = arith.constant 0 : index
    %106 = vector.load %arg8[%c0_167, %c0_168, %c0_169, %c0_170] : memref<2x8x8x256xf32, #tpu.memory_space<vmem>>, vector<2x8x8x256xf32>
    tpu.vector_store %arg8[%c0_167, %c0_168, %c0_169, %c0_170], %105 {strides = array<i32>} : memref<2x8x8x256xf32, #tpu.memory_space<vmem>>, vector<2x8x8x256xf32>,
    return
  }
  func.func @transform_0(%arg0: i32) -> (i32, i32, i32, i32) {
    %c0_i32 = arith.constant 0 : i32
    %c0_i32_0 = arith.constant 0 : i32
    %c0_i32_1 = arith.constant 0 : i32
    %c0_i32_2 = arith.constant 0 : i32
    return %arg0, %c0_i32, %c0_i32_0, %c0_i32_1 : i32, i32, i32, i32
  }
  func.func @transform_1(%arg0: i32) -> (i32, i32) {
    %c0_i32 = arith.constant 0 : i32
    %c0_i32_0 = arith.constant 0 : i32
    %c0_i32_1 = arith.constant 0 : i32
    return %c0_i32, %c0_i32_0 : i32, i32
  }
  func.func @transform_2(%arg0: i32) -> (i32, i32) {
    %c0_i32 = arith.constant 0 : i32
    %c0_i32_0 = arith.constant 0 : i32
    %c0_i32_1 = arith.constant 0 : i32
    return %c0_i32, %c0_i32_0 : i32, i32
  }
  func.func @transform_3(%arg0: i32) -> (i32, i32) {
    %c0_i32 = arith.constant 0 : i32
    %c0_i32_0 = arith.constant 0 : i32
    %c0_i32_1 = arith.constant 0 : i32
    return %c0_i32, %c0_i32_0 : i32, i32
  }
  func.func @transform_4(%arg0: i32) -> (i32, i32) {
    %c0_i32 = arith.constant 0 : i32
    %c0_i32_0 = arith.constant 0 : i32
    %c0_i32_1 = arith.constant 0 : i32
    return %c0_i32, %c0_i32_0 : i32, i32
  }
  func.func @transform_5(%arg0: i32) -> (i32, i32) {
    %c0_i32 = arith.constant 0 : i32
    %c0_i32_0 = arith.constant 0 : i32
    %c0_i32_1 = arith.constant 0 : i32
    return %c0_i32, %c0_i32_0 : i32, i32
  }
  func.func @transform_6(%arg0: i32) -> (i32, i32) {
    %c0_i32 = arith.constant 0 : i32
    %c0_i32_0 = arith.constant 0 : i32
    %c0_i32_1 = arith.constant 0 : i32
    return %c0_i32, %c0_i32_0 : i32, i32
  }
  func.func @transform_7(%arg0: i32) -> (i32, i32, i32, i32) {
    %c0_i32 = arith.constant 0 : i32
    %c0_i32_0 = arith.constant 0 : i32
    %c0_i32_1 = arith.constant 0 : i32
    %c0_i32_2 = arith.constant 0 : i32
    return %arg0, %c0_i32, %c0_i32_0, %c0_i32_1 : i32, i32, i32, i32
  }
}

</mosaic_0001>

<bundles_post_ra>
// kernel: a_call__.1
= control target key start
LH: loop header
LB: loop body
LE: loop exit
PB: predicated region body
PF: predicated region fallthrough
CT: control target
= control target key end

     0   :  { %12 = vsyncpa [#allocation6], 0  ;;  %s17044_s0 = inlined_call_operand.hbm [shape: f32[2,8,8,256], index: 0, kind: input, shape index: {}]   ;;  %s17045_s1 = inlined_call_operand.hbm [shape: bf16[2304,256], index: 1, kind: input, shape index: {}]   ;;  %s17046_s2 = inlined_call_operand.hbm [shape: bf16[2304,256], index: 2, kind: input, shape index: {}]   ;;  %s17047_s3 = inlined_call_operand.hbm [shape: f32[1,256], index: 3, kind: input, shape index: {}]   ;;  %s17048_s4 = inlined_call_operand.hbm [shape: f32[1,256], index: 4, kind: input, shape index: {}]   ;;  %s17049_s5 = inlined_call_operand.vmem [shape: f32[1,256], index: 5, kind: input, shape index: {}]   ;;  %s17050_s6 = inlined_call_operand.hbm [shape: f32[1,256], index: 6, kind: input, shape index: {}]   ;;  %s17051_s7 = inlined_call_operand.hbm [shape: f32[2,8,8,256], index: 7, kind: output, shape index: {}]  }
   0x1   :  { %13 = vsyncpa [#allocation9], 0 }
   0x2   :  { %14 = vsyncpa [#allocation12], 0 }
   0x3   :  { %15 = vsyncpa [#allocation15], 0 }
   0x4   :  { %16 = vsyncpa [#allocation7], 0  ;;  %s13658_s24 = smov [#allocation8]  }
   0x5   :  { %s34_s25 = sshll.u32 %s13658_s24, 4  ;;  %s35_s25 = int_to_ptr.vmem [resolvable:$true] %s34_s25 }
   0x6   :  { %s13516_s26 = scalar_lea.vmem %s35_s25, 36864  ;;  %p13521_p1 = scmp.lt.s32.totalorder %s35_s25, %s35_s25 }
   0x7   :  { %p13517_p0 = scmp.ne.s32.totalorder %s35_s25, %s13516_s26  ;;  %p13522_p2 = scmp.lt.s32.totalorder %s13516_s26, %s13516_s26 }
   0x9   :  { %p13523_p3 = por %p13522_p2, %p13521_p1 }
   0xb   :  { %p13524_p4 = pnand %p13523_p3, %p13517_p0 }
   0xd   :  { %13527 = shalt.err (!%p13524_p4)
}
   0xe   :  { %s13659_s27 = smov 128   ;;  %s13660_s28 = smov 8  }
   0xf   :  { %40 = dma.hbm_to_vmem [thread:$0]  %s17045_s1, 36864, %s35_s25, [#allocation9], %s13659_s27, %s13659_s27, %s13660_s28  }
  0x10   :  { %s13661_s8 = smov [#allocation11]   ;;  %s13662_s10 = smov [#allocation5]  }
  0x11   :  { %s59_s9 = sshll.u32 %s13661_s8, 4  ;;  %s22_s11 = sshll.u32 %s13662_s10, 4  ;;  %s60_s9 = int_to_ptr.vmem [resolvable:$true] %s59_s9  ;;  %s23_s11 = int_to_ptr.vmem [resolvable:$true] %s22_s11 }
  0x12   :  { %s13536_s12 = scalar_lea.vmem %s60_s9, 32  ;;  %p13541_p6 = scmp.lt.s32.totalorder %s60_s9, %s60_s9 }
  0x13   :  { %p13537_p5 = scmp.ne.s32.totalorder %s60_s9, %s13536_s12  ;;  %p13542_p7 = scmp.lt.s32.totalorder %s13536_s12, %s13536_s12 }
  0x15   :  { %p13543_p8 = por %p13542_p7, %p13541_p6 }
  0x17   :  { %p13544_p9 = pnand %p13543_p8, %p13537_p5 }
  0x19   :  { %13547 = shalt.err (!%p13544_p9)
}
  0x1a   :  { %62 = dma.hbm_to_vmem [thread:$0]  %s17047_s3, 32, %s60_s9, [#allocation12]  }
  0x1b   :  { %s13556_s15 = scalar_lea.vmem %s23_s11, 4096  ;;  %p13561_p11 = scmp.lt.s32.totalorder %s23_s11, %s23_s11 }
  0x1c   :  { %p13557_p10 = scmp.ne.s32.totalorder %s23_s11, %s13556_s15  ;;  %p13562_p12 = scmp.lt.s32.totalorder %s13556_s15, %s13556_s15 }
  0x1e   :  { %p13563_p13 = por %p13562_p12, %p13561_p11 }
  0x20   :  { %p13564_p0 = pnand %p13563_p13, %p13557_p10 }
  0x22   :  { %13567 = shalt.err (!%p13564_p0)
}
  0x23   :  { %s13663_s1 = smov 256   ;;  %s13664_s16 = smov 16  }
  0x24   :  { %28 = dma.hbm_to_vmem [thread:$0]  %s17044_s0, 4096, %s23_s11, [#allocation6], %s13663_s1, %s13663_s1, %s13664_s16  }
  0x25   :  { %s13665_s19 = smov [#allocation10]   ;;  %s13666_s3 = smov [#allocation13]  }
  0x26   :  { %s46_s20 = sshll.u32 %s13665_s19, 4  ;;  %s69_s21 = sshll.u32 %s13666_s3, 4  ;;  %s47_s20 = int_to_ptr.vmem [resolvable:$true] %s46_s20  ;;  %s70_s21 = int_to_ptr.vmem [resolvable:$true] %s69_s21 }
  0x27   :  { %s13576_s22 = scalar_lea.vmem %s47_s20, 36864  ;;  %p13581_p2 = scmp.lt.s32.totalorder %s47_s20, %s47_s20 }
  0x28   :  { %p13577_p1 = scmp.ne.s32.totalorder %s47_s20, %s13576_s22  ;;  %p13582_p3 = scmp.lt.s32.totalorder %s13576_s22, %s13576_s22 }
  0x2a   :  { %p13583_p4 = por %p13582_p3, %p13581_p2 }
  0x2c   :  { %p13584_p5 = pnand %p13583_p4, %p13577_p1 }
  0x2e   :  { %13587 = shalt.err (!%p13584_p5)
}
  0x2f   :  { %52 = dma.hbm_to_vmem [thread:$0]  %s17046_s2, 36864, %s47_s20, [#allocation9], %s13659_s27, %s13659_s27, %s13660_s28  }
  0x30   :  { %s13596_s0 = scalar_lea.vmem %s70_s21, 32  ;;  %p13601_p7 = scmp.lt.s32.totalorder %s70_s21, %s70_s21 }
  0x31   :  { %p13597_p6 = scmp.ne.s32.totalorder %s70_s21, %s13596_s0  ;;  %p13602_p8 = scmp.lt.s32.totalorder %s13596_s0, %s13596_s0 }
  0x33   :  { %p13603_p9 = por %p13602_p8, %p13601_p7 }
  0x35   :  { %p13604_p10 = pnand %p13603_p9, %p13597_p6 }
  0x37   :  { %13607 = shalt.err (!%p13604_p10)
}
  0x38   :  { %72 = dma.hbm_to_vmem [thread:$0]  %s17048_s4, 32, %s70_s21, [#allocation12]  }
  0x39   :  { %s13667_s29 = smov [#allocation14]  }
  0x3a   :  { %s81_s30 = sshll.u32 %s13667_s29, 4  ;;  %s82_s30 = int_to_ptr.vmem [resolvable:$true] %s81_s30 }
  0x3b   :  { %s13616_s8 = scalar_lea.vmem %s82_s30, 32  ;;  %p13621_p12 = scmp.lt.s32.totalorder %s82_s30, %s82_s30 }
  0x3c   :  { %p13617_p11 = scmp.ne.s32.totalorder %s82_s30, %s13616_s8  ;;  %p13622_p13 = scmp.lt.s32.totalorder %s13616_s8, %s13616_s8 }
  0x3e   :  { %p13623_p0 = por %p13622_p13, %p13621_p12 }
  0x40   :  { %p13624_p1 = pnand %p13623_p0, %p13617_p11 }
  0x42   :  { %13627 = shalt.err (!%p13624_p1)
}
  0x43   :  { %84 = dma.hbm_to_vmem [thread:$0]  %s17050_s6, 32, %s82_s30, [#allocation15]  }
  0x44   :  { %13648 = dma.done.wait [#allocation6], 4096  }
  0x45   :  { %13649 = vsyncadd [#allocation6], 4294963200 }
  0x46   :  { %13650 = dma.done.wait [#allocation9], 73728  }
  0x47   :  { %13651 = vsyncadd [#allocation9], 4294893568 }
  0x48   :  { %13652 = dma.done.wait [#allocation12], 64  }
  0x49   :  { %13653 = vsyncadd [#allocation12], 4294967232 }
  0x4a   :  { %13654 = dma.done.wait [#allocation15], 32  }
  0x4b   :  { %13655 = vsyncadd [#allocation15], 4294967264  ;;  %v13668_v0 = vmov 0   ;;  %v12599_v1 = vld [vmem:[#allocation8 + $0x74] ss:$8 sps:$4 sm:$0xff]   ;;  %vm114_vm2 = vcmask 1040384  }
  0x4c   :  { %104 = vst [vmem:[#allocation2 + $0x110] sm:$0xff] %v13668_v0  ;;  %105 = vst [vmem:[#allocation2 + $0x38] sm:$0x11] %v13668_v0  ;;  %v12601_v2 = vld [vmem:[#allocation8 + $0x174] ss:$8 sps:$4 sm:$0xff]   ;;  %4666 = vmatprep.subr.bf16.mxu0 %v12599_v1  ;;  %vm117_vm4 = vcmask 1044484  }
  0x4d   :  { %106 = vst [vmem:[#allocation2 + $0xa0] sm:$0xff] %v13668_v0  ;;  %107 = vst [vmem:[#allocation2 + $0x20] sm:$0x11] %v13668_v0  ;;  %v12603_v3 = vld [vmem:[#allocation8 + $0x70] ss:$8 sps:$4 sm:$0xff]   ;;  %4779 = vmatprep.subr.bf16.mxu1 %v12601_v2  ;;  %v17067_v39 = vmov 0 }
  0x4e   :  { %109 = vst [vmem:[#allocation2 + $0xf8] sm:$0xff] %v13668_v0  ;;  %110 = vst [vmem:[#allocation2 + $0x138] sm:$0x11] %v13668_v0  ;;  %v12604_v4 = vld [vmem:[#allocation8 + $0x170] ss:$8 sps:$4 sm:$0xff]   ;;  %4667 = vmatpush1.bf16.msra.mxu0 %v12603_v3  ;;  %vm526_vm12 = vcmask 1043456  }
  0x4f   :  { %111 = vst [vmem:[#allocation2 + $0x88] sm:$0xff] %v13668_v0  ;;  %112 = vst [vmem:[#allocation2 + $0xb8] sm:$0x11] %v13668_v0  ;;  %v12605_v5 = vld [vmem:[#allocation8 + $0x64] ss:$8 sps:$4 sm:$0xff]   ;;  %4780 = vmatpush1.bf16.msra.mxu1 %v12604_v4  ;;  %vm528_vm13 = vcmask 1047556  }
  0x50   :  { %5803 = vst [vmem:[#allocation3 + $0x100] sm:$0xff] %v13668_v0  ;;  %5804 = vst [vmem:[#allocation3 + $0x118] sm:$0x11] %v13668_v0  ;;  %v12607_v6 = vld [vmem:[#allocation8 + $0x164] ss:$8 sps:$4 sm:$0xff]   ;;  %4668 = vmatprep.subr.bf16.mxu0 %v12605_v5  ;;  %v17074_v5 = vmov 0 }
  0x51   :  { %5805 = vst [vmem:[#allocation3 + $0x60] sm:$0xff] %v13668_v0  ;;  %5806 = vst [vmem:[#allocation3 + $0xd0] sm:$0x11] %v13668_v0  ;;  %v12609_v7 = vld [vmem:[#allocation8 + $0x60] ss:$8 sps:$4 sm:$0xff]   ;;  %4781 = vmatprep.subr.bf16.mxu1 %v12607_v6  ;;  %v697_v6 = vrot.slane %v13668_v0, 4 }
  0x52   :  { %5808 = vst [vmem:[#allocation3 + $0xf0] sm:$0xff] %v13668_v0  ;;  %5809 = vst [vmem:[#allocation3 + $0x48] sm:$0x11] %v13668_v0  ;;  %v12610_v8 = vld [vmem:[#allocation8 + $0x160] ss:$8 sps:$4 sm:$0xff]   ;;  %4669 = vmatpush1.bf16.msra.mxu0 %v12609_v7  ;;  %v700_v7 = vrot.slane %v13668_v0, 5 }
  0x53   :  { %5810 = vst [vmem:[#allocation3 + $0x68] sm:$0xff] %v13668_v0  ;;  %5811 = vst [vmem:[#allocation3 + $0x110] sm:$0x11] %v13668_v0  ;;  %v12611_v9 = vld [vmem:[#allocation8 + $0x54] ss:$8 sps:$4 sm:$0xff]   ;;  %4782 = vmatpush1.bf16.msra.mxu1 %v12610_v8  ;;  %v222_v53 = vld [vmem:[#allocation5] sm:$0xff] }
  0x54   :  { %v12613_v10 = vld [vmem:[#allocation8 + $0x154] ss:$8 sps:$4 sm:$0xff]   ;;  %v12615_v11 = vld [vmem:[#allocation8 + $0x50] ss:$8 sps:$4 sm:$0xff]   ;;  %v12617_v13 = vld [vmem:[#allocation8 + $0x44] ss:$8 sps:$4 sm:$0xff]   ;;  %4670 = vmatprep.subr.bf16.mxu0 %v12611_v9 }
  0x55   :  { %v12616_v12 = vld [vmem:[#allocation8 + $0x150] ss:$8 sps:$4 sm:$0xff]   ;;  %4783 = vmatprep.subr.bf16.mxu1 %v12613_v10  ;;  %v12619_v14 = vld [vmem:[#allocation8 + $0x144] ss:$8 sps:$4 sm:$0xff]   ;;  %v12621_v15 = vld [vmem:[#allocation8 + $0x40] ss:$8 sps:$4 sm:$0xff]  }
  0x56   :  { %4671 = vmatpush1.bf16.msra.mxu0 %v12615_v11  ;;  %v12622_v16 = vld [vmem:[#allocation8 + $0x140] ss:$8 sps:$4 sm:$0xff]   ;;  %v12623_v17 = vld [vmem:[#allocation8 + $0x34] ss:$8 sps:$4 sm:$0xff]   ;;  %v12627_v19 = vld [vmem:[#allocation8 + $0x30] ss:$8 sps:$4 sm:$0xff]  }
  0x57   :  { %4784 = vmatpush1.bf16.msra.mxu1 %v12616_v12  ;;  %4672 = vmatprep.subr.bf16.mxu0 %v12617_v13  ;;  %v12625_v18 = vld [vmem:[#allocation8 + $0x134] ss:$8 sps:$4 sm:$0xff]   ;;  %v12628_v20 = vld [vmem:[#allocation8 + $0x130] ss:$8 sps:$4 sm:$0xff]   ;;  %v12629_v21 = vld [vmem:[#allocation8 + $0x24] ss:$8 sps:$4 sm:$0xff]  }
  0x58   :  { %4785 = vmatprep.subr.bf16.mxu1 %v12619_v14  ;;  %v12631_v22 = vld [vmem:[#allocation8 + $0x124] ss:$8 sps:$4 sm:$0xff]   ;;  %v12633_v23 = vld [vmem:[#allocation8 + $0x20] ss:$8 sps:$4 sm:$0xff]   ;;  %v12635_v25 = vld [vmem:[#allocation8 + $0x14] ss:$8 sps:$4 sm:$0xff]  }
  0x59   :  { %v12634_v24 = vld [vmem:[#allocation8 + $0x120] ss:$8 sps:$4 sm:$0xff]   ;;  %v12637_v26 = vld [vmem:[#allocation8 + $0x114] ss:$8 sps:$4 sm:$0xff]   ;;  %v12639_v27 = vld [vmem:[#allocation8 + $0x10] ss:$8 sps:$4 sm:$0xff]  }
  0x5a   :  { %4673 = vmatpush1.bf16.msra.mxu0 %v12621_v15  ;;  %v12640_v28 = vld [vmem:[#allocation8 + $0x110] ss:$8 sps:$4 sm:$0xff]   ;;  %v12641_v29 = vld [vmem:[#allocation8 + $0x4] ss:$8 sps:$4 sm:$0xff]   ;;  %vm115_vm0 = vsmask.f32 256 }
  0x5b   :  { %4786 = vmatpush1.bf16.msra.mxu1 %v12622_v16  ;;  %4674 = vmatprep.subr.bf16.mxu0 %v12623_v17  ;;  %v12643_v30 = vld [vmem:[#allocation8 + $0x104] ss:$8 sps:$4 sm:$0xff]   ;;  %v12645_v31 = vld [vmem:[#allocation8] ss:$8 sps:$4 sm:$0xff]   ;;  %vm118_vm1 = vsmask.f32 4352  ;;  %vm116_vm3 = vmand %vm114_vm2, %vm115_vm0 }
  0x5c   :  { %4787 = vmatprep.subr.bf16.mxu1 %v12625_v18  ;;  %v12646_v32 = vld [vmem:[#allocation8 + $0x100] ss:$8 sps:$4 sm:$0xff]   ;;  %v12647_v33 = vld [vmem:[#allocation8 + $0xf4] ss:$8 sps:$4 sm:$0xff]   ;;  %v12651_v35 = vld [vmem:[#allocation8 + $0xf0] ss:$8 sps:$4 sm:$0xff]  }
  0x5d   :  { %v12649_v34 = vld [vmem:[#allocation8 + $0x1f4] ss:$8 sps:$4 sm:$0xff]   ;;  %v12652_v36 = vld [vmem:[#allocation8 + $0x1f0] ss:$8 sps:$4 sm:$0xff]   ;;  %vm119_vm5 = vmand %vm117_vm4, %vm118_vm1  ;;  %vm169_vm7 = vsmask.f32 7938 }
  0x5e   :  { %4675 = vmatpush1.bf16.msra.mxu0 %v12627_v19  ;;  %v12653_v37 = vld [vmem:[#allocation8 + $0xe4] ss:$8 sps:$4 sm:$0xff]   ;;  %vm13755_vm6 = vmor %vm119_vm5, %vm116_vm3  ;;  %v12657_v40 = vld [vmem:[#allocation8 + $0xe0] ss:$8 sps:$4 sm:$0xff]   ;;  %vm171_vm8 = vsmask.f32 7954 }
  0x5f   :  { %4788 = vmatpush1.bf16.msra.mxu1 %v12628_v20  ;;  %4676 = vmatprep.subr.bf16.mxu0 %v12629_v21  ;;  %v12655_v38 = vld [vmem:[#allocation8 + $0x1e4] ss:$8 sps:$4 sm:$0xff]   ;;  %v17068_v39 = vsel %vm13755_vm6, 4294967295, %v17067_v39  ;;  %v12658_v41 = vld [vmem:[#allocation8 + $0x1e0] ss:$8 sps:$4 sm:$0xff]   ;;  %vm170_vm9 = vmand %vm114_vm2, %vm169_vm7  ;;  %vm1015_vm5 = vcmask 1046532  }
  0x60   :  { %4789 = vmatprep.subr.bf16.mxu1 %v12631_v22  ;;  %17069 = vst [vmem:[#allocation22_spill] sm:$0xff] %v17068_v39  ;;  %v12659_v42 = vld [vmem:[#allocation8 + $0xd4] ss:$8 sps:$4 sm:$0xff]   ;;  %v12663_v44 = vld [vmem:[#allocation8 + $0xd0] ss:$8 sps:$4 sm:$0xff]   ;;  %vm172_vm10 = vmand %vm117_vm4, %vm171_vm8  ;;  %vm1014_vm4 = vcmask 1042432   ;;  %v5685_v39 = vlaneseq }
  0x61   :  { %v12661_v43 = vld [vmem:[#allocation8 + $0x1d4] ss:$8 sps:$4 sm:$0xff]   ;;  %v12664_v45 = vld [vmem:[#allocation8 + $0x1d0] ss:$8 sps:$4 sm:$0xff]   ;;  %v12665_v46 = vld [vmem:[#allocation8 + $0xc4] ss:$8 sps:$4 sm:$0xff]  }
  0x62   :  { %4677 = vmatpush1.bf16.msra.mxu0 %v12633_v23  ;;  %v12667_v47 = vld [vmem:[#allocation8 + $0x1c4] ss:$8 sps:$4 sm:$0xff]   ;;  %v12669_v48 = vld [vmem:[#allocation8 + $0xc0] ss:$8 sps:$4 sm:$0xff]   ;;  %v121_v49 = vld [vmem:[#allocation2 + $0xb0] sm:$0x11] }
  0x63   :  { %4790 = vmatpush1.bf16.msra.mxu1 %v12634_v24  ;;  %4678 = vmatprep.subr.bf16.mxu0 %v12635_v25  ;;  %vm13763_vm11 = vmor %vm172_vm10, %vm170_vm9  ;;  %v12670_v51 = vld [vmem:[#allocation8 + $0x1c0] ss:$8 sps:$4 sm:$0xff]   ;;  %v122_v52 = vsel %vm13755_vm6, 0, %v121_v49  ;;  %v12671_v55 = vld [vmem:[#allocation8 + $0xb4] ss:$8 sps:$4 sm:$0xff]  }
  0x64   :  { %4791 = vmatprep.subr.bf16.mxu1 %v12637_v26  ;;  %v223_v54 = vld [vmem:[#allocation5 + $0x8] sm:$0xff]  ;;  %v12673_v56 = vld [vmem:[#allocation8 + $0x1b4] ss:$8 sps:$4 sm:$0xff]   ;;  %123 = vst [vmem:[#allocation2 + $0xb0] sm:$0x11] %v122_v52  ;;  %vm13771_vm14 = vmand %vm526_vm12, %vm169_vm7  ;;  %v701_v26 = vor.u32 %v700_v7, %v697_v6 }
  0x65   :  { %v12555_v57 = vpack.c.bf16 %v223_v54, %v222_v53  ;;  %v174_v58 = vld [vmem:[#allocation2 + $0x18] sm:$0x11]  ;;  %vm529_vm15 = vmand %vm528_vm13, %vm171_vm8  ;;  %v12677_v2 = vld [vmem:[#allocation8 + $0xa4] ss:$8 sps:$4 sm:$0xff]   ;;  %vm691_vm0 = vsmask.f32 3328 }
  0x66   :  { %4679 = vmatpush1.bf16.msra.mxu0 %v12639_v27  ;;  %v175_v60 = vsel %vm13763_vm11, 0, %v174_v58  ;;  %v12675_v61 = vld [vmem:[#allocation8 + $0xb0] ss:$8 sps:$4 sm:$0xff]   ;;  %vm692_vm1 = vsmask.f32 7440  ;;  %vm13781_vm2 = vmor %vm529_vm15, %vm13771_vm14  ;;  %v226_v23 = vld [vmem:[#allocation5 + $0x20] sm:$0xff] }
  0x67   :  { %4792 = vmatpush1.bf16.msra.mxu1 %v12640_v28  ;;  %4680 = vmatprep.subr.bf16.mxu0 %v12641_v29  ;;  %v367_v62 = vshrl.u32 %v12555_v57, 16  ;;  %v370_v63 = vshll.u32 %v12555_v57, 16  ;;  %176 = vst [vmem:[#allocation2 + $0x18] sm:$0x11] %v175_v60  ;;  %v12676_v1 = vld [vmem:[#allocation8 + $0x1b0] ss:$8 sps:$4 sm:$0xff]   ;;  %vm13810_vm3 = vmor %vm691_vm0, %vm692_vm1 }
  0x68   :  { %4793 = vmatprep.subr.bf16.mxu1 %v12643_v30  ;;  %v12679_v4 = vld [vmem:[#allocation8 + $0x1a4] ss:$8 sps:$4 sm:$0xff]   ;;  %v17075_v5 = vsel %vm13781_vm2, 4294967295, %v17074_v5  ;;  %v12681_v8 = vld [vmem:[#allocation8 + $0xa0] ss:$8 sps:$4 sm:$0xff]   ;;  %v224_v21 = vld [vmem:[#allocation5 + $0x10] sm:$0xff] }
  0x69   :  { %v369_v3 = vrot.slane %v367_v62, 7  ;;  %17076 = vst [vmem:[#allocation23_spill] sm:$0xff] %v17075_v5  ;;  %v12682_v9 = vld [vmem:[#allocation8 + $0x1a0] ss:$8 sps:$4 sm:$0xff]   ;;  %v660_v12 = vld [vmem:[#allocation2 + $0x38] sm:$0x11]  ;;  %vm14039_vm7 = vmor %vm1014_vm4, %vm1015_vm5 }
  0x6a   :  { %4681 = vmatpush1.bf16.msra.mxu0 %v12645_v31  ;;  %v12683_v13 = vld [vmem:[#allocation8 + $0x94] ss:$8 sps:$4 sm:$0xff]   ;;  %v124_v16 = vld [vmem:[#allocation2 + $0xc8] sm:$0x11]  ;;  %v12687_v30 = vld [vmem:[#allocation8 + $0x90] ss:$8 sps:$4 sm:$0xff]  }
  0x6b   :  { %4794 = vmatpush1.bf16.msra.mxu1 %v12646_v32  ;;  %4682 = vmatprep.subr.bf16.mxu0 %v12647_v33  ;;  %v372_v10 = vor.u32 %v370_v63, %v369_v3  ;;  %v373_v11 = vrot.slane %v369_v3, 4  ;;  %v12685_v14 = vld [vmem:[#allocation8 + $0x194] ss:$8 sps:$4 sm:$0xff]   ;;  %v127_v17 = vld [vmem:[#allocation2 + $0x128] sm:$0x11]  ;;  %v125_v19 = vsel %vm13755_vm6, 0, %v124_v16 }
  0x6c   :  { %4795 = vmatprep.subr.bf16.mxu1 %v12649_v34  ;;  %v531_v15 = vld [vmem:[#allocation2 + $0xb0] sm:$0xff]  ;;  %v128_v20 = vsel %vm13755_vm6, 0, %v127_v17  ;;  %v225_v22 = vld [vmem:[#allocation5 + $0x18] sm:$0xff]  ;;  %126 = vst [vmem:[#allocation2 + $0xc8] sm:$0x11] %v125_v19  ;;  %v227_v29 = vld [vmem:[#allocation5 + $0x28] sm:$0xff] }
  0x6d   :  { %v13789_v18 = vsel %vm13781_vm2, %v372_v10, %v531_v15  ;;  %129 = vst [vmem:[#allocation2 + $0x128] sm:$0x11] %v128_v20  ;;  %v704_v32 = vshll.u32 %v660_v12, 16  ;;  %v12556_v33 = vpack.c.bf16 %v225_v22, %v224_v21  ;;  %v12557_v34 = vpack.c.bf16 %v227_v29, %v226_v23  ;;  %v12694_v52 = vld [vmem:[#allocation8 + $0x180] ss:$8 sps:$4 sm:$0xff]  }
  0x6e   :  { %4683 = vmatpush2.bf16.msra.mxu0 %v12651_v35  ;;  %533 = vst [vmem:[#allocation2 + $0xb0] sm:$0xff] %v13789_v18  ;;  %v11628_v24 = vcombine.high %v13668_v0, %v13789_v18  ;;  %v534_v25 = vld [vmem:[#allocation2 + $0x18] sm:$0x11]  ;;  %v709_v27 = vshrl.u32 %v13789_v18, 16  ;;  %v712_v28 = vshll.u32 %v13789_v18, 16  ;;  %v13806_v53 = vrot.slane %v701_v26, 4 }
  0x6f   :  { %4796 = vmatpush2.bf16.msra.mxu1 %v12652_v36  ;;  %4684 = vmatprep.subr.bf16.mxu0 %v12653_v37  ;;  %v535_v31 = vsel %vm13755_vm6, %v373_v11, %v534_v25  ;;  %v177_v35 = vld [vmem:[#allocation2 + $0xe8] sm:$0x11]  ;;  %v12688_v37 = vld [vmem:[#allocation8 + $0x190] ss:$8 sps:$4 sm:$0xff]   ;;  %v706_v54 = vrot.slane %v704_v32, 5  ;;  %v17077_v57 = vmov 0 }
  0x70   :  { %4797 = vmatprep.subr.bf16.mxu1 %v12655_v38  ;;  %v180_v36 = vld [vmem:[#allocation2 + $0x48] sm:$0x11]  ;;  %4698 = vmatprep.mubr.bf16.mxu0 %v11628_v24  ;;  %536 = vst [vmem:[#allocation2 + $0x18] sm:$0x11] %v535_v31  ;;  %v711_v38 = vrot.slane %v709_v27, 4  ;;  %v17078_v57 = vsel %vm13810_vm3, 4294967295, %v17077_v57 }
  0x71   :  { %17079 = vst [vmem:[#allocation24_spill] sm:$0xff] %v17078_v57  ;;  %v12697_v58 = vld [vmem:[#allocation8 + $0x274] ss:$8 sps:$4 sm:$0xff]   ;;  %v13817_v7 = vsel %vm13810_vm3, %v13806_v53, %v706_v54  ;;  %v133_v12 = vld [vmem:[#allocation2 + $0xa8] sm:$0x11]  ;;  %v230_v25 = vld [vmem:[#allocation5 + $0x40] sm:$0xff] }
  0x72   :  { %4685 = vmatpush2.bf16.msra.mxu0 %v12657_v40  ;;  %v714_v40 = vrot.slane %v712_v28, 5  ;;  %v12700_v3 = vld [vmem:[#allocation8 + $0x374] ss:$8 sps:$4 sm:$0xff]   ;;  %v12703_v16 = vld [vmem:[#allocation8 + $0x264] ss:$8 sps:$4 sm:$0xff]  }
  0x73   :  { %4798 = vmatpush2.bf16.msra.mxu1 %v12658_v41  ;;  %4686 = vmatprep.subr.bf16.mxu0 %v12659_v42  ;;  %v178_v41 = vsel %vm13763_vm11, 0, %v177_v35  ;;  %v181_v42 = vsel %vm13763_vm11, 0, %v180_v36  ;;  %v537_v63 = vld [vmem:[#allocation2 + $0xc8] sm:$0xff]  ;;  %v229_v24 = vld [vmem:[#allocation5 + $0x38] sm:$0xff]  ;;  %v183_v31 = vld [vmem:[#allocation2 + $0xf0] sm:$0x11] }
  0x74   :  { %4799 = vmatprep.subr.bf16.mxu1 %v12661_v43  ;;  %v12689_v43 = vld [vmem:[#allocation8 + $0x84] ss:$8 sps:$4 sm:$0xff]   ;;  %179 = vst [vmem:[#allocation2 + $0xe8] sm:$0x11] %v178_v41  ;;  %182 = vst [vmem:[#allocation2 + $0x48] sm:$0x11] %v181_v42  ;;  %v715_v49 = vor.u32 %v714_v40, %v711_v38 }
  0x75   :  { %v231_v26 = vld [vmem:[#allocation5 + $0x48] sm:$0xff]  ;;  %v186_v36 = vld [vmem:[#allocation2 + $0x60] sm:$0x11]  ;;  %v12698_v38 = vld [vmem:[#allocation8 + $0x370] ss:$8 sps:$4 sm:$0xff]   ;;  %v184_v41 = vsel %vm13763_vm11, 0, %v183_v31 }
  0x76   :  { %4687 = vmatpush2.bf16.msra.mxu0 %v12663_v44  ;;  %v375_v44 = vshrl.u32 %v12556_v33, 16  ;;  %v12559_v35 = vpack.c.bf16 %v231_v26, %v230_v25  ;;  %v187_v42 = vsel %vm13763_vm11, 0, %v186_v36  ;;  %185 = vst [vmem:[#allocation2 + $0xf0] sm:$0x11] %v184_v41  ;;  %v235_v36 = vld [vmem:[#allocation5 + $0x68] sm:$0xff] }
  0x77   :  { %4800 = vmatpush2.bf16.msra.mxu1 %v12664_v45  ;;  %4688 = vmatprep.subr.bf16.mxu0 %v12665_v46  ;;  %v378_v45 = vshll.u32 %v12556_v33, 16  ;;  %v383_v46 = vshrl.u32 %v12557_v34, 16  ;;  %v662_v6 = vld [vmem:[#allocation2 + $0x18] sm:$0x11]  ;;  %188 = vst [vmem:[#allocation2 + $0x60] sm:$0x11] %v187_v42 }
  0x78   :  { %4801 = vmatprep.subr.bf16.mxu1 %v12667_v47  ;;  %v386_v47 = vshll.u32 %v12557_v34, 16  ;;  %v718_v15 = vshll.u32 %v662_v6, 16  ;;  %v399_v54 = vshrl.u32 %v12559_v35, 16 }
  0x7a   :  { %4689 = vmatpush2.bf16.msra.mxu0 %v12669_v48  ;;  %v12691_v48 = vld [vmem:[#allocation8 + $0x184] ss:$8 sps:$4 sm:$0xff]   ;;  %v720_v27 = vrot.slane %v718_v15, 5 }
  0x7b   :  { %4802 = vmatpush2.bf16.msra.mxu1 %v12670_v51  ;;  %4690 = vmatprep.subr.bf16.mxu0 %v12671_v55  ;;  %v12693_v51 = vld [vmem:[#allocation8 + $0x80] ss:$8 sps:$4 sm:$0xff]   ;;  %v377_v55 = vrot.slane %v375_v44, 7 }
  0x7c   :  { %4803 = vmatprep.subr.bf16.mxu1 %v12673_v56  ;;  %v385_v56 = vrot.slane %v383_v46, 7  ;;  %v540_v19 = vld [vmem:[#allocation2 + $0xe8] sm:$0x11] }
  0x7d   :  { %v380_v59 = vor.u32 %v378_v45, %v377_v55  ;;  %v381_v60 = vrot.slane %v377_v55, 4  ;;  %v546_v20 = vld [vmem:[#allocation2 + $0x48] sm:$0x11]  ;;  %v402_v55 = vshll.u32 %v12559_v35, 16  ;;  %v234_v35 = vld [vmem:[#allocation5 + $0x60] sm:$0xff] }
  0x7e   :  { %4691 = vmatpush2.bf16.msra.mxu0 %v12675_v61  ;;  %v388_v61 = vor.u32 %v386_v47, %v385_v56  ;;  %v389_v62 = vrot.slane %v385_v56, 4  ;;  %v12701_v45 = vld [vmem:[#allocation8 + $0x260] ss:$8 sps:$4 sm:$0xff]   ;;  %v12706_v46 = vld [vmem:[#allocation8 + $0x364] ss:$8 sps:$4 sm:$0xff]  }
  0x7f   :  { %4804 = vmatpush2.bf16.msra.mxu1 %v12676_v1  ;;  %4692 = vmatprep.subr.bf16.mxu0 %v12677_v2  ;;  %v543_v1 = vld [vmem:[#allocation2 + $0x128] sm:$0xff]  ;;  %v716_v2 = vrot.slane %v715_v49, 4  ;;  %v541_v22 = vsel %vm13755_vm6, %v381_v60, %v540_v19 }
  0x80   :  { %4805 = vmatprep.subr.bf16.mxu1 %v12679_v4  ;;  %v130_v4 = vld [vmem:[#allocation2 + $0x78] sm:$0x11]  ;;  %v13825_v10 = vsel %vm13781_vm2, %v388_v61, %v543_v1  ;;  %542 = vst [vmem:[#allocation2 + $0xe8] sm:$0x11] %v541_v22  ;;  %v12704_v56 = vld [vmem:[#allocation8 + $0x360] ss:$8 sps:$4 sm:$0xff]  }
  0x81   :  { %v131_v11 = vsel %vm13755_vm6, 0, %v130_v4  ;;  %545 = vst [vmem:[#allocation2 + $0x128] sm:$0xff] %v13825_v10  ;;  %v737_v23 = vshrl.u32 %v13825_v10, 16  ;;  %v740_v29 = vshll.u32 %v13825_v10, 16  ;;  %v12713_v19 = vld [vmem:[#allocation8 + $0x240] ss:$8 sps:$4 sm:$0xff]  }
  0x82   :  { %4693 = vmatpush2.bf16.msra.mxu0 %v12681_v8  ;;  %v12695_v8 = vld [vmem:[#allocation8 + $0x270] ss:$8 sps:$4 sm:$0xff]   ;;  %132 = vst [vmem:[#allocation2 + $0x78] sm:$0x11] %v131_v11  ;;  %v558_v22 = vld [vmem:[#allocation2 + $0x60] sm:$0x11] }
  0x83   :  { %4806 = vmatpush2.bf16.msra.mxu1 %v12682_v9  ;;  %4694 = vmatprep.subr.bf16.mxu0 %v12683_v13  ;;  %v13821_v9 = vsel %vm13781_vm2, %v380_v59, %v537_v63  ;;  %v228_v13 = vld [vmem:[#allocation5 + $0x30] sm:$0xff]  ;;  %v739_v33 = vrot.slane %v737_v23, 4  ;;  %v742_v40 = vrot.slane %v740_v29, 5  ;;  %v401_v63 = vrot.slane %v399_v54, 7 }
  0x84   :  { %4807 = vmatprep.subr.bf16.mxu1 %v12685_v14  ;;  %v11627_v14 = vcombine.low %v13668_v0, %v13789_v18  ;;  %539 = vst [vmem:[#allocation2 + $0xc8] sm:$0xff] %v13821_v9  ;;  %v11646_v17 = vcombine.high %v13821_v9, %v13825_v10  ;;  %v723_v21 = vshrl.u32 %v13821_v9, 16  ;;  %v547_v0 = vsel %vm13755_vm6, %v389_v62, %v546_v20  ;;  %v12712_v62 = vld [vmem:[#allocation8 + $0x354] ss:$8 sps:$4 sm:$0xff]  }
  0x85   :  { %v726_v18 = vshll.u32 %v13821_v9, 16  ;;  %548 = vst [vmem:[#allocation2 + $0x48] sm:$0x11] %v547_v0  ;;  %v12558_v34 = vpack.c.bf16 %v229_v24, %v228_v13  ;;  %v743_v49 = vor.u32 %v742_v40, %v739_v33  ;;  %v11645_v61 = vcombine.low %v13821_v9, %v13825_v10  ;;  %v232_v0 = vld [vmem:[#allocation5 + $0x50] sm:$0xff] }
  0x86   :  { %4695 = vmatpush2.bf16.msra.mxu0 %v12687_v30  ;;  %v725_v28 = vrot.slane %v723_v21, 4  ;;  %v134_v30 = vsel %vm13755_vm6, 0, %v133_v12  ;;  %v12715_v12 = vld [vmem:[#allocation8 + $0x244] ss:$8 sps:$4 sm:$0xff]   ;;  %v404_v13 = vor.u32 %v402_v55, %v401_v63  ;;  %v552_v21 = vld [vmem:[#allocation2 + $0xf0] sm:$0x11]  ;;  %v12561_v55 = vpack.c.bf16 %v235_v36, %v234_v35 }
  0x87   :  { %4808 = vmatpush2.bf16.msra.mxu1 %v12688_v37  ;;  %4696 = vmatprep.subr.bf16.mxu0 %v12689_v43  ;;  %v728_v32 = vrot.slane %v726_v18, 5  ;;  %135 = vst [vmem:[#allocation2 + $0xa8] sm:$0x11] %v134_v30  ;;  %v721_v37 = vsel %vm13810_vm3, %v716_v2, %v720_v27  ;;  %v664_v2 = vld [vmem:[#allocation2 + $0xe8] sm:$0x11]  ;;  %v744_v4 = vrot.slane %v743_v49, 4 }
  0x88   :  { %4809 = vmatprep.subr.bf16.mxu1 %v12691_v48  ;;  %v11629_v43 = vcombine.low %v13817_v7, %v721_v37  ;;  %v11630_v44 = vcombine.high %v13817_v7, %v721_v37  ;;  %v391_v48 = vshrl.u32 %v12558_v34, 16  ;;  %v12718_v18 = vld [vmem:[#allocation8 + $0x344] ss:$8 sps:$4 sm:$0xff]   ;;  %v12721_v27 = vld [vmem:[#allocation8 + $0x234] ss:$8 sps:$4 sm:$0xff]  }
  0x89   :  { %v729_v47 = vor.u32 %v728_v32, %v725_v28  ;;  %v549_v1 = vld [vmem:[#allocation2 + $0x78] sm:$0xff]  ;;  %v136_v28 = vld [vmem:[#allocation2 + $0x28] sm:$0x11]  ;;  %v139_v29 = vld [vmem:[#allocation2 + $0x70] sm:$0x11] }
  0x8a   :  { %4697 = vmatpush2.bf16.msra.mxu0 %v12693_v51  ;;  %v12709_v51 = vld [vmem:[#allocation8 + $0x254] ss:$8 sps:$4 sm:$0xff]   ;;  %4811 = vmatprep.mubr.bf16.mxu1 %v11630_v44  ;;  %v393_v59 = vrot.slane %v391_v48, 7  ;;  %v12716_v44 = vld [vmem:[#allocation8 + $0x340] ss:$8 sps:$4 sm:$0xff]   ;;  %v137_v48 = vsel %vm13755_vm6, 0, %v136_v28 }
  0x8b   :  { %4810 = vmatpush2.bf16.msra.mxu1 %v12694_v52  ;;  %4892 = vmatprep.subr.bf16.mxu0 %v12697_v58  ;;  %v394_v52 = vshll.u32 %v12558_v34, 16  ;;  %v12707_v58 = vld [vmem:[#allocation8 + $0x250] ss:$8 sps:$4 sm:$0xff]   ;;  %v730_v60 = vrot.slane %v729_v47, 4  ;;  %138 = vst [vmem:[#allocation2 + $0x28] sm:$0x11] %v137_v48 }
  0x8c   :  { %5005 = vmatprep.subr.bf16.mxu1 %v12700_v3  ;;  %v666_v3 = vld [vmem:[#allocation2 + $0x48] sm:$0x11]  ;;  %v397_v7 = vrot.slane %v393_v59, 4  ;;  %v233_v30 = vld [vmem:[#allocation5 + $0x58] sm:$0xff] }
  0x8d   :  { %4699 = vmatmul.mubr.bf16.vlgmr.msra.gmra.mxu0 %v11627_v14  ;;  %v396_v6 = vor.u32 %v394_v52, %v393_v59  ;;  %v746_v11 = vshll.u32 %v666_v3, 16  ;;  %v405_v14 = vrot.slane %v401_v63, 4  ;;  %v189_v37 = vld [vmem:[#allocation2 + $0x118] sm:$0x11]  ;;  %v140_v52 = vsel %vm13755_vm6, 0, %v139_v29 }
  0x8e   :  { %4893 = vmatpush1.bf16.msra.mxu0 %v12695_v8  ;;  %4708 = vmatprep.mubr.bf16.mxu0 %v11646_v17  ;;  %v732_v8 = vshll.u32 %v664_v2, 16  ;;  %v555_v15 = vld [vmem:[#allocation2 + $0xa8] sm:$0xff]  ;;  %v553_v24 = vsel %vm13755_vm6, %v397_v7, %v552_v21  ;;  %v12560_v54 = vpack.c.bf16 %v233_v30, %v232_v0  ;;  %141 = vst [vmem:[#allocation2 + $0x70] sm:$0x11] %v140_v52  ;;  %v190_v59 = vsel %vm13763_vm11, 0, %v189_v37 }
  0x8f   :  { %4894 = vmatprep.subr.bf16.mxu0 %v12703_v16  ;;  %4812 = vmatmul.mubr.bf16.vlgmr.msra.gmra.mxu1 %v11629_v43  ;;  %v12710_v16 = vld [vmem:[#allocation8 + $0x350] ss:$8 sps:$4 sm:$0xff]   ;;  %v13857_v9 = vsel %vm13781_vm2, %v396_v6, %v549_v1  ;;  %v748_v17 = vrot.slane %v746_v11, 5  ;;  %v13862_v20 = vsel %vm13781_vm2, %v404_v13, %v555_v15  ;;  %v559_v25 = vsel %vm13755_vm6, %v405_v14, %v558_v22  ;;  %v12727_v63 = vld [vmem:[#allocation8 + $0x224] ss:$8 sps:$4 sm:$0xff]  }
  0x90   :  { %5006 = vmatpush1.bf16.msra.mxu1 %v12698_v38  ;;  %v734_v10 = vrot.slane %v732_v8, 5  ;;  %551 = vst [vmem:[#allocation2 + $0x78] sm:$0xff] %v13857_v9  ;;  %557 = vst [vmem:[#allocation2 + $0xa8] sm:$0xff] %v13862_v20  ;;  %v11664_v23 = vcombine.high %v13857_v9, %v13862_v20  ;;  %v751_v26 = vshrl.u32 %v13857_v9, 16  ;;  %v754_v33 = vshll.u32 %v13857_v9, 16  ;;  %v239_v22 = vld [vmem:[#allocation5 + $0x88] sm:$0xff] }
  0x91   :  { %5007 = vmatprep.subr.bf16.mxu1 %v12706_v46  ;;  %v749_v32 = vsel %vm13810_vm3, %v744_v4, %v748_v17  ;;  %554 = vst [vmem:[#allocation2 + $0xf0] sm:$0x11] %v553_v24  ;;  %560 = vst [vmem:[#allocation2 + $0x60] sm:$0x11] %v559_v25  ;;  %v765_v34 = vshrl.u32 %v13862_v20, 16  ;;  %v768_v42 = vshll.u32 %v13862_v20, 16  ;;  %v11663_v47 = vcombine.low %v13857_v9, %v13862_v20 }
  0x92   :  { %4895 = vmatpush1.bf16.msra.mxu0 %v12701_v45  ;;  %v735_v31 = vsel %vm13810_vm3, %v730_v60, %v734_v10  ;;  %v753_v41 = vrot.slane %v751_v26, 4  ;;  %v192_v43 = vld [vmem:[#allocation2 + $0x30] sm:$0x11]  ;;  %v756_v45 = vrot.slane %v754_v33, 5  ;;  %v407_v1 = vshrl.u32 %v12560_v54, 16  ;;  %v238_v17 = vld [vmem:[#allocation5 + $0x80] sm:$0xff] }
  0x93   :  { %4896 = vmatprep.subr.bf16.mxu0 %v12709_v51  ;;  %v11648_v38 = vcombine.high %v735_v31, %v749_v32  ;;  %v11647_v40 = vcombine.low %v735_v31, %v749_v32  ;;  %v767_v46 = vrot.slane %v765_v34, 4  ;;  %v770_v49 = vrot.slane %v768_v42, 5  ;;  %v12719_v51 = vld [vmem:[#allocation8 + $0x230] ss:$8 sps:$4 sm:$0xff]   ;;  %191 = vst [vmem:[#allocation2 + $0x118] sm:$0x11] %v190_v59 }
  0x94   :  { %5008 = vmatpush1.bf16.msra.mxu1 %v12704_v56  ;;  %v757_v56 = vor.u32 %v756_v45, %v753_v41  ;;  %v193_v60 = vsel %vm13763_vm11, 0, %v192_v43  ;;  %v410_v2 = vshll.u32 %v12560_v54, 16  ;;  %v415_v3 = vshrl.u32 %v12561_v55, 16  ;;  %v12725_v4 = vld [vmem:[#allocation8 + $0x220] ss:$8 sps:$4 sm:$0xff]  }
  0x95   :  { %4709 = vmatmul.mubr.bf16.gmra.mxu0 %v11645_v61  ;;  %5009 = vmatprep.subr.bf16.mxu1 %v12712_v62  ;;  %v771_v61 = vor.u32 %v770_v49, %v767_v46  ;;  %v12722_v62 = vld [vmem:[#allocation8 + $0x330] ss:$8 sps:$4 sm:$0xff]   ;;  %194 = vst [vmem:[#allocation2 + $0x30] sm:$0x11] %v193_v60  ;;  %v12730_v6 = vld [vmem:[#allocation8 + $0x324] ss:$8 sps:$4 sm:$0xff]   ;;  %v12563_v31 = vpack.c.bf16 %v239_v22, %v238_v17 }
  0x96   :  { %4897 = vmatpush1.bf16.msra.mxu0 %v12707_v58  ;;  %4718 = vmatprep.mubr.bf16.mxu0 %v11664_v23  ;;  %v12724_v58 = vld [vmem:[#allocation8 + $0x334] ss:$8 sps:$4 sm:$0xff]   ;;  %v418_v7 = vshll.u32 %v12561_v55, 16  ;;  %v409_v13 = vrot.slane %v407_v1, 7  ;;  %v417_v10 = vrot.slane %v415_v3, 7  ;;  %v561_v26 = vld [vmem:[#allocation2 + $0x28] sm:$0xff] }
  0x97   :  { %4898 = vmatprep.subr.bf16.mxu0 %v12715_v12  ;;  %4821 = vmatprep.mubr.bf16.mxu1 %v11648_v38  ;;  %v758_v12 = vrot.slane %v757_v56, 4  ;;  %v12733_v14 = vld [vmem:[#allocation8 + $0x214] ss:$8 sps:$4 sm:$0xff]   ;;  %v145_v21 = vld [vmem:[#allocation2 + $0x108] sm:$0x11]  ;;  %v431_v56 = vshrl.u32 %v12563_v31, 16 }
  0x98   :  { %5010 = vmatpush1.bf16.msra.mxu1 %v12710_v16  ;;  %v668_v8 = vld [vmem:[#allocation2 + $0xf0] sm:$0x11]  ;;  %v670_v11 = vld [vmem:[#allocation2 + $0x60] sm:$0x11]  ;;  %v772_v16 = vrot.slane %v771_v61, 4  ;;  %v413_v20 = vrot.slane %v409_v13, 4  ;;  %v420_v24 = vor.u32 %v418_v7, %v417_v10 }
  0x99   :  { %4822 = vmatmul.mubr.bf16.gmra.mxu1 %v11647_v40  ;;  %5011 = vmatprep.subr.bf16.mxu1 %v12718_v18  ;;  %v760_v15 = vshll.u32 %v668_v8, 16  ;;  %v774_v9 = vshll.u32 %v670_v11, 16  ;;  %v198_v0 = vld [vmem:[#allocation2 + $0x40] sm:$0x11]  ;;  %v421_v25 = vrot.slane %v417_v10, 4  ;;  %v567_v29 = vld [vmem:[#allocation2 + $0x70] sm:$0xff] }
  0x9a   :  { %4899 = vmatpush1.bf16.msra.mxu0 %v12713_v19  ;;  %v412_v19 = vor.u32 %v410_v2, %v409_v13  ;;  %v146_v30 = vsel %vm13755_vm6, 0, %v145_v21  ;;  %v199_v32 = vsel %vm13763_vm11, 0, %v198_v0  ;;  %v568_v35 = vsel %vm13781_vm2, %v420_v24, %v567_v29  ;;  %v564_v36 = vld [vmem:[#allocation2 + $0x118] sm:$0x11]  ;;  %v12728_v42 = vld [vmem:[#allocation8 + $0x320] ss:$8 sps:$4 sm:$0xff]  }
  0x9b   :  { %4900 = vmatprep.subr.bf16.mxu0 %v12721_v27  ;;  %v762_v18 = vrot.slane %v760_v15, 5  ;;  %v776_v23 = vrot.slane %v774_v9, 5  ;;  %v12731_v27 = vld [vmem:[#allocation8 + $0x210] ss:$8 sps:$4 sm:$0xff]   ;;  %147 = vst [vmem:[#allocation2 + $0x108] sm:$0x11] %v146_v30 }
  0x9c   :  { %5012 = vmatpush1.bf16.msra.mxu1 %v12716_v44  ;;  %v562_v28 = vsel %vm13781_vm2, %v412_v19, %v561_v26  ;;  %v570_v37 = vld [vmem:[#allocation2 + $0x30] sm:$0x11]  ;;  %200 = vst [vmem:[#allocation2 + $0x40] sm:$0x11] %v199_v32  ;;  %569 = vst [vmem:[#allocation2 + $0x70] sm:$0xff] %v568_v35  ;;  %v565_v44 = vsel %vm13755_vm6, %v413_v20, %v564_v36  ;;  %v793_v49 = vshrl.u32 %v568_v35, 16 }
  0x9d   :  { %4719 = vmatmul.mubr.bf16.gmra.mxu0 %v11663_v47  ;;  %5013 = vmatprep.subr.bf16.mxu1 %v12724_v58  ;;  %v763_v33 = vsel %vm13810_vm3, %v758_v12, %v762_v18  ;;  %v777_v34 = vsel %vm13810_vm3, %v772_v16, %v776_v23  ;;  %563 = vst [vmem:[#allocation2 + $0x28] sm:$0xff] %v562_v28  ;;  %v779_v38 = vshrl.u32 %v562_v28, 16  ;;  %v12736_v45 = vld [vmem:[#allocation8 + $0x314] ss:$8 sps:$4 sm:$0xff]   ;;  %566 = vst [vmem:[#allocation2 + $0x118] sm:$0x11] %v565_v44 }
  0x9e   :  { %4901 = vmatpush1.bf16.msra.mxu0 %v12719_v51  ;;  %v11666_v40 = vcombine.high %v763_v33, %v777_v34  ;;  %v11665_v41 = vcombine.low %v763_v33, %v777_v34  ;;  %v11682_v43 = vcombine.high %v562_v28, %v568_v35  ;;  %v571_v46 = vsel %vm13755_vm6, %v421_v25, %v570_v37  ;;  %v12739_v51 = vld [vmem:[#allocation8 + $0x204] ss:$8 sps:$4 sm:$0xff]   ;;  %v12734_v55 = vld [vmem:[#allocation8 + $0x310] ss:$8 sps:$4 sm:$0xff]   ;;  %v12745_v2 = vld [vmem:[#allocation8 + $0x2f4] ss:$8 sps:$4 sm:$0xff]  }
  0x9f   :  { %4902 = vmatprep.subr.bf16.mxu0 %v12727_v63  ;;  %v781_v47 = vrot.slane %v779_v38, 4  ;;  %v782_v48 = vshll.u32 %v562_v28, 16  ;;  %572 = vst [vmem:[#allocation2 + $0x30] sm:$0x11] %v571_v46  ;;  %v796_v52 = vshll.u32 %v568_v35, 16  ;;  %v11681_v54 = vcombine.low %v562_v28, %v568_v35  ;;  %v240_v3 = vld [vmem:[#allocation5 + $0x90] sm:$0xff] }
  0xa0   :  { %5014 = vmatpush1.bf16.msra.mxu1 %v12722_v62  ;;  %4831 = vmatprep.mubr.bf16.mxu1 %v11666_v40  ;;  %v434_v58 = vshll.u32 %v12563_v31, 16  ;;  %v13905_v59 = vld [vmem:[#allocation2 + $0x20] sm:$0x11]  ;;  %v795_v61 = vrot.slane %v793_v49, 4  ;;  %v433_v1 = vrot.slane %v431_v56, 7  ;;  %v241_v11 = vld [vmem:[#allocation5 + $0x98] sm:$0xff] }
  0xa1   :  { %5015 = vmatprep.subr.bf16.mxu1 %v12730_v6  ;;  %4728 = vmatprep.mubr.bf16.mxu0 %v11682_v43  ;;  %v784_v60 = vrot.slane %v782_v48, 5  ;;  %v12737_v62 = vld [vmem:[#allocation8 + $0x200] ss:$8 sps:$4 sm:$0xff]   ;;  %v798_v63 = vrot.slane %v796_v52, 5  ;;  %v12742_v6 = vld [vmem:[#allocation8 + $0x304] ss:$8 sps:$4 sm:$0xff]   ;;  %v12564_v17 = vpack.c.bf16 %v241_v11, %v240_v3 }
  0xa2   :  { %4903 = vmatpush1.bf16.msra.mxu0 %v12725_v4  ;;  %4832 = vmatmul.mubr.bf16.gmra.mxu1 %v11665_v41  ;;  %v816_v7 = vshll.u32 %v13905_v59, 16  ;;  %v12743_v8 = vld [vmem:[#allocation8 + $0x2f0] ss:$8 sps:$4 sm:$0xff]   ;;  %v12740_v13 = vld [vmem:[#allocation8 + $0x300] ss:$8 sps:$4 sm:$0xff]   ;;  %v437_v15 = vrot.slane %v433_v1, 4 }
  0xa3   :  { %4904 = vmatprep.subr.bf16.mxu0 %v12733_v14  ;;  %v785_v4 = vor.u32 %v784_v60, %v781_v47  ;;  %v799_v12 = vor.u32 %v798_v63, %v795_v61  ;;  %v436_v14 = vor.u32 %v434_v58, %v433_v1  ;;  %v579_v16 = vld [vmem:[#allocation2 + $0x108] sm:$0xff]  ;;  %v582_v9 = vld [vmem:[#allocation2 + $0x40] sm:$0x11]  ;;  %v148_v10 = vld [vmem:[#allocation2 + $0xd8] sm:$0x11]  ;;  %v439_v41 = vshrl.u32 %v12564_v17, 16 }
  0xa4   :  { %5016 = vmatpush1.bf16.msra.mxu1 %v12728_v42  ;;  %v12748_v20 = vld [vmem:[#allocation8 + $0x3f4] ss:$8 sps:$4 sm:$0xff]   ;;  %v12751_v21 = vld [vmem:[#allocation8 + $0x2e4] ss:$8 sps:$4 sm:$0xff]   ;;  %v149_v22 = vsel %vm13755_vm6, 0, %v148_v10  ;;  %v442_v47 = vshll.u32 %v12564_v17, 16 }
  0xa5   :  { %4729 = vmatmul.mubr.bf16.gmra.mxu0 %v11681_v54  ;;  %5017 = vmatprep.subr.bf16.mxu1 %v12736_v45  ;;  %v786_v19 = vrot.slane %v785_v4, 4  ;;  %v151_v0 = vld [vmem:[#allocation2 + $0x8] sm:$0x11]  ;;  %v242_v18 = vld [vmem:[#allocation5 + $0xa0] sm:$0xff]  ;;  %v672_v24 = vld [vmem:[#allocation2 + $0x118] sm:$0x11]  ;;  %v580_v26 = vsel %vm13781_vm2, %v436_v14, %v579_v16 }
  0xa6   :  { %4905 = vmatpush1.bf16.msra.mxu0 %v12731_v27  ;;  %v243_v23 = vld [vmem:[#allocation5 + $0xa8] sm:$0xff]  ;;  %v800_v25 = vrot.slane %v799_v12, 4  ;;  %v583_v27 = vsel %vm13755_vm6, %v437_v15, %v582_v9  ;;  %150 = vst [vmem:[#allocation2 + $0xd8] sm:$0x11] %v149_v22  ;;  %v152_v28 = vsel %vm13755_vm6, 0, %v151_v0  ;;  %v788_v31 = vshll.u32 %v672_v24, 16 }
  0xa7   :  { %4906 = vmatprep.subr.bf16.mxu0 %v12739_v51  ;;  %v201_v29 = vld [vmem:[#allocation2 + $0x80] sm:$0x11]  ;;  %v674_v30 = vld [vmem:[#allocation2 + $0x30] sm:$0x11]  ;;  %581 = vst [vmem:[#allocation2 + $0x108] sm:$0xff] %v580_v26  ;;  %v821_v34 = vshrl.u32 %v580_v26, 16  ;;  %v12565_v40 = vpack.c.bf16 %v243_v23, %v242_v18 }
  0xa8   :  { %5018 = vmatpush1.bf16.msra.mxu1 %v12734_v55  ;;  %v13499_v32 = vld [vmem:[#allocation2 + $0x110] sm:$0xff]  ;;  %584 = vst [vmem:[#allocation2 + $0x40] sm:$0x11] %v583_v27  ;;  %v824_v35 = vshll.u32 %v580_v26, 16  ;;  %153 = vst [vmem:[#allocation2 + $0x8] sm:$0x11] %v152_v28 }
  0xa9   :  { %5019 = vmatprep.subr.bf16.mxu1 %v12742_v6  ;;  %v11700_v33 = vcombine.high %v13499_v32, %v580_v26  ;;  %v802_v36 = vshll.u32 %v674_v30, 16  ;;  %v11699_v37 = vcombine.low %v13499_v32, %v580_v26  ;;  %v12746_v38 = vld [vmem:[#allocation8 + $0x3f0] ss:$8 sps:$4 sm:$0xff]   ;;  %v790_v43 = vrot.slane %v788_v31, 5  ;;  %v12749_v46 = vld [vmem:[#allocation8 + $0x2e0] ss:$8 sps:$4 sm:$0xff]  }
  0xaa   :  { %4907 = vmatpush1.bf16.msra.mxu0 %v12737_v62  ;;  %v204_v42 = vld [vmem:[#allocation2 + $0x130] sm:$0x11]  ;;  %v823_v44 = vrot.slane %v821_v34, 4  ;;  %v826_v45 = vrot.slane %v824_v35, 5  ;;  %v13916_v49 = vrot.slane %v439_v41, 7  ;;  %v447_v51 = vshrl.u32 %v12565_v40, 16 }
  0xab   :  { %4908 = vmatprep.subr.bf16.mxu0 %v12745_v2  ;;  %4738 = vmatprep.mubr.bf16.mxu0 %v11700_v33  ;;  %v804_v48 = vrot.slane %v802_v36, 5  ;;  %v450_v52 = vshll.u32 %v12565_v40, 16  ;;  %v12757_v54 = vld [vmem:[#allocation8 + $0x2d4] ss:$8 sps:$4 sm:$0xff]   ;;  %v791_v55 = vsel %vm13810_vm3, %v786_v19, %v790_v43  ;;  %v12754_v58 = vld [vmem:[#allocation8 + $0x3e4] ss:$8 sps:$4 sm:$0xff]  }
  0xac   :  { %5020 = vmatpush1.bf16.msra.mxu1 %v12740_v13  ;;  %v827_v56 = vor.u32 %v826_v45, %v823_v44  ;;  %v202_v60 = vsel %vm13763_vm11, 0, %v201_v29  ;;  %v205_v61 = vsel %vm13763_vm11, 0, %v204_v42  ;;  %v818_v63 = vrot.slane %v816_v7, 5  ;;  %v12752_v1 = vld [vmem:[#allocation8 + $0x3e0] ss:$8 sps:$4 sm:$0xff]   ;;  %v245_v31 = vld [vmem:[#allocation5 + $0xb8] sm:$0xff] }
  0xad   :  { %4739 = vmatmul.mubr.bf16.gmra.mxu0 %v11699_v37  ;;  %5021 = vmatprep.subr.bf16.mxu1 %v12748_v20  ;;  %v805_v62 = vsel %vm13810_vm3, %v800_v25, %v804_v48  ;;  %v444_v2 = vor.u32 %v442_v47, %v13916_v49  ;;  %v13929_v3 = vrot.slane %v447_v51, 7  ;;  %203 = vst [vmem:[#allocation2 + $0x80] sm:$0x11] %v202_v60  ;;  %206 = vst [vmem:[#allocation2 + $0x130] sm:$0x11] %v205_v61  ;;  %v585_v11 = vld [vmem:[#allocation2 + $0xd8] sm:$0xff] }
  0xae   :  { %4909 = vmatpush2.bf16.msra.mxu0 %v12743_v8  ;;  %v12755_v4 = vld [vmem:[#allocation8 + $0x2d0] ss:$8 sps:$4 sm:$0xff]   ;;  %v11684_v6 = vcombine.high %v791_v55, %v805_v62  ;;  %v11683_v8 = vcombine.low %v791_v55, %v805_v62  ;;  %v12760_v12 = vld [vmem:[#allocation8 + $0x3d4] ss:$8 sps:$4 sm:$0xff]   ;;  %v12763_v13 = vld [vmem:[#allocation8 + $0x2c4] ss:$8 sps:$4 sm:$0xff]  }
  0xaf   :  { %4910 = vmatprep.subr.bf16.mxu0 %v12751_v21  ;;  %v678_v14 = vld [vmem:[#allocation2 + $0x40] sm:$0x11]  ;;  %v445_v15 = vrot.slane %v13916_v49, 4  ;;  %v452_v59 = vor.u32 %v450_v52, %v13929_v3  ;;  %v13935_v7 = vsel %vm13781_vm2, %v444_v2, %v585_v11  ;;  %v591_v16 = vld [vmem:[#allocation2 + $0x8] sm:$0xff]  ;;  %v828_v9 = vrot.slane %v827_v56, 4  ;;  %v244_v25 = vld [vmem:[#allocation5 + $0xb0] sm:$0xff] }
  0xb0   :  { %5022 = vmatpush2.bf16.msra.mxu1 %v12746_v38  ;;  %4841 = vmatprep.mubr.bf16.mxu1 %v11684_v6  ;;  %v830_v10 = vshll.u32 %v678_v14, 16  ;;  %587 = vst [vmem:[#allocation2 + $0xd8] sm:$0xff] %v13935_v7  ;;  %v835_v17 = vshrl.u32 %v13935_v7, 16  ;;  %v838_v19 = vshll.u32 %v13935_v7, 16  ;;  %v12761_v20 = vld [vmem:[#allocation8 + $0x2c0] ss:$8 sps:$4 sm:$0xff]   ;;  %v13943_v21 = vsel %vm13810_vm3, %v13806_v53, %v818_v63 }
  0xb1   :  { %5023 = vmatprep.subr.bf16.mxu1 %v12754_v58  ;;  %4842 = vmatmul.mubr.bf16.gmra.mxu1 %v11683_v8  ;;  %v453_v22 = vrot.slane %v13929_v3, 4  ;;  %v592_v0 = vsel %vm13781_vm2, %v452_v59, %v591_v16  ;;  %v12758_v18 = vld [vmem:[#allocation8 + $0x3d0] ss:$8 sps:$4 sm:$0xff]   ;;  %v154_v23 = vld [vmem:[#allocation2 + $0xe0] sm:$0x11]  ;;  %v247_v32 = vld [vmem:[#allocation5 + $0xc8] sm:$0xff]  ;;  %v12566_v44 = vpack.c.bf16 %v245_v31, %v244_v25 }
  0xb2   :  { %4911 = vmatpush2.bf16.msra.mxu0 %v12749_v46  ;;  %v157_v24 = vld [vmem:[#allocation2 + $0x100] sm:$0x11]  ;;  %v832_v26 = vrot.slane %v830_v10, 5  ;;  %593 = vst [vmem:[#allocation2 + $0x8] sm:$0xff] %v592_v0  ;;  %v11718_v27 = vcombine.high %v13935_v7, %v592_v0  ;;  %v837_v28 = vrot.slane %v835_v17, 4  ;;  %v840_v29 = vrot.slane %v838_v19, 5 }
  0xb3   :  { %4912 = vmatprep.subr.bf16.mxu0 %v12757_v54  ;;  %v12766_v30 = vld [vmem:[#allocation8 + $0x3c4] ss:$8 sps:$4 sm:$0xff]   ;;  %v849_v33 = vshrl.u32 %v592_v0, 16  ;;  %v852_v34 = vshll.u32 %v592_v0, 16  ;;  %v11717_v35 = vcombine.low %v13935_v7, %v592_v0  ;;  %v155_v36 = vsel %vm13755_vm6, 0, %v154_v23  ;;  %v248_v23 = vld [vmem:[#allocation5 + $0xd0] sm:$0xff] }
  0xb4   :  { %v246_v53 = vld [vmem:[#allocation5 + $0xc0] sm:$0xff]  ;;  %5024 = vmatpush2.bf16.msra.mxu1 %v12752_v1  ;;  %v207_v37 = vld [vmem:[#allocation2 + $0x10] sm:$0x11]  ;;  %v833_v38 = vsel %vm13810_vm3, %v828_v9, %v832_v26  ;;  %4748 = vmatprep.mubr.bf16.mxu0 %v11718_v27  ;;  %v841_v42 = vor.u32 %v840_v29, %v837_v28  ;;  %156 = vst [vmem:[#allocation2 + $0xe0] sm:$0x11] %v155_v36  ;;  %v158_v43 = vsel %vm13755_vm6, 0, %v157_v24 }
  0xb5   :  { %v588_v40 = vld [vmem:[#allocation2 + $0x80] sm:$0x11]  ;;  %v594_v41 = vld [vmem:[#allocation2 + $0x130] sm:$0x11]  ;;  %5025 = vmatprep.subr.bf16.mxu1 %v12760_v12  ;;  %v11702_v45 = vcombine.high %v13943_v21, %v833_v38  ;;  %v11701_v46 = vcombine.low %v13943_v21, %v833_v38  ;;  %4749 = vmatmul.mubr.bf16.gmra.mxu0 %v11717_v35  ;;  %159 = vst [vmem:[#allocation2 + $0x100] sm:$0x11] %v158_v43 }
  0xb6   :  { %4913 = vmatpush2.bf16.msra.mxu0 %v12755_v4  ;;  %v589_v47 = vsel %vm13755_vm6, %v445_v15, %v588_v40  ;;  %v595_v48 = vsel %vm13755_vm6, %v453_v22, %v594_v41  ;;  %v210_v49 = vld [vmem:[#allocation2 + $0x98] sm:$0x11]  ;;  %v13962_v54 = vrot.slane %v841_v42, 4  ;;  %v851_v55 = vrot.slane %v849_v33, 4  ;;  %v12764_v60 = vld [vmem:[#allocation8 + $0x3c0] ss:$8 sps:$4 sm:$0xff]  }
  0xb7   :  { %4914 = vmatprep.subr.bf16.mxu0 %v12763_v13  ;;  %v12767_v51 = vld [vmem:[#allocation8 + $0x2b0] ss:$8 sps:$4 sm:$0xff]   ;;  %v12769_v52 = vld [vmem:[#allocation8 + $0x2b4] ss:$8 sps:$4 sm:$0xff]   ;;  %590 = vst [vmem:[#allocation2 + $0x80] sm:$0x11] %v589_v47  ;;  %v12567_v58 = vpack.c.bf16 %v247_v32, %v246_v53  ;;  %4851 = vmatprep.mubr.bf16.mxu1 %v11702_v45 }
  0xb8   :  { %596 = vst [vmem:[#allocation2 + $0x130] sm:$0x11] %v595_v48  ;;  %v854_v56 = vrot.slane %v852_v34, 5  ;;  %5026 = vmatpush2.bf16.msra.mxu1 %v12758_v18  ;;  %v455_v61 = vshrl.u32 %v12566_v44, 16  ;;  %v458_v62 = vshll.u32 %v12566_v44, 16  ;;  %v208_v63 = vsel %vm13763_vm11, 0, %v207_v37 }
  0xb9   :  { %v211_v1 = vsel %vm13763_vm11, 0, %v210_v49  ;;  %5027 = vmatprep.subr.bf16.mxu1 %v12766_v30  ;;  %v463_v3 = vshrl.u32 %v12567_v58, 16  ;;  %v466_v4 = vshll.u32 %v12567_v58, 16  ;;  %209 = vst [vmem:[#allocation2 + $0x10] sm:$0x11] %v208_v63  ;;  %4852 = vmatmul.mubr.bf16.gmra.mxu1 %v11701_v46  ;;  %v249_v24 = vld [vmem:[#allocation5 + $0xd8] sm:$0xff] }
  0xba   :  { %4915 = vmatpush2.bf16.msra.mxu0 %v12761_v20  ;;  %v855_v2 = vor.u32 %v854_v56, %v851_v55  ;;  %212 = vst [vmem:[#allocation2 + $0x98] sm:$0x11] %v211_v1  ;;  %v12772_v6 = vld [vmem:[#allocation8 + $0x3b4] ss:$8 sps:$4 sm:$0xff]   ;;  %v457_v8 = vrot.slane %v455_v61, 7  ;;  %v13976_v29 = vpack.c.bf16 %v249_v24, %v248_v23  ;;  %v250_v33 = vld [vmem:[#allocation5 + $0xe0] sm:$0xff] }
  0xbb   :  { %4916 = vmatprep.subr.bf16.mxu0 %v12769_v52  ;;  %v12770_v11 = vld [vmem:[#allocation8 + $0x3b0] ss:$8 sps:$4 sm:$0xff]   ;;  %v12775_v12 = vld [vmem:[#allocation8 + $0x2a4] ss:$8 sps:$4 sm:$0xff]   ;;  %v465_v14 = vrot.slane %v463_v3, 7 }
  0xbc   :  { %v856_v13 = vrot.slane %v855_v2, 4  ;;  %v12773_v15 = vld [vmem:[#allocation8 + $0x2a0] ss:$8 sps:$4 sm:$0xff]   ;;  %v12778_v59 = vld [vmem:[#allocation8 + $0x3a4] ss:$8 sps:$4 sm:$0xff]   ;;  %v460_v16 = vor.u32 %v458_v62, %v457_v8  ;;  %v461_v9 = vrot.slane %v457_v8, 4  ;;  %5028 = vmatpush2.bf16.msra.mxu1 %v12764_v60 }
  0xbd   :  { %v597_v10 = vld [vmem:[#allocation2 + $0xe0] sm:$0xff]  ;;  %v160_v17 = vld [vmem:[#allocation2 + $0xd0] sm:$0x11]  ;;  %v163_v19 = vld [vmem:[#allocation2 + $0x58] sm:$0x11]  ;;  %v468_v20 = vor.u32 %v466_v4, %v465_v14  ;;  %v469_v21 = vrot.slane %v465_v14, 4  ;;  %5029 = vmatprep.subr.bf16.mxu1 %v12772_v6 }
  0xbe   :  { %4917 = vmatpush2.bf16.msra.mxu0 %v12767_v51  ;;  %v603_v22 = vld [vmem:[#allocation2 + $0x100] sm:$0xff]  ;;  %v161_v0 = vsel %vm13755_vm6, 0, %v160_v17  ;;  %v164_v18 = vsel %vm13755_vm6, 0, %v163_v19  ;;  %v13974_v27 = vsel %vm13781_vm2, %v460_v16, %v597_v10  ;;  %v251_v34 = vld [vmem:[#allocation5 + $0xe8] sm:$0xff]  ;;  %v12779_v55 = vld [vmem:[#allocation8 + $0x290] ss:$8 sps:$4 sm:$0xff]  }
  0xbf   :  { %4918 = vmatprep.subr.bf16.mxu0 %v12775_v12  ;;  %v680_v25 = vld [vmem:[#allocation2 + $0x80] sm:$0x11]  ;;  %v682_v26 = vld [vmem:[#allocation2 + $0x130] sm:$0x11]  ;;  %162 = vst [vmem:[#allocation2 + $0xd0] sm:$0x11] %v161_v0  ;;  %v13981_v53 = vsel %vm13781_vm2, %v468_v20, %v603_v22  ;;  %v12569_v60 = vpack.c.bf16 %v251_v34, %v250_v33 }
  0xc0   :  { %v12776_v28 = vld [vmem:[#allocation8 + $0x3a0] ss:$8 sps:$4 sm:$0xff]   ;;  %165 = vst [vmem:[#allocation2 + $0x58] sm:$0x11] %v164_v18  ;;  %v844_v30 = vshll.u32 %v680_v25, 16  ;;  %v858_v31 = vshll.u32 %v682_v26, 16  ;;  %v11736_v35 = vcombine.high %v13974_v27, %v13981_v53  ;;  %v11735_v41 = vcombine.low %v13974_v27, %v13981_v53  ;;  %5030 = vmatpush2.bf16.msra.mxu1 %v12770_v11 }
  0xc1   :  { %599 = vst [vmem:[#allocation2 + $0xe0] sm:$0xff] %v13974_v27  ;;  %v863_v32 = vshrl.u32 %v13974_v27, 16  ;;  %605 = vst [vmem:[#allocation2 + $0x100] sm:$0xff] %v13981_v53  ;;  %v600_v36 = vld [vmem:[#allocation2 + $0x10] sm:$0x11]  ;;  %v866_v38 = vshll.u32 %v13974_v27, 16  ;;  %5031 = vmatprep.subr.bf16.mxu1 %v12778_v59 }
  0xc2   :  { %4919 = vmatpush2.bf16.msra.mxu0 %v12773_v15  ;;  %v606_v37 = vld [vmem:[#allocation2 + $0x98] sm:$0x11]  ;;  %v877_v40 = vshrl.u32 %v13981_v53, 16  ;;  %v846_v42 = vrot.slane %v844_v30, 5  ;;  %v860_v43 = vrot.slane %v858_v31, 5  ;;  %v601_v44 = vsel %vm13755_vm6, %v461_v9, %v600_v36  ;;  %4758 = vmatprep.mubr.bf16.mxu0 %v11736_v35 }
  0xc3   :  { %v607_v45 = vsel %vm13755_vm6, %v469_v21, %v606_v37  ;;  %v213_v46 = vld [vmem:[#allocation2] sm:$0x11]  ;;  %602 = vst [vmem:[#allocation2 + $0x10] sm:$0x11] %v601_v44  ;;  %v865_v48 = vrot.slane %v863_v32, 4  ;;  %v868_v49 = vrot.slane %v866_v38, 5  ;;  %4759 = vmatmul.mubr.bf16.gmra.mxu0 %v11735_v41 }
  0xc4   :  { %v216_v47 = vld [vmem:[#allocation2 + $0x120] sm:$0x11]  ;;  %608 = vst [vmem:[#allocation2 + $0x98] sm:$0x11] %v607_v45  ;;  %v879_v51 = vrot.slane %v877_v40, 4  ;;  %v880_v52 = vshll.u32 %v13981_v53, 16  ;;  %v847_v56 = vsel %vm13810_vm3, %v13962_v54, %v846_v42  ;;  %v861_v58 = vsel %vm13810_vm3, %v856_v13, %v860_v43  ;;  %5032 = vmatpush2.bf16.msra.mxu1 %v12776_v28 }
  0xc5   :  { %v471_v61 = vshrl.u32 %v13976_v29, 16  ;;  %v12781_v62 = vld [vmem:[#allocation8 + $0x294] ss:$8 sps:$4 sm:$0xff]   ;;  %v11720_v63 = vcombine.high %v847_v56, %v861_v58  ;;  %v11719_v1 = vcombine.low %v847_v56, %v861_v58  ;;  %v869_v2 = vor.u32 %v868_v49, %v865_v48  ;;  %v12782_v4 = vld [vmem:[#allocation8 + $0x390] ss:$8 sps:$4 sm:$0xff]  }
  0xc6   :  { %v882_v3 = vrot.slane %v880_v52, 5  ;;  %v12784_v6 = vld [vmem:[#allocation8 + $0x394] ss:$8 sps:$4 sm:$0xff]   ;;  %v474_v54 = vshll.u32 %v13976_v29, 16  ;;  %v479_v11 = vshrl.u32 %v12569_v60, 16  ;;  %v482_v12 = vshll.u32 %v12569_v60, 16  ;;  %4920 = vmatprep.subr.bf16.mxu0 %v12781_v62 }
  0xc7   :  { %v14002_v8 = vrot.slane %v471_v61, 7  ;;  %v609_v13 = vld [vmem:[#allocation2 + $0xd0] sm:$0xff]  ;;  %4861 = vmatprep.mubr.bf16.mxu1 %v11720_v63  ;;  %v615_v15 = vld [vmem:[#allocation2 + $0x58] sm:$0xff]  ;;  %v214_v59 = vsel %vm13763_vm11, 0, %v213_v46  ;;  %v217_v16 = vsel %vm13763_vm11, 0, %v216_v47  ;;  %4921 = vmatpush2.bf16.msra.mxu0 %v12779_v55  ;;  %v870_v10 = vrot.slane %v869_v2, 4 }
  0xc8   :  { %v883_v14 = vor.u32 %v882_v3, %v879_v51  ;;  %v12785_v9 = vld [vmem:[#allocation8 + $0x280] ss:$8 sps:$4 sm:$0xff]   ;;  %4862 = vmatmul.mubr.bf16.gmra.mxu1 %v11719_v1  ;;  %v481_v19 = vrot.slane %v479_v11, 7  ;;  %215 = vst [vmem:[#allocation2] sm:$0x11] %v214_v59  ;;  %5033 = vmatprep.subr.bf16.mxu1 %v12784_v6  ;;  %v17080_v58 = vmov 0 }
  0xc9   :  { %v476_v17 = vor.u32 %v474_v54, %v14002_v8  ;;  %218 = vst [vmem:[#allocation2 + $0x120] sm:$0x11] %v217_v16  ;;  %v12787_v20 = vld [vmem:[#allocation8 + $0x284] ss:$8 sps:$4 sm:$0xff]   ;;  %v477_v21 = vrot.slane %v14002_v8, 4  ;;  %5034 = vmatpush2.bf16.msra.mxu1 %v12782_v4  ;;  %v17081_v58 = vsel %vm14039_vm7, 4294967295, %v17080_v58 }
  0xca   :  { %v12788_v22 = vld [vmem:[#allocation8 + $0x380] ss:$8 sps:$4 sm:$0xff]   ;;  %v12790_v0 = vld [vmem:[#allocation8 + $0x384] ss:$8 sps:$4 sm:$0xff]   ;;  %v684_v18 = vld [vmem:[#allocation2 + $0x10] sm:$0x11]  ;;  %v484_v25 = vor.u32 %v482_v12, %v481_v19  ;;  %4922 = vmatprep.subr.bf16.mxu0 %v12787_v20 }
  0xcb   :  { %v686_v23 = vld [vmem:[#allocation2 + $0x98] sm:$0x11]  ;;  %v884_v24 = vrot.slane %v883_v14, 4  ;;  %v14013_v26 = vsel %vm13781_vm2, %v476_v17, %v609_v13  ;;  %v872_v28 = vshll.u32 %v684_v18, 16  ;;  %4923 = vmatpush2.bf16.msra.mxu0 %v12785_v9  ;;  %5035 = vmatprep.subr.bf16.mxu1 %v12790_v0  ;;  %v485_v32 = vrot.slane %v481_v19, 4  ;;  %17082 = vst [vmem:[#allocation25_spill] sm:$0xff] %v17081_v58 }
  0xcc   :  { %v886_v29 = vshll.u32 %v686_v23, 16  ;;  %611 = vst [vmem:[#allocation2 + $0xd0] sm:$0xff] %v14013_v26  ;;  %v891_v30 = vshrl.u32 %v14013_v26, 16  ;;  %v894_v31 = vshll.u32 %v14013_v26, 16  ;;  %v14020_v33 = vsel %vm13781_vm2, %v484_v25, %v615_v15  ;;  %v950_v34 = vld [vmem:[#allocation2 + $0x110] sm:$0xee] }
  0xcd   :  { %v951_v35 = vld [vmem:[#allocation2 + $0x38] sm:$0x11]  ;;  %v11742_v36 = vcombine.high %v13981_v53, %v14013_v26  ;;  %v11741_v37 = vcombine.low %v13981_v53, %v14013_v26  ;;  %v874_v38 = vrot.slane %v872_v28, 5  ;;  %617 = vst [vmem:[#allocation2 + $0x58] sm:$0xff] %v14020_v33  ;;  %v11754_v41 = vcombine.high %v14013_v26, %v14020_v33  ;;  %v952_v43 = vld [vmem:[#allocation2 + $0xb0] sm:$0xee]  ;;  %5036 = vmatpush2.bf16.msra.mxu1 %v12788_v22 }
  0xce   :  { %v888_v40 = vrot.slane %v886_v29, 5  ;;  %v893_v42 = vrot.slane %v891_v30, 4  ;;  %v953_v44 = vld [vmem:[#allocation2 + $0x18] sm:$0x11]  ;;  %v896_v45 = vrot.slane %v894_v31, 5  ;;  %v905_v46 = vshrl.u32 %v14020_v33, 16 }
  0xcf   :  { %v908_v47 = vshll.u32 %v14020_v33, 16  ;;  %v11753_v48 = vcombine.low %v14013_v26, %v14020_v33  ;;  %v12793_v49 = vld [vmem:[#allocation8 + $0x474] ss:$8 sps:$4 sm:$0xff]   ;;  %v875_v51 = vsel %vm13810_vm3, %v870_v10, %v874_v38  ;;  %4768 = vmatprep.mubr.bf16.mxu0 %v11754_v41  ;;  %v612_v55 = vld [vmem:[#allocation2] sm:$0x11]  ;;  %v11579_v60 = vrot.slane %v950_v34, 9 }
  0xd0   :  { %v889_v52 = vsel %vm13810_vm3, %v884_v24, %v888_v40  ;;  %v618_v56 = vld [vmem:[#allocation2 + $0x120] sm:$0x11]  ;;  %v1019_v61 = vrot.slane %v951_v35, 5  ;;  %v613_v1 = vsel %vm13755_vm6, %v477_v21, %v612_v55  ;;  %v907_v3 = vrot.slane %v905_v46, 4  ;;  %5118 = vmatprep.subr.bf16.mxu0 %v12793_v49  ;;  %v12798_v6 = vld [vmem:[#allocation8 + $0x574] ss:$8 sps:$4 sm:$0xff]  }
  0xd1   :  { %v11738_v62 = vcombine.high %v875_v51, %v889_v52  ;;  %v11737_v63 = vcombine.low %v875_v51, %v889_v52  ;;  %v619_v2 = vsel %vm13755_vm6, %v485_v32, %v618_v56  ;;  %4769 = vmatmul.mubr.bf16.gmra.mxu0 %v11753_v48  ;;  %614 = vst [vmem:[#allocation2] sm:$0x11] %v613_v1  ;;  %v910_v4 = vrot.slane %v908_v47, 5  ;;  %v12791_v12 = vld [vmem:[#allocation8 + $0x470] ss:$8 sps:$4 sm:$0xff]   ;;  %v14057_v40 = vld [vmem:[#allocation2 + $0xc8] sm:$0xff] }
  0xd2   :  { %620 = vst [vmem:[#allocation2 + $0x120] sm:$0x11] %v619_v2  ;;  %v1020_v8 = vsel %vm14039_vm7, %v11579_v60, %v1019_v61  ;;  %v11580_v54 = vrot.slane %v952_v43, 9  ;;  %v1023_v11 = vrot.slane %v953_v44, 5  ;;  %5231 = vmatprep.subr.bf16.mxu1 %v12798_v6  ;;  %v897_v13 = vor.u32 %v896_v45, %v893_v42  ;;  %v12801_v15 = vld [vmem:[#allocation8 + $0x464] ss:$8 sps:$4 sm:$0xff]  }
  0xd3   :  { %4871 = vmatprep.mubr.bf16.mxu1 %v11738_v62  ;;  %v954_v59 = vld [vmem:[#allocation2 + $0xc8] sm:$0xee]  ;;  %v955_v16 = vld [vmem:[#allocation2 + $0xe8] sm:$0x11]  ;;  %v911_v9 = vor.u32 %v910_v4, %v907_v3  ;;  %v14055_v35 = vld [vmem:[#allocation2 + $0xb0] sm:$0xff] }
  0xd4   :  { %4872 = vmatmul.mubr.bf16.gmra.mxu1 %v11737_v63  ;;  %v1024_v14 = vsel %vm14039_vm7, %v11580_v54, %v1023_v11  ;;  %v956_v19 = vld [vmem:[#allocation2 + $0x128] sm:$0xee]  ;;  %v957_v20 = vld [vmem:[#allocation2 + $0x48] sm:$0x11]  ;;  %v11581_v21 = vrot.slane %v954_v59, 9  ;;  %v1027_v22 = vrot.slane %v955_v16, 5  ;;  %v11634_v49 = vcombine.high %v14055_v35, %v14057_v40 }
  0xd5   :  { %v11631_v10 = vcombine.low %v1020_v8, %v1024_v14  ;;  %v11632_v17 = vcombine.high %v1020_v8, %v1024_v14  ;;  %v11582_v0 = vrot.slane %v956_v19, 9  ;;  %v1031_v18 = vrot.slane %v957_v20, 5  ;;  %v12799_v23 = vld [vmem:[#allocation8 + $0x460] ss:$8 sps:$4 sm:$0xff]   ;;  %v12807_v41 = vld [vmem:[#allocation8 + $0x454] ss:$8 sps:$4 sm:$0xff]  }
  0xd6   :  { %v898_v28 = vrot.slane %v897_v13, 4  ;;  %v1028_v29 = vsel %vm14039_vm7, %v11581_v21, %v1027_v22  ;;  %v912_v32 = vrot.slane %v911_v9, 4  ;;  %v12805_v45 = vld [vmem:[#allocation8 + $0x450] ss:$8 sps:$4 sm:$0xff]   ;;  %v960_v52 = vld [vmem:[#allocation2 + $0xa8] sm:$0xee] }
  0xd7   :  { %4924 = vmatprep.mubr.bf16.mxu0 %v11632_v17  ;;  %v1032_v30 = vsel %vm14039_vm7, %v11582_v0, %v1031_v18  ;;  %v958_v46 = vld [vmem:[#allocation2 + $0x78] sm:$0xee]  ;;  %v959_v51 = vld [vmem:[#allocation2 + $0xf0] sm:$0x11]  ;;  %v961_v55 = vld [vmem:[#allocation2 + $0x60] sm:$0x11] }
  0xd8   :  { %v688_v24 = vld [vmem:[#allocation2] sm:$0x11]  ;;  %v11650_v38 = vcombine.high %v1028_v29, %v1032_v30  ;;  %v11649_v44 = vcombine.low %v1028_v29, %v1032_v30  ;;  %v11583_v62 = vrot.slane %v958_v46, 9  ;;  %v1035_v63 = vrot.slane %v959_v51, 5  ;;  %v14069_v8 = vld [vmem:[#allocation2 + $0x128] sm:$0xff]  ;;  %v237_v29 = vld [vmem:[#allocation5 + $0x78] sm:$0xff] }
  0xd9   :  { %v690_v25 = vld [vmem:[#allocation2 + $0x120] sm:$0x11]  ;;  %4925 = vmatmul.mubr.bf16.vlgmr.msra.gmra.mxu0 %v11631_v10  ;;  %v900_v31 = vshll.u32 %v688_v24, 16  ;;  %v11584_v1 = vrot.slane %v960_v52, 9  ;;  %v1039_v2 = vrot.slane %v961_v55, 5  ;;  %v11633_v10 = vcombine.low %v14055_v35, %v14057_v40  ;;  %v14083_v46 = vld [vmem:[#allocation2 + $0xa8] sm:$0xff] }
  0xda   :  { %v914_v34 = vshll.u32 %v690_v25, 16  ;;  %5119 = vmatpush1.bf16.msra.mxu0 %v12791_v12  ;;  %4934 = vmatprep.mubr.bf16.mxu0 %v11650_v38  ;;  %v12815_v61 = vld [vmem:[#allocation8 + $0x444] ss:$8 sps:$4 sm:$0xff]   ;;  %v1036_v3 = vsel %vm14039_vm7, %v11583_v62, %v1035_v63  ;;  %v12813_v4 = vld [vmem:[#allocation8 + $0x440] ss:$8 sps:$4 sm:$0xff]   ;;  %v14071_v12 = vld [vmem:[#allocation2 + $0x78] sm:$0xff] }
  0xdb   :  { %5120 = vmatprep.subr.bf16.mxu0 %v12801_v15  ;;  %v902_v42 = vrot.slane %v900_v31, 5  ;;  %v1040_v6 = vsel %vm14039_vm7, %v11584_v1, %v1039_v2  ;;  %v12821_v11 = vld [vmem:[#allocation8 + $0x434] ss:$8 sps:$4 sm:$0xff]   ;;  %v12819_v13 = vld [vmem:[#allocation8 + $0x430] ss:$8 sps:$4 sm:$0xff]   ;;  %v11652_v0 = vcombine.high %v14069_v8, %v14071_v12 }
  0xdc   :  { %v916_v43 = vrot.slane %v914_v34, 5  ;;  %v11668_v54 = vcombine.high %v1036_v3, %v1040_v6  ;;  %v12796_v14 = vld [vmem:[#allocation8 + $0x570] ss:$8 sps:$4 sm:$0xff]   ;;  %v11667_v15 = vcombine.low %v1036_v3, %v1040_v6  ;;  %v962_v59 = vld [vmem:[#allocation2 + $0x28] sm:$0xee] }
  0xdd   :  { %v903_v47 = vsel %vm13810_vm3, %v898_v28, %v902_v42  ;;  %v963_v16 = vld [vmem:[#allocation2 + $0x118] sm:$0x11]  ;;  %v964_v9 = vld [vmem:[#allocation2 + $0x70] sm:$0xee]  ;;  %v965_v17 = vld [vmem:[#allocation2 + $0x30] sm:$0x11] }
  0xde   :  { %v917_v48 = vsel %vm13810_vm3, %v912_v32, %v916_v43  ;;  %5121 = vmatpush1.bf16.msra.mxu0 %v12799_v23  ;;  %v11585_v19 = vrot.slane %v962_v59, 9  ;;  %v1043_v20 = vrot.slane %v963_v16, 5  ;;  %v11586_v21 = vrot.slane %v964_v9, 9  ;;  %v12804_v22 = vld [vmem:[#allocation8 + $0x564] ss:$8 sps:$4 sm:$0xff]   ;;  %v236_v28 = vld [vmem:[#allocation5 + $0x70] sm:$0xff] }
  0xdf   :  { %v11756_v56 = vcombine.high %v903_v47, %v917_v48  ;;  %v11755_v60 = vcombine.low %v903_v47, %v917_v48  ;;  %5122 = vmatprep.subr.bf16.mxu0 %v12807_v41  ;;  %v12827_v18 = vld [vmem:[#allocation8 + $0x424] ss:$8 sps:$4 sm:$0xff]   ;;  %v1047_v23 = vrot.slane %v965_v17, 5  ;;  %v142_v25 = vld [vmem:[#allocation2 + $0x90] sm:$0x11]  ;;  %v12562_v34 = vpack.c.bf16 %v237_v29, %v236_v28 }
  0xe0   :  { %v1044_v24 = vsel %vm14039_vm7, %v11585_v19, %v1043_v20  ;;  %v12802_v30 = vld [vmem:[#allocation8 + $0x560] ss:$8 sps:$4 sm:$0xff]   ;;  %v143_v32 = vsel %vm13755_vm6, 0, %v142_v25  ;;  %v12812_v38 = vld [vmem:[#allocation8 + $0x554] ss:$8 sps:$4 sm:$0xff]   ;;  %v1178_v20 = vshrl.u32 %v14055_v35, 16 }
  0xe1   :  { %4881 = vmatprep.mubr.bf16.mxu1 %v11756_v56  ;;  %4935 = vmatmul.mubr.bf16.gmra.mxu0 %v11649_v44  ;;  %v1048_v31 = vsel %vm14039_vm7, %v11586_v21, %v1047_v23  ;;  %v12825_v41 = vld [vmem:[#allocation8 + $0x420] ss:$8 sps:$4 sm:$0xff]   ;;  %144 = vst [vmem:[#allocation2 + $0x90] sm:$0x11] %v143_v32  ;;  %v12833_v43 = vld [vmem:[#allocation8 + $0x414] ss:$8 sps:$4 sm:$0xff]   ;;  %v11651_v56 = vcombine.low %v14069_v8, %v14071_v12 }
  0xe2   :  { %4882 = vmatmul.mubr.bf16.gmra.mxu1 %v11755_v60  ;;  %5123 = vmatpush1.bf16.msra.mxu0 %v12805_v45  ;;  %v11686_v42 = vcombine.high %v1044_v24, %v1048_v31  ;;  %v423_v44 = vshrl.u32 %v12562_v34, 16  ;;  %v426_v45 = vshll.u32 %v12562_v34, 16  ;;  %v14085_v47 = vld [vmem:[#allocation2 + $0x28] sm:$0xff]  ;;  %v12810_v48 = vld [vmem:[#allocation8 + $0x550] ss:$8 sps:$4 sm:$0xff]  }
  0xe3   :  { %5037 = vmatprep.mubr.bf16.mxu1 %v11634_v49  ;;  %5124 = vmatprep.subr.bf16.mxu0 %v12815_v61  ;;  %v11685_v49 = vcombine.low %v1044_v24, %v1048_v31  ;;  %v12831_v51 = vld [vmem:[#allocation8 + $0x410] ss:$8 sps:$4 sm:$0xff]   ;;  %v966_v55 = vld [vmem:[#allocation2 + $0xa0] sm:$0xee]  ;;  %v967_v60 = vld [vmem:[#allocation2 + $0x20] sm:$0x11]  ;;  %v11670_v1 = vcombine.high %v14083_v46, %v14085_v47  ;;  %v11669_v29 = vcombine.low %v14083_v46, %v14085_v47 }
  0xe4   :  { %4944 = vmatprep.mubr.bf16.mxu0 %v11668_v54  ;;  %v14087_v52 = vrot.slane %v423_v44, 7  ;;  %v968_v61 = vld [vmem:[#allocation2 + $0x108] sm:$0xee]  ;;  %v969_v62 = vld [vmem:[#allocation2 + $0x40] sm:$0x11]  ;;  %v11587_v3 = vrot.slane %v966_v55, 9 }
  0xe5   :  { %v12818_v63 = vld [vmem:[#allocation8 + $0x544] ss:$8 sps:$4 sm:$0xff]   ;;  %v11588_v54 = vrot.slane %v968_v61, 9  ;;  %v12837_v16 = vld [vmem:[#allocation8 + $0x400] ss:$8 sps:$4 sm:$0xff]   ;;  %v14104_v21 = vld [vmem:[#allocation2 + $0x70] sm:$0xff] }
  0xe6   :  { %5125 = vmatpush1.bf16.msra.mxu0 %v12813_v4  ;;  %v428_v2 = vor.u32 %v426_v45, %v14087_v52  ;;  %v1051_v4 = vrot.slane %v967_v60, 5  ;;  %v12839_v6 = vld [vmem:[#allocation8 + $0x404] ss:$8 sps:$4 sm:$0xff]   ;;  %v12845_v19 = vld [vmem:[#allocation8 + $0x4f4] ss:$8 sps:$4 sm:$0xff]  }
  0xe7   :  { %5126 = vmatprep.subr.bf16.mxu0 %v12821_v11  ;;  %v1055_v11 = vrot.slane %v969_v62, 5  ;;  %v970_v24 = vld [vmem:[#allocation2 + $0xd8] sm:$0xee]  ;;  %v971_v25 = vld [vmem:[#allocation2 + $0x80] sm:$0x11] }
  0xe8   :  { %v972_v28 = vld [vmem:[#allocation2 + $0x8] sm:$0xee]  ;;  %v11589_v31 = vrot.slane %v970_v24, 9  ;;  %v1059_v32 = vrot.slane %v971_v25, 5  ;;  %v12857_v62 = vld [vmem:[#allocation8 + $0x4d4] ss:$8 sps:$4 sm:$0xff]  }
  0xe9   :  { %4945 = vmatmul.mubr.bf16.gmra.mxu0 %v11667_v15  ;;  %v1052_v15 = vsel %vm14039_vm7, %v11587_v3, %v1051_v4  ;;  %v1056_v9 = vsel %vm14039_vm7, %v11588_v54, %v1055_v11  ;;  %v11590_v34 = vrot.slane %v972_v28, 9  ;;  %v12851_v44 = vld [vmem:[#allocation8 + $0x4e4] ss:$8 sps:$4 sm:$0xff]   ;;  %v12849_v60 = vld [vmem:[#allocation8 + $0x4e0] ss:$8 sps:$4 sm:$0xff]  }
  0xea   :  { %5038 = vmatmul.mubr.bf16.vlgmr.msra.gmra.mxu1 %v11633_v10  ;;  %5127 = vmatpush1.bf16.msra.mxu0 %v12819_v13  ;;  %v12816_v13 = vld [vmem:[#allocation8 + $0x540] ss:$8 sps:$4 sm:$0xff]   ;;  %v12824_v10 = vld [vmem:[#allocation8 + $0x534] ss:$8 sps:$4 sm:$0xff]   ;;  %v11704_v17 = vcombine.high %v1052_v15, %v1056_v9  ;;  %v11703_v23 = vcombine.low %v1052_v15, %v1056_v9  ;;  %v1060_v45 = vsel %vm14039_vm7, %v11589_v31, %v1059_v32  ;;  %v12855_v9 = vld [vmem:[#allocation8 + $0x4d0] ss:$8 sps:$4 sm:$0xff]  }
  0xeb   :  { %5232 = vmatpush1.bf16.msra.mxu1 %v12796_v14  ;;  %5047 = vmatprep.mubr.bf16.mxu1 %v11652_v0  ;;  %v573_v14 = vld [vmem:[#allocation2 + $0x90] sm:$0xff]  ;;  %v1181_v0 = vshll.u32 %v14055_v35, 16  ;;  %v976_v11 = vld [vmem:[#allocation2 + $0x100] sm:$0xee]  ;;  %v14136_v32 = vld [vmem:[#allocation2 + $0x8] sm:$0xff] }
  0xec   :  { %5233 = vmatprep.subr.bf16.mxu1 %v12804_v22  ;;  %5128 = vmatprep.subr.bf16.mxu0 %v12827_v18  ;;  %v14098_v59 = vsel %vm13781_vm2, %v428_v2, %v573_v14  ;;  %v12843_v22 = vld [vmem:[#allocation8 + $0x4f0] ss:$8 sps:$4 sm:$0xff]   ;;  %v14120_v2 = vld [vmem:[#allocation2 + $0x108] sm:$0xff]  ;;  %v12848_v31 = vld [vmem:[#allocation8 + $0x5f4] ss:$8 sps:$4 sm:$0xff]  }
  0xed   :  { %4954 = vmatprep.mubr.bf16.mxu0 %v11686_v42  ;;  %575 = vst [vmem:[#allocation2 + $0x90] sm:$0xff] %v14098_v59  ;;  %v12822_v18 = vld [vmem:[#allocation8 + $0x530] ss:$8 sps:$4 sm:$0xff]   ;;  %v1180_v42 = vrot.slane %v1178_v20, 4  ;;  %v11706_v20 = vcombine.high %v14120_v2, %v13935_v7  ;;  %v12840_v25 = vld [vmem:[#allocation8 + $0x500] ss:$8 sps:$4 sm:$0xff]  }
  0xee   :  { %5129 = vmatpush1.bf16.msra.mxu0 %v12825_v41  ;;  %v11688_v41 = vcombine.high %v14104_v21, %v14098_v59  ;;  %v975_v3 = vld [vmem:[#allocation2 + $0x10] sm:$0x11]  ;;  %v1220_v7 = vshrl.u32 %v14071_v12, 16  ;;  %v1439_v26 = vld [vmem:[#allocation2 + $0x78] sm:$0xee] }
  0xef   :  { %5234 = vmatpush1.bf16.msra.mxu1 %v12802_v30  ;;  %5130 = vmatprep.subr.bf16.mxu0 %v12833_v43  ;;  %v973_v30 = vld [vmem:[#allocation2 + $0x130] sm:$0x11]  ;;  %v1192_v43 = vshrl.u32 %v14057_v40, 16  ;;  %v1067_v15 = vrot.slane %v975_v3, 5  ;;  %v5813_v58 = vld [vmem:[#allocation3 + $0x8] sm:$0x11] }
  0xf0   :  { %5235 = vmatprep.subr.bf16.mxu1 %v12812_v38  ;;  %v12830_v38 = vld [vmem:[#allocation8 + $0x524] ss:$8 sps:$4 sm:$0xff]   ;;  %v1063_v35 = vrot.slane %v973_v30, 5  ;;  %v1209_v30 = vshll.u32 %v14069_v8, 16  ;;  %v252_v3 = vld [vmem:[#allocation5 + $0xf0] sm:$0xff] }
  0xf1   :  { %4955 = vmatmul.mubr.bf16.gmra.mxu0 %v11685_v49  ;;  %v1195_v49 = vshll.u32 %v14057_v40, 16  ;;  %v974_v40 = vld [vmem:[#allocation2 + $0xe0] sm:$0xee] }
  0xf2   :  { %5048 = vmatmul.mubr.bf16.gmra.mxu1 %v11651_v56  ;;  %5131 = vmatpush1.bf16.msra.mxu0 %v12831_v51  ;;  %v12828_v51 = vld [vmem:[#allocation8 + $0x520] ss:$8 sps:$4 sm:$0xff]   ;;  %v1064_v55 = vsel %vm14039_vm7, %v11590_v34, %v1063_v35  ;;  %v12836_v56 = vld [vmem:[#allocation8 + $0x514] ss:$8 sps:$4 sm:$0xff]   ;;  %v11591_v14 = vrot.slane %v974_v40, 9  ;;  %v1234_v35 = vshrl.u32 %v14083_v46, 16 }
  0xf3   :  { %5236 = vmatpush1.bf16.msra.mxu1 %v12810_v48  ;;  %5057 = vmatprep.mubr.bf16.mxu1 %v11670_v1  ;;  %v1183_v48 = vrot.slane %v1181_v0, 5  ;;  %v11722_v61 = vcombine.high %v1060_v45, %v1064_v55  ;;  %v1206_v1 = vshrl.u32 %v14069_v8, 16  ;;  %v11721_v54 = vcombine.low %v1060_v45, %v1064_v55  ;;  %v12842_v0 = vld [vmem:[#allocation8 + $0x504] ss:$8 sps:$4 sm:$0xff]   ;;  %v12861_v34 = vld [vmem:[#allocation8 + $0x4c0] ss:$8 sps:$4 sm:$0xff]  }
  0xf4   :  { %5237 = vmatprep.subr.bf16.mxu1 %v12818_v63  ;;  %5132 = vmatprep.subr.bf16.mxu0 %v12839_v6  ;;  %v14117_v63 = vrot.slane %v1192_v43, 4  ;;  %v1197_v6 = vrot.slane %v1195_v49, 5  ;;  %v978_v43 = vld [vmem:[#allocation2 + $0xd0] sm:$0xee]  ;;  %v980_v8 = vld [vmem:[#allocation2 + $0x58] sm:$0xee] }
  0xf5   :  { %4964 = vmatprep.mubr.bf16.mxu0 %v11704_v17  ;;  %v1184_v4 = vor.u32 %v1183_v48, %v1180_v42  ;;  %v12869_v42 = vld [vmem:[#allocation8 + $0x4b4] ss:$8 sps:$4 sm:$0xff]   ;;  %v981_v45 = vld [vmem:[#allocation2 + $0x120] sm:$0x11]  ;;  %v11593_v48 = vrot.slane %v978_v43, 9 }
  0xf6   :  { %5133 = vmatpush1.bf16.msra.mxu0 %v12837_v16  ;;  %v11687_v16 = vcombine.low %v14104_v21, %v14098_v59  ;;  %v166_v40 = vld [vmem:[#allocation2 + $0xc0] sm:$0x11] }
  0xf7   :  { %5238 = vmatpush1.bf16.msra.mxu1 %v12816_v13  ;;  %5134 = vmatprep.subr.bf16.mxu0 %v12845_v19  ;;  %v977_v13 = vld [vmem:[#allocation2 + $0x98] sm:$0x11]  ;;  %v14130_v24 = vrot.slane %v1184_v4, 4 }
  0xf8   :  { %5239 = vmatprep.subr.bf16.mxu1 %v12824_v10  ;;  %v11592_v10 = vrot.slane %v976_v11, 9  ;;  %v1071_v17 = vrot.slane %v977_v13, 5  ;;  %v12834_v19 = vld [vmem:[#allocation8 + $0x510] ss:$8 sps:$4 sm:$0xff]   ;;  %v1211_v13 = vrot.slane %v1209_v30, 5 }
  0xf9   :  { %4965 = vmatmul.mubr.bf16.gmra.mxu0 %v11703_v23  ;;  %v253_v11 = vld [vmem:[#allocation5 + $0xf8] sm:$0xff] }
  0xfa   :  { %5058 = vmatmul.mubr.bf16.gmra.mxu1 %v11669_v29  ;;  %5135 = vmatpush2.bf16.msra.mxu0 %v12843_v22  ;;  %v1068_v22 = vsel %vm14039_vm7, %v11591_v14, %v1067_v15  ;;  %v1072_v23 = vsel %vm14039_vm7, %v11592_v10, %v1071_v17  ;;  %v14132_v29 = vrot.slane %v1206_v1, 4  ;;  %v12854_v14 = vld [vmem:[#allocation8 + $0x5e4] ss:$8 sps:$4 sm:$0xff]   ;;  %v12852_v10 = vld [vmem:[#allocation8 + $0x5e0] ss:$8 sps:$4 sm:$0xff]  }
  0xfb   :  { %5240 = vmatpush1.bf16.msra.mxu1 %v12822_v18  ;;  %5067 = vmatprep.mubr.bf16.mxu1 %v11688_v41  ;;  %v12863_v18 = vld [vmem:[#allocation8 + $0x4c4] ss:$8 sps:$4 sm:$0xff]   ;;  %v11740_v28 = vcombine.high %v1068_v22, %v1072_v23  ;;  %v1223_v41 = vshll.u32 %v14071_v12, 16  ;;  %v11739_v55 = vcombine.low %v1068_v22, %v1072_v23  ;;  %v1237_v12 = vshll.u32 %v14083_v46, 16  ;;  %v1146_v30 = vld [vmem:[#allocation2 + $0x18] sm:$0x11] }
  0xfc   :  { %5241 = vmatprep.subr.bf16.mxu1 %v12830_v38  ;;  %5136 = vmatprep.subr.bf16.mxu0 %v12851_v44  ;;  %v1198_v38 = vor.u32 %v1197_v6, %v14117_v63  ;;  %v979_v44 = vld [vmem:[#allocation2] sm:$0x11]  ;;  %v12867_v63 = vld [vmem:[#allocation8 + $0x4b0] ss:$8 sps:$4 sm:$0xff]   ;;  %v11724_v6 = vcombine.high %v14136_v32, %v13974_v27 }
  0xfd   :  { %4974 = vmatprep.mubr.bf16.mxu0 %v11722_v61  ;;  %v1075_v49 = vrot.slane %v979_v44, 5  ;;  %v13500_v61 = vld [vmem:[#allocation2 + $0xd8] sm:$0xff]  ;;  %v12875_v15 = vld [vmem:[#allocation8 + $0x4a4] ss:$8 sps:$4 sm:$0xff]   ;;  %v1239_v22 = vrot.slane %v1237_v12, 5  ;;  %v1248_v44 = vshrl.u32 %v14085_v47, 16 }
  0xfe   :  { %5137 = vmatpush2.bf16.msra.mxu0 %v12849_v60  ;;  %v1079_v60 = vrot.slane %v981_v45, 5  ;;  %v1199_v4 = vrot.slane %v1198_v38, 4  ;;  %v12879_v45 = vld [vmem:[#allocation8 + $0x490] ss:$8 sps:$4 sm:$0xff]   ;;  %v12887_v12 = vld [vmem:[#allocation8 + $0x484] ss:$8 sps:$4 sm:$0xff]  }
  0xff   :  { %5242 = vmatpush1.bf16.msra.mxu1 %v12828_v51  ;;  %5138 = vmatprep.subr.bf16.mxu0 %v12857_v62  ;;  %v12846_v51 = vld [vmem:[#allocation8 + $0x5f0] ss:$8 sps:$4 sm:$0xff]   ;;  %v11705_v62 = vcombine.low %v14120_v2, %v13500_v61  ;;  %v14145_v1 = vsel %vm14039_vm7, %v11593_v48, %v1075_v49 }
 0x100   :  { %5243 = vmatprep.subr.bf16.mxu1 %v12836_v56  ;;  %v11594_v56 = vrot.slane %v980_v8, 9  ;;  %v1251_v8 = vshll.u32 %v14085_v47, 16 }
 0x101   :  { %4975 = vmatmul.mubr.bf16.gmra.mxu0 %v11721_v54  ;;  %v167_v54 = vsel %vm13755_vm6, 0, %v166_v40 }
 0x102   :  { %5068 = vmatmul.mubr.bf16.gmra.mxu1 %v11687_v16  ;;  %5139 = vmatpush2.bf16.msra.mxu0 %v12855_v9  ;;  %v1080_v46 = vsel %vm14039_vm7, %v11594_v56, %v1079_v60  ;;  %168 = vst [vmem:[#allocation2 + $0xc0] sm:$0x11] %v167_v54  ;;  %v12570_v16 = vpack.c.bf16 %v253_v11, %v252_v3  ;;  %v1222_v9 = vrot.slane %v1220_v7, 4  ;;  %v12866_v56 = vld [vmem:[#allocation8 + $0x5c4] ss:$8 sps:$4 sm:$0xff]   ;;  %v1250_v3 = vrot.slane %v1248_v44, 4 }
 0x103   :  { %5244 = vmatpush1.bf16.msra.mxu1 %v12834_v19  ;;  %5077 = vmatprep.mubr.bf16.mxu1 %v11706_v20  ;;  %v11758_v17 = vcombine.high %v14145_v1, %v1080_v46  ;;  %v1225_v19 = vrot.slane %v1223_v41, 5  ;;  %v1236_v20 = vrot.slane %v1234_v35, 4  ;;  %v1212_v7 = vor.u32 %v1211_v13, %v14132_v29  ;;  %v12893_v54 = vld [vmem:[#allocation8 + $0x674] ss:$8 sps:$4 sm:$0xff]   ;;  %v12876_v44 = vld [vmem:[#allocation8 + $0x5a0] ss:$8 sps:$4 sm:$0xff]  }
 0x104   :  { %5245 = vmatprep.subr.bf16.mxu1 %v12842_v0  ;;  %5140 = vmatprep.subr.bf16.mxu0 %v12863_v18  ;;  %v12860_v0 = vld [vmem:[#allocation8 + $0x5d4] ss:$8 sps:$4 sm:$0xff]   ;;  %v12873_v18 = vld [vmem:[#allocation8 + $0x4a0] ss:$8 sps:$4 sm:$0xff]   ;;  %v487_v23 = vshrl.u32 %v12570_v16, 16  ;;  %v1187_v41 = vshll.u32 %v1146_v30, 16 }
 0x105   :  { %4984 = vmatprep.mubr.bf16.mxu0 %v11740_v28  ;;  %v12881_v28 = vld [vmem:[#allocation8 + $0x494] ss:$8 sps:$4 sm:$0xff]   ;;  %v1226_v43 = vor.u32 %v1225_v19, %v1222_v9  ;;  %v1213_v40 = vrot.slane %v1212_v7, 4  ;;  %v1435_v19 = vld [vmem:[#allocation2 + $0xc8] sm:$0xee] }
 0x106   :  { %5141 = vmatpush2.bf16.msra.mxu0 %v12861_v34  ;;  %v11723_v34 = vcombine.low %v14136_v32, %v13974_v27  ;;  %v14157_v38 = vrot.slane %v487_v23, 7  ;;  %v1189_v48 = vrot.slane %v1187_v41, 5  ;;  %v1240_v27 = vor.u32 %v1239_v22, %v1236_v20  ;;  %v1436_v20 = vld [vmem:[#allocation2 + $0xe8] sm:$0x11] }
 0x107   :  { %5246 = vmatpush1.bf16.msra.mxu1 %v12840_v25  ;;  %5142 = vmatprep.subr.bf16.mxu0 %v12869_v42  ;;  %v490_v25 = vshll.u32 %v12570_v16, 16  ;;  %v11757_v42 = vcombine.low %v14145_v1, %v1080_v46  ;;  %v12872_v46 = vld [vmem:[#allocation8 + $0x5b4] ss:$8 sps:$4 sm:$0xff]   ;;  %v1227_v11 = vrot.slane %v1226_v43, 4  ;;  %v1503_v41 = vrot.slane %v1436_v20, 5 }
 0x108   :  { %5247 = vmatprep.subr.bf16.mxu1 %v12848_v31  ;;  %v1148_v31 = vld [vmem:[#allocation2 + $0xe8] sm:$0x11]  ;;  %v1190_v47 = vsel %vm13810_vm3, %v14130_v24, %v1189_v48  ;;  %v14173_v13 = vrot.slane %v1240_v27, 4  ;;  %v1433_v24 = vld [vmem:[#allocation2 + $0xb0] sm:$0xee] }
 0x109   :  { %4985 = vmatmul.mubr.bf16.gmra.mxu0 %v11739_v55  ;;  %v1201_v35 = vshll.u32 %v1148_v31, 16  ;;  %v492_v29 = vor.u32 %v490_v25, %v14157_v38  ;;  %v621_v55 = vld [vmem:[#allocation2 + $0xc0] sm:$0xff]  ;;  %v1265_v25 = vshll.u32 %v14104_v21, 16  ;;  %v11595_v31 = vrot.slane %v1433_v24, 9  ;;  %v12884_v48 = vld [vmem:[#allocation8 + $0x594] ss:$8 sps:$4 sm:$0xff]  }
 0x10a   :  { %5078 = vmatmul.mubr.bf16.gmra.mxu1 %v11705_v62  ;;  %5143 = vmatpush2.bf16.msra.mxu0 %v12867_v63  ;;  %v12864_v62 = vld [vmem:[#allocation8 + $0x5c0] ss:$8 sps:$4 sm:$0xff]  }
 0x10b   :  { %5248 = vmatpush2.bf16.msra.mxu1 %v12846_v51  ;;  %5087 = vmatprep.mubr.bf16.mxu1 %v11724_v6  ;;  %v1203_v49 = vrot.slane %v1201_v35, 5  ;;  %v12858_v51 = vld [vmem:[#allocation8 + $0x5d0] ss:$8 sps:$4 sm:$0xff]   ;;  %v14165_v60 = vsel %vm13781_vm2, %v492_v29, %v621_v55  ;;  %v12885_v63 = vld [vmem:[#allocation8 + $0x480] ss:$8 sps:$4 sm:$0xff]   ;;  %v1253_v6 = vrot.slane %v1251_v8, 5 }
 0x10c   :  { %5249 = vmatprep.subr.bf16.mxu1 %v12854_v14  ;;  %5144 = vmatprep.subr.bf16.mxu0 %v12875_v15  ;;  %623 = vst [vmem:[#allocation2 + $0xc0] sm:$0xff] %v14165_v60  ;;  %v1152_v14 = vld [vmem:[#allocation2 + $0xf0] sm:$0x11]  ;;  %v1434_v15 = vld [vmem:[#allocation2 + $0x18] sm:$0x11]  ;;  %v11760_v30 = vcombine.high %v14020_v33, %v14165_v60 }
 0x10d   :  { %4994 = vmatprep.mubr.bf16.mxu0 %v11758_v17  ;;  %v1204_v61 = vsel %vm13810_vm3, %v1199_v4, %v1203_v49  ;;  %v1150_v4 = vld [vmem:[#allocation2 + $0x48] sm:$0x11]  ;;  %v1229_v9 = vshll.u32 %v1152_v14, 16  ;;  %v1254_v22 = vor.u32 %v1253_v6, %v1250_v3  ;;  %v1499_v7 = vrot.slane %v1434_v15, 5  ;;  %v1437_v49 = vld [vmem:[#allocation2 + $0x128] sm:$0xee] }
 0x10e   :  { %5145 = vmatpush2.bf16.msra.mxu0 %v12873_v18  ;;  %v11636_v1 = vcombine.high %v1190_v47, %v1204_v61  ;;  %v1215_v16 = vshll.u32 %v1150_v4, 16  ;;  %v11635_v17 = vcombine.low %v1190_v47, %v1204_v61  ;;  %v12899_v35 = vld [vmem:[#allocation8 + $0x664] ss:$8 sps:$4 sm:$0xff]   ;;  %v1279_v3 = vshll.u32 %v14098_v59, 16 }
 0x10f   :  { %5250 = vmatpush2.bf16.msra.mxu1 %v12852_v10  ;;  %5146 = vmatprep.subr.bf16.mxu0 %v12881_v28  ;;  %v12870_v10 = vld [vmem:[#allocation8 + $0x5b0] ss:$8 sps:$4 sm:$0xff]   ;;  %v1231_v23 = vrot.slane %v1229_v9, 5  ;;  %v12878_v28 = vld [vmem:[#allocation8 + $0x5a4] ss:$8 sps:$4 sm:$0xff]   ;;  %v1255_v29 = vrot.slane %v1254_v22, 4  ;;  %v14195_v47 = vsel %vm14039_vm7, %v11595_v31, %v1499_v7  ;;  %v11759_v6 = vcombine.low %v14020_v33, %v14165_v60 }
 0x110   :  { %5251 = vmatprep.subr.bf16.mxu1 %v12860_v0  ;;  %v12891_v0 = vld [vmem:[#allocation8 + $0x670] ss:$8 sps:$4 sm:$0xff]   ;;  %v1217_v18 = vrot.slane %v1215_v16, 5  ;;  %v1438_v55 = vld [vmem:[#allocation2 + $0x48] sm:$0x11]  ;;  %v11597_v14 = vrot.slane %v1437_v49, 9 }
 0x111   :  { %4995 = vmatmul.mubr.bf16.gmra.mxu0 %v11757_v42  ;;  %v1232_v43 = vsel %vm13810_vm3, %v1227_v11, %v1231_v23  ;;  %v1507_v15 = vrot.slane %v1438_v55, 5  ;;  %v11598_v16 = vrot.slane %v1439_v26, 9  ;;  %v12917_v22 = vld [vmem:[#allocation8 + $0x634] ss:$8 sps:$4 sm:$0xff]   ;;  %v429_v55 = vrot.slane %v14087_v52, 4 }
 0x112   :  { %5088 = vmatmul.mubr.bf16.gmra.mxu1 %v11723_v34  ;;  %5147 = vmatpush2.bf16.msra.mxu0 %v12879_v45  ;;  %v11596_v34 = vrot.slane %v1435_v19, 9  ;;  %v1218_v42 = vsel %vm13810_vm3, %v1213_v40, %v1217_v18  ;;  %v12905_v45 = vld [vmem:[#allocation8 + $0x654] ss:$8 sps:$4 sm:$0xff]   ;;  %v1276_v40 = vshrl.u32 %v14098_v59, 16  ;;  %v12911_v59 = vld [vmem:[#allocation8 + $0x644] ss:$8 sps:$4 sm:$0xff]  }
 0x113   :  { %5252 = vmatpush2.bf16.msra.mxu1 %v12858_v51  ;;  %5097 = vmatprep.mubr.bf16.mxu1 %v11742_v36  ;;  %v1262_v36 = vshrl.u32 %v14104_v21, 16  ;;  %v12897_v21 = vld [vmem:[#allocation8 + $0x660] ss:$8 sps:$4 sm:$0xff]   ;;  %v11654_v8 = vcombine.high %v1218_v42, %v1232_v43  ;;  %v14191_v51 = vrot.slane %v1265_v25, 5  ;;  %v14214_v31 = vsel %vm14039_vm7, %v11597_v14, %v1507_v15  ;;  %v12908_v52 = vld [vmem:[#allocation8 + $0x754] ss:$8 sps:$4 sm:$0xff]  }
 0x114   :  { %5253 = vmatprep.subr.bf16.mxu1 %v12866_v56  ;;  %5148 = vmatprep.subr.bf16.mxu0 %v12887_v12  ;;  %v1154_v56 = vld [vmem:[#allocation2 + $0x60] sm:$0x11]  ;;  %v1156_v12 = vld [vmem:[#allocation2 + $0x118] sm:$0x11]  ;;  %v14199_v53 = vsel %vm14039_vm7, %v11596_v34, %v1503_v41  ;;  %v1278_v23 = vrot.slane %v1276_v40, 4 }
 0x115   :  { %5150 = vmatprep.mubr.bf16.mxu0 %v11636_v1  ;;  %v14189_v27 = vrot.slane %v1262_v36, 4  ;;  %v1257_v61 = vshll.u32 %v1156_v12, 16  ;;  %v1440_v1 = vld [vmem:[#allocation2 + $0xf0] sm:$0x11]  ;;  %v11638_v4 = vcombine.high %v14195_v47, %v14199_v53  ;;  %v12888_v19 = vld [vmem:[#allocation8 + $0x580] ss:$8 sps:$4 sm:$0xff]  }
 0x116   :  { %5149 = vmatpush2.bf16.msra.mxu0 %v12885_v63  ;;  %v11653_v63 = vcombine.low %v1218_v42, %v1232_v43  ;;  %v1511_v9 = vrot.slane %v1440_v1, 5  ;;  %v1442_v18 = vld [vmem:[#allocation2 + $0x60] sm:$0x11]  ;;  %v1281_v36 = vrot.slane %v1279_v3, 5  ;;  %v1443_v25 = vld [vmem:[#allocation2 + $0x28] sm:$0xee] }
 0x117   :  { %5254 = vmatpush2.bf16.msra.mxu1 %v12864_v62  ;;  %5344 = vmatprep.subr.bf16.mxu0 %v12893_v54  ;;  %v12882_v62 = vld [vmem:[#allocation8 + $0x590] ss:$8 sps:$4 sm:$0xff]   ;;  %v1259_v24 = vrot.slane %v1257_v61, 5  ;;  %v1268_v41 = vor.u32 %v14191_v51, %v14189_v27  ;;  %v12902_v51 = vld [vmem:[#allocation8 + $0x764] ss:$8 sps:$4 sm:$0xff]  }
 0x118   :  { %5255 = vmatprep.subr.bf16.mxu1 %v12872_v46  ;;  %v12890_v46 = vld [vmem:[#allocation8 + $0x584] ss:$8 sps:$4 sm:$0xff]   ;;  %v12903_v54 = vld [vmem:[#allocation8 + $0x650] ss:$8 sps:$4 sm:$0xff]   ;;  %v14218_v7 = vsel %vm14039_vm7, %v11598_v16, %v1511_v9  ;;  %v1282_v12 = vor.u32 %v1281_v36, %v1278_v23  ;;  %v12929_v61 = vld [vmem:[#allocation8 + $0x614] ss:$8 sps:$4 sm:$0xff]  }
 0x119   :  { %5151 = vmatmul.mubr.bf16.vlgmr.msra.gmra.mxu0 %v11635_v17  ;;  %v1260_v17 = vsel %vm13810_vm3, %v1255_v29, %v1259_v24  ;;  %v12915_v43 = vld [vmem:[#allocation8 + $0x630] ss:$8 sps:$4 sm:$0xff]   ;;  %v1515_v29 = vrot.slane %v1442_v18, 5  ;;  %v14231_v26 = vrot.slane %v1268_v41, 4  ;;  %v11655_v14 = vcombine.low %v14214_v31, %v14218_v7  ;;  %v1164_v16 = vld [vmem:[#allocation2 + $0x80] sm:$0x11] }
 0x11a   :  { %5098 = vmatmul.mubr.bf16.gmra.mxu1 %v11741_v37  ;;  %5345 = vmatpush1.bf16.msra.mxu0 %v12891_v0  ;;  %v1243_v37 = vshll.u32 %v1154_v56, 16  ;;  %v1441_v0 = vld [vmem:[#allocation2 + $0xa8] sm:$0xee]  ;;  %v12894_v27 = vld [vmem:[#allocation8 + $0x770] ss:$8 sps:$4 sm:$0xff]   ;;  %v11656_v56 = vcombine.high %v14214_v31, %v14218_v7  ;;  %v1313_v31 = vshll.u32 %v1164_v16, 16 }
 0x11b   :  { %5256 = vmatpush2.bf16.msra.mxu1 %v12870_v10  ;;  %5107 = vmatprep.mubr.bf16.mxu1 %v11760_v30  ;;  %v12909_v10 = vld [vmem:[#allocation8 + $0x640] ss:$8 sps:$4 sm:$0xff]   ;;  %v14241_v3 = vld [vmem:[#allocation2 + $0x70] sm:$0xee]  ;;  %v1163_v24 = vld [vmem:[#allocation2 + $0xd8] sm:$0xff] }
 0x11c   :  { %5257 = vmatprep.subr.bf16.mxu1 %v12878_v28  ;;  %5346 = vmatprep.subr.bf16.mxu0 %v12899_v35  ;;  %v1245_v11 = vrot.slane %v1243_v37, 5  ;;  %v1444_v28 = vld [vmem:[#allocation2 + $0x118] sm:$0x11]  ;;  %v195_v30 = vld [vmem:[#allocation2 + $0x68] sm:$0x11]  ;;  %v11637_v35 = vcombine.low %v14195_v47, %v14199_v53  ;;  %v1304_v9 = vshrl.u32 %v1163_v24, 16 }
 0x11d   :  { %5160 = vmatprep.mubr.bf16.mxu0 %v11654_v8  ;;  %v196_v34 = vsel %vm13763_vm11, 0, %v195_v30  ;;  %v1293_v8 = vshll.u32 %v14120_v2, 16  ;;  %v1519_v49 = vrot.slane %v1444_v28, 5  ;;  %v12921_v47 = vld [vmem:[#allocation8 + $0x620] ss:$8 sps:$4 sm:$0xff]   ;;  %v11601_v28 = vrot.slane %v14241_v3, 9 }
 0x11e   :  { %5347 = vmatpush1.bf16.msra.mxu0 %v12897_v21  ;;  %v1246_v33 = vsel %vm13810_vm3, %v14173_v13, %v1245_v11  ;;  %v12896_v13 = vld [vmem:[#allocation8 + $0x774] ss:$8 sps:$4 sm:$0xff]   ;;  %197 = vst [vmem:[#allocation2 + $0x68] sm:$0x11] %v196_v34  ;;  %v1290_v21 = vshrl.u32 %v14120_v2, 16  ;;  %v1306_v23 = vrot.slane %v1304_v9, 4 }
 0x11f   :  { %5258 = vmatpush2.bf16.msra.mxu1 %v12876_v44  ;;  %5348 = vmatprep.subr.bf16.mxu0 %v12905_v45  ;;  %v11672_v20 = vcombine.high %v1246_v33, %v1260_v17  ;;  %v11671_v42 = vcombine.low %v1246_v33, %v1260_v17  ;;  %v1158_v44 = vld [vmem:[#allocation2 + $0x30] sm:$0x11]  ;;  %v11599_v45 = vrot.slane %v1441_v0, 9  ;;  %v12923_v53 = vld [vmem:[#allocation8 + $0x624] ss:$8 sps:$4 sm:$0xff]  }
 0x120   :  { %5259 = vmatprep.subr.bf16.mxu1 %v12884_v48  ;;  %v11600_v48 = vrot.slane %v1443_v25, 9  ;;  %v1271_v2 = vshll.u32 %v1158_v44, 16  ;;  %v12900_v37 = vld [vmem:[#allocation8 + $0x760] ss:$8 sps:$4 sm:$0xff]   ;;  %v12914_v25 = vld [vmem:[#allocation8 + $0x744] ss:$8 sps:$4 sm:$0xff]  }
 0x121   :  { %5161 = vmatmul.mubr.bf16.gmra.mxu0 %v11653_v63  ;;  %v1295_v63 = vrot.slane %v1293_v8, 5  ;;  %v14235_v1 = vsel %vm14039_vm7, %v11599_v45, %v1515_v29  ;;  %v1162_v11 = vld [vmem:[#allocation2 + $0x40] sm:$0x11]  ;;  %v1449_v41 = vld [vmem:[#allocation2 + $0x108] sm:$0xee] }
 0x122   :  { %5108 = vmatmul.mubr.bf16.gmra.mxu1 %v11759_v6  ;;  %5349 = vmatpush1.bf16.msra.mxu0 %v12903_v54  ;;  %v14239_v40 = vsel %vm14039_vm7, %v11600_v48, %v1519_v49  ;;  %v14243_v6 = vld [vmem:[#allocation2 + $0x30] sm:$0x11]  ;;  %v14247_v54 = vrot.slane %v1282_v12, 4  ;;  %v1273_v0 = vrot.slane %v1271_v2, 5  ;;  %v1299_v18 = vshll.u32 %v1162_v11, 16 }
 0x123   :  { %5260 = vmatpush2.bf16.msra.mxu1 %v12882_v62  ;;  %5263 = vmatprep.mubr.bf16.mxu1 %v11638_v4  ;;  %v1292_v62 = vrot.slane %v1290_v21, 4  ;;  %v1318_v4 = vshrl.u32 %v14136_v32, 16  ;;  %v11674_v33 = vcombine.high %v14235_v1, %v14239_v40  ;;  %v1523_v30 = vrot.slane %v14243_v6, 5  ;;  %v12933_v7 = vld [vmem:[#allocation8 + $0x600] ss:$8 sps:$4 sm:$0xff]  }
 0x124   :  { %5261 = vmatprep.subr.bf16.mxu1 %v12890_v46  ;;  %5350 = vmatprep.subr.bf16.mxu0 %v12911_v59  ;;  %v14245_v46 = vld [vmem:[#allocation2 + $0x90] sm:$0xee]  ;;  %v12935_v34 = vld [vmem:[#allocation8 + $0x604] ss:$8 sps:$4 sm:$0xff]   ;;  %v1301_v45 = vrot.slane %v1299_v18, 5  ;;  %v14267_v12 = vsel %vm13810_vm3, %v14231_v26, %v1273_v0 }
 0x125   :  { %5170 = vmatprep.mubr.bf16.mxu0 %v11672_v20  ;;  %v576_v15 = vld [vmem:[#allocation2 + $0x68] sm:$0x11]  ;;  %v12906_v59 = vld [vmem:[#allocation8 + $0x750] ss:$8 sps:$4 sm:$0xff]   ;;  %v1296_v20 = vor.u32 %v1295_v63, %v1292_v62  ;;  %v1450_v44 = vld [vmem:[#allocation2 + $0x40] sm:$0x11] }
 0x126   :  { %5351 = vmatpush1.bf16.msra.mxu0 %v12909_v10  ;;  %v1307_v10 = vshll.u32 %v1163_v24, 16  ;;  %v577_v17 = vsel %vm13755_vm6, %v429_v55, %v576_v15  ;;  %v12920_v8 = vld [vmem:[#allocation8 + $0x734] ss:$8 sps:$4 sm:$0xff]   ;;  %v1452_v48 = vld [vmem:[#allocation2 + $0x80] sm:$0x11]  ;;  %v1315_v55 = vrot.slane %v1313_v31, 5 }
 0x127   :  { %5262 = vmatpush2.bf16.msra.mxu1 %v12888_v19  ;;  %5352 = vmatprep.subr.bf16.mxu0 %v12917_v22  ;;  %v12927_v19 = vld [vmem:[#allocation8 + $0x610] ss:$8 sps:$4 sm:$0xff]   ;;  %v1321_v22 = vshll.u32 %v14136_v32, 16  ;;  %578 = vst [vmem:[#allocation2 + $0x68] sm:$0x11] %v577_v17 }
 0x128   :  { %5457 = vmatprep.subr.bf16.mxu1 %v12896_v13  ;;  %v1309_v36 = vrot.slane %v1307_v10, 5  ;;  %v11602_v13 = vrot.slane %v14245_v46, 9  ;;  %v1451_v29 = vld [vmem:[#allocation2 + $0xd8] sm:$0xee]  ;;  %v1166_v2 = vld [vmem:[#allocation2 + $0x130] sm:$0x11] }
 0x129   :  { %5171 = vmatmul.mubr.bf16.gmra.mxu0 %v11671_v42  ;;  %v12912_v42 = vld [vmem:[#allocation8 + $0x740] ss:$8 sps:$4 sm:$0xff]   ;;  %v1323_v21 = vrot.slane %v1321_v22, 5  ;;  %v11604_v3 = vrot.slane %v1451_v29, 9  ;;  %v12918_v24 = vld [vmem:[#allocation8 + $0x730] ss:$8 sps:$4 sm:$0xff]  }
 0x12a   :  { %5264 = vmatmul.mubr.bf16.vlgmr.msra.gmra.mxu1 %v11637_v35  ;;  %5353 = vmatpush1.bf16.msra.mxu0 %v12915_v43  ;;  %v1310_v32 = vor.u32 %v1309_v36, %v1306_v23  ;;  %v1320_v35 = vrot.slane %v1318_v4, 4  ;;  %v1297_v43 = vrot.slane %v1296_v20, 4  ;;  %v12926_v4 = vld [vmem:[#allocation8 + $0x724] ss:$8 sps:$4 sm:$0xff]   ;;  %v1327_v16 = vshll.u32 %v1166_v2, 16 }
 0x12b   :  { %5458 = vmatpush1.bf16.msra.mxu1 %v12894_v27  ;;  %5273 = vmatprep.mubr.bf16.mxu1 %v11656_v56  ;;  %v12941_v27 = vld [vmem:[#allocation8 + $0x6f4] ss:$8 sps:$4 sm:$0xff]   ;;  %v11673_v56 = vcombine.low %v14235_v1, %v14239_v40  ;;  %v1535_v1 = vrot.slane %v1452_v48, 5  ;;  %v12924_v20 = vld [vmem:[#allocation8 + $0x720] ss:$8 sps:$4 sm:$0xff]   ;;  %v1388_v29 = vshrl.u32 %v14165_v60, 16 }
 0x12c   :  { %5459 = vmatprep.subr.bf16.mxu1 %v12902_v51  ;;  %5354 = vmatprep.subr.bf16.mxu0 %v12923_v53  ;;  %v14260_v49 = vrot.slane %v1310_v32, 4  ;;  %v11603_v51 = vrot.slane %v1449_v41, 9  ;;  %v1531_v53 = vrot.slane %v1450_v44, 5  ;;  %v1324_v40 = vor.u32 %v1323_v21, %v1320_v35  ;;  %v14305_v31 = vld [vmem:[#allocation2 + $0xe0] sm:$0xee] }
 0x12d   :  { %v14298_v18 = vsel %vm14039_vm7, %v11604_v3, %v1535_v1  ;;  %v1329_v32 = vrot.slane %v1327_v16, 5  ;;  %v1456_v35 = vld [vmem:[#allocation2 + $0x10] sm:$0x11]  ;;  %v1391_v16 = vshll.u32 %v14165_v60, 16 }
 0x12e   :  { %5355 = vmatpush1.bf16.msra.mxu0 %v12921_v47  ;;  %v12939_v47 = vld [vmem:[#allocation8 + $0x6f0] ss:$8 sps:$4 sm:$0xff]   ;;  %v1160_v62 = vld [vmem:[#allocation2 + $0x68] sm:$0x11]  ;;  %v14284_v15 = vsel %vm13810_vm3, %v14260_v49, %v1315_v55  ;;  %v14294_v0 = vsel %vm14039_vm7, %v11603_v51, %v1531_v53  ;;  %v1325_v23 = vrot.slane %v1324_v40, 4  ;;  %v11606_v51 = vrot.slane %v14305_v31, 9 }
 0x12f   :  { %5460 = vmatpush1.bf16.msra.mxu1 %v12900_v37  ;;  %5356 = vmatprep.subr.bf16.mxu0 %v12929_v61  ;;  %v14269_v37 = vld [vmem:[#allocation2 + $0xe0] sm:$0xff]  ;;  %v1168_v61 = vld [vmem:[#allocation2 + $0x10] sm:$0x11]  ;;  %v1448_v63 = vld [vmem:[#allocation2 + $0x68] sm:$0x11]  ;;  %v1285_v6 = vshll.u32 %v1160_v62, 16 }
 0x130   :  { %5461 = vmatprep.subr.bf16.mxu1 %v12908_v52  ;;  %v14273_v52 = vsel %vm14039_vm7, %v11601_v28, %v1523_v30  ;;  %v1527_v46 = vrot.slane %v1448_v63, 5  ;;  %v1332_v26 = vshrl.u32 %v14269_v37, 16  ;;  %v1335_v11 = vshll.u32 %v14269_v37, 16  ;;  %v1453_v30 = vld [vmem:[#allocation2 + $0x8] sm:$0xee]  ;;  %v14319_v53 = vld [vmem:[#allocation2 + $0xd0] sm:$0xff] }
 0x131   :  { %v1341_v9 = vshll.u32 %v1168_v61, 16  ;;  %v1287_v10 = vrot.slane %v1285_v6, 5  ;;  %v12930_v44 = vld [vmem:[#allocation8 + $0x710] ss:$8 sps:$4 sm:$0xff]   ;;  %v12953_v21 = vld [vmem:[#allocation8 + $0x6d4] ss:$8 sps:$4 sm:$0xff]   ;;  %v14323_v2 = vsel %vm13810_vm3, %v1325_v23, %v1329_v32 }
 0x132   :  { %5274 = vmatmul.mubr.bf16.gmra.mxu1 %v11655_v14  ;;  %5357 = vmatpush1.bf16.msra.mxu0 %v12927_v19  ;;  %v14279_v14 = vsel %vm13810_vm3, %v1297_v43, %v1301_v45  ;;  %v1334_v17 = vrot.slane %v1332_v26, 4  ;;  %v1337_v19 = vrot.slane %v1335_v11, 5  ;;  %v12938_v55 = vld [vmem:[#allocation8 + $0x704] ss:$8 sps:$4 sm:$0xff]   ;;  %v12951_v3 = vld [vmem:[#allocation8 + $0x6d0] ss:$8 sps:$4 sm:$0xff]  }
 0x133   :  { %5462 = vmatpush1.bf16.msra.mxu1 %v12906_v59  ;;  %5283 = vmatprep.mubr.bf16.mxu1 %v11674_v33  ;;  %v14288_v59 = vsel %vm14039_vm7, %v11602_v13, %v1527_v46  ;;  %v12947_v33 = vld [vmem:[#allocation8 + $0x6e4] ss:$8 sps:$4 sm:$0xff]   ;;  %v1288_v36 = vsel %vm13810_vm3, %v14247_v54, %v1287_v10  ;;  %v1454_v13 = vld [vmem:[#allocation2 + $0x130] sm:$0x11]  ;;  %v1343_v41 = vrot.slane %v1341_v9, 5  ;;  %v1360_v40 = vshrl.u32 %v14319_v53, 16 }
 0x134   :  { %5463 = vmatprep.subr.bf16.mxu1 %v12914_v25  ;;  %5358 = vmatprep.subr.bf16.mxu0 %v12935_v34  ;;  %v11692_v22 = vcombine.high %v14273_v52, %v14288_v59  ;;  %v11708_v25 = vcombine.high %v14279_v14, %v14284_v15  ;;  %v1338_v28 = vor.u32 %v1337_v19, %v1334_v17  ;;  %v12932_v54 = vld [vmem:[#allocation8 + $0x714] ss:$8 sps:$4 sm:$0xff]   ;;  %v1539_v45 = vrot.slane %v1454_v13, 5  ;;  %v1172_v62 = vld [vmem:[#allocation2] sm:$0x11] }
 0x135   :  { %v11689_v34 = vcombine.low %v14267_v12, %v1288_v36  ;;  %v11691_v48 = vcombine.low %v14273_v52, %v14288_v59  ;;  %v1363_v6 = vshll.u32 %v14319_v53, 16  ;;  %v1369_v46 = vshll.u32 %v1172_v62, 16  ;;  %v12936_v26 = vld [vmem:[#allocation8 + $0x700] ss:$8 sps:$4 sm:$0xff]   ;;  %v12959_v11 = vld [vmem:[#allocation8 + $0x6c4] ss:$8 sps:$4 sm:$0xff]  }
 0x136   :  { %5359 = vmatpush1.bf16.msra.mxu0 %v12933_v7  ;;  %v11690_v7 = vcombine.high %v14267_v12, %v1288_v36  ;;  %v14309_v43 = vrot.slane %v1338_v28, 4  ;;  %v14317_v12 = vld [vmem:[#allocation2 + $0x100] sm:$0xff]  ;;  %v11707_v10 = vcombine.low %v14279_v14, %v14284_v15  ;;  %v12944_v59 = vld [vmem:[#allocation8 + $0x7f4] ss:$8 sps:$4 sm:$0xff]   ;;  %v1362_v19 = vrot.slane %v1360_v40, 4 }
 0x137   :  { %5464 = vmatpush1.bf16.msra.mxu1 %v12912_v42  ;;  %5360 = vmatprep.subr.bf16.mxu0 %v12941_v27  ;;  %v12945_v42 = vld [vmem:[#allocation8 + $0x6e0] ss:$8 sps:$4 sm:$0xff]   ;;  %v11710_v27 = vcombine.high %v14294_v0, %v14298_v18  ;;  %v1346_v63 = vshrl.u32 %v14317_v12, 16  ;;  %v1349_v52 = vshll.u32 %v14317_v12, 16  ;;  %v12965_v23 = vld [vmem:[#allocation8 + $0x6b4] ss:$8 sps:$4 sm:$0xff]  }
 0x138   :  { %5465 = vmatprep.subr.bf16.mxu1 %v12920_v8  ;;  %5180 = vmatprep.mubr.bf16.mxu0 %v11690_v7  ;;  %v11605_v8 = vrot.slane %v1453_v30, 9  ;;  %v14328_v61 = vsel %vm13810_vm3, %v14309_v43, %v1343_v41  ;;  %v12957_v17 = vld [vmem:[#allocation8 + $0x6c0] ss:$8 sps:$4 sm:$0xff]   ;;  %v1371_v13 = vrot.slane %v1369_v46, 5  ;;  %v1459_v31 = vld [vmem:[#allocation2 + $0xd0] sm:$0xee]  ;;  %v11709_v41 = vcombine.low %v14294_v0, %v14298_v18 }
 0x139   :  { %5181 = vmatmul.mubr.bf16.gmra.mxu0 %v11689_v34  ;;  %v11726_v60 = vcombine.high %v14323_v2, %v14328_v61  ;;  %v1457_v36 = vld [vmem:[#allocation2 + $0x100] sm:$0xee]  ;;  %v12942_v7 = vld [vmem:[#allocation8 + $0x7f0] ss:$8 sps:$4 sm:$0xff]   ;;  %v1460_v32 = vld [vmem:[#allocation2] sm:$0x11]  ;;  %v11725_v62 = vcombine.low %v14323_v2, %v14328_v61 }
 0x13a   :  { %5284 = vmatmul.mubr.bf16.gmra.mxu1 %v11673_v56  ;;  %5361 = vmatpush2.bf16.msra.mxu0 %v12939_v47  ;;  %v1543_v56 = vrot.slane %v1456_v35, 5  ;;  %v1170_v47 = vld [vmem:[#allocation2 + $0x98] sm:$0x11]  ;;  %v12950_v35 = vld [vmem:[#allocation8 + $0x7e4] ss:$8 sps:$4 sm:$0xff]   ;;  %v11608_v18 = vrot.slane %v1459_v31, 9 }
 0x13b   :  { %5466 = vmatpush1.bf16.msra.mxu1 %v12918_v24  ;;  %5293 = vmatprep.mubr.bf16.mxu1 %v11692_v22  ;;  %v1355_v1 = vshll.u32 %v1170_v47, 16  ;;  %v1348_v24 = vrot.slane %v1346_v63, 4  ;;  %v12956_v40 = vld [vmem:[#allocation8 + $0x7d4] ss:$8 sps:$4 sm:$0xff]   ;;  %v14405_v31 = vld [vmem:[#allocation2 + $0xc8] sm:$0xff] }
 0x13c   :  { %5467 = vmatprep.subr.bf16.mxu1 %v12926_v4  ;;  %5362 = vmatprep.subr.bf16.mxu0 %v12947_v33  ;;  %v1351_v4 = vrot.slane %v1349_v52, 5  ;;  %v14341_v33 = vsel %vm14039_vm7, %v11605_v8, %v1539_v45  ;;  %v14349_v15 = vsel %vm14039_vm7, %v11606_v51, %v1543_v56  ;;  %v11607_v8 = vrot.slane %v1457_v36, 9  ;;  %v14369_v51 = vld [vmem:[#allocation2 + $0x58] sm:$0xff]  ;;  %v12971_v56 = vld [vmem:[#allocation8 + $0x6a4] ss:$8 sps:$4 sm:$0xff]  }
 0x13d   :  { %5190 = vmatprep.mubr.bf16.mxu0 %v11708_v25  ;;  %v1458_v25 = vld [vmem:[#allocation2 + $0x98] sm:$0x11]  ;;  %v1357_v28 = vrot.slane %v1355_v1, 5  ;;  %v1374_v63 = vshrl.u32 %v14369_v51, 16  ;;  %v1377_v52 = vshll.u32 %v14369_v51, 16 }
 0x13e   :  { %5363 = vmatpush2.bf16.msra.mxu0 %v12945_v42  ;;  %v1352_v22 = vor.u32 %v1351_v4, %v1348_v24  ;;  %v1390_v42 = vrot.slane %v1388_v29, 4  ;;  %v1547_v45 = vrot.slane %v1458_v25, 5  ;;  %v1551_v29 = vrot.slane %v1460_v32, 5  ;;  %v12948_v1 = vld [vmem:[#allocation8 + $0x7e0] ss:$8 sps:$4 sm:$0xff]  }
 0x13f   :  { %5468 = vmatpush1.bf16.msra.mxu1 %v12924_v20  ;;  %5364 = vmatprep.subr.bf16.mxu0 %v12953_v21  ;;  %v1365_v20 = vrot.slane %v1363_v6, 5  ;;  %v12963_v21 = vld [vmem:[#allocation8 + $0x6b0] ss:$8 sps:$4 sm:$0xff]   ;;  %v1174_v4 = vld [vmem:[#allocation2 + $0x120] sm:$0x11] }
 0x140   :  { %5469 = vmatprep.subr.bf16.mxu1 %v12932_v54  ;;  %v14351_v34 = vrot.slane %v1352_v22, 4  ;;  %v14383_v2 = vsel %vm14039_vm7, %v11607_v8, %v1547_v45  ;;  %v14387_v61 = vsel %vm14039_vm7, %v11608_v18, %v1551_v29  ;;  %v12954_v24 = vld [vmem:[#allocation8 + $0x7d0] ss:$8 sps:$4 sm:$0xff]   ;;  %v1659_v8 = vshrl.u32 %v14405_v31, 16  ;;  %v12968_v29 = vld [vmem:[#allocation8 + $0x7b4] ss:$8 sps:$4 sm:$0xff]  }
 0x141   :  { %v1366_v30 = vor.u32 %v1365_v20, %v1362_v19  ;;  %5191 = vmatmul.mubr.bf16.gmra.mxu0 %v11707_v10  ;;  %v12962_v19 = vld [vmem:[#allocation8 + $0x7c4] ss:$8 sps:$4 sm:$0xff]   ;;  %v14392_v20 = vrot.slane %v1374_v63, 4  ;;  %v12975_v22 = vld [vmem:[#allocation8 + $0x690] ss:$8 sps:$4 sm:$0xff]   ;;  %v1662_v45 = vshll.u32 %v14405_v31, 16 }
 0x142   :  { %5294 = vmatmul.mubr.bf16.gmra.mxu1 %v11691_v48  ;;  %5365 = vmatpush2.bf16.msra.mxu0 %v12951_v3  ;;  %v1393_v48 = vrot.slane %v1391_v16, 5  ;;  %v12977_v16 = vld [vmem:[#allocation8 + $0x694] ss:$8 sps:$4 sm:$0xff]   ;;  %v1629_v63 = vld [vmem:[#allocation2 + $0x48] sm:$0x11] }
 0x143   :  { %5470 = vmatpush1.bf16.msra.mxu1 %v12930_v44  ;;  %5303 = vmatprep.mubr.bf16.mxu1 %v11710_v27  ;;  %v14355_v54 = vrot.slane %v1366_v30, 4  ;;  %v11728_v44 = vcombine.high %v14341_v33, %v14349_v15  ;;  %v219_v27 = vld [vmem:[#allocation2 + $0x50] sm:$0x11]  ;;  %v14400_v25 = vld [vmem:[#allocation2 + $0x58] sm:$0xee] }
 0x144   :  { %5471 = vmatprep.subr.bf16.mxu1 %v12938_v55  ;;  %5366 = vmatprep.subr.bf16.mxu0 %v12959_v11  ;;  %v14362_v55 = vsel %vm13810_vm3, %v14351_v34, %v1357_v28  ;;  %v220_v47 = vsel %vm13763_vm11, 0, %v219_v27  ;;  %v1394_v46 = vor.u32 %v1393_v48, %v1390_v42  ;;  %v12969_v11 = vld [vmem:[#allocation8 + $0x6a0] ss:$8 sps:$4 sm:$0xff]   ;;  %v14402_v30 = vld [vmem:[#allocation2 + $0x110] sm:$0xff] }
 0x145   :  { %5200 = vmatprep.mubr.bf16.mxu0 %v11726_v60  ;;  %v14367_v0 = vsel %vm13810_vm3, %v14355_v54, %v1371_v13  ;;  %221 = vst [vmem:[#allocation2 + $0x50] sm:$0x11] %v220_v47  ;;  %v14394_v60 = vrot.slane %v1377_v52, 5  ;;  %v12983_v13 = vld [vmem:[#allocation8 + $0x684] ss:$8 sps:$4 sm:$0xff]   ;;  %v1661_v52 = vrot.slane %v1659_v8, 4 }
 0x146   :  { %5367 = vmatpush2.bf16.msra.mxu0 %v12957_v17  ;;  %v11744_v6 = vcombine.high %v14362_v55, %v14367_v0  ;;  %v11727_v17 = vcombine.low %v14341_v33, %v14349_v15  ;;  %v14398_v36 = vrot.slane %v1394_v46, 4  ;;  %v1757_v33 = vshrl.u32 %v14402_v30, 16  ;;  %v14422_v47 = vld [vmem:[#allocation2 + $0xc0] sm:$0xee]  ;;  %v12978_v9 = vld [vmem:[#allocation8 + $0x790] ss:$8 sps:$4 sm:$0xff]  }
 0x147   :  { %5472 = vmatpush1.bf16.msra.mxu1 %v12936_v26  ;;  %5368 = vmatprep.subr.bf16.mxu0 %v12965_v23  ;;  %v11746_v23 = vcombine.high %v14383_v2, %v14387_v61  ;;  %v1383_v15 = vshll.u32 %v1174_v4, 16  ;;  %v11743_v42 = vcombine.low %v14362_v55, %v14367_v0  ;;  %v11609_v55 = vrot.slane %v14400_v25, 9  ;;  %v1627_v0 = vld [vmem:[#allocation2 + $0xe8] sm:$0x11] }
 0x148   :  { %5473 = vmatprep.subr.bf16.mxu1 %v12944_v59  ;;  %v493_v59 = vrot.slane %v14157_v38, 4 }
 0x149   :  { %5201 = vmatmul.mubr.bf16.gmra.mxu0 %v11725_v62 }
 0x14a   :  { %5304 = vmatmul.mubr.bf16.gmra.mxu1 %v11709_v41  ;;  %5369 = vmatpush2.bf16.msra.mxu0 %v12963_v21  ;;  %v1760_v41 = vshll.u32 %v14402_v30, 16  ;;  %v14414_v21 = vld [vmem:[#allocation2 + $0x120] sm:$0x11] }
 0x14b   :  { %5474 = vmatpush2.bf16.msra.mxu1 %v12942_v7  ;;  %5313 = vmatprep.mubr.bf16.mxu1 %v11728_v44  ;;  %v14407_v7 = vld [vmem:[#allocation2 + $0x128] sm:$0xff] }
 0x14c   :  { %5475 = vmatprep.subr.bf16.mxu1 %v12950_v35  ;;  %5370 = vmatprep.subr.bf16.mxu0 %v12971_v56  ;;  %v12960_v35 = vld [vmem:[#allocation8 + $0x7c0] ss:$8 sps:$4 sm:$0xff]   ;;  %v624_v44 = vld [vmem:[#allocation2 + $0x50] sm:$0x11]  ;;  %v1380_v56 = vor.u32 %v14394_v60, %v14392_v20  ;;  %v1676_v4 = vshll.u32 %v14407_v7, 16 }
 0x14d   :  { %v4700_v26 = vpop.f32.mrf.mxu0  ;;  %5210 = vmatprep.mubr.bf16.mxu0 %v11744_v6  ;;  %v625_v27 = vsel %vm13755_vm6, %v493_v59, %v624_v44  ;;  %v1673_v6 = vshrl.u32 %v14407_v7, 16  ;;  %v12989_v20 = vld [vmem:[#allocation8 + $0x874] ss:$8 sps:$4 sm:$0xff]   ;;  %v11610_v44 = vrot.slane %v14422_v47, 9 }
 0x14e   :  { %5371 = vmatpush2.bf16.msra.mxu0 %v12969_v11  ;;  %626 = vst [vmem:[#allocation2 + $0x50] sm:$0x11] %v625_v27  ;;  %v12981_v11 = vld [vmem:[#allocation8 + $0x680] ss:$8 sps:$4 sm:$0xff]   ;;  %v1678_v8 = vrot.slane %v1676_v4, 5 }
 0x14f   :  { %v4702_v10 = vpop.f32.mrf.mxu0  ;;  %5476 = vmatpush2.bf16.msra.mxu1 %v12948_v1  ;;  %v4813_v38 = vpop.f32.mrf.mxu1  ;;  %5372 = vmatprep.subr.bf16.mxu0 %v12977_v16  ;;  %v1664_v1 = vrot.slane %v1662_v45, 5  ;;  %v1682_v16 = vshll.u32 %v1629_v63, 16  ;;  %v1631_v45 = vld [vmem:[#allocation2 + $0xf0] sm:$0x11] }
 0x150   :  { %5477 = vmatprep.subr.bf16.mxu1 %v12956_v40  ;;  %v14409_v32 = vadd.f32 %v4813_v38, %v4700_v26  ;;  %v1668_v40 = vshll.u32 %v1627_v0, 16  ;;  %v14433_v38 = vld [vmem:[#allocation2 + $0x78] sm:$0xff]  ;;  %v12974_v0 = vld [vmem:[#allocation8 + $0x7a4] ss:$8 sps:$4 sm:$0xff]  }
 0x151   :  { %v4704_v28 = vpop.f32.mrf.mxu0  ;;  %v4815_v48 = vpop.f32.mrf.mxu1  ;;  %v1665_v60 = vor.u32 %v1664_v1, %v1661_v52  ;;  %5211 = vmatmul.mubr.bf16.gmra.mxu0 %v11743_v42  ;;  %v1696_v52 = vshll.u32 %v1631_v45, 16 }
 0x152   :  { %5314 = vmatmul.mubr.bf16.gmra.mxu1 %v11727_v17  ;;  %v14425_v62 = vadd.f32 %v4815_v48, %v4702_v10  ;;  %5373 = vmatpush2.bf16.msra.mxu0 %v12975_v22  ;;  %v12966_v10 = vld [vmem:[#allocation8 + $0x7b0] ss:$8 sps:$4 sm:$0xff]   ;;  %v1385_v17 = vrot.slane %v1383_v15, 5  ;;  %v1670_v15 = vrot.slane %v1668_v40, 5  ;;  %v1687_v48 = vshrl.u32 %v14433_v38, 16 }
 0x153   :  { %v4706_v18 = vpop.f32.mrf.mxu0  ;;  %5478 = vmatpush2.bf16.msra.mxu1 %v12954_v24  ;;  %5323 = vmatprep.mubr.bf16.mxu1 %v11746_v23  ;;  %v4817_v46 = vpop.f32.mrf.mxu1  ;;  %v11745_v24 = vcombine.low %v14383_v2, %v14387_v61  ;;  %v1675_v23 = vrot.slane %v1673_v6, 4  ;;  %v14443_v61 = vrot.slane %v1380_v56, 4  ;;  %v1666_v42 = vrot.slane %v1665_v60, 4  ;;  %v12972_v60 = vld [vmem:[#allocation8 + $0x7a0] ss:$8 sps:$4 sm:$0xff]  }
 0x154   :  { %5479 = vmatprep.subr.bf16.mxu1 %v12962_v19  ;;  %v14429_v59 = vadd.f32 %v4817_v46, %v4704_v28  ;;  %5374 = vmatprep.subr.bf16.mxu0 %v12983_v13  ;;  %v14435_v19 = vld [vmem:[#allocation2 + $0xa8] sm:$0xff]  ;;  %v1555_v28 = vrot.slane %v14414_v21, 5  ;;  %v1684_v13 = vrot.slane %v1682_v16, 5  ;;  %v1690_v21 = vshll.u32 %v14433_v38, 16 }
 0x155   :  { %v4710_v26 = vpop.f32.mrf.mxu0  ;;  %v4819_v25 = vpop.f32.mrf.mxu1  ;;  %v1679_v63 = vor.u32 %v1678_v8, %v1675_v23  ;;  %v1701_v47 = vshrl.u32 %v14435_v19, 16  ;;  %v1689_v56 = vrot.slane %v1687_v48, 4  ;;  %v1704_v1 = vshll.u32 %v14435_v19, 16  ;;  %v1176_v6 = vld [vmem:[#allocation2 + $0x50] sm:$0x11] }
 0x156   :  { %v14441_v2 = vadd.f32 %v4819_v25, %v4706_v18  ;;  %5375 = vmatpush2.bf16.msra.mxu0 %v12981_v11  ;;  %v1464_v46 = vld [vmem:[#allocation2 + $0x50] sm:$0x11]  ;;  %v1692_v16 = vrot.slane %v1690_v21, 5  ;;  %v11640_v25 = vcombine.high %v14405_v31, %v14407_v7 }
 0x157   :  { %v14437_v22 = vpop.f32.mrf.mxu0  ;;  %5480 = vmatpush2.bf16.msra.mxu1 %v12960_v35  ;;  %5570 = vmatprep.subr.bf16.mxu0 %v12989_v20  ;;  %v1633_v35 = vld [vmem:[#allocation2 + $0x60] sm:$0x11]  ;;  %v1680_v11 = vrot.slane %v1679_v63, 4  ;;  %v1397_v20 = vshll.u32 %v1176_v6, 16  ;;  %v1559_v23 = vrot.slane %v1464_v46, 5  ;;  %v1703_v8 = vrot.slane %v1701_v47, 4 }
 0x158   :  { %5481 = vmatprep.subr.bf16.mxu1 %v12968_v29  ;;  %v1556_v29 = vsel %vm14039_vm7, %v11609_v55, %v1555_v28  ;;  %v1386_v55 = vsel %vm13810_vm3, %v14443_v61, %v1385_v17  ;;  %v1706_v28 = vrot.slane %v1704_v1, 5  ;;  %v1710_v63 = vshll.u32 %v1633_v35, 16 }
 0x159   :  { %v4714_v27 = vpop.f32.mrf.mxu0  ;;  %v4823_v18 = vpop.f32.mrf.mxu1  ;;  %v1560_v21 = vsel %vm14039_vm7, %v11610_v44, %v1559_v23  ;;  %v1698_v47 = vrot.slane %v1696_v52, 5  ;;  %v14470_v17 = vsel %vm13810_vm3, %v1680_v11, %v1684_v13 }
 0x15a   :  { %5324 = vmatmul.mubr.bf16.gmra.mxu1 %v11745_v24  ;;  %v14451_v4 = vadd.f32 %v4823_v18, %v4710_v26  ;;  %v12980_v24 = vld [vmem:[#allocation8 + $0x794] ss:$8 sps:$4 sm:$0xff]   ;;  %v1693_v26 = vor.u32 %v1692_v16, %v1689_v56  ;;  %v14464_v18 = vsel %vm13810_vm3, %v1666_v42, %v1670_v15  ;;  %v11763_v3 = vcombine.low %v1556_v29, %v1560_v21  ;;  %v14472_v56 = vld [vmem:[#allocation2 + $0x28] sm:$0xff] }
 0x15b   :  { %v4716_v40 = vpop.f32.mrf.mxu0  ;;  %5482 = vmatpush2.bf16.msra.mxu1 %v12966_v10  ;;  %v4825_v45 = vpop.f32.mrf.mxu1  ;;  %v1399_v10 = vrot.slane %v1397_v20, 5  ;;  %v1707_v35 = vor.u32 %v1706_v28, %v1703_v8  ;;  %v12986_v15 = vld [vmem:[#allocation8 + $0x784] ss:$8 sps:$4 sm:$0xff]   ;;  %v14482_v16 = vld [vmem:[#allocation2 + $0x70] sm:$0xff]  ;;  %v1712_v8 = vrot.slane %v1710_v63, 5  ;;  %v14498_v63 = vrot.slane %v1757_v33, 4 }
 0x15c   :  { %5483 = vmatprep.subr.bf16.mxu1 %v12974_v0  ;;  %v11764_v0 = vcombine.high %v1556_v29, %v1560_v21  ;;  %v1694_v42 = vrot.slane %v1693_v26, 4  ;;  %v14478_v52 = vadd.f32 %v4825_v45, %v14437_v22  ;;  %v1637_v22 = vld [vmem:[#allocation2 + $0x30] sm:$0x11]  ;;  %v1718_v45 = vshll.u32 %v14472_v56, 16  ;;  %v12984_v21 = vld [vmem:[#allocation8 + $0x780] ss:$8 sps:$4 sm:$0xff]  }
 0x15d   :  { %v14455_v48 = vpop.f32.mrf.mxu0  ;;  %v4827_v6 = vpop.f32.mrf.mxu1  ;;  %v1400_v44 = vsel %vm13810_vm3, %v14398_v36, %v1399_v10  ;;  %v1708_v23 = vrot.slane %v1707_v35, 4  ;;  %v1635_v36 = vld [vmem:[#allocation2 + $0x118] sm:$0x11]  ;;  %v1729_v28 = vshrl.u32 %v14482_v16, 16  ;;  %v14494_v10 = vld [vmem:[#allocation2 + $0x90] sm:$0xff] }
 0x15e   :  { %v14480_v1 = vadd.f32 %v4827_v6, %v4714_v27  ;;  %v11762_v11 = vcombine.high %v1386_v55, %v1400_v44  ;;  %v11761_v20 = vcombine.low %v1386_v55, %v1400_v44  ;;  %5333 = vmatprep.mubr.bf16.mxu1 %v11764_v0  ;;  %v1715_v27 = vshrl.u32 %v14472_v56, 16 }
 0x15f   :  { %v14466_v46 = vpop.f32.mrf.mxu0  ;;  %5484 = vmatpush2.bf16.msra.mxu1 %v12972_v60  ;;  %v4829_v29 = vpop.f32.mrf.mxu1  ;;  %v11642_v60 = vcombine.high %v14464_v18, %v14470_v17  ;;  %v1732_v55 = vshll.u32 %v14482_v16, 16  ;;  %v1720_v0 = vrot.slane %v1718_v45, 5  ;;  %v1724_v35 = vshll.u32 %v1635_v36, 16 }
 0x160   :  { %5485 = vmatprep.subr.bf16.mxu1 %v12980_v24  ;;  %v14488_v26 = vadd.f32 %v4829_v29, %v4716_v40  ;;  %5220 = vmatprep.mubr.bf16.mxu0 %v11762_v11  ;;  %v14502_v40 = vrot.slane %v1760_v41, 5  ;;  %v1717_v6 = vrot.slane %v1715_v27, 4  ;;  %v14510_v33 = vsel %vm13810_vm3, %v1708_v23, %v1712_v8 }
 0x161   :  { %v14484_v13 = vpop.f32.mrf.mxu0  ;;  %5221 = vmatmul.mubr.bf16.gmra.mxu0 %v11761_v20  ;;  %v1731_v44 = vrot.slane %v1729_v28, 4  ;;  %v1734_v29 = vrot.slane %v1732_v55, 5  ;;  %v1738_v41 = vshll.u32 %v1637_v22, 16  ;;  %v1743_v20 = vshrl.u32 %v14494_v10, 16  ;;  %v1639_v28 = vld [vmem:[#allocation2 + $0x68] sm:$0x11] }
 0x162   :  { %5334 = vmatmul.mubr.bf16.gmra.mxu1 %v11763_v3  ;;  %v14506_v3 = vsel %vm13810_vm3, %v1694_v42, %v1698_v47  ;;  %5376 = vmatprep.mubr.bf16.mxu0 %v11640_v25  ;;  %v11658_v47 = vcombine.high %v14433_v38, %v14435_v19  ;;  %v4833_v42 = vpop.f32.mrf.mxu1  ;;  %v1721_v11 = vor.u32 %v1720_v0, %v1717_v6  ;;  %v1726_v22 = vrot.slane %v1724_v35, 5 }
 0x163   :  { %v4726_v24 = vpop.f32.mrf.mxu0  ;;  %5486 = vmatpush2.bf16.msra.mxu1 %v12978_v9  ;;  %v11639_v9 = vcombine.low %v14405_v31, %v14407_v7  ;;  %5489 = vmatprep.mubr.bf16.mxu1 %v11642_v60  ;;  %v11641_v25 = vcombine.low %v14464_v18, %v14470_v17  ;;  %v14520_v23 = vadd.f32 %v4833_v42, %v14455_v48  ;;  %v1746_v31 = vshll.u32 %v14494_v10, 16  ;;  %v1641_v48 = vld [vmem:[#allocation2 + $0x138] sm:$0x11] }
 0x164   :  { %5487 = vmatprep.subr.bf16.mxu1 %v12986_v15  ;;  %v12987_v15 = vld [vmem:[#allocation8 + $0x870] ss:$8 sps:$4 sm:$0xff]   ;;  %v1735_v8 = vor.u32 %v1734_v29, %v1731_v44  ;;  %v11660_v7 = vcombine.high %v14506_v3, %v14510_v33  ;;  %v1722_v60 = vrot.slane %v1721_v11, 4  ;;  %v1740_v27 = vrot.slane %v1738_v41, 5  ;;  %v4835_v45 = vpop.f32.mrf.mxu1  ;;  %v12992_v44 = vld [vmem:[#allocation8 + $0x864] ss:$8 sps:$4 sm:$0xff]  }
 0x165   :  { %v14522_v36 = vpop.f32.mrf.mxu0  ;;  %v14528_v18 = vadd.f32 %v4835_v45, %v14466_v46  ;;  %v1745_v17 = vrot.slane %v1743_v20, 4  ;;  %v1748_v6 = vrot.slane %v1746_v31, 5  ;;  %v1763_v35 = vor.u32 %v14502_v40, %v14498_v63 }
 0x166   :  { %v1736_v55 = vrot.slane %v1735_v8, 4  ;;  %v4837_v29 = vpop.f32.mrf.mxu1  ;;  %v14543_v46 = vsel %vm13810_vm3, %v1722_v60, %v1726_v22  ;;  %v1766_v8 = vshll.u32 %v1641_v48, 16  ;;  %v12997_v60 = vld [vmem:[#allocation8 + $0x854] ss:$8 sps:$4 sm:$0xff]   ;;  %v11657_v22 = vcombine.low %v14433_v38, %v14435_v19 }
 0x167   :  { %5488 = vmatpush2.bf16.msra.mxu1 %v12984_v21  ;;  %v14530_v0 = vpop.f32.mrf.mxu0  ;;  %v14532_v21 = vld [vmem:[#allocation2 + $0x8] sm:$0xff]  ;;  %v14535_v42 = vadd.f32 %v4837_v29, %v14484_v13  ;;  %v1749_v63 = vor.u32 %v1748_v6, %v1745_v17  ;;  %v1643_v6 = vld [vmem:[#allocation2 + $0x80] sm:$0x11] }
 0x168   :  { %v14547_v11 = vsel %vm13810_vm3, %v1736_v55, %v1740_v27  ;;  %v4839_v20 = vpop.f32.mrf.mxu1  ;;  %v12990_v13 = vld [vmem:[#allocation8 + $0x860] ss:$8 sps:$4 sm:$0xff]   ;;  %v11659_v27 = vcombine.low %v14506_v3, %v14510_v33  ;;  %v14565_v55 = vrot.slane %v1763_v35, 4  ;;  %v1768_v17 = vrot.slane %v1766_v8, 5  ;;  %v13000_v3 = vld [vmem:[#allocation8 + $0x844] ss:$8 sps:$4 sm:$0xff]  }
 0x169   :  { %v14539_v41 = vpop.f32.mrf.mxu0  ;;  %5377 = vmatmul.mubr.bf16.vlgmr.msra.gmra.mxu0 %v11639_v9  ;;  %v14549_v31 = vadd.f32 %v4839_v20, %v4726_v24  ;;  %v1785_v9 = vshrl.u32 %v14532_v21, 16  ;;  %v11676_v24 = vcombine.high %v14472_v56, %v14482_v16  ;;  %v11678_v45 = vcombine.high %v14543_v46, %v14547_v11  ;;  %v1645_v33 = vld [vmem:[#allocation2 + $0x130] sm:$0x11] }
 0x16a   :  { %5490 = vmatmul.mubr.bf16.vlgmr.msra.gmra.mxu1 %v11641_v25  ;;  %v1752_v25 = vshll.u32 %v1639_v28, 16  ;;  %5571 = vmatpush1.bf16.msra.mxu0 %v12987_v15  ;;  %v1750_v48 = vrot.slane %v1749_v63, 4  ;;  %v1780_v20 = vshll.u32 %v1643_v6, 16 }
 0x16b   :  { %5499 = vmatprep.mubr.bf16.mxu1 %v11660_v7  ;;  %5386 = vmatprep.mubr.bf16.mxu0 %v11658_v47  ;;  %v14551_v40 = vpop.f32.mrf.mxu0  ;;  %v1788_v7 = vshll.u32 %v14532_v21, 16  ;;  %v12995_v47 = vld [vmem:[#allocation8 + $0x850] ss:$8 sps:$4 sm:$0xff]   ;;  %v1787_v38 = vrot.slane %v1785_v9, 4  ;;  %v1794_v9 = vshll.u32 %v1645_v33, 16 }
 0x16c   :  { %5572 = vmatprep.subr.bf16.mxu0 %v12992_v44  ;;  %v1754_v28 = vrot.slane %v1752_v25, 5  ;;  %v12998_v25 = vld [vmem:[#allocation8 + $0x840] ss:$8 sps:$4 sm:$0xff]  }
 0x16d   :  { %v14559_v15 = vpop.f32.mrf.mxu0  ;;  %v1790_v19 = vrot.slane %v1788_v7, 5 }
 0x16e   :  { %5573 = vmatpush1.bf16.msra.mxu0 %v12990_v13  ;;  %v14571_v8 = vsel %vm13810_vm3, %v1750_v48, %v1754_v28  ;;  %v1769_v13 = vsel %vm13810_vm3, %v14565_v55, %v1768_v17  ;;  %v11694_v17 = vcombine.high %v14494_v10, %v14402_v30 }
 0x16f   :  { %v4742_v44 = vpop.f32.mrf.mxu0  ;;  %5574 = vmatprep.subr.bf16.mxu0 %v12997_v60  ;;  %v1791_v63 = vor.u32 %v1790_v19, %v1787_v38  ;;  %v13005_v60 = vld [vmem:[#allocation8 + $0x834] ss:$8 sps:$4 sm:$0xff]   ;;  %v11696_v28 = vcombine.high %v14571_v8, %v1769_v13  ;;  %v1796_v19 = vrot.slane %v1794_v9, 5 }
 0x171   :  { %v14567_v29 = vpop.f32.mrf.mxu0  ;;  %5387 = vmatmul.mubr.bf16.gmra.mxu0 %v11657_v22  ;;  %v4843_v35 = vpop.f32.mrf.mxu1  ;;  %v1792_v38 = vrot.slane %v1791_v63, 4 }
 0x172   :  { %5500 = vmatmul.mubr.bf16.gmra.mxu1 %v11659_v27  ;;  %5575 = vmatpush1.bf16.msra.mxu0 %v12995_v47  ;;  %v14579_v22 = vadd.f32 %v4843_v35, %v14522_v36  ;;  %v11677_v27 = vcombine.low %v14543_v46, %v14547_v11  ;;  %v1782_v36 = vrot.slane %v1780_v20, 5  ;;  %v1647_v46 = vld [vmem:[#allocation2 + $0x10] sm:$0x11]  ;;  %v13008_v11 = vld [vmem:[#allocation8 + $0x824] ss:$8 sps:$4 sm:$0xff]  }
 0x173   :  { %5509 = vmatprep.mubr.bf16.mxu1 %v11678_v45  ;;  %5396 = vmatprep.mubr.bf16.mxu0 %v11676_v24  ;;  %v14576_v7 = vpop.f32.mrf.mxu0  ;;  %v4845_v47 = vpop.f32.mrf.mxu1  ;;  %v11675_v24 = vcombine.low %v14472_v56, %v14482_v16  ;;  %v13003_v45 = vld [vmem:[#allocation8 + $0x830] ss:$8 sps:$4 sm:$0xff]   ;;  %v1808_v20 = vshll.u32 %v1647_v46, 16  ;;  %v13006_v35 = vld [vmem:[#allocation8 + $0x820] ss:$8 sps:$4 sm:$0xff]   ;;  %v1797_v9 = vsel %vm13810_vm3, %v1792_v38, %v1796_v19 }
 0x174   :  { %5576 = vmatprep.subr.bf16.mxu0 %v13000_v3  ;;  %v14587_v48 = vadd.f32 %v4845_v47, %v14530_v0  ;;  %v1649_v16 = vld [vmem:[#allocation2 + $0x98] sm:$0x11] }
 0x175   :  { %v4847_v6 = vpop.f32.mrf.mxu1  ;;  %v14591_v3 = vpop.f32.mrf.mxu0  ;;  %v13502_v38 = vld [vmem:[#allocation2 + $0xd8] sm:$0xff] }
 0x176   :  { %5577 = vmatpush1.bf16.msra.mxu0 %v12998_v25  ;;  %v14594_v56 = vadd.f32 %v4847_v6, %v14539_v41  ;;  %v1783_v41 = vsel %vm13810_vm3, %v14260_v49, %v1782_v36  ;;  %v1810_v36 = vrot.slane %v1808_v20, 5  ;;  %v11712_v19 = vcombine.high %v13502_v38, %v14532_v21 }
 0x177   :  { %5578 = vmatprep.subr.bf16.mxu0 %v13005_v60  ;;  %v4849_v0 = vpop.f32.mrf.mxu1  ;;  %v14596_v33 = vpop.f32.mrf.mxu0  ;;  %v1822_v60 = vshll.u32 %v1649_v16, 16  ;;  %v11714_v6 = vcombine.high %v1783_v41, %v1797_v9  ;;  %v1653_v16 = vld [vmem:[#allocation2 + $0x120] sm:$0x11] }
 0x178   :  { %v14599_v25 = vadd.f32 %v4849_v0, %v14551_v40  ;;  %v13014_v0 = vld [vmem:[#allocation8 + $0x804] ss:$8 sps:$4 sm:$0xff]   ;;  %v1850_v20 = vshll.u32 %v1653_v16, 16 }
 0x179   :  { %5397 = vmatmul.mubr.bf16.gmra.mxu0 %v11675_v24  ;;  %v4853_v63 = vpop.f32.mrf.mxu1  ;;  %v14609_v40 = vpop.f32.mrf.mxu0  ;;  %v11695_v24 = vcombine.low %v14571_v8, %v1769_v13 }
 0x17a   :  { %5510 = vmatmul.mubr.bf16.gmra.mxu1 %v11677_v27  ;;  %5579 = vmatpush1.bf16.msra.mxu0 %v13003_v45  ;;  %v13011_v27 = vld [vmem:[#allocation8 + $0x814] ss:$8 sps:$4 sm:$0xff]   ;;  %v14607_v47 = vadd.f32 %v4853_v63, %v14559_v15  ;;  %v1824_v15 = vrot.slane %v1822_v60, 5  ;;  %v1811_v63 = vsel %vm13810_vm3, %v14309_v43, %v1810_v36 }
 0x17b   :  { %5519 = vmatprep.mubr.bf16.mxu1 %v11696_v28  ;;  %5406 = vmatprep.mubr.bf16.mxu0 %v11694_v17  ;;  %v4855_v45 = vpop.f32.mrf.mxu1  ;;  %v11693_v28 = vcombine.low %v14494_v10, %v14402_v30  ;;  %v13009_v17 = vld [vmem:[#allocation8 + $0x810] ss:$8 sps:$4 sm:$0xff]   ;;  %v14620_v13 = vpop.f32.mrf.mxu0  ;;  %v14622_v10 = vld [vmem:[#allocation2 + $0xc0] sm:$0xff] }
 0x17c   :  { %5580 = vmatprep.subr.bf16.mxu0 %v13008_v11  ;;  %v14614_v49 = vadd.f32 %v4855_v45, %v4742_v44  ;;  %v1651_v11 = vld [vmem:[#allocation2] sm:$0x11]  ;;  %17083 = vst [vmem:[#allocation26_spill] sm:$0xff] %v14620_v13  ;;  %v1855_v60 = vshrl.u32 %v14622_v10, 16 }
 0x17d   :  { %v4857_v46 = vpop.f32.mrf.mxu1  ;;  %v1836_v44 = vshll.u32 %v1651_v11, 16  ;;  %v1852_v11 = vrot.slane %v1850_v20, 5  ;;  %v17085_v20 = vcombine.high %v14269_v37, %v14317_v12 }
 0x17e   :  { %5581 = vmatpush1.bf16.msra.mxu0 %v13006_v35  ;;  %v14618_v8 = vadd.f32 %v4857_v46, %v14567_v29  ;;  %v13012_v35 = vld [vmem:[#allocation8 + $0x800] ss:$8 sps:$4 sm:$0xff]   ;;  %v1825_v29 = vsel %vm13810_vm3, %v14351_v34, %v1824_v15  ;;  %v13022_v46 = vld [vmem:[#allocation8 + $0x8e4] ss:$8 sps:$4 sm:$0xff]   ;;  %v1655_v34 = vld [vmem:[#allocation2 + $0x50] sm:$0x11] }
 0x17f   :  { %5582 = vmatprep.subr.bf16.mxu0 %v13011_v27  ;;  %v1858_v27 = vshll.u32 %v14622_v10, 16  ;;  %v14632_v45 = vpop.f32.mrf.mxu1  ;;  %v11732_v43 = vcombine.high %v1811_v63, %v1825_v29  ;;  %v1838_v36 = vrot.slane %v1836_v44, 5  ;;  %v1657_v15 = vld [vmem:[#allocation2 + $0xb8] sm:$0x11]  ;;  %v1857_v14 = vrot.slane %v1855_v60, 4 }
 0x180   :  { %17084 = vst [vmem:[#allocation27_spill] sm:$0xff] %v14632_v45  ;;  %v13020_v45 = vld [vmem:[#allocation8 + $0x8e0] ss:$8 sps:$4 sm:$0xff]   ;;  %v1853_v44 = vsel %vm13810_vm3, %v14443_v61, %v1852_v11  ;;  %v1864_v60 = vshll.u32 %v1655_v34, 16  ;;  %v13028_v61 = vld [vmem:[#allocation8 + $0x8c4] ss:$8 sps:$4 sm:$0xff]  }
 0x181   :  { %5407 = vmatmul.mubr.bf16.gmra.mxu0 %v11693_v28  ;;  %v1860_v5 = vrot.slane %v1858_v27, 5  ;;  %v1878_v27 = vshll.u32 %v1657_v15, 16  ;;  %v13503_v11 = vld [vmem:[#allocation2 + $0xd0] sm:$0xff]  ;;  %v13026_v15 = vld [vmem:[#allocation8 + $0x8c0] ss:$8 sps:$4 sm:$0xff]  }
 0x182   :  { %5520 = vmatmul.mubr.bf16.gmra.mxu1 %v11695_v24  ;;  %5583 = vmatpush1.bf16.msra.mxu0 %v13009_v17  ;;  %v13019_v24 = vld [vmem:[#allocation8 + $0x8f4] ss:$8 sps:$4 sm:$0xff]   ;;  %v13017_v17 = vld [vmem:[#allocation8 + $0x8f0] ss:$8 sps:$4 sm:$0xff]  }
 0x183   :  { %5529 = vmatprep.mubr.bf16.mxu1 %v11714_v6  ;;  %5416 = vmatprep.mubr.bf16.mxu0 %v11712_v19  ;;  %v14634_v28 = vpop.f32.mrf.mxu0  ;;  %v11713_v6 = vcombine.low %v1783_v41, %v1797_v9  ;;  %v11711_v19 = vcombine.low %v13502_v38, %v14532_v21  ;;  %v13025_v21 = vld [vmem:[#allocation8 + $0x8d4] ss:$8 sps:$4 sm:$0xff]   ;;  %v1839_v38 = vsel %vm13810_vm3, %v14355_v54, %v1838_v36  ;;  %v13023_v54 = vld [vmem:[#allocation8 + $0x8d0] ss:$8 sps:$4 sm:$0xff]   ;;  %v1880_v34 = vrot.slane %v1878_v27, 5 }
 0x184   :  { %5584 = vmatprep.subr.bf16.mxu0 %v13014_v0  ;;  %v13031_v27 = vld [vmem:[#allocation8 + $0x8b0] ss:$8 sps:$4 sm:$0xff]  }
 0x185   :  { %v4762_v16 = vpop.f32.mrf.mxu0 }
 0x186   :  { %5585 = vmatpush1.bf16.msra.mxu0 %v13012_v35  ;;  %v1861_v35 = vor.u32 %v1860_v5, %v1857_v14  ;;  %v1866_v14 = vrot.slane %v1864_v60, 5  ;;  %v1917_v60 = vld [vmem:[#allocation2 + $0x48] sm:$0x11] }
 0x187   :  { %5586 = vmatprep.subr.bf16.mxu0 %v13019_v24  ;;  %v14637_v13 = vpop.f32.mrf.mxu0 }
 0x188   :  { %v4863_v0 = vpop.f32.mrf.mxu1  ;;  %v1862_v5 = vrot.slane %v1861_v35, 4  ;;  %v1916_v35 = vld [vmem:[#allocation2 + $0x128] sm:$0xee] }
 0x189   :  { %v14640_v41 = vadd.f32 %v4863_v0, %v14591_v3  ;;  %5417 = vmatmul.mubr.bf16.gmra.mxu0 %v11711_v19  ;;  %v11731_v19 = vcombine.low %v1811_v63, %v1825_v29  ;;  %v13033_v63 = vld [vmem:[#allocation8 + $0x8b4] ss:$8 sps:$4 sm:$0xff]  }
 0x18a   :  { %5530 = vmatmul.mubr.bf16.gmra.mxu1 %v11713_v6  ;;  %v4865_v9 = vpop.f32.mrf.mxu1  ;;  %5587 = vmatpush2.bf16.msra.mxu0 %v13017_v17  ;;  %v14654_v6 = vpop.f32.mrf.mxu0  ;;  %v11750_v17 = vcombine.high %v1839_v38, %v1853_v44 }
 0x18b   :  { %5539 = vmatprep.mubr.bf16.mxu1 %v11732_v43  ;;  %5426 = vmatprep.mubr.bf16.mxu0 %v17085_v20  ;;  %v14652_v3 = vadd.f32 %v4865_v9, %v14596_v33  ;;  %v11748_v33 = vcombine.high %v13503_v11, %v14369_v51  ;;  %v1867_v9 = vsel %vm13810_vm3, %v1862_v5, %v1866_v14  ;;  %v1915_v20 = vld [vmem:[#allocation2 + $0xe8] sm:$0x11] }
 0x18c   :  { %5588 = vmatprep.subr.bf16.mxu0 %v13022_v46  ;;  %v4867_v24 = vpop.f32.mrf.mxu1  ;;  %v11766_v5 = vcombine.high %v14622_v10, %v14402_v30  ;;  %v1980_v14 = vrot.slane %v1915_v20, 5  ;;  %v1920_v20 = vld [vmem:[#allocation2 + $0xa8] sm:$0xee] }
 0x18d   :  { %v14657_v43 = vadd.f32 %v4867_v24, %v14609_v40  ;;  %v17086_v40 = vcombine.low %v14269_v37, %v14317_v12  ;;  %v11749_v24 = vcombine.low %v1839_v38, %v1853_v44  ;;  %v1984_v38 = vrot.slane %v1917_v60, 5 }
 0x18e   :  { %5589 = vmatpush2.bf16.msra.mxu0 %v13020_v45  ;;  %v14659_v36 = vpop.f32.mrf.mxu1  ;;  %v1914_v45 = vld [vmem:[#allocation2 + $0xc8] sm:$0xee] }
 0x18f   :  { %5590 = vmatprep.subr.bf16.mxu0 %v13025_v21  ;;  %v1881_v21 = vsel %vm13810_vm3, %v14565_v55, %v1880_v34  ;;  %v11612_v34 = vrot.slane %v1916_v35, 9  ;;  %v1921_v35 = vld [vmem:[#allocation2 + $0x60] sm:$0x11] }
 0x190   :  { %v11768_v11 = vcombine.high %v1867_v9, %v1881_v21 }
 0x191   :  { %v14662_v46 = vpop.f32.mrf.mxu0  ;;  %5427 = vmatmul.mubr.bf16.gmra.mxu0 %v17086_v40 }
 0x192   :  { %5540 = vmatmul.mubr.bf16.gmra.mxu1 %v11731_v19  ;;  %5591 = vmatpush2.bf16.msra.mxu0 %v13023_v54 }
 0x193   :  { %5549 = vmatprep.mubr.bf16.mxu1 %v11750_v17  ;;  %v14667_v29 = vpop.f32.mrf.mxu0  ;;  %5436 = vmatprep.mubr.bf16.mxu0 %v11748_v33  ;;  %v13036_v17 = vld [vmem:[#allocation8 + $0x8a4] ss:$8 sps:$4 sm:$0xff]  }
 0x194   :  { %v4873_v0 = vpop.f32.mrf.mxu1  ;;  %5592 = vmatprep.subr.bf16.mxu0 %v13028_v61  ;;  %v11611_v61 = vrot.slane %v1914_v45, 9  ;;  %v1919_v45 = vld [vmem:[#allocation2 + $0xf0] sm:$0x11] }
 0x195   :  { %v14675_v37 = vadd.f32 %v4873_v0, %v14634_v28  ;;  %v14677_v12 = vpop.f32.mrf.mxu0  ;;  %v13039_v0 = vld [vmem:[#allocation8 + $0x894] ss:$8 sps:$4 sm:$0xff]  }
 0x196   :  { %v4875_v54 = vpop.f32.mrf.mxu1  ;;  %5593 = vmatpush2.bf16.msra.mxu0 %v13026_v15  ;;  %v17087_v15 = vcombine.low %v14319_v53, %v14369_v51  ;;  %v1985_v53 = vsel %vm14039_vm7, %v11612_v34, %v1984_v38  ;;  %v1988_v34 = vrot.slane %v1919_v45, 5  ;;  %v11614_v38 = vrot.slane %v1920_v20, 9  ;;  %v1924_v45 = vld [vmem:[#allocation2 + $0x70] sm:$0xee]  ;;  %v1925_v20 = vld [vmem:[#allocation2 + $0x30] sm:$0x11] }
 0x197   :  { %v14679_v19 = vadd.f32 %v4875_v54, %v4762_v16  ;;  %v14681_v33 = vpop.f32.mrf.mxu0  ;;  %5594 = vmatprep.subr.bf16.mxu0 %v13033_v63  ;;  %v13034_v16 = vld [vmem:[#allocation8 + $0x8a0] ss:$8 sps:$4 sm:$0xff]   ;;  %v1918_v63 = vld [vmem:[#allocation2 + $0x78] sm:$0xee]  ;;  %v11767_v54 = vcombine.low %v1867_v9, %v1881_v21 }
 0x198   :  { %v4877_v55 = vpop.f32.mrf.mxu1 }
 0x199   :  { %v14686_v28 = vadd.f32 %v4877_v55, %v14637_v13  ;;  %v4926_v44 = vpop.f32.mrf.mxu0  ;;  %5437 = vmatmul.mubr.bf16.gmra.mxu0 %v17087_v15  ;;  %v13042_v55 = vld [vmem:[#allocation8 + $0x884] ss:$8 sps:$4 sm:$0xff]  }
 0x19a   :  { %5550 = vmatmul.mubr.bf16.gmra.mxu1 %v11749_v24  ;;  %v14689_v40 = vadd.f32 %v4926_v44, %v14409_v32  ;;  %5595 = vmatpush2.bf16.msra.mxu0 %v13031_v27  ;;  %v1981_v32 = vsel %vm14039_vm7, %v11611_v61, %v1980_v14  ;;  %v14701_v60 = vpop.f32.mrf.mxu1  ;;  %v13037_v24 = vld [vmem:[#allocation8 + $0x890] ss:$8 sps:$4 sm:$0xff]   ;;  %v11613_v14 = vrot.slane %v1918_v63, 9  ;;  %v1992_v44 = vrot.slane %v1921_v35, 5 }
 0x19b   :  { %5559 = vmatprep.mubr.bf16.mxu1 %v11768_v11  ;;  %v4928_v30 = vpop.f32.mrf.mxu0  ;;  %5446 = vmatprep.mubr.bf16.mxu0 %v11766_v5  ;;  %v1923_v63 = vld [vmem:[#allocation2 + $0x118] sm:$0x11] }
 0x19c   :  { %v14695_v13 = vadd.f32 %v4928_v30, %v14425_v62  ;;  %5596 = vmatprep.subr.bf16.mxu0 %v13036_v17  ;;  %v13504_v62 = vld [vmem:[#allocation2 + $0x110] sm:$0xff]  ;;  %v11644_v17 = vcombine.high %v1981_v32, %v1985_v53  ;;  %v1922_v30 = vld [vmem:[#allocation2 + $0x28] sm:$0xee] }
 0x19d   :  { %v4930_v51 = vpop.f32.mrf.mxu0  ;;  %v11765_v11 = vcombine.low %v14622_v10, %v13504_v62  ;;  %v11643_v62 = vcombine.low %v1981_v32, %v1985_v53  ;;  %v1926_v53 = vld [vmem:[#allocation2 + $0x90] sm:$0xee] }
 0x19e   :  { %v14704_v27 = vadd.f32 %v4930_v51, %v14429_v59  ;;  %5597 = vmatpush2.bf16.msra.mxu0 %v13034_v16  ;;  %v13040_v59 = vld [vmem:[#allocation8 + $0x880] ss:$8 sps:$4 sm:$0xff]  }
 0x19f   :  { %v4932_v5 = vpop.f32.mrf.mxu0  ;;  %5598 = vmatprep.subr.bf16.mxu0 %v13039_v0 }
 0x1a0   :  { %v14708_v61 = vadd.f32 %v4932_v5, %v14441_v2 }
 0x1a1   :  { %v4936_v15 = vpop.f32.mrf.mxu0  ;;  %5447 = vmatmul.mubr.bf16.gmra.mxu0 %v11765_v11 }
 0x1a2   :  { %v4883_v9 = vpop.f32.mrf.mxu1  ;;  %5560 = vmatmul.mubr.bf16.gmra.mxu1 %v11767_v54  ;;  %v14711_v21 = vadd.f32 %v4936_v15, %v14451_v4  ;;  %5599 = vmatpush2.bf16.msra.mxu0 %v13037_v24  ;;  %v1989_v4 = vsel %vm14039_vm7, %v11613_v14, %v1988_v34  ;;  %v1996_v14 = vrot.slane %v1923_v63, 5  ;;  %v11616_v34 = vrot.slane %v1924_v45, 9 }
 0x1a3   :  { %v14714_v10 = vadd.f32 %v4883_v9, %v14662_v46  ;;  %v4938_v16 = vpop.f32.mrf.mxu0  ;;  %5602 = vmatprep.mubr.bf16.mxu0 %v11644_v17  ;;  %5600 = vmatprep.subr.bf16.mxu0 %v13042_v55  ;;  %v1993_v46 = vsel %vm14039_vm7, %v11614_v38, %v1992_v44  ;;  %v11615_v17 = vrot.slane %v1922_v30, 9  ;;  %v2000_v38 = vrot.slane %v1925_v20, 5  ;;  %v1929_v30 = vld [vmem:[#allocation2 + $0x138] sm:$0x11] }
 0x1a4   :  { %v4885_v2 = vpop.f32.mrf.mxu1  ;;  %v14717_v0 = vadd.f32 %v4938_v16, %v14478_v52  ;;  %v1928_v16 = vld [vmem:[#allocation2 + $0xf8] sm:$0xee] }
 0x1a5   :  { %v14720_v35 = vadd.f32 %v4885_v2, %v14667_v29  ;;  %v4940_v51 = vpop.f32.mrf.mxu0  ;;  %v11662_v29 = vcombine.high %v1989_v4, %v1993_v46  ;;  %v1997_v63 = vsel %vm14039_vm7, %v11615_v17, %v1996_v14  ;;  %v11618_v14 = vrot.slane %v1928_v16, 9 }
 0x1a6   :  { %v4887_v24 = vpop.f32.mrf.mxu1  ;;  %v4941_v54 = vadd.f32 %v4940_v51, %v14480_v1  ;;  %5601 = vmatpush2.bf16.msra.mxu0 %v13040_v59 }
 0x1a7   :  { %v14728_v52 = vadd.f32 %v4887_v24, %v14677_v12  ;;  %v4942_v11 = vpop.f32.mrf.mxu0 }
 0x1a8   :  { %v14730_v5 = vpop.f32.mrf.mxu1  ;;  %v14733_v55 = vadd.f32 %v4942_v11, %v14488_v26  ;;  %v1927_v26 = vld [vmem:[#allocation2 + $0x68] sm:$0x11] }
 0x1a9   :  { %v4946_v44 = vpop.f32.mrf.mxu0  ;;  %5603 = vmatmul.mubr.bf16.vlgmr.msra.gmra.mxu0 %v11643_v62  ;;  %v2004_v17 = vrot.slane %v1927_v26, 5 }
 0x1aa   :  { %v5039_v15 = vpop.f32.mrf.mxu1  ;;  %v4947_v1 = vadd.f32 %v4946_v44, %v14520_v23  ;;  %5612 = vmatprep.mubr.bf16.mxu0 %v11662_v29  ;;  %v2001_v23 = vsel %vm14039_vm7, %v11616_v34, %v2000_v38  ;;  %v11617_v29 = vrot.slane %v1926_v53, 9  ;;  %v2008_v44 = vrot.slane %v1929_v30, 5  ;;  %v1932_v53 = vld [vmem:[#allocation2 + $0x8] sm:$0xee] }
 0x1ab   :  { %v14737_v12 = vadd.f32 %v5039_v15, %v14689_v40  ;;  %v4948_v32 = vpop.f32.mrf.mxu0  ;;  %v11680_v11 = vcombine.high %v1997_v63, %v2001_v23 }
 0x1ac   :  { %v5041_v9 = vpop.f32.mrf.mxu1  ;;  %v4949_v59 = vadd.f32 %v4948_v32, %v14528_v18  ;;  %v11661_v18 = vcombine.low %v1989_v4, %v1993_v46  ;;  %v1930_v4 = vld [vmem:[#allocation2 + $0xd8] sm:$0xee] }
 0x1ad   :  { %v14741_v2 = vadd.f32 %v5041_v9, %v14695_v13  ;;  %v4950_v40 = vpop.f32.mrf.mxu0  ;;  %v1933_v9 = vld [vmem:[#allocation2 + $0x130] sm:$0x11] }
 0x1ae   :  { %v5043_v45 = vpop.f32.mrf.mxu1  ;;  %v4951_v20 = vadd.f32 %v4950_v40, %v14535_v42 }
 0x1af   :  { %v14749_v51 = vadd.f32 %v5043_v45, %v14704_v27  ;;  %v4952_v24 = vpop.f32.mrf.mxu0 }
 0x1b0   :  { %v14751_v62 = vpop.f32.mrf.mxu1  ;;  %v14754_v13 = vadd.f32 %v4952_v24, %v14549_v31  ;;  %v1931_v31 = vld [vmem:[#allocation2 + $0x80] sm:$0x11] }
 0x1b1   :  { %v4956_v34 = vpop.f32.mrf.mxu0  ;;  %5613 = vmatmul.mubr.bf16.gmra.mxu0 %v11661_v18 }
 0x1b2   :  { %v5049_v38 = vpop.f32.mrf.mxu1  ;;  %v4957_v15 = vadd.f32 %v4956_v34, %v14579_v22  ;;  %5622 = vmatprep.mubr.bf16.mxu0 %v11680_v11  ;;  %v2005_v22 = vsel %vm14039_vm7, %v11617_v29, %v2004_v17  ;;  %v11619_v34 = vrot.slane %v1930_v4, 9  ;;  %v2012_v29 = vrot.slane %v1931_v31, 5  ;;  %v1936_v4 = vld [vmem:[#allocation2 + $0x100] sm:$0xee]  ;;  %v1937_v31 = vld [vmem:[#allocation2 + $0x98] sm:$0x11] }
 0x1b3   :  { %v14758_v42 = vadd.f32 %v5049_v38, %v14711_v21  ;;  %v4958_v27 = vpop.f32.mrf.mxu0  ;;  %v2009_v21 = vsel %vm14039_vm7, %v11618_v14, %v2008_v44  ;;  %v11620_v17 = vrot.slane %v1932_v53, 9  ;;  %v2016_v38 = vrot.slane %v1933_v9, 5 }
 0x1b4   :  { %v5051_v46 = vpop.f32.mrf.mxu1  ;;  %v14761_v32 = vadd.f32 %v4958_v27, %v14587_v48  ;;  %v11679_v48 = vcombine.low %v1997_v63, %v2001_v23  ;;  %v11698_v11 = vcombine.high %v2005_v22, %v2009_v21  ;;  %v1934_v63 = vld [vmem:[#allocation2 + $0xe0] sm:$0xee]  ;;  %v1935_v23 = vld [vmem:[#allocation2 + $0x10] sm:$0x11]  ;;  %v2013_v9 = vsel %vm14039_vm7, %v11619_v34, %v2012_v29 }
 0x1b5   :  { %v14764_v26 = vadd.f32 %v5051_v46, %v14717_v0  ;;  %v4960_v16 = vpop.f32.mrf.mxu0  ;;  %v11622_v34 = vrot.slane %v1936_v4, 9  ;;  %v2024_v29 = vrot.slane %v1937_v31, 5  ;;  %v1941_v4 = vld [vmem:[#allocation2 + $0x120] sm:$0x11] }
 0x1b6   :  { %v5053_v30 = vpop.f32.mrf.mxu1  ;;  %v14771_v40 = vadd.f32 %v4960_v16, %v14594_v56  ;;  %v13048_v31 = vld [vmem:[#allocation10 + $0x64] ss:$8 sps:$4 sm:$0xff]  }
 0x1b7   :  { %v14773_v45 = vadd.f32 %v5053_v30, %v4941_v54  ;;  %v4962_v18 = vpop.f32.mrf.mxu0 }
 0x1b8   :  { %v14775_v24 = vpop.f32.mrf.mxu1  ;;  %v14778_v0 = vadd.f32 %v4962_v18, %v14599_v25  ;;  %v11697_v18 = vcombine.low %v2005_v22, %v2009_v21  ;;  %v1938_v22 = vld [vmem:[#allocation2 + $0xd0] sm:$0xee]  ;;  %v1939_v21 = vld [vmem:[#allocation2] sm:$0x11] }
 0x1b9   :  { %v4966_v14 = vpop.f32.mrf.mxu0  ;;  %5623 = vmatmul.mubr.bf16.gmra.mxu0 %v11679_v48 }
 0x1ba   :  { %17088 = vst [vmem:[#allocation28_spill] sm:$0xff] %v14778_v0  ;;  %v5059_v44 = vpop.f32.mrf.mxu1  ;;  %v14781_v27 = vadd.f32 %v4966_v14, %v14607_v47  ;;  %5632 = vmatprep.mubr.bf16.mxu0 %v11698_v11  ;;  %v2017_v47 = vsel %vm14039_vm7, %v11620_v17, %v2016_v38  ;;  %v11621_v14 = vrot.slane %v1934_v63, 9  ;;  %v13043_v17 = vld [vmem:[#allocation10 + $0x70] ss:$8 sps:$4 sm:$0xff]  }
 0x1bb   :  { %v14783_v56 = vadd.f32 %v5059_v44, %v4947_v1  ;;  %v4968_v54 = vpop.f32.mrf.mxu0  ;;  %v2020_v44 = vrot.slane %v1935_v23, 5  ;;  %v1940_v23 = vld [vmem:[#allocation2 + $0x58] sm:$0xee] }
 0x1bc   :  { %v5061_v46 = vpop.f32.mrf.mxu1  ;;  %v14786_v25 = vadd.f32 %v4968_v54, %v14614_v49  ;;  %v13045_v54 = vld [vmem:[#allocation10 + $0x74] ss:$8 sps:$4 sm:$0xff]   ;;  %v13061_v0 = vld [vmem:[#allocation10 + $0x30] ss:$8 sps:$4 sm:$0xff]  }
 0x1bd   :  { %v14788_v53 = vadd.f32 %v5061_v46, %v4949_v59  ;;  %v4970_v1 = vpop.f32.mrf.mxu0  ;;  %v11716_v59 = vcombine.high %v2013_v9, %v2017_v47  ;;  %10310 = vmatprep.subr.bf16.mxu1 %v13045_v54  ;;  %v13046_v54 = vld [vmem:[#allocation10 + $0x60] ss:$8 sps:$4 sm:$0xff]  }
 0x1be   :  { %v5063_v16 = vpop.f32.mrf.mxu1  ;;  %v14795_v30 = vadd.f32 %v4970_v1, %v14618_v8  ;;  %10311 = vmatpush1.bf16.msra.mxu1 %v13043_v17 }
 0x1bf   :  { %v14797_v48 = vadd.f32 %v5063_v16, %v4951_v20  ;;  %v14799_v49 = vpop.f32.mrf.mxu0  ;;  %10312 = vmatprep.subr.bf16.mxu1 %v13048_v31 }
 0x1c0   :  { %v14801_v11 = vpop.f32.mrf.mxu1 }
 0x1c1   :  { %17089 = vst [vmem:[#allocation29_spill] sm:$0xff] %v14801_v11  ;;  %v4976_v46 = vpop.f32.mrf.mxu0  ;;  %5633 = vmatmul.mubr.bf16.gmra.mxu0 %v11697_v18 }
 0x1c2   :  { %v5069_v38 = vpop.f32.mrf.mxu1  ;;  %v14804_v57 = vadd.f32 %v4976_v46, %v14640_v41  ;;  %5642 = vmatprep.mubr.bf16.mxu0 %v11716_v59  ;;  %v14816_v41 = vsel %vm14039_vm7, %v11621_v14, %v2020_v44  ;;  %10313 = vmatpush1.bf16.msra.mxu1 %v13046_v54 }
 0x1c3   :  { %v14806_v8 = vadd.f32 %v5069_v38, %v4957_v15  ;;  %v4978_v20 = vpop.f32.mrf.mxu0  ;;  %v14820_v15 = vsel %vm14039_vm7, %v11622_v34, %v2024_v29  ;;  %v11623_v34 = vrot.slane %v1938_v22, 9  ;;  %v2028_v29 = vrot.slane %v1939_v21, 5  ;;  %v13051_v38 = vld [vmem:[#allocation10 + $0x54] ss:$8 sps:$4 sm:$0xff]  }
 0x1c4   :  { %v5071_v1 = vpop.f32.mrf.mxu1  ;;  %v14809_v63 = vadd.f32 %v4978_v20, %v14652_v3  ;;  %v11734_v44 = vcombine.high %v14816_v41, %v14820_v15  ;;  %v11624_v20 = vrot.slane %v1940_v23, 9  ;;  %10314 = vmatprep.subr.bf16.mxu1 %v13051_v38  ;;  %v1945_v23 = vld [vmem:[#allocation2 + $0xb8] sm:$0x11] }
 0x1c5   :  { %v14812_v16 = vadd.f32 %v5071_v1, %v14761_v32  ;;  %v4980_v18 = vpop.f32.mrf.mxu0  ;;  %v11715_v32 = vcombine.low %v2013_v9, %v2017_v47  ;;  %v2032_v1 = vrot.slane %v1941_v4, 5  ;;  %v1942_v9 = vld [vmem:[#allocation2 + $0xc0] sm:$0xee] }
 0x1c6   :  { %v5073_v59 = vpop.f32.mrf.mxu1  ;;  %v14823_v3 = vadd.f32 %v4980_v18, %v14657_v43  ;;  %v13049_v18 = vld [vmem:[#allocation10 + $0x50] ss:$8 sps:$4 sm:$0xff]   ;;  %v13057_v4 = vld [vmem:[#allocation10 + $0x44] ss:$8 sps:$4 sm:$0xff]  }
 0x1c7   :  { %v14826_v46 = vadd.f32 %v5073_v59, %v14771_v40  ;;  %v14828_v17 = vpop.f32.mrf.mxu0  ;;  %v1943_v59 = vld [vmem:[#allocation2 + $0x50] sm:$0x11]  ;;  %10315 = vmatpush1.bf16.msra.mxu1 %v13049_v18  ;;  %v13055_v18 = vld [vmem:[#allocation10 + $0x40] ss:$8 sps:$4 sm:$0xff]  }
 0x1c8   :  { %v14830_v14 = vpop.f32.mrf.mxu1  ;;  %10316 = vmatprep.subr.bf16.mxu1 %v13057_v4  ;;  %v13063_v4 = vld [vmem:[#allocation10 + $0x34] ss:$8 sps:$4 sm:$0xff]  }
 0x1c9   :  { %17090 = vst [vmem:[#allocation30_spill] sm:$0xff] %v14830_v14  ;;  %v4986_v43 = vpop.f32.mrf.mxu0  ;;  %5643 = vmatmul.mubr.bf16.gmra.mxu0 %v11715_v32  ;;  %v1944_v14 = vld [vmem:[#allocation2 + $0x88] sm:$0xee]  ;;  %v14848_v32 = vsel %vm14039_vm7, %v11623_v34, %v2028_v29  ;;  %v11733_v34 = vcombine.low %v14816_v41, %v14820_v15 }
 0x1ca   :  { %v5079_v31 = vpop.f32.mrf.mxu1  ;;  %v14835_v40 = vadd.f32 %v4986_v43, %v14675_v37  ;;  %5652 = vmatprep.mubr.bf16.mxu0 %v11734_v44  ;;  %v13054_v43 = vld [vmem:[#allocation10 + $0x174] ss:$8 sps:$4 sm:$0xff]   ;;  %v13058_v15 = vld [vmem:[#allocation10 + $0x160] ss:$8 sps:$4 sm:$0xff]  }
 0x1cb   :  { %v14838_v47 = vadd.f32 %v5079_v31, %v14781_v27  ;;  %v4988_v54 = vpop.f32.mrf.mxu0  ;;  %v14852_v27 = vsel %vm14039_vm7, %v11624_v20, %v2032_v1  ;;  %v13052_v31 = vld [vmem:[#allocation10 + $0x170] ss:$8 sps:$4 sm:$0xff]   ;;  %10423 = vmatprep.subr.bf16.mxu0 %v13054_v43  ;;  %10317 = vmatpush1.bf16.msra.mxu1 %v13055_v18 }
 0x1cc   :  { %v5081_v22 = vpop.f32.mrf.mxu1  ;;  %v14841_v21 = vadd.f32 %v4988_v54, %v14679_v19  ;;  %v11625_v54 = vrot.slane %v1942_v9, 9  ;;  %v11752_v1 = vcombine.high %v14848_v32, %v14852_v27  ;;  %10424 = vmatpush1.bf16.msra.mxu0 %v13052_v31  ;;  %10318 = vmatprep.subr.bf16.mxu1 %v13063_v4 }
 0x1cd   :  { %v14844_v37 = vadd.f32 %v5081_v22, %v14786_v25  ;;  %v4990_v38 = vpop.f32.mrf.mxu0  ;;  %v11626_v22 = vrot.slane %v1944_v14, 9 }
 0x1ce   :  { %v5083_v44 = vpop.f32.mrf.mxu1  ;;  %v14855_v19 = vadd.f32 %v4990_v38, %v14686_v28  ;;  %v2036_v28 = vrot.slane %v1943_v59, 5  ;;  %v2040_v38 = vrot.slane %v1945_v23, 5  ;;  %v13069_v23 = vld [vmem:[#allocation10 + $0x24] ss:$8 sps:$4 sm:$0xff]  }
 0x1cf   :  { %v14858_v25 = vadd.f32 %v5083_v44, %v14795_v30  ;;  %v14862_v29 = vpop.f32.mrf.mxu0  ;;  %v13060_v44 = vld [vmem:[#allocation10 + $0x164] ss:$8 sps:$4 sm:$0xff]   ;;  %10319 = vmatpush1.bf16.msra.mxu1 %v13061_v0 }
 0x1d0   :  { %v14864_v20 = vpop.f32.mrf.mxu1  ;;  %10425 = vmatprep.subr.bf16.mxu0 %v13060_v44  ;;  %v2041_v31 = vsel %vm14039_vm7, %v11626_v22, %v2040_v38  ;;  %10320 = vmatprep.subr.bf16.mxu1 %v13069_v23  ;;  %v13075_v22 = vld [vmem:[#allocation10 + $0x14] ss:$8 sps:$4 sm:$0xff]   ;;  %v13073_v44 = vld [vmem:[#allocation10 + $0x10] ss:$8 sps:$4 sm:$0xff]  }
 0x1d1   :  { %v4996_v30 = vpop.f32.mrf.mxu0  ;;  %5653 = vmatmul.mubr.bf16.gmra.mxu0 %v11733_v34  ;;  %v13067_v34 = vld [vmem:[#allocation10 + $0x20] ss:$8 sps:$4 sm:$0xff]  }
 0x1d2   :  { %v5089_v11 = vpop.f32.mrf.mxu1  ;;  %v14869_v41 = vadd.f32 %v4996_v30, %v14714_v10  ;;  %5662 = vmatprep.mubr.bf16.mxu0 %v11752_v1  ;;  %10426 = vmatpush1.bf16.msra.mxu0 %v13058_v15  ;;  %v2037_v10 = vsel %vm14039_vm7, %v11625_v54, %v2036_v28 }
 0x1d3   :  { %v14872_v9 = vadd.f32 %v5089_v11, %v14804_v57  ;;  %v4998_v43 = vpop.f32.mrf.mxu0  ;;  %v13066_v11 = vld [vmem:[#allocation10 + $0x154] ss:$8 sps:$4 sm:$0xff]   ;;  %v11770_v0 = vcombine.high %v2037_v10, %v2041_v31  ;;  %10321 = vmatpush1.bf16.msra.mxu1 %v13067_v34 }
 0x1d4   :  { %v5091_v59 = vpop.f32.mrf.mxu1  ;;  %v14875_v14 = vadd.f32 %v4998_v43, %v14720_v35  ;;  %v13064_v35 = vld [vmem:[#allocation10 + $0x150] ss:$8 sps:$4 sm:$0xff]   ;;  %10427 = vmatprep.subr.bf16.mxu0 %v13066_v11  ;;  %10322 = vmatprep.subr.bf16.mxu1 %v13075_v22  ;;  %v13078_v34 = vld [vmem:[#allocation10 + $0x134] ss:$8 sps:$4 sm:$0xff]  }
 0x1d5   :  { %v14878_v18 = vadd.f32 %v5091_v59, %v14809_v63  ;;  %v5000_v57 = vpop.f32.mrf.mxu0  ;;  %v11751_v63 = vcombine.low %v14848_v32, %v14852_v27 }
 0x1d6   :  { %v5093_v4 = vpop.f32.mrf.mxu1  ;;  %v14885_v1 = vadd.f32 %v5000_v57, %v14728_v52  ;;  %10428 = vmatpush1.bf16.msra.mxu0 %v13064_v35  ;;  %v13072_v52 = vld [vmem:[#allocation10 + $0x144] ss:$8 sps:$4 sm:$0xff]  }
 0x1d7   :  { %v14888_v30 = vadd.f32 %v5093_v4, %v14823_v3  ;;  %v14892_v54 = vpop.f32.mrf.mxu0  ;;  %v13070_v3 = vld [vmem:[#allocation10 + $0x140] ss:$8 sps:$4 sm:$0xff]   ;;  %10429 = vmatprep.subr.bf16.mxu0 %v13072_v52  ;;  %v13081_v57 = vld [vmem:[#allocation10 + $0x4] ss:$8 sps:$4 sm:$0xff]   ;;  %10323 = vmatpush1.bf16.msra.mxu1 %v13073_v44 }
 0x1d8   :  { %v14894_v28 = vpop.f32.mrf.mxu1  ;;  %v13079_v4 = vld [vmem:[#allocation10] ss:$8 sps:$4 sm:$0xff]   ;;  %10324 = vmatprep.subr.bf16.mxu1 %v13081_v57  ;;  %v13084_v44 = vld [vmem:[#allocation10 + $0x124] ss:$8 sps:$4 sm:$0xff]  }
 0x1d9   :  { %v5152_v38 = vpop.f32.mrf.mxu0  ;;  %5663 = vmatmul.mubr.bf16.gmra.mxu0 %v11751_v63  ;;  %v13076_v63 = vld [vmem:[#allocation10 + $0x130] ss:$8 sps:$4 sm:$0xff]   ;;  %v13093_v57 = vld [vmem:[#allocation10 + $0xe4] ss:$8 sps:$4 sm:$0xff]  }
 0x1da   :  { %v5099_v15 = vpop.f32.mrf.mxu1  ;;  %v14897_v43 = vadd.f32 %v5152_v38, %v14737_v12  ;;  %5672 = vmatprep.mubr.bf16.mxu0 %v11770_v0  ;;  %10430 = vmatpush1.bf16.msra.mxu0 %v13070_v3 }
 0x1db   :  { %v14900_v32 = vadd.f32 %v5099_v15, %v14835_v40  ;;  %v5154_v27 = vpop.f32.mrf.mxu0  ;;  %10431 = vmatprep.subr.bf16.mxu0 %v13078_v34  ;;  %10325 = vmatpush1.bf16.msra.mxu1 %v13079_v4  ;;  %v13085_v15 = vld [vmem:[#allocation10 + $0xf0] ss:$8 sps:$4 sm:$0xff]   ;;  %v13091_v4 = vld [vmem:[#allocation10 + $0xe0] ss:$8 sps:$4 sm:$0xff]  }
 0x1dc   :  { %v5101_v59 = vpop.f32.mrf.mxu1  ;;  %v14903_v23 = vadd.f32 %v5154_v27, %v14741_v2  ;;  %v11769_v2 = vcombine.low %v2037_v10, %v2041_v31  ;;  %v13082_v27 = vld [vmem:[#allocation10 + $0x120] ss:$8 sps:$4 sm:$0xff]  }
 0x1dd   :  { %v14906_v11 = vadd.f32 %v5101_v59, %v14841_v21  ;;  %v5156_v12 = vpop.f32.mrf.mxu0  ;;  %v13087_v21 = vld [vmem:[#allocation10 + $0xf4] ss:$8 sps:$4 sm:$0xff]  }
 0x1de   :  { %v5103_v35 = vpop.f32.mrf.mxu1  ;;  %v14909_v40 = vadd.f32 %v5156_v12, %v14749_v51  ;;  %10432 = vmatpush1.bf16.msra.mxu0 %v13076_v63  ;;  %10326 = vmatprep.subr.bf16.mxu1 %v13087_v21 }
 0x1df   :  { %v14912_v0 = vadd.f32 %v5103_v35, %v14855_v19  ;;  %v14914_v22 = vpop.f32.mrf.mxu0  ;;  %10433 = vmatprep.subr.bf16.mxu0 %v13084_v44  ;;  %10327 = vmatpush2.bf16.msra.mxu1 %v13085_v15  ;;  %v13096_v44 = vld [vmem:[#allocation10 + $0x104] ss:$8 sps:$4 sm:$0xff]   ;;  %v13097_v15 = vld [vmem:[#allocation10 + $0xd0] ss:$8 sps:$4 sm:$0xff]  }
 0x1e0   :  { %v14916_v38 = vpop.f32.mrf.mxu1  ;;  %10328 = vmatprep.subr.bf16.mxu1 %v13093_v57 }
 0x1e1   :  { %v5162_v52 = vpop.f32.mrf.mxu0  ;;  %5673 = vmatmul.mubr.bf16.gmra.mxu0 %v11769_v2 }
 0x1e2   :  { %v5109_v3 = vpop.f32.mrf.mxu1  ;;  %v14919_v51 = vadd.f32 %v5162_v52, %v14758_v42  ;;  %10434 = vmatpush1.bf16.msra.mxu0 %v13082_v27  ;;  %v13090_v42 = vld [vmem:[#allocation10 + $0x114] ss:$8 sps:$4 sm:$0xff]   ;;  %v13094_v27 = vld [vmem:[#allocation10 + $0x100] ss:$8 sps:$4 sm:$0xff]  }
 0x1e3   :  { %v14922_v19 = vadd.f32 %v5109_v3, %v14869_v41  ;;  %v5164_v10 = vpop.f32.mrf.mxu0  ;;  %v13088_v41 = vld [vmem:[#allocation10 + $0x110] ss:$8 sps:$4 sm:$0xff]   ;;  %10435 = vmatprep.subr.bf16.mxu0 %v13090_v42  ;;  %10329 = vmatpush2.bf16.msra.mxu1 %v13091_v4  ;;  %v13105_v42 = vld [vmem:[#allocation10 + $0xc4] ss:$8 sps:$4 sm:$0xff]  }
 0x1e4   :  { %v5111_v31 = vpop.f32.mrf.mxu1  ;;  %v14925_v59 = vadd.f32 %v5164_v10, %v14764_v26 }
 0x1e5   :  { %v14928_v12 = vadd.f32 %v5111_v31, %v14875_v14  ;;  %v5166_v34 = vpop.f32.mrf.mxu0  ;;  %v13099_v14 = vld [vmem:[#allocation10 + $0xd4] ss:$8 sps:$4 sm:$0xff]  }
 0x1e6   :  { %v5113_v35 = vpop.f32.mrf.mxu1  ;;  %v14931_v63 = vadd.f32 %v5166_v34, %v14773_v45  ;;  %10436 = vmatpush1.bf16.msra.mxu0 %v13088_v41  ;;  %10330 = vmatprep.subr.bf16.mxu1 %v13099_v14  ;;  %v13102_v34 = vld [vmem:[#allocation10 + $0x1f4] ss:$8 sps:$4 sm:$0xff]   ;;  %v13103_v41 = vld [vmem:[#allocation10 + $0xc0] ss:$8 sps:$4 sm:$0xff]  }
 0x1e7   :  { %v14934_v2 = vadd.f32 %v5113_v35, %v14885_v1  ;;  %v14936_v26 = vpop.f32.mrf.mxu0  ;;  %10437 = vmatprep.subr.bf16.mxu0 %v13096_v44  ;;  %10331 = vmatpush2.bf16.msra.mxu1 %v13097_v15  ;;  %v13108_v44 = vld [vmem:[#allocation10 + $0x1e4] ss:$8 sps:$4 sm:$0xff]   ;;  %v13106_v15 = vld [vmem:[#allocation10 + $0x1e0] ss:$8 sps:$4 sm:$0xff]  }
 0x1e8   :  { %17091 = vst [vmem:[#allocation31_spill] sm:$0xff] %v14931_v63  ;;  %v14938_v21 = vpop.f32.mrf.mxu1  ;;  %10332 = vmatprep.subr.bf16.mxu1 %v13105_v42  ;;  %v5864_v63 = vld [vmem:[#allocation3] sm:$0x11] }
 0x1e9   :  { %v5172_v52 = vpop.f32.mrf.mxu0 }
 0x1ea   :  { %v14940_v3 = vpop.f32.mrf.mxu1  ;;  %v14943_v45 = vadd.f32 %v5172_v52, %v14783_v56  ;;  %10438 = vmatpush1.bf16.msra.mxu0 %v13094_v27  ;;  %v13100_v56 = vld [vmem:[#allocation10 + $0x1f0] ss:$8 sps:$4 sm:$0xff]   ;;  %v13111_v52 = vld [vmem:[#allocation10 + $0xb4] ss:$8 sps:$4 sm:$0xff]  }
 0x1eb   :  { %v5174_v1 = vpop.f32.mrf.mxu0  ;;  %10439 = vmatprep.subr.bf16.mxu0 %v13102_v34  ;;  %10333 = vmatpush2.bf16.msra.mxu1 %v13103_v41  ;;  %v13109_v27 = vld [vmem:[#allocation10 + $0xb0] ss:$8 sps:$4 sm:$0xff]   ;;  %v13117_v34 = vld [vmem:[#allocation10 + $0xa4] ss:$8 sps:$4 sm:$0xff]   ;;  %v13115_v41 = vld [vmem:[#allocation10 + $0xa0] ss:$8 sps:$4 sm:$0xff]  }
 0x1ec   :  { %17092 = vst [vmem:[#allocation32_spill] sm:$0xff] %v14943_v45  ;;  %v14945_v10 = vpop.f32.mrf.mxu1  ;;  %v14948_v31 = vadd.f32 %v5174_v1, %v14788_v53  ;;  %10334 = vmatprep.subr.bf16.mxu1 %v13111_v52  ;;  %v13112_v52 = vld [vmem:[#allocation10 + $0x1d0] ss:$8 sps:$4 sm:$0xff]  }
 0x1ed   :  { %v5176_v57 = vpop.f32.mrf.mxu0 }
 0x1ee   :  { %17093 = vst [vmem:[#allocation33_spill] sm:$0xff] %v14948_v31  ;;  %v14950_v4 = vpop.f32.mrf.mxu1  ;;  %v5177_v35 = vadd.f32 %v5176_v57, %v14797_v48  ;;  %10440 = vmatpush2.bf16.msra.mxu0 %v13100_v56  ;;  %v5861_v31 = vld [vmem:[#allocation3 + $0xe0] sm:$0x11]  ;;  %v5814_v48 = vsel %vm13755_vm6, 0, %v5813_v58  ;;  %v13114_v56 = vld [vmem:[#allocation10 + $0x1d4] ss:$8 sps:$4 sm:$0xff]  }
 0x1ef   :  { %10441 = vmatprep.subr.bf16.mxu0 %v13108_v44  ;;  %v5862_v57 = vsel %vm13763_vm11, 0, %v5861_v31  ;;  %10335 = vmatpush2.bf16.msra.mxu1 %v13109_v27  ;;  %5815 = vst [vmem:[#allocation3 + $0x8] sm:$0x11] %v5814_v48  ;;  %v5816_v44 = vld [vmem:[#allocation3 + $0x10] sm:$0x11]  ;;  %v5865_v31 = vsel %vm13763_vm11, 0, %v5864_v63 }
 0x1f0   :  { %v14953_v14 = vpop.f32.mrf.mxu1  ;;  %5863 = vst [vmem:[#allocation3 + $0xe0] sm:$0x11] %v5862_v57  ;;  %10336 = vmatprep.subr.bf16.mxu1 %v13117_v34  ;;  %v5817_v58 = vsel %vm13755_vm6, 0, %v5816_v44  ;;  %5866 = vst [vmem:[#allocation3] sm:$0x11] %v5865_v31 }
 0x1f1   :  { %5818 = vst [vmem:[#allocation3 + $0x10] sm:$0x11] %v5817_v58  ;;  %v13120_v48 = vld [vmem:[#allocation10 + $0x1c4] ss:$8 sps:$4 sm:$0xff]   ;;  %v13123_v57 = vld [vmem:[#allocation10 + $0x94] ss:$8 sps:$4 sm:$0xff]  }
 0x1f2   :  { %v14955_v53 = vpop.f32.mrf.mxu1  ;;  %10442 = vmatpush2.bf16.msra.mxu0 %v13106_v15  ;;  %v14973_v15 = vpop.f32.mrf.mxu0  ;;  %v13118_v34 = vld [vmem:[#allocation10 + $0x1c0] ss:$8 sps:$4 sm:$0xff]  }
 0x1f3   :  { %10443 = vmatprep.subr.bf16.mxu0 %v13114_v56  ;;  %10337 = vmatpush2.bf16.msra.mxu1 %v13115_v41  ;;  %v5819_v56 = vld [vmem:[#allocation3 + $0x40] sm:$0x11] }
 0x1f4   :  { %v14957_v1 = vpop.f32.mrf.mxu1  ;;  %10338 = vmatprep.subr.bf16.mxu1 %v13123_v57  ;;  %v5820_v41 = vsel %vm13755_vm6, 0, %v5819_v56  ;;  %v5867_v44 = vld [vmem:[#allocation3 + $0x80] sm:$0x11]  ;;  %v13126_v57 = vld [vmem:[#allocation10 + $0x1b4] ss:$8 sps:$4 sm:$0xff]  }
 0x1f5   :  { %17094 = vst [vmem:[#allocation34_spill] sm:$0xff] %v14957_v1  ;;  %5821 = vst [vmem:[#allocation3 + $0x40] sm:$0x11] %v5820_v41  ;;  %v13124_v1 = vld [vmem:[#allocation10 + $0x1b0] ss:$8 sps:$4 sm:$0xff]  }
 0x1f6   :  { %v14963_v42 = vpop.f32.mrf.mxu1  ;;  %10444 = vmatpush2.bf16.msra.mxu0 %v13112_v52  ;;  %v5870_v41 = vld [vmem:[#allocation3 + $0xc8] sm:$0x11] }
 0x1f7   :  { %17095 = vst [vmem:[#allocation35_spill] sm:$0xff] %v14963_v42  ;;  %10445 = vmatprep.subr.bf16.mxu0 %v13120_v48  ;;  %v5868_v48 = vsel %vm13763_vm11, 0, %v5867_v44 }
 0x1f8   :  { %v14965_v45 = vpop.f32.mrf.mxu1  ;;  %5869 = vst [vmem:[#allocation3 + $0x80] sm:$0x11] %v5868_v48 }
 0x1f9   :  { %17096 = vst [vmem:[#allocation36_spill] sm:$0xff] %v14965_v45  ;;  %v13121_v45 = vld [vmem:[#allocation10 + $0x90] ss:$8 sps:$4 sm:$0xff]   ;;  %v5182_v52 = vpop.f32.mrf.mxu0 }
 0x1fa   :  { %v14971_v27 = vpop.f32.mrf.mxu1  ;;  %10446 = vmatpush2.bf16.msra.mxu0 %v13118_v34  ;;  %10339 = vmatpush2.bf16.msra.mxu1 %v13121_v45  ;;  %v14982_v31 = vadd.f32 %v5182_v52, %v14806_v8 }
 0x1fb   :  { %17097 = vst [vmem:[#allocation37_spill] sm:$0xff] %v14971_v27  ;;  %v13129_v27 = vld [vmem:[#allocation10 + $0x84] ss:$8 sps:$4 sm:$0xff]   ;;  %v5184_v45 = vpop.f32.mrf.mxu0  ;;  %10447 = vmatprep.subr.bf16.mxu0 %v13126_v57 }
 0x1fc   :  { %v14975_v42 = vpop.f32.mrf.mxu1  ;;  %17099 = vst [vmem:[#allocation39_spill] sm:$0xff] %v14982_v31  ;;  %10340 = vmatprep.subr.bf16.mxu1 %v13129_v27  ;;  %v14989_v56 = vadd.f32 %v5184_v45, %v14812_v16  ;;  %v5871_v27 = vsel %vm13763_vm11, 0, %v5870_v41  ;;  %v13132_v16 = vld [vmem:[#allocation10 + $0x1a4] ss:$8 sps:$4 sm:$0xff]  }
 0x1fd   :  { %17098 = vst [vmem:[#allocation38_spill] sm:$0xff] %v14975_v42  ;;  %v13127_v42 = vld [vmem:[#allocation10 + $0x80] ss:$8 sps:$4 sm:$0xff]   ;;  %5872 = vst [vmem:[#allocation3 + $0xc8] sm:$0x11] %v5871_v27 }
 0x1fe   :  { %v5289_v63 = vpop.f32.mrf.mxu1  ;;  %17101 = vst [vmem:[#allocation41_spill] sm:$0xff] %v14989_v56  ;;  %10341 = vmatpush2.bf16.msra.mxu1 %v13127_v42  ;;  %10448 = vmatpush2.bf16.msra.mxu0 %v13124_v1  ;;  %v13130_v42 = vld [vmem:[#allocation10 + $0x1a0] ss:$8 sps:$4 sm:$0xff]   ;;  %v5873_v56 = vld [vmem:[#allocation3 + $0xd8] sm:$0x11] }
 0x1ff   :  { %v14979_v58 = vadd.f32 %v5289_v63, %v5177_v35  ;;  %v5822_v35 = vld [vmem:[#allocation3 + $0x18] sm:$0x11]  ;;  %v5186_v63 = vpop.f32.mrf.mxu0  ;;  %v5825_v45 = vld [vmem:[#allocation3 + $0x128] sm:$0x11]  ;;  %10449 = vmatprep.subr.bf16.mxu0 %v13132_v16 }
 0x200   :  { %v14986_v34 = vpop.f32.mrf.mxu1  ;;  %v5823_v52 = vsel %vm13755_vm6, 0, %v5822_v35  ;;  %v14996_v44 = vadd.f32 %v5186_v63, %v14826_v46  ;;  %v5826_v46 = vsel %vm13755_vm6, 0, %v5825_v45  ;;  %v5874_v63 = vsel %vm13763_vm11, 0, %v5873_v56 }
 0x201   :  { %17100 = vst [vmem:[#allocation40_spill] sm:$0xff] %v14986_v34  ;;  %5824 = vst [vmem:[#allocation3 + $0x18] sm:$0x11] %v5823_v52  ;;  %v15002_v57 = vpop.f32.mrf.mxu0 }
 0x202   :  { %v14991_v8 = vpop.f32.mrf.mxu1  ;;  %17103 = vst [vmem:[#allocation43_spill] sm:$0xff] %v14996_v44  ;;  %10450 = vmatpush2.bf16.msra.mxu0 %v13130_v42  ;;  %5827 = vst [vmem:[#allocation3 + $0x128] sm:$0x11] %v5826_v46 }
 0x203   :  { %17102 = vst [vmem:[#allocation42_spill] sm:$0xff] %v14991_v8  ;;  %v5192_v1 = vpop.f32.mrf.mxu0  ;;  %5875 = vst [vmem:[#allocation3 + $0xd8] sm:$0x11] %v5874_v63  ;;  %v5876_v8 = vld [vmem:[#allocation3 + $0x38] sm:$0x11] }
 0x204   :  { %v15000_v48 = vpop.f32.mrf.mxu1  ;;  %v5193_v52 = vadd.f32 %v5192_v1, %v14838_v47  ;;  %v5877_v47 = vsel %vm13763_vm11, 0, %v5876_v8  ;;  %v5831_v63 = vld [vmem:[#allocation3 + $0x88] sm:$0x11] }
 0x205   :  { %17104 = vst [vmem:[#allocation44_spill] sm:$0xff] %v15000_v48  ;;  %v5194_v27 = vpop.f32.mrf.mxu0  ;;  %v5828_v48 = vld [vmem:[#allocation3 + $0xb0] sm:$0x11]  ;;  %5878 = vst [vmem:[#allocation3 + $0x38] sm:$0x11] %v5877_v47 }
 0x206   :  { %v15004_v35 = vpop.f32.mrf.mxu1  ;;  %v15014_v44 = vadd.f32 %v5194_v27, %v14844_v37  ;;  %v5829_v56 = vsel %vm13755_vm6, 0, %v5828_v48  ;;  %v5879_v48 = vld [vmem:[#allocation3 + $0xa0] sm:$0x11] }
 0x207   :  { %17105 = vst [vmem:[#allocation45_spill] sm:$0xff] %v15004_v35  ;;  %v5196_v35 = vpop.f32.mrf.mxu0  ;;  %5830 = vst [vmem:[#allocation3 + $0xb0] sm:$0x11] %v5829_v56  ;;  %v13135_v56 = vld [vmem:[#allocation10 + $0x274] ss:$8 sps:$4 sm:$0xff]  }
 0x208   :  { %v15011_v41 = vpop.f32.mrf.mxu1  ;;  %17107 = vst [vmem:[#allocation47_spill] sm:$0xff] %v15014_v44  ;;  %v5197_v45 = vadd.f32 %v5196_v35, %v14858_v25  ;;  %v5832_v25 = vsel %vm13755_vm6, 0, %v5831_v63  ;;  %v5882_v44 = vld [vmem:[#allocation3 + $0xa8] sm:$0x11]  ;;  %10536 = vmatprep.subr.bf16.mxu1 %v13135_v56 }
 0x209   :  { %17106 = vst [vmem:[#allocation46_spill] sm:$0xff] %v15011_v41  ;;  %v15025_v1 = vpop.f32.mrf.mxu0  ;;  %5833 = vst [vmem:[#allocation3 + $0x88] sm:$0x11] %v5832_v25  ;;  %v5883_v25 = vsel %vm13763_vm11, 0, %v5882_v44  ;;  %v13142_v41 = vld [vmem:[#allocation10 + $0x180] ss:$8 sps:$4 sm:$0xff]  }
 0x20a   :  { %v5305_v16 = vpop.f32.mrf.mxu1  ;;  %5884 = vst [vmem:[#allocation3 + $0xa8] sm:$0x11] %v5883_v25 }
 0x20b   :  { %v15016_v31 = vadd.f32 %v5305_v16, %v5193_v52  ;;  %v5202_v46 = vpop.f32.mrf.mxu0  ;;  %v5880_v16 = vsel %vm13763_vm11, 0, %v5879_v48 }
 0x20c   :  { %v15023_v42 = vpop.f32.mrf.mxu1  ;;  %v5203_v52 = vadd.f32 %v5202_v46, %v14872_v9  ;;  %5881 = vst [vmem:[#allocation3 + $0xa0] sm:$0x11] %v5880_v16 }
 0x20d   :  { %17108 = vst [vmem:[#allocation48_spill] sm:$0xff] %v15023_v42  ;;  %v5204_v8 = vpop.f32.mrf.mxu0 }
 0x20e   :  { %v5309_v37 = vpop.f32.mrf.mxu1  ;;  %v5205_v47 = vadd.f32 %v5204_v8, %v14878_v18  ;;  %v13136_v18 = vld [vmem:[#allocation10 + $0x190] ss:$8 sps:$4 sm:$0xff]   ;;  %v13138_v8 = vld [vmem:[#allocation10 + $0x194] ss:$8 sps:$4 sm:$0xff]  }
 0x20f   :  { %v15027_v27 = vadd.f32 %v5309_v37, %v5197_v45  ;;  %v5206_v45 = vpop.f32.mrf.mxu0  ;;  %v5834_v37 = vld [vmem:[#allocation3 + $0x138] sm:$0x11]  ;;  %10451 = vmatprep.subr.bf16.mxu0 %v13138_v8  ;;  %v5837_v8 = vld [vmem:[#allocation3 + $0x130] sm:$0x11] }
 0x210   :  { %v15032_v35 = vpop.f32.mrf.mxu1  ;;  %v5207_v46 = vadd.f32 %v5206_v45, %v14888_v30  ;;  %v5835_v63 = vsel %vm13755_vm6, 0, %v5834_v37  ;;  %10452 = vmatpush2.bf16.msra.mxu0 %v13136_v18  ;;  %v13144_v45 = vld [vmem:[#allocation10 + $0x184] ss:$8 sps:$4 sm:$0xff]   ;;  %v5838_v18 = vsel %vm13755_vm6, 0, %v5837_v8 }
 0x211   :  { %17109 = vst [vmem:[#allocation49_spill] sm:$0xff] %v15032_v35  ;;  %v15044_v35 = vpop.f32.mrf.mxu0  ;;  %5836 = vst [vmem:[#allocation3 + $0x138] sm:$0x11] %v5835_v63  ;;  %10453 = vmatprep.subr.bf16.mxu0 %v13144_v45 }
 0x212   :  { %v5315_v42 = vpop.f32.mrf.mxu1  ;;  %5839 = vst [vmem:[#allocation3 + $0x130] sm:$0x11] %v5838_v18 }
 0x213   :  { %v15037_v9 = vadd.f32 %v5315_v42, %v5203_v52  ;;  %v5212_v42 = vpop.f32.mrf.mxu0 }
 0x214   :  { %v5317_v48 = vpop.f32.mrf.mxu1  ;;  %v5213_v30 = vadd.f32 %v5212_v42, %v14900_v32  ;;  %10454 = vmatpush2.bf16.msra.mxu0 %v13142_v41  ;;  %v5888_v41 = vld [vmem:[#allocation3 + $0x28] sm:$0x11] }
 0x215   :  { %v15046_v16 = vadd.f32 %v5317_v48, %v5205_v47  ;;  %v5214_v44 = vpop.f32.mrf.mxu0 }
 0x216   :  { %v5319_v56 = vpop.f32.mrf.mxu1  ;;  %v5215_v63 = vadd.f32 %v5214_v44, %v14906_v11 }
 0x217   :  { %v15048_v52 = vadd.f32 %v5319_v56, %v5207_v46  ;;  %v5216_v34 = vpop.f32.mrf.mxu0  ;;  %v5885_v56 = vld [vmem:[#allocation3 + $0x90] sm:$0x11] }
 0x218   :  { %v15051_v37 = vpop.f32.mrf.mxu1  ;;  %v5217_v48 = vadd.f32 %v5216_v34, %v14912_v0  ;;  %v5886_v42 = vsel %vm13763_vm11, 0, %v5885_v56  ;;  %v5840_v34 = vld [vmem:[#allocation3 + $0x58] sm:$0x11] }
 0x219   :  { %17110 = vst [vmem:[#allocation50_spill] sm:$0xff] %v15051_v37  ;;  %5887 = vst [vmem:[#allocation3 + $0x90] sm:$0x11] %v5886_v42  ;;  %v15063_v45 = vpop.f32.mrf.mxu0  ;;  %v5843_v37 = vld [vmem:[#allocation3 + $0x120] sm:$0x11] }
 0x21a   :  { %v5325_v25 = vpop.f32.mrf.mxu1  ;;  %17111 = vst [vmem:[#allocation51_spill] sm:$0xff] %v15063_v45  ;;  %v5891_v45 = vld [vmem:[#allocation3 + $0x70] sm:$0x11] }
 0x21b   :  { %v15054_v47 = vadd.f32 %v5325_v25, %v5213_v30  ;;  %v5889_v25 = vsel %vm13763_vm11, 0, %v5888_v41  ;;  %v5892_v41 = vsel %vm13763_vm11, 0, %v5891_v45 }
 0x21c   :  { %v5327_v46 = vpop.f32.mrf.mxu1  ;;  %5890 = vst [vmem:[#allocation3 + $0x28] sm:$0x11] %v5889_v25  ;;  %5893 = vst [vmem:[#allocation3 + $0x70] sm:$0x11] %v5892_v41 }
 0x21d   :  { %v15057_v32 = vadd.f32 %v5327_v46, %v5215_v63  ;;  %v5841_v63 = vsel %vm13755_vm6, 0, %v5840_v34  ;;  %v5844_v34 = vsel %vm13755_vm6, 0, %v5843_v37 }
 0x21e   :  { %v5329_v11 = vpop.f32.mrf.mxu1  ;;  %5842 = vst [vmem:[#allocation3 + $0x58] sm:$0x11] %v5841_v63  ;;  %5845 = vst [vmem:[#allocation3 + $0x120] sm:$0x11] %v5844_v34 }
 0x21f   :  { %v15065_v30 = vadd.f32 %v5329_v11, %v5217_v48 }
 0x220   :  { %v15067_v0 = vpop.f32.mrf.mxu1 }
 0x221   :  { %17112 = vst [vmem:[#allocation52_spill] sm:$0xff] %v15065_v30  ;;  %17113 = vst [vmem:[#allocation53_spill] sm:$0xff] %v15067_v0  ;;  %v5222_v46 = vpop.f32.mrf.mxu0  ;;  %v13150_v0 = vld [vmem:[#allocation10 + $0x374] ss:$8 sps:$4 sm:$0xff]  }
 0x222   :  { %v5335_v44 = vpop.f32.mrf.mxu1  ;;  %v5223_v8 = vadd.f32 %v5222_v46, %v14922_v19  ;;  %10649 = vmatprep.subr.bf16.mxu0 %v13150_v0 }
 0x223   :  { %v5224_v18 = vpop.f32.mrf.mxu0 }
 0x224   :  { %v5337_v56 = vpop.f32.mrf.mxu1  ;;  %v5225_v48 = vadd.f32 %v5224_v18, %v14928_v12  ;;  %v15075_v42 = vadd.f32 %v5335_v44, %v5223_v8 }
 0x225   :  { %v5226_v30 = vpop.f32.mrf.mxu0 }
 0x226   :  { %v5339_v11 = vpop.f32.mrf.mxu1  ;;  %v5227_v63 = vadd.f32 %v5226_v30, %v14934_v2  ;;  %v15082_v19 = vadd.f32 %v5337_v56, %v5225_v48  ;;  %v5846_v30 = vld [vmem:[#allocation3 + $0x20] sm:$0x11]  ;;  %v5894_v56 = vld [vmem:[#allocation3 + $0xf8] sm:$0x11] }
 0x227   :  { %v15086_v12 = vpop.f32.mrf.mxu0  ;;  %v5847_v0 = vsel %vm13755_vm6, 0, %v5846_v30  ;;  %v5895_v48 = vsel %vm13763_vm11, 0, %v5894_v56 }
 0x228   :  { %17114 = vst [vmem:[#allocation54_spill] sm:$0xff] %v15082_v19  ;;  %v15084_v25 = vpop.f32.mrf.mxu1  ;;  %v15088_v44 = vadd.f32 %v5339_v11, %v5227_v63  ;;  %5848 = vst [vmem:[#allocation3 + $0x20] sm:$0x11] %v5847_v0  ;;  %v5849_v63 = vld [vmem:[#allocation3 + $0x98] sm:$0x11] }
 0x229   :  { %17115 = vst [vmem:[#allocation55_spill] sm:$0xff] %v15084_v25  ;;  %v15092_v8 = vpop.f32.mrf.mxu0  ;;  %5896 = vst [vmem:[#allocation3 + $0xf8] sm:$0x11] %v5895_v48  ;;  %v5900_v19 = vld [vmem:[#allocation3 + $0x78] sm:$0x11] }
 0x22a   :  { %17116 = vst [vmem:[#allocation56_spill] sm:$0xff] %v15088_v44  ;;  %v15090_v46 = vpop.f32.mrf.mxu1  ;;  %v5850_v44 = vsel %vm13755_vm6, 0, %v5849_v63 }
 0x22b   :  { %17117 = vst [vmem:[#allocation57_spill] sm:$0xff] %v15090_v46  ;;  %v15096_v45 = vpop.f32.mrf.mxu0  ;;  %5851 = vst [vmem:[#allocation3 + $0x98] sm:$0x11] %v5850_v44 }
 0x22c   :  { %v15094_v37 = vpop.f32.mrf.mxu1 }
 0x22d   :  { %17118 = vst [vmem:[#allocation58_spill] sm:$0xff] %v15094_v37  ;;  %v15100_v18 = vpop.f32.mrf.mxu0  ;;  %v5897_v37 = vld [vmem:[#allocation3 + $0x30] sm:$0x11] }
 0x22e   :  { %v15098_v2 = vpop.f32.mrf.mxu1  ;;  %v5898_v30 = vsel %vm13763_vm11, 0, %v5897_v37 }
 0x22f   :  { %17119 = vst [vmem:[#allocation59_spill] sm:$0xff] %v15098_v2  ;;  %v15108_v34 = vpop.f32.mrf.mxu0  ;;  %5899 = vst [vmem:[#allocation3 + $0x30] sm:$0x11] %v5898_v30 }
 0x230   :  { %v15106_v11 = vpop.f32.mrf.mxu1 }
 0x231   :  { %17120 = vst [vmem:[#allocation60_spill] sm:$0xff] %v15106_v11  ;;  %v15112_v2 = vpop.f32.mrf.mxu0 }
 0x232   :  { %v15110_v41 = vpop.f32.mrf.mxu1 }
 0x233   :  { %17121 = vst [vmem:[#allocation61_spill] sm:$0xff] %v15110_v41  ;;  %v15120_v56 = vpop.f32.mrf.mxu0 }
 0x234   :  { %v15116_v46 = vpop.f32.mrf.mxu1  ;;  %17123 = vst [vmem:[#allocation63_spill] sm:$0xff] %v15120_v56 }
 0x235   :  { %17122 = vst [vmem:[#allocation62_spill] sm:$0xff] %v15116_v46  ;;  %v15124_v48 = vpop.f32.mrf.mxu0  ;;  %v5852_v46 = vld [vmem:[#allocation3 + $0x108] sm:$0x11] }
 0x236   :  { %v15122_v0 = vpop.f32.mrf.mxu1  ;;  %17125 = vst [vmem:[#allocation65_spill] sm:$0xff] %v15124_v48  ;;  %v5853_v37 = vsel %vm13755_vm6, 0, %v5852_v46  ;;  %v5855_v48 = vld [vmem:[#allocation3 + $0xe8] sm:$0x11] }
 0x237   :  { %17124 = vst [vmem:[#allocation64_spill] sm:$0xff] %v15122_v0  ;;  %v15128_v11 = vpop.f32.mrf.mxu0  ;;  %5854 = vst [vmem:[#allocation3 + $0x108] sm:$0x11] %v5853_v37  ;;  %v5901_v0 = vsel %vm13763_vm11, 0, %v5900_v19  ;;  %v5856_v37 = vsel %vm13755_vm6, 0, %v5855_v48 }
 0x238   :  { %v15126_v41 = vpop.f32.mrf.mxu1  ;;  %17127 = vst [vmem:[#allocation67_spill] sm:$0xff] %v15128_v11  ;;  %5902 = vst [vmem:[#allocation3 + $0x78] sm:$0x11] %v5901_v0  ;;  %v5906_v48 = vld [vmem:[#allocation3 + $0xc0] sm:$0x11] }
 0x239   :  { %17126 = vst [vmem:[#allocation66_spill] sm:$0xff] %v15126_v41  ;;  %v15132_v63 = vpop.f32.mrf.mxu0  ;;  %5857 = vst [vmem:[#allocation3 + $0xe8] sm:$0x11] %v5856_v37 }
 0x23a   :  { %v15130_v25 = vpop.f32.mrf.mxu1  ;;  %17129 = vst [vmem:[#allocation69_spill] sm:$0xff] %v15132_v63 }
 0x23b   :  { %17128 = vst [vmem:[#allocation68_spill] sm:$0xff] %v15130_v25  ;;  %v15138_v30 = vpop.f32.mrf.mxu0 }
 0x23c   :  { %v15134_v44 = vpop.f32.mrf.mxu1  ;;  %17131 = vst [vmem:[#allocation71_spill] sm:$0xff] %v15138_v30  ;;  %v5903_v30 = vld [vmem:[#allocation3 + $0x50] sm:$0x11] }
 0x23d   :  { %17130 = vst [vmem:[#allocation70_spill] sm:$0xff] %v15134_v44  ;;  %v5402_v11 = vpop.f32.mrf.mxu0  ;;  %v5904_v19 = vsel %vm13763_vm11, 0, %v5903_v30  ;;  %v5907_v30 = vsel %vm13763_vm11, 0, %v5906_v48 }
 0x23e   :  { %v15142_v41 = vpop.f32.mrf.mxu1  ;;  %v15145_v25 = vadd.f32 %v5402_v11, %v14979_v58  ;;  %5905 = vst [vmem:[#allocation3 + $0x50] sm:$0x11] %v5904_v19  ;;  %5908 = vst [vmem:[#allocation3 + $0xc0] sm:$0x11] %v5907_v30 }
 0x23f   :  { %17132 = vst [vmem:[#allocation72_spill] sm:$0xff] %v15142_v41  ;;  %v15149_v44 = vpop.f32.mrf.mxu0  ;;  %v5858_v41 = vld [vmem:[#allocation3 + $0xb8] sm:$0x11] }
 0x240   :  { %17133 = vst [vmem:[#allocation73_spill] sm:$0xff] %v15145_v25  ;;  %v15147_v63 = vpop.f32.mrf.mxu1  ;;  %v5859_v37 = vsel %vm13755_vm6, 0, %v5858_v41 }
 0x241   :  { %17134 = vst [vmem:[#allocation74_spill] sm:$0xff] %v15147_v63  ;;  %v15155_v56 = vpop.f32.mrf.mxu0  ;;  %5860 = vst [vmem:[#allocation3 + $0xb8] sm:$0x11] %v5859_v37 }
 0x242   :  { %v15151_v46 = vpop.f32.mrf.mxu1 }
 0x243   :  { %17135 = vst [vmem:[#allocation75_spill] sm:$0xff] %v15151_v46  ;;  %v15161_v58 = vpop.f32.mrf.mxu0 }
 0x244   :  { %v15159_v0 = vpop.f32.mrf.mxu1  ;;  %17137 = vst [vmem:[#allocation77_spill] sm:$0xff] %v15161_v58 }
 0x245   :  { %17136 = vst [vmem:[#allocation76_spill] sm:$0xff] %v15159_v0  ;;  %v15165_v63 = vpop.f32.mrf.mxu0 }
 0x246   :  { %v15163_v11 = vpop.f32.mrf.mxu1  ;;  %17139 = vst [vmem:[#allocation79_spill] sm:$0xff] %v15165_v63 }
 0x247   :  { %17138 = vst [vmem:[#allocation78_spill] sm:$0xff] %v15163_v11  ;;  %v15169_v25 = vpop.f32.mrf.mxu0 }
 0x248   :  { %v15167_v46 = vpop.f32.mrf.mxu1  ;;  %17141 = vst [vmem:[#allocation81_spill] sm:$0xff] %v15169_v25 }
 0x249   :  { %17140 = vst [vmem:[#allocation80_spill] sm:$0xff] %v15167_v46  ;;  %v5418_v19 = vpop.f32.mrf.mxu0 }
 0x24a   :  { %v15175_v0 = vpop.f32.mrf.mxu1  ;;  %v15178_v11 = vadd.f32 %v5418_v19, %v15016_v31  ;;  %v5686_v31 = vshrl.u32 %v5685_v39, 7  ;;  %v17149_v19 = vld [vmem:[#allocation27_spill] sm:$0xff] }
 0x24b   :  { %17142 = vst [vmem:[#allocation82_spill] sm:$0xff] %v15175_v0  ;;  %v15182_v46 = vpop.f32.mrf.mxu0  ;;  %v17150_v0 = vld [vmem:[#allocation26_spill] sm:$0xff] }
 0x24c   :  { %17143 = vst [vmem:[#allocation83_spill] sm:$0xff] %v15178_v11  ;;  %v15180_v63 = vpop.f32.mrf.mxu1  ;;  %v4870_v11 = vadd.f32 %v14659_v36, %v17150_v0 }
 0x24d   :  { %17144 = vst [vmem:[#allocation84_spill] sm:$0xff] %v15180_v63  ;;  %v5422_v25 = vpop.f32.mrf.mxu0  ;;  %v4860_v63 = vadd.f32 %v17149_v19, %v14576_v7  ;;  %v5046_v19 = vadd.f32 %v14751_v62, %v14708_v61  ;;  %v5727_v61 = vld [vmem:[#allocation13] sm:$0x3] }
 0x24e   :  { %v15184_v58 = vpop.f32.mrf.mxu1  ;;  %v15187_v41 = vadd.f32 %v5422_v25, %v15027_v27  ;;  %v4983_v0 = vadd.f32 %v14828_v17, %v4870_v11  ;;  %v17157_v11 = vld [vmem:[#allocation28_spill] sm:$0xff] }
 0x24f   :  { %17145 = vst [vmem:[#allocation85_spill] sm:$0xff] %v15184_v58  ;;  %v15191_v48 = vpop.f32.mrf.mxu0  ;;  %v4880_v58 = vadd.f32 %v14701_v60, %v14654_v6  ;;  %v4973_v36 = vadd.f32 %v14799_v49, %v4860_v63  ;;  %v5056_v49 = vadd.f32 %v14775_v24, %v14733_v55  ;;  %v15232_v63 = vsub.s32 1, %v5686_v31 }
 0x250   :  { %17146 = vst [vmem:[#allocation86_spill] sm:$0xff] %v15187_v41  ;;  %v15189_v50 = vpop.f32.mrf.mxu1  ;;  %v15208_v41 = vld [vmem:[#allocation2 + $0x110] sm:$0xff]  ;;  %v5096_v24 = vadd.f32 %v14894_v28, %v4983_v0 }
 0x251   :  { %17147 = vst [vmem:[#allocation87_spill] sm:$0xff] %v15189_v50  ;;  %v5428_v30 = vpop.f32.mrf.mxu0  ;;  %v4890_v50 = vadd.f32 %v14730_v5, %v14681_v33  ;;  %17151 = vst [vmem:[#allocation27_spill] sm:$0xff] %v15208_v41  ;;  %v6342_v39 = vshrl.u32 %v15208_v41, 16  ;;  %v6345_v7 = vshll.u32 %v15208_v41, 16  ;;  %v4993_v6 = vadd.f32 %v14862_v29, %v4880_v58  ;;  %v17156_v58 = vld [vmem:[#allocation29_spill] sm:$0xff] }
 0x252   :  { %v15193_v37 = vpop.f32.mrf.mxu1  ;;  %v15202_v27 = vadd.f32 %v5428_v30, %v15037_v9  ;;  %v15221_v30 = vsub.s32 0, %v5686_v31  ;;  %17155 = vst [vmem:[#allocation91_spill] sm:$0xff] %v15232_v63  ;;  %v5086_v55 = vadd.f32 %v14864_v20, %v4973_v36  ;;  %v5159_v31 = vadd.f32 %v14914_v22, %v5046_v19  ;;  %v17162_v19 = vld [vmem:[#allocation36_spill] sm:$0xff] }
 0x253   :  { %17148 = vst [vmem:[#allocation88_spill] sm:$0xff] %v15193_v37  ;;  %v5430_v37 = vpop.f32.mrf.mxu0  ;;  %v5003_v33 = vadd.f32 %v14892_v54, %v4890_v50  ;;  %v5066_v54 = vadd.f32 %v17156_v58, %v14754_v13  ;;  %v17158_v50 = vld [vmem:[#allocation30_spill] sm:$0xff]  ;;  %v6344_v62 = vrot.slane %v6342_v39, 4  ;;  %v5266_v13 = vadd.f32 %v14940_v3, %v14897_v43 }
 0x254   :  { %v15204_v25 = vpop.f32.mrf.mxu1  ;;  %v15216_v60 = vadd.f32 %v5430_v37, %v15046_v16  ;;  %17153 = vst [vmem:[#allocation89_spill] sm:$0xff] %v15221_v30  ;;  %v5683_v16 = vld [vmem:[#allocation11] sm:$0x3]  ;;  %v5076_v37 = vadd.f32 %v17158_v50, %v17157_v11  ;;  %v5169_v58 = vadd.f32 %v14936_v26, %v5056_v49  ;;  %v5268_v20 = vadd.f32 %v14945_v10, %v14903_v23 }
 0x255   :  { %v5432_v5 = vpop.f32.mrf.mxu0  ;;  %v15249_v39 = vrot.slane %v5683_v16, %v15221_v30  ;;  %v15259_v22 = vrot.slane %v5727_v61, %v15221_v30  ;;  %v5270_v43 = vadd.f32 %v14950_v4, %v14909_v40  ;;  %v5179_v26 = vadd.f32 %v14973_v15, %v5066_v54  ;;  %v17159_v40 = vld [vmem:[#allocation34_spill] sm:$0xff]  ;;  %v17160_v15 = vld [vmem:[#allocation31_spill] sm:$0xff] }
 0x256   :  { %v15218_v9 = vpop.f32.mrf.mxu1  ;;  %v15228_v17 = vadd.f32 %v5432_v5, %v15048_v52  ;;  %v5106_v52 = vadd.f32 %v14916_v38, %v4993_v6  ;;  %v6310_v5 = vld [vmem:[#allocation3 + $0x118] sm:$0x11]  ;;  %v5272_v23 = vadd.f32 %v14953_v14, %v5159_v31  ;;  %v5189_v10 = vadd.f32 %v15002_v57, %v5076_v37  ;;  %v17164_v57 = vld [vmem:[#allocation37_spill] sm:$0xff] }
 0x257   :  { %17152 = vst [vmem:[#allocation26_spill] sm:$0xff] %v15218_v9  ;;  %v15238_v41 = vpop.f32.mrf.mxu0  ;;  %v6347_v9 = vrot.slane %v6345_v7, 5  ;;  %v6351_v36 = vshll.u32 %v6310_v5, 16  ;;  %v15273_v0 = vrot.slane %v5727_v61, %v15232_v63  ;;  %v5276_v6 = vadd.f32 %v14955_v53, %v14919_v51  ;;  %v17165_v37 = vld [vmem:[#allocation52_spill] sm:$0xff]  ;;  %v17167_v53 = vld [vmem:[#allocation33_spill] sm:$0xff] }
 0x258   :  { %v15230_v29 = vpop.f32.mrf.mxu1  ;;  %v5278_v4 = vadd.f32 %v17159_v40, %v14925_v59  ;;  %v5282_v49 = vadd.f32 %v17162_v19, %v5169_v58  ;;  %v5209_v50 = vadd.f32 %v15044_v35, %v5096_v24  ;;  %v17168_v59 = vld [vmem:[#allocation38_spill] sm:$0xff]  ;;  %v17169_v31 = vld [vmem:[#allocation40_spill] sm:$0xff]  ;;  %v17170_v40 = vld [vmem:[#allocation39_spill] sm:$0xff] }
 0x259   :  { %17154 = vst [vmem:[#allocation90_spill] sm:$0xff] %v15230_v29  ;;  %v5116_v29 = vadd.f32 %v14938_v21, %v5003_v33  ;;  %v5438_v11 = vpop.f32.mrf.mxu0  ;;  %v15262_v21 = vrot.slane %v5683_v16, %v15232_v63  ;;  %v6348_v7 = vor.u32 %v6347_v9, %v6344_v62  ;;  %v17161_v33 = vld [vmem:[#allocation35_spill] sm:$0xff]  ;;  %v17163_v16 = vld [vmem:[#allocation32_spill] sm:$0xff]  ;;  %v5288_v62 = vadd.f32 %v17168_v59, %v17167_v53  ;;  %v17175_v19 = vld [vmem:[#allocation45_spill] sm:$0xff] }
 0x25a   :  { %v15254_v28 = vadd.f32 %v5438_v11, %v15054_v47  ;;  %v15256_v38 = vpop.f32.mrf.mxu1  ;;  %v5280_v9 = vadd.f32 %v17161_v33, %v17160_v15  ;;  %v5286_v54 = vadd.f32 %v17164_v57, %v17163_v16  ;;  %v5292_v5 = vadd.f32 %v17169_v31, %v5179_v26  ;;  %v17171_v15 = vld [vmem:[#allocation42_spill] sm:$0xff]  ;;  %v17173_v35 = vld [vmem:[#allocation44_spill] sm:$0xff]  ;;  %v17174_v33 = vld [vmem:[#allocation43_spill] sm:$0xff] }
 0x25b   :  { %v5440_v3 = vpop.f32.mrf.mxu0  ;;  %v15296_v58 = vrot.slane %v6348_v7, 4  ;;  %v17176_v16 = vld [vmem:[#allocation46_spill] sm:$0xff]  ;;  %v5229_v26 = vadd.f32 %v15086_v12, %v5116_v29  ;;  %v5379_v59 = vadd.f32 %v15092_v8, %v5266_v13  ;;  %v5381_v7 = vadd.f32 %v15096_v45, %v5268_v20  ;;  %v6598_v63 = vld [vmem:[#allocation3 + $0x118] sm:$0x11] }
 0x25c   :  { %v15270_v47 = vadd.f32 %v5440_v3, %v15057_v32  ;;  %v5199_v32 = vadd.f32 %v15025_v1, %v5086_v55  ;;  %v15289_v51 = vpop.f32.mrf.mxu1  ;;  %v6353_v3 = vrot.slane %v6351_v36, 5  ;;  %v5296_v1 = vadd.f32 %v17171_v15, %v17170_v40  ;;  %v17172_v55 = vld [vmem:[#allocation41_spill] sm:$0xff]  ;;  %v17178_v40 = vld [vmem:[#allocation47_spill] sm:$0xff]  ;;  %v17179_v15 = vld [vmem:[#allocation48_spill] sm:$0xff] }
 0x25d   :  { %v5442_v14 = vpop.f32.mrf.mxu0  ;;  %v5298_v24 = vadd.f32 %v17173_v35, %v17172_v55  ;;  %v5302_v57 = vadd.f32 %v17176_v16, %v5189_v10  ;;  %v6597_v31 = vld [vmem:[#allocation3 + $0x100] sm:$0xee]  ;;  %v5308_v30 = vadd.f32 %v17179_v15, %v17178_v40  ;;  %v5383_v12 = vadd.f32 %v15100_v18, %v5270_v43  ;;  %v17188_v18 = vld [vmem:[#allocation55_spill] sm:$0xff] }
 0x25e   :  { %v15287_v61 = vadd.f32 %v5442_v14, %v17165_v37  ;;  %v5300_v14 = vadd.f32 %v17175_v19, %v17174_v33  ;;  %v17177_v37 = vld [vmem:[#allocation51_spill] sm:$0xff]  ;;  %v17180_v55 = vld [vmem:[#allocation49_spill] sm:$0xff]  ;;  %v15315_v10 = vpop.f32.mrf.mxu1  ;;  %v5385_v8 = vadd.f32 %v15108_v34, %v5272_v23  ;;  %v5389_v45 = vadd.f32 %v15112_v2, %v5276_v6  ;;  %v17190_v23 = vld [vmem:[#allocation58_spill] sm:$0xff] }
 0x25f   :  { %v15294_v11 = vpop.f32.mrf.mxu0  ;;  %v5219_v53 = vadd.f32 %v17177_v37, %v5106_v52  ;;  %v5312_v35 = vadd.f32 %v17180_v55, %v5199_v32  ;;  %v15326_v20 = vsel %vm13810_vm3, %v15296_v58, %v6353_v3  ;;  %v17184_v32 = vld [vmem:[#allocation63_spill] sm:$0xff]  ;;  %v12075_v16 = vrot.slane %v6597_v31, 9  ;;  %v17187_v37 = vld [vmem:[#allocation53_spill] sm:$0xff] }
 0x260   :  { %17166 = vst [vmem:[#allocation29_spill] sm:$0xff] %v15287_v61  ;;  %v17181_v61 = vld [vmem:[#allocation50_spill] sm:$0xff]  ;;  %17183 = vst [vmem:[#allocation28_spill] sm:$0xff] %v15326_v20  ;;  %v15334_v43 = vadd.f32 %v17188_v18, %v5229_v26  ;;  %v17189_v34 = vld [vmem:[#allocation57_spill] sm:$0xff]  ;;  %v5494_v6 = vadd.f32 %v17190_v23, %v5381_v7 }
 0x261   :  { %v5448_v36 = vpop.f32.mrf.mxu0  ;;  %v15313_v33 = vadd.f32 %v17181_v61, %v5209_v50  ;;  %v5391_v50 = vadd.f32 %v17184_v32, %v5278_v4  ;;  %v17185_v61 = vld [vmem:[#allocation54_spill] sm:$0xff]  ;;  %v5492_v2 = vadd.f32 %v17189_v34, %v5379_v59  ;;  %v6326_v15 = vld [vmem:[#allocation3 + $0xd0] sm:$0x11]  ;;  %v17191_v3 = vld [vmem:[#allocation65_spill] sm:$0xff] }
 0x262   :  { %v15318_v52 = vadd.f32 %v5448_v36, %v15075_v42  ;;  %v6663_v42 = vrot.slane %v6598_v63, 5  ;;  %v5332_v36 = vadd.f32 %v17187_v37, %v5219_v53  ;;  %v5393_v55 = vadd.f32 %v17191_v3, %v5280_v9  ;;  %v17192_v20 = vld [vmem:[#allocation67_spill] sm:$0xff]  ;;  %v17193_v32 = vld [vmem:[#allocation69_spill] sm:$0xff]  ;;  %v17194_v63 = vld [vmem:[#allocation56_spill] sm:$0xff] }
 0x263   :  { %v5450_v29 = vpop.f32.mrf.mxu0  ;;  %v5395_v4 = vadd.f32 %v17192_v20, %v5282_v49  ;;  %v17195_v53 = vld [vmem:[#allocation59_spill] sm:$0xff]  ;;  %v17196_v37 = vld [vmem:[#allocation60_spill] sm:$0xff]  ;;  %v17197_v59 = vld [vmem:[#allocation61_spill] sm:$0xff]  ;;  %v5405_v49 = vadd.f32 %v15149_v44, %v5292_v5 }
 0x264   :  { %v15330_v19 = vadd.f32 %v5450_v29, %v17185_v61  ;;  %v5399_v29 = vadd.f32 %v17193_v32, %v5286_v54  ;;  %v15341_v61 = vpop.f32.mrf.mxu1  ;;  %v5496_v26 = vadd.f32 %v17195_v53, %v5383_v12  ;;  %v5498_v18 = vadd.f32 %v17196_v37, %v5385_v8  ;;  %v17198_v7 = vld [vmem:[#allocation71_spill] sm:$0xff]  ;;  %v17199_v9 = vld [vmem:[#allocation62_spill] sm:$0xff]  ;;  %v17201_v32 = vld [vmem:[#allocation77_spill] sm:$0xff] }
 0x265   :  { %v5452_v40 = vpop.f32.mrf.mxu0  ;;  %v5502_v34 = vadd.f32 %v17197_v59, %v5389_v45  ;;  %v5401_v23 = vadd.f32 %v17198_v7, %v5288_v62  ;;  %v15353_v3 = vadd.f32 %v17199_v9, %v5391_v50  ;;  %v6463_v54 = vshll.u32 %v6326_v15, 16  ;;  %v17203_v53 = vld [vmem:[#allocation81_spill] sm:$0xff]  ;;  %v17204_v59 = vld [vmem:[#allocation64_spill] sm:$0xff]  ;;  %v17205_v50 = vld [vmem:[#allocation66_spill] sm:$0xff] }
 0x266   :  { %17186 = vst [vmem:[#allocation30_spill] sm:$0xff] %v15330_v19  ;;  %v15344_v31 = vadd.f32 %v5452_v40, %v17194_v63  ;;  %v15358_v40 = vsel %vm14039_vm7, %v12075_v16, %v6663_v42  ;;  %v5409_v12 = vadd.f32 %v15155_v56, %v5296_v1  ;;  %v5411_v8 = vadd.f32 %v17201_v32, %v5298_v24  ;;  %v17202_v63 = vld [vmem:[#allocation79_spill] sm:$0xff]  ;;  %v17206_v44 = vld [vmem:[#allocation68_spill] sm:$0xff]  ;;  %v5561_v16 = vpop.f32.mrf.mxu1  ;;  %v17207_v15 = vld [vmem:[#allocation70_spill] sm:$0xff] }
 0x267   :  { %v15350_v19 = vpop.f32.mrf.mxu0  ;;  %v5413_v45 = vadd.f32 %v17202_v63, %v5300_v14  ;;  %v5415_v62 = vadd.f32 %v17203_v53, %v5302_v57  ;;  %v15365_v7 = vadd.f32 %v17204_v59, %v5393_v55  ;;  %v15368_v9 = vadd.f32 %v17205_v50, %v5395_v4  ;;  %v17208_v1 = vld [vmem:[#allocation73_spill] sm:$0xff]  ;;  %v17209_v24 = vld [vmem:[#allocation72_spill] sm:$0xff]  ;;  %v17210_v63 = vld [vmem:[#allocation74_spill] sm:$0xff] }
 0x268   :  { %v15371_v5 = vadd.f32 %v17206_v44, %v5399_v29  ;;  %v15374_v56 = vadd.f32 %v17207_v15, %v5401_v23  ;;  %v15378_v14 = vadd.f32 %v17209_v24, %v17208_v1  ;;  %v5421_v57 = vadd.f32 %v15182_v46, %v5308_v30  ;;  %v17212_v23 = vld [vmem:[#allocation76_spill] sm:$0xff]  ;;  %v17213_v44 = vld [vmem:[#allocation78_spill] sm:$0xff] }
 0x269   :  { %v5604_v37 = vpop.f32.mrf.mxu0  ;;  %v5425_v55 = vadd.f32 %v15191_v48, %v5312_v35  ;;  %v15383_v4 = vadd.f32 %v17210_v63, %v5405_v49  ;;  %v6465_v59 = vrot.slane %v6463_v54, 5  ;;  %v15390_v50 = vadd.f32 %v17212_v23, %v5411_v8  ;;  %v17214_v46 = vld [vmem:[#allocation80_spill] sm:$0xff]  ;;  %v17215_v35 = vld [vmem:[#allocation83_spill] sm:$0xff]  ;;  %v17216_v49 = vld [vmem:[#allocation82_spill] sm:$0xff] }
 0x26a   :  { %v5605_v42 = vadd.f32 %v5604_v37, %v5492_v2  ;;  %v17211_v2 = vld [vmem:[#allocation75_spill] sm:$0xff]  ;;  %v15393_v15 = vadd.f32 %v17213_v44, %v5413_v45  ;;  %v15396_v30 = vadd.f32 %v17214_v46, %v5415_v62  ;;  %v15400_v1 = vadd.f32 %v17216_v49, %v17215_v35  ;;  %v17217_v24 = vld [vmem:[#allocation84_spill] sm:$0xff]  ;;  %v17219_v45 = vld [vmem:[#allocation85_spill] sm:$0xff] }
 0x26b   :  { %v5606_v32 = vpop.f32.mrf.mxu0  ;;  %v15387_v37 = vadd.f32 %v17211_v2, %v5409_v12  ;;  %v15405_v8 = vadd.f32 %v17217_v24, %v5421_v57  ;;  %v17220_v62 = vld [vmem:[#allocation87_spill] sm:$0xff]  ;;  %v5435_v23 = vadd.f32 %v15238_v41, %v15313_v33  ;;  %v17221_v57 = vld [vmem:[#allocation88_spill] sm:$0xff]  ;;  %v5445_v41 = vadd.f32 %v15294_v11, %v5332_v36  ;;  %v17224_v36 = vld [vmem:[#allocation29_spill] sm:$0xff] }
 0x26c   :  { %v5695_v29 = vmul.f32 %v15249_v39, %v5605_v42  ;;  %v5607_v53 = vadd.f32 %v5606_v32, %v5494_v6  ;;  %v5563_v42 = vpop.f32.mrf.mxu1  ;;  %v17218_v32 = vld [vmem:[#allocation86_spill] sm:$0xff]  ;;  %v15412_v2 = vadd.f32 %v17220_v62, %v5425_v55  ;;  %v15429_v55 = vadd.f32 %v15204_v25, %v15216_v60 }
 0x26d   :  { %v5608_v48 = vpop.f32.mrf.mxu0  ;;  %v15409_v63 = vadd.f32 %v17219_v45, %v17218_v32  ;;  %v15443_v25 = vadd.f32 %v15256_v38, %v15254_v28  ;;  %v15447_v60 = vadd.f32 %v15289_v51, %v15270_v47  ;;  %v15456_v62 = vadd.f32 %v15341_v61, %v5445_v41 }
 0x26e   :  { %v5739_v6 = vadd.f32 %v15259_v22, %v5695_v29  ;;  %v5696_v54 = vmul.f32 %v15262_v21, %v5607_v53  ;;  %v5609_v12 = vadd.f32 %v5608_v48, %v5496_v26  ;;  %v15421_v26 = vsel %vm13810_vm3, %v15296_v58, %v6465_v59  ;;  %v5565_v49 = vpop.f32.mrf.mxu1  ;;  %v17222_v59 = vld [vmem:[#allocation26_spill] sm:$0xff] }
 0x26f   :  { %v5610_v44 = vpop.f32.mrf.mxu0  ;;  %v15425_v48 = vadd.f32 %v17221_v57, %v15202_v27  ;;  %v15436_v24 = vadd.f32 %v17222_v59, %v15228_v17  ;;  %v17223_v27 = vld [vmem:[#allocation90_spill] sm:$0xff]  ;;  %v15459_v28 = vadd.f32 %v5561_v16, %v15318_v52  ;;  %v5455_v38 = vadd.f32 %v15350_v19, %v15334_v43 }
 0x270   :  { %v5740_v46 = vadd.f32 %v15273_v0, %v5696_v54  ;;  %v5697_v29 = vmul.f32 %v15249_v39, %v5609_v12  ;;  %v5611_v53 = vadd.f32 %v5610_v44, %v5498_v18  ;;  %v5771_v33 = vmax.f32 %v5739_v6, 0.0 }
 0x271   :  { %v5614_v35 = vpop.f32.mrf.mxu0  ;;  %v15439_v32 = vadd.f32 %v17223_v27, %v5435_v23  ;;  %v15451_v6 = vadd.f32 %v15315_v10, %v17224_v36  ;;  %v5567_v23 = vpop.f32.mrf.mxu1  ;;  %v15469_v61 = vadd.f32 %v5565_v49, %v15344_v31 }
 0x272   :  { %v5772_v54 = vmax.f32 %v5740_v46, 0.0  ;;  %v5741_v18 = vadd.f32 %v15259_v22, %v5697_v29  ;;  %v5698_v12 = vmul.f32 %v15262_v21, %v5611_v53  ;;  %v5615_v58 = vadd.f32 %v5614_v35, %v5502_v34  ;;  %v17225_v53 = vld [vmem:[#allocation30_spill] sm:$0xff] }
 0x273   :  { %v5616_v11 = vpop.f32.mrf.mxu0  ;;  %v15466_v57 = vadd.f32 %v5563_v42, %v17225_v53  ;;  %v15474_v35 = vadd.f32 %v5567_v23, %v5455_v38 }
 0x274   :  { %v12571_v34 = vpack.c.bf16 %v5772_v54, %v5771_v33  ;;  %v5742_v17 = vadd.f32 %v15273_v0, %v5698_v12  ;;  %v5699_v45 = vmul.f32 %v15249_v39, %v5615_v58  ;;  %v5617_v47 = vadd.f32 %v5616_v11, %v15353_v3  ;;  %v6181_v54 = vld [vmem:[#allocation3 + $0x8] sm:$0xff] }
 0x275   :  { %v5618_v51 = vpop.f32.mrf.mxu0  ;;  %v5773_v44 = vmax.f32 %v5741_v18, 0.0  ;;  %v6184_v18 = vld [vmem:[#allocation3 + $0xe0] sm:$0x11] }
 0x276   :  { %v6022_v10 = vshrl.u32 %v12571_v34, 16  ;;  %v5774_v46 = vmax.f32 %v5742_v17, 0.0  ;;  %v5743_v29 = vadd.f32 %v15259_v22, %v5699_v45  ;;  %v5700_v52 = vmul.f32 %v15262_v21, %v5617_v47  ;;  %v13231_v45 = vld [vmem:[#allocation10 + $0x474] ss:$8 sps:$4 sm:$0xff]  }
 0x277   :  { %v5619_v16 = vadd.f32 %v5618_v51, %v15365_v7  ;;  %v5620_v19 = vpop.f32.mrf.mxu0  ;;  %v6025_v3 = vshll.u32 %v12571_v34, 16 }
 0x278   :  { %v6024_v43 = vrot.slane %v6022_v10, 7  ;;  %v12572_v41 = vpack.c.bf16 %v5774_v46, %v5773_v44  ;;  %v5621_v33 = vadd.f32 %v5620_v19, %v15368_v9  ;;  %v5775_v12 = vmax.f32 %v5743_v29, 0.0  ;;  %v6187_v44 = vld [vmem:[#allocation3 + $0x10] sm:$0xff]  ;;  %v6190_v46 = vld [vmem:[#allocation3] sm:$0x11] }
 0x279   :  { %v5744_v42 = vadd.f32 %v15273_v0, %v5700_v52  ;;  %v5701_v31 = vmul.f32 %v15249_v39, %v5619_v16  ;;  %v5624_v49 = vpop.f32.mrf.mxu0 }
 0x27a   :  { %v6027_v58 = vor.u32 %v6025_v3, %v6024_v43  ;;  %v6028_v59 = vrot.slane %v6024_v43, 4  ;;  %v6030_v27 = vshrl.u32 %v12572_v41, 16  ;;  %v6033_v7 = vshll.u32 %v12572_v41, 16 }
 0x27b   :  { %v5776_v11 = vmax.f32 %v5744_v42, 0.0  ;;  %v5745_v36 = vadd.f32 %v15259_v22, %v5701_v31  ;;  %v5702_v34 = vmul.f32 %v15262_v21, %v5621_v33  ;;  %v5625_v9 = vadd.f32 %v5624_v49, %v15371_v5  ;;  %v5626_v17 = vpop.f32.mrf.mxu0 }
 0x27c   :  { %v15483_v38 = vsel %vm13781_vm2, %v6027_v58, %v6181_v54  ;;  %v6185_v51 = vsel %vm13755_vm6, %v6028_v59, %v6184_v18  ;;  %v6032_v23 = vrot.slane %v6030_v27, 7  ;;  %v5627_v10 = vadd.f32 %v5626_v17, %v15374_v56 }
 0x27d   :  { %6183 = vst [vmem:[#allocation3 + $0x8] sm:$0xff] %v15483_v38  ;;  %6186 = vst [vmem:[#allocation3 + $0xe0] sm:$0x11] %v6185_v51  ;;  %v12573_v29 = vpack.c.bf16 %v5776_v11, %v5775_v12  ;;  %v5777_v53 = vmax.f32 %v5745_v36, 0.0  ;;  %v5746_v5 = vadd.f32 %v15273_v0, %v5702_v34  ;;  %v5703_v52 = vmul.f32 %v15249_v39, %v5625_v9  ;;  %v5628_v16 = vpop.f32.mrf.mxu0  ;;  %v6193_v36 = vld [vmem:[#allocation3 + $0x40] sm:$0xff] }
 0x27e   :  { %v6035_v19 = vor.u32 %v6033_v7, %v6032_v23  ;;  %v6036_v43 = vrot.slane %v6032_v23, 4  ;;  %v5704_v3 = vmul.f32 %v15262_v21, %v5627_v10  ;;  %v5629_v41 = vadd.f32 %v5628_v16, %v15378_v14  ;;  %v6196_v34 = vld [vmem:[#allocation3 + $0x80] sm:$0x11]  ;;  %v17228_v23 = vld [vmem:[#allocation27_spill] sm:$0xff] }
 0x27f   :  { %v6038_v33 = vshrl.u32 %v12573_v29, 16  ;;  %v6041_v56 = vshll.u32 %v12573_v29, 16  ;;  %v5778_v54 = vmax.f32 %v5746_v5, 0.0  ;;  %v5747_v18 = vadd.f32 %v15259_v22, %v5703_v52  ;;  %v5630_v42 = vpop.f32.mrf.mxu0 }
 0x280   :  { %v15496_v12 = vsel %vm13781_vm2, %v6035_v19, %v6187_v44  ;;  %v6191_v31 = vsel %vm13755_vm6, %v6036_v43, %v6190_v46  ;;  %v5748_v49 = vadd.f32 %v15273_v0, %v5704_v3  ;;  %v5705_v58 = vmul.f32 %v15249_v39, %v5629_v41 }
 0x281   :  { %6189 = vst [vmem:[#allocation3 + $0x10] sm:$0xff] %v15496_v12  ;;  %6192 = vst [vmem:[#allocation3] sm:$0x11] %v6191_v31  ;;  %v6040_v14 = vrot.slane %v6038_v33, 7  ;;  %v12574_v59 = vpack.c.bf16 %v5778_v54, %v5777_v53  ;;  %v5779_v27 = vmax.f32 %v5747_v18, 0.0  ;;  %v5631_v7 = vadd.f32 %v5630_v42, %v15383_v4  ;;  %v5634_v11 = vpop.f32.mrf.mxu0 }
 0x282   :  { %v5780_v9 = vmax.f32 %v5748_v49, 0.0  ;;  %v5749_v17 = vadd.f32 %v15259_v22, %v5705_v58  ;;  %v5635_v51 = vadd.f32 %v5634_v11, %v15387_v37  ;;  %v12123_v10 = vcombine.low %v17228_v23, %v15483_v38  ;;  %v6202_v54 = vld [vmem:[#allocation3 + $0xc8] sm:$0x11] }
 0x283   :  { %v6043_v44 = vor.u32 %v6041_v56, %v6040_v14  ;;  %v6044_v46 = vrot.slane %v6040_v14, 4  ;;  %v6046_v29 = vshrl.u32 %v12574_v59, 16  ;;  %v6049_v5 = vshll.u32 %v12574_v59, 16  ;;  %v5636_v52 = vpop.f32.mrf.mxu0  ;;  %v6199_v56 = vld [vmem:[#allocation3 + $0x18] sm:$0xff] }
 0x284   :  { %v12575_v53 = vpack.c.bf16 %v5780_v9, %v5779_v27  ;;  %v5781_v16 = vmax.f32 %v5749_v17, 0.0  ;;  %v5706_v4 = vmul.f32 %v15262_v21, %v5631_v7  ;;  %v5707_v19 = vmul.f32 %v15249_v39, %v5635_v51  ;;  %v6205_v51 = vld [vmem:[#allocation3 + $0x128] sm:$0xff] }
 0x285   :  { %v15512_v43 = vsel %vm13781_vm2, %v6043_v44, %v6193_v36  ;;  %v6197_v37 = vsel %vm13755_vm6, %v6044_v46, %v6196_v34  ;;  %v6048_v3 = vrot.slane %v6046_v29, 7  ;;  %v5637_v41 = vadd.f32 %v5636_v52, %v15390_v50  ;;  %v5638_v33 = vpop.f32.mrf.mxu0  ;;  %v6208_v44 = vld [vmem:[#allocation3 + $0xd8] sm:$0x11] }
 0x286   :  { %6195 = vst [vmem:[#allocation3 + $0x40] sm:$0xff] %v15512_v43  ;;  %6198 = vst [vmem:[#allocation3 + $0x80] sm:$0x11] %v6197_v37  ;;  %v6054_v18 = vshrl.u32 %v12575_v53, 16  ;;  %v6057_v42 = vshll.u32 %v12575_v53, 16  ;;  %v5750_v31 = vadd.f32 %v15273_v0, %v5706_v4  ;;  %v5751_v49 = vadd.f32 %v15259_v22, %v5707_v19 }
 0x287   :  { %v6051_v58 = vor.u32 %v6049_v5, %v6048_v3  ;;  %v6052_v14 = vrot.slane %v6048_v3, 4  ;;  %v5708_v59 = vmul.f32 %v15262_v21, %v5637_v41  ;;  %v5639_v27 = vadd.f32 %v5638_v33, %v15393_v15  ;;  %v5640_v7 = vpop.f32.mrf.mxu0  ;;  %v13133_v3 = vld [vmem:[#allocation10 + $0x270] ss:$8 sps:$4 sm:$0xff]  }
 0x288   :  { %v6056_v50 = vrot.slane %v6054_v18, 7  ;;  %v5782_v11 = vmax.f32 %v5750_v31, 0.0  ;;  %v5783_v36 = vmax.f32 %v5751_v49, 0.0  ;;  %v5641_v34 = vadd.f32 %v5640_v7, %v15396_v30 }
 0x289   :  { %v15525_v9 = vsel %vm13781_vm2, %v6051_v58, %v6199_v56  ;;  %v6203_v17 = vsel %vm13755_vm6, %v6052_v14, %v6202_v54  ;;  %v5752_v46 = vadd.f32 %v15273_v0, %v5708_v59  ;;  %v5709_v29 = vmul.f32 %v15249_v39, %v5639_v27  ;;  %v5644_v15 = vpop.f32.mrf.mxu0  ;;  %v6214_v27 = vld [vmem:[#allocation3 + $0x38] sm:$0x11] }
 0x28a   :  { %6201 = vst [vmem:[#allocation3 + $0x18] sm:$0xff] %v15525_v9  ;;  %6204 = vst [vmem:[#allocation3 + $0xc8] sm:$0x11] %v6203_v17  ;;  %v6059_v5 = vor.u32 %v6057_v42, %v6056_v50  ;;  %v6060_v52 = vrot.slane %v6056_v50, 4  ;;  %v12576_v30 = vpack.c.bf16 %v5782_v11, %v5781_v16  ;;  %v5710_v53 = vmul.f32 %v15262_v21, %v5641_v34  ;;  %v13141_v42 = vld [vmem:[#allocation10 + $0x264] ss:$8 sps:$4 sm:$0xff]  }
 0x28b   :  { %v5784_v4 = vmax.f32 %v5752_v46, 0.0  ;;  %v5753_v19 = vadd.f32 %v15259_v22, %v5709_v29  ;;  %v12124_v37 = vcombine.high %v17228_v23, %v15483_v38  ;;  %v5645_v41 = vadd.f32 %v5644_v15, %v15400_v1  ;;  %v5646_v33 = vpop.f32.mrf.mxu0  ;;  %v13139_v46 = vld [vmem:[#allocation10 + $0x260] ss:$8 sps:$4 sm:$0xff]  }
 0x28c   :  { %v15539_v56 = vsel %vm13781_vm2, %v6059_v5, %v6205_v51  ;;  %v6209_v54 = vsel %vm13755_vm6, %v6060_v52, %v6208_v44  ;;  %v6062_v16 = vshrl.u32 %v12576_v30, 16  ;;  %v6065_v18 = vshll.u32 %v12576_v30, 16 }
 0x28d   :  { %6207 = vst [vmem:[#allocation3 + $0x128] sm:$0xff] %v15539_v56  ;;  %6210 = vst [vmem:[#allocation3 + $0xd8] sm:$0x11] %v6209_v54  ;;  %v12577_v31 = vpack.c.bf16 %v5784_v4, %v5783_v36  ;;  %v5785_v49 = vmax.f32 %v5753_v19, 0.0  ;;  %v5754_v58 = vadd.f32 %v15273_v0, %v5710_v53  ;;  %10342 = vmatprep.mubr.bf16.mxu1 %v12124_v37  ;;  %v5648_v14 = vpop.f32.mrf.mxu0  ;;  %v6211_v36 = vld [vmem:[#allocation3 + $0xb0] sm:$0xff] }
 0x28e   :  { %v5711_v1 = vmul.f32 %v15249_v39, %v5645_v41  ;;  %v6064_v59 = vrot.slane %v6062_v16, 7  ;;  %10343 = vmatmul.mubr.bf16.vlgmr.msra.gmra.mxu1 %v12123_v10  ;;  %v5647_v7 = vadd.f32 %v5646_v33, %v15405_v8  ;;  %v5649_v50 = vadd.f32 %v5648_v14, %v15409_v63  ;;  %v13147_v63 = vld [vmem:[#allocation10 + $0x254] ss:$8 sps:$4 sm:$0xff]   ;;  %v6220_v41 = vld [vmem:[#allocation3 + $0xa0] sm:$0x11] }
 0x28f   :  { %v12141_v11 = vcombine.low %v15496_v12, %v15512_v43  ;;  %v6070_v34 = vshrl.u32 %v12577_v31, 16  ;;  %v6073_v17 = vshll.u32 %v12577_v31, 16  ;;  %v5786_v51 = vmax.f32 %v5754_v58, 0.0  ;;  %10537 = vmatpush1.bf16.msra.mxu1 %v13133_v3  ;;  %v5650_v29 = vpop.f32.mrf.mxu0  ;;  %v6217_v3 = vld [vmem:[#allocation3 + $0x88] sm:$0xff]  ;;  %v6312_v31 = vld [vmem:[#allocation3 + $0xe0] sm:$0x11] }
 0x290   :  { %v5755_v44 = vadd.f32 %v15259_v22, %v5711_v1  ;;  %v6067_v15 = vor.u32 %v6065_v18, %v6064_v59  ;;  %v6068_v5 = vrot.slane %v6064_v59, 4  ;;  %v5712_v23 = vmul.f32 %v15262_v21, %v5647_v7  ;;  %10538 = vmatprep.subr.bf16.mxu1 %v13141_v42 }
 0x291   :  { %v5713_v8 = vmul.f32 %v15249_v39, %v5649_v50  ;;  %v6072_v10 = vrot.slane %v6070_v34, 7  ;;  %v12578_v52 = vpack.c.bf16 %v5786_v51, %v5785_v49  ;;  %v5651_v53 = vadd.f32 %v5650_v29, %v15412_v2  ;;  %v5654_v4 = vpop.f32.mrf.mxu0 }
 0x292   :  { %v5787_v30 = vmax.f32 %v5755_v44, 0.0  ;;  %v15559_v19 = vsel %vm13781_vm2, %v6067_v15, %v6211_v36  ;;  %v6215_v37 = vsel %vm13755_vm6, %v6068_v5, %v6214_v27  ;;  %v5756_v33 = vadd.f32 %v15273_v0, %v5712_v23  ;;  %v13145_v27 = vld [vmem:[#allocation10 + $0x250] ss:$8 sps:$4 sm:$0xff]  }
 0x293   :  { %v5757_v54 = vadd.f32 %v15259_v22, %v5713_v8  ;;  %6213 = vst [vmem:[#allocation3 + $0xb0] sm:$0xff] %v15559_v19  ;;  %6216 = vst [vmem:[#allocation3 + $0x38] sm:$0x11] %v6215_v37  ;;  %v6075_v16 = vor.u32 %v6073_v17, %v6072_v10  ;;  %v6076_v18 = vrot.slane %v6072_v10, 4  ;;  %v6078_v2 = vshrl.u32 %v12578_v52, 16  ;;  %10539 = vmatpush1.bf16.msra.mxu1 %v13139_v46  ;;  %v5656_v49 = vpop.f32.mrf.mxu0  ;;  %v6223_v44 = vld [vmem:[#allocation3 + $0x138] sm:$0xff] }
 0x294   :  { %v6081_v42 = vshll.u32 %v12578_v52, 16  ;;  %v5788_v58 = vmax.f32 %v5756_v33, 0.0  ;;  %v5714_v14 = vmul.f32 %v15262_v21, %v5651_v53  ;;  %v12142_v59 = vcombine.high %v15496_v12, %v15512_v43  ;;  %10540 = vmatprep.subr.bf16.mxu1 %v13147_v63  ;;  %v13153_v17 = vld [vmem:[#allocation10 + $0x244] ss:$8 sps:$4 sm:$0xff]  }
 0x295   :  { %v5789_v1 = vmax.f32 %v5757_v54, 0.0  ;;  %v15571_v7 = vsel %vm13781_vm2, %v6075_v16, %v6217_v3  ;;  %v6221_v50 = vsel %vm13755_vm6, %v6076_v18, %v6220_v41  ;;  %v6080_v36 = vrot.slane %v6078_v2, 7  ;;  %v5658_v51 = vpop.f32.mrf.mxu0  ;;  %v6226_v46 = vld [vmem:[#allocation3 + $0xa8] sm:$0x11] }
 0x296   :  { %v6356_v34 = vshrl.u32 %v15483_v38, 16  ;;  %6219 = vst [vmem:[#allocation3 + $0x88] sm:$0xff] %v15571_v7  ;;  %6222 = vst [vmem:[#allocation3 + $0xa0] sm:$0x11] %v6221_v50  ;;  %v12579_v29 = vpack.c.bf16 %v5788_v58, %v5787_v30  ;;  %v5758_v15 = vadd.f32 %v15273_v0, %v5714_v14  ;;  %10352 = vmatprep.mubr.bf16.mxu1 %v12142_v59  ;;  %v6359_v5 = vshll.u32 %v15483_v38, 16  ;;  %v6229_v58 = vld [vmem:[#allocation3 + $0x130] sm:$0xff] }
 0x297   :  { %v6365_v23 = vshll.u32 %v6312_v31, 16  ;;  %v6083_v8 = vor.u32 %v6081_v42, %v6080_v36  ;;  %v6084_v63 = vrot.slane %v6080_v36, 4  ;;  %10353 = vmatmul.mubr.bf16.gmra.mxu1 %v12141_v11  ;;  %v5655_v52 = vadd.f32 %v5654_v4, %v15425_v48  ;;  %v5660_v53 = vpop.f32.mrf.mxu0  ;;  %v13151_v54 = vld [vmem:[#allocation10 + $0x240] ss:$8 sps:$4 sm:$0xff]   ;;  %v13159_v11 = vld [vmem:[#allocation10 + $0x234] ss:$8 sps:$4 sm:$0xff]  }
 0x298   :  { %v6358_v10 = vrot.slane %v6356_v34, 4  ;;  %v6086_v37 = vshrl.u32 %v12579_v29, 16  ;;  %v6089_v3 = vshll.u32 %v12579_v29, 16  ;;  %v5790_v41 = vmax.f32 %v5758_v15, 0.0  ;;  %10541 = vmatpush1.bf16.msra.mxu1 %v13145_v27  ;;  %v6232_v14 = vld [vmem:[#allocation3 + $0x90] sm:$0x11] }
 0x299   :  { %v6361_v33 = vrot.slane %v6359_v5, 5  ;;  %v6224_v30 = vsel %vm13781_vm2, %v6083_v8, %v6223_v44  ;;  %v6227_v38 = vsel %vm13755_vm6, %v6084_v63, %v6226_v46  ;;  %v6367_v16 = vrot.slane %v6365_v23, 5  ;;  %10542 = vmatprep.subr.bf16.mxu1 %v13153_v17  ;;  %v15585_v2 = vpop.f32.mrf.mxu0  ;;  %v13157_v29 = vld [vmem:[#allocation10 + $0x230] ss:$8 sps:$4 sm:$0xff]  }
 0x29a   :  { %v5715_v18 = vmul.f32 %v15249_v39, %v5655_v52  ;;  %6225 = vst [vmem:[#allocation3 + $0x138] sm:$0xff] %v6224_v30  ;;  %6228 = vst [vmem:[#allocation3 + $0xa8] sm:$0x11] %v6227_v38  ;;  %v6088_v48 = vrot.slane %v6086_v37, 7  ;;  %v12580_v4 = vpack.c.bf16 %v5790_v41, %v5789_v1  ;;  %v5657_v31 = vadd.f32 %v5656_v49, %v15429_v55  ;;  %v6235_v8 = vld [vmem:[#allocation3 + $0x58] sm:$0xff] }
 0x29b   :  { %v6362_v42 = vor.u32 %v6361_v33, %v6358_v10  ;;  %v5659_v27 = vadd.f32 %v5658_v51, %v15436_v24  ;;  %v5661_v50 = vadd.f32 %v5660_v53, %v15439_v32  ;;  %v12159_v36 = vcombine.low %v15525_v9, %v15539_v56  ;;  %v15593_v34 = vpop.f32.mrf.mxu0  ;;  %v13165_v24 = vld [vmem:[#allocation10 + $0x224] ss:$8 sps:$4 sm:$0xff]   ;;  %v13148_v63 = vld [vmem:[#allocation10 + $0x370] ss:$8 sps:$4 sm:$0xff]  }
 0x29c   :  { %v5759_v59 = vadd.f32 %v15259_v22, %v5715_v18  ;;  %v6091_v17 = vor.u32 %v6089_v3, %v6088_v48  ;;  %v6092_v44 = vrot.slane %v6088_v48, 4  ;;  %v6094_v46 = vshrl.u32 %v12580_v4, 16  ;;  %10543 = vmatpush1.bf16.msra.mxu1 %v13151_v54  ;;  %v6238_v53 = vld [vmem:[#allocation3 + $0x28] sm:$0x11]  ;;  %v6314_v30 = vld [vmem:[#allocation3] sm:$0x11] }
 0x29d   :  { %v6097_v1 = vshll.u32 %v12580_v4, 16  ;;  %v6363_v55 = vrot.slane %v6362_v42, 4  ;;  %v5716_v15 = vmul.f32 %v15262_v21, %v5657_v31  ;;  %v5717_v5 = vmul.f32 %v15249_v39, %v5659_v27  ;;  %10544 = vmatprep.subr.bf16.mxu1 %v13159_v11  ;;  %v15604_v52 = vpop.f32.mrf.mxu0  ;;  %v13156_v33 = vld [vmem:[#allocation10 + $0x364] ss:$8 sps:$4 sm:$0xff]   ;;  %v17229_v11 = vld [vmem:[#allocation28_spill] sm:$0xff] }
 0x29e   :  { %v5791_v49 = vmax.f32 %v5759_v59, 0.0  ;;  %v15599_v32 = vsel %vm13781_vm2, %v6091_v17, %v6229_v58  ;;  %v6233_v51 = vsel %vm13755_vm6, %v6092_v44, %v6232_v14  ;;  %v6096_v23 = vrot.slane %v6094_v46, 7  ;;  %v13163_v42 = vld [vmem:[#allocation10 + $0x220] ss:$8 sps:$4 sm:$0xff]   ;;  %v13171_v31 = vld [vmem:[#allocation10 + $0x214] ss:$8 sps:$4 sm:$0xff]  }
 0x29f   :  { %v5718_v10 = vmul.f32 %v15262_v21, %v5661_v50  ;;  %6231 = vst [vmem:[#allocation3 + $0x130] sm:$0xff] %v15599_v32  ;;  %6234 = vst [vmem:[#allocation3 + $0x90] sm:$0x11] %v6233_v51  ;;  %v6368_v37 = vsel %vm13810_vm3, %v6363_v55, %v6367_v16  ;;  %v5760_v3 = vadd.f32 %v15273_v0, %v5716_v15  ;;  %v6316_v59 = vld [vmem:[#allocation3 + $0x80] sm:$0x11]  ;;  %v6370_v27 = vshrl.u32 %v15496_v12, 16 }
 0x2a0   :  { %v5761_v41 = vadd.f32 %v15259_v22, %v5717_v5  ;;  %v12160_v54 = vcombine.high %v15525_v9, %v15539_v56  ;;  %v6099_v38 = vor.u32 %v6097_v1, %v6096_v23  ;;  %v6100_v18 = vrot.slane %v6096_v23, 4  ;;  %10545 = vmatpush1.bf16.msra.mxu1 %v13157_v29  ;;  %v13154_v44 = vld [vmem:[#allocation10 + $0x360] ss:$8 sps:$4 sm:$0xff]   ;;  %v15624_v29 = vpop.f32.mrf.mxu0  ;;  %v13162_v51 = vld [vmem:[#allocation10 + $0x354] ss:$8 sps:$4 sm:$0xff]  }
 0x2a1   :  { %v12125_v48 = vcombine.low %v17229_v11, %v6368_v37  ;;  %v12126_v4 = vcombine.high %v17229_v11, %v6368_v37  ;;  %v5792_v58 = vmax.f32 %v5760_v3, 0.0  ;;  %v5762_v14 = vadd.f32 %v15273_v0, %v5718_v10  ;;  %10546 = vmatprep.subr.bf16.mxu1 %v13165_v24 }
 0x2a2   :  { %v5793_v16 = vmax.f32 %v5761_v41, 0.0  ;;  %10362 = vmatprep.mubr.bf16.mxu1 %v12160_v54  ;;  %v15619_v50 = vsel %vm13781_vm2, %v6099_v38, %v6235_v8  ;;  %v6239_v17 = vsel %vm13755_vm6, %v6100_v18, %v6238_v53  ;;  %v6373_v46 = vshll.u32 %v15496_v12, 16  ;;  %v13169_v12 = vld [vmem:[#allocation10 + $0x210] ss:$8 sps:$4 sm:$0xff]   ;;  %v15631_v18 = vpop.f32.mrf.mxu0 }
 0x2a3   :  { %10455 = vmatprep.mubr.bf16.mxu0 %v12126_v4  ;;  %10363 = vmatmul.mubr.bf16.gmra.mxu1 %v12159_v36  ;;  %v6379_v1 = vshll.u32 %v6314_v30, 16  ;;  %6237 = vst [vmem:[#allocation3 + $0x58] sm:$0xff] %v15619_v50  ;;  %6240 = vst [vmem:[#allocation3 + $0x28] sm:$0x11] %v6239_v17  ;;  %v12581_v55 = vpack.c.bf16 %v5792_v58, %v5791_v49  ;;  %v5794_v15 = vmax.f32 %v5762_v14, 0.0  ;;  %v6372_v5 = vrot.slane %v6370_v27, 4 }
 0x2a4   :  { %10456 = vmatmul.mubr.bf16.vlgmr.msra.gmra.mxu0 %v12125_v48  ;;  %v6384_v24 = vshrl.u32 %v15512_v43, 16  ;;  %v6375_v23 = vrot.slane %v6373_v46, 5  ;;  %v6387_v36 = vshll.u32 %v15512_v43, 16  ;;  %v6393_v10 = vshll.u32 %v6316_v59, 16  ;;  %10547 = vmatpush1.bf16.msra.mxu1 %v13163_v42  ;;  %v13177_v49 = vld [vmem:[#allocation10 + $0x204] ss:$8 sps:$4 sm:$0xff]  }
 0x2a5   :  { %10650 = vmatpush1.bf16.msra.mxu0 %v13148_v63  ;;  %v6381_v8 = vrot.slane %v6379_v1, 5  ;;  %v6102_v53 = vshrl.u32 %v12581_v55, 16  ;;  %v6105_v37 = vshll.u32 %v12581_v55, 16  ;;  %v12582_v3 = vpack.c.bf16 %v5794_v15, %v5793_v16  ;;  %10548 = vmatprep.subr.bf16.mxu1 %v13171_v31  ;;  %v6244_v43 = vld [vmem:[#allocation3 + $0x70] sm:$0x11] }
 0x2a6   :  { %10651 = vmatprep.subr.bf16.mxu0 %v13156_v33  ;;  %v6386_v41 = vrot.slane %v6384_v24, 4  ;;  %v6376_v54 = vor.u32 %v6375_v23, %v6372_v5  ;;  %v6389_v30 = vrot.slane %v6387_v36, 5  ;;  %v6395_v38 = vrot.slane %v6393_v10, 5  ;;  %v6241_v33 = vld [vmem:[#allocation3 + $0x120] sm:$0xff]  ;;  %v13160_v14 = vld [vmem:[#allocation10 + $0x350] ss:$8 sps:$4 sm:$0xff]  }
 0x2a7   :  { %v5665_v63 = vadd.f32 %v15585_v2, %v15443_v25  ;;  %v6104_v11 = vrot.slane %v6102_v53, 7  ;;  %v6110_v48 = vshrl.u32 %v12582_v3, 16  ;;  %v6113_v4 = vshll.u32 %v12582_v3, 16  ;;  %v13175_v25 = vld [vmem:[#allocation10 + $0x200] ss:$8 sps:$4 sm:$0xff]  }
 0x2a8   :  { %v5667_v42 = vadd.f32 %v15593_v34, %v15447_v60  ;;  %v6377_v58 = vrot.slane %v6376_v54, 4  ;;  %v6390_v31 = vor.u32 %v6389_v30, %v6386_v41  ;;  %v5669_v59 = vadd.f32 %v15604_v52, %v15451_v6  ;;  %10549 = vmatpush1.bf16.msra.mxu1 %v13169_v12  ;;  %v13168_v1 = vld [vmem:[#allocation10 + $0x344] ss:$8 sps:$4 sm:$0xff]   ;;  %v6250_v34 = vld [vmem:[#allocation3 + $0xf8] sm:$0x11]  ;;  %v15643_v52 = vpop.f32.mrf.mxu0 }
 0x2a9   :  { %10652 = vmatpush1.bf16.msra.mxu0 %v13154_v44  ;;  %v5719_v16 = vmul.f32 %v15249_v39, %v5665_v63  ;;  %v6107_v2 = vor.u32 %v6105_v37, %v6104_v11  ;;  %v6108_v27 = vrot.slane %v6104_v11, 4  ;;  %v6112_v17 = vrot.slane %v6110_v48, 7  ;;  %10550 = vmatprep.subr.bf16.mxu1 %v13177_v49  ;;  %v6247_v60 = vld [vmem:[#allocation3 + $0x20] sm:$0xff]  ;;  %v13183_v5 = vld [vmem:[#allocation10 + $0x2f4] ss:$8 sps:$4 sm:$0xff]  }
 0x2aa   :  { %10653 = vmatprep.subr.bf16.mxu0 %v13162_v51  ;;  %v5720_v46 = vmul.f32 %v15262_v21, %v5667_v42  ;;  %v6382_v44 = vsel %vm13810_vm3, %v6377_v58, %v6381_v8  ;;  %v6391_v55 = vrot.slane %v6390_v31, 4  ;;  %v5721_v6 = vmul.f32 %v15249_v39, %v5669_v59  ;;  %v6318_v37 = vld [vmem:[#allocation3 + $0xc8] sm:$0x11]  ;;  %v13181_v3 = vld [vmem:[#allocation10 + $0x2f0] ss:$8 sps:$4 sm:$0xff]  }
 0x2ab   :  { %v5763_v15 = vadd.f32 %v15259_v22, %v5719_v16  ;;  %v15647_v24 = vsel %vm13781_vm2, %v6107_v2, %v6241_v33  ;;  %v6245_v51 = vsel %vm13755_vm6, %v6108_v27, %v6244_v43  ;;  %v6115_v23 = vor.u32 %v6113_v4, %v6112_v17  ;;  %v6320_v4 = vld [vmem:[#allocation3 + $0xd8] sm:$0x11]  ;;  %v5678_v33 = vpop.f32.mrf.mxu0  ;;  %v13189_v59 = vld [vmem:[#allocation10 + $0x2e4] ss:$8 sps:$4 sm:$0xff]  }
 0x2ac   :  { %v6116_v36 = vrot.slane %v6112_v17, 4  ;;  %6243 = vst [vmem:[#allocation3 + $0x120] sm:$0xff] %v15647_v24  ;;  %6246 = vst [vmem:[#allocation3 + $0x70] sm:$0x11] %v6245_v51  ;;  %v6396_v8 = vsel %vm13810_vm3, %v6391_v55, %v6395_v38  ;;  %v5764_v12 = vadd.f32 %v15273_v0, %v5720_v46  ;;  %v15656_v53 = vadd.f32 %v15259_v22, %v5721_v6  ;;  %v13166_v38 = vld [vmem:[#allocation10 + $0x340] ss:$8 sps:$4 sm:$0xff]  }
 0x2ad   :  { %v5795_v10 = vmax.f32 %v5763_v15, 0.0  ;;  %10654 = vmatpush1.bf16.msra.mxu0 %v13160_v14  ;;  %10551 = vmatpush1.bf16.msra.mxu1 %v13175_v25  ;;  %v15660_v41 = vsel %vm13781_vm2, %v6115_v23, %v6247_v60  ;;  %v12143_v54 = vcombine.low %v6382_v44, %v6396_v8  ;;  %v12144_v30 = vcombine.high %v6382_v44, %v6396_v8  ;;  %v13174_v42 = vld [vmem:[#allocation10 + $0x334] ss:$8 sps:$4 sm:$0xff]   ;;  %v13172_v27 = vld [vmem:[#allocation10 + $0x330] ss:$8 sps:$4 sm:$0xff]   ;;  %v5680_v51 = vpop.f32.mrf.mxu0 }
 0x2ae   :  { %v6251_v49 = vsel %vm13755_vm6, %v6116_v36, %v6250_v34  ;;  %10655 = vmatprep.subr.bf16.mxu0 %v13168_v1  ;;  %6249 = vst [vmem:[#allocation3 + $0x20] sm:$0xff] %v15660_v41  ;;  %v5796_v63 = vmax.f32 %v5764_v12, 0.0  ;;  %v5797_v11 = vmax.f32 %v15656_v53, 0.0  ;;  %v5671_v43 = vadd.f32 %v15624_v29, %v15456_v62  ;;  %10552 = vmatprep.subr.bf16.mxu1 %v13183_v5  ;;  %v13187_v17 = vld [vmem:[#allocation10 + $0x2e0] ss:$8 sps:$4 sm:$0xff]  }
 0x2af   :  { %6252 = vst [vmem:[#allocation3 + $0xf8] sm:$0x11] %v6251_v49  ;;  %v12177_v48 = vcombine.low %v15559_v19, %v15571_v7  ;;  %10465 = vmatprep.mubr.bf16.mxu0 %v12144_v30  ;;  %v12178_v58 = vcombine.high %v15559_v19, %v15571_v7  ;;  %v6398_v31 = vshrl.u32 %v15525_v9, 16  ;;  %v6401_v16 = vshll.u32 %v15525_v9, 16  ;;  %v13195_v9 = vld [vmem:[#allocation10 + $0x2d4] ss:$8 sps:$4 sm:$0xff]  }
 0x2b0   :  { %v6407_v14 = vshll.u32 %v6318_v37, 16  ;;  %10466 = vmatmul.mubr.bf16.gmra.mxu0 %v12143_v54  ;;  %v12583_v25 = vpack.c.bf16 %v5796_v63, %v5795_v10  ;;  %v5722_v62 = vmul.f32 %v15262_v21, %v5671_v43  ;;  %v6412_v29 = vshrl.u32 %v15539_v56, 16  ;;  %v13180_v5 = vld [vmem:[#allocation10 + $0x324] ss:$8 sps:$4 sm:$0xff]   ;;  %v6256_v12 = vld [vmem:[#allocation3 + $0x30] sm:$0x11] }
 0x2b1   :  { %v6415_v2 = vshll.u32 %v15539_v56, 16  ;;  %10553 = vmatpush2.bf16.msra.mxu1 %v13181_v3  ;;  %10656 = vmatpush1.bf16.msra.mxu0 %v13166_v38  ;;  %v6400_v46 = vrot.slane %v6398_v31, 4  ;;  %v6403_v1 = vrot.slane %v6401_v16, 5  ;;  %v6421_v34 = vshll.u32 %v6320_v4, 16  ;;  %v13193_v49 = vld [vmem:[#allocation10 + $0x2d0] ss:$8 sps:$4 sm:$0xff]  }
 0x2b2   :  { %10372 = vmatprep.mubr.bf16.mxu1 %v12178_v58  ;;  %v6409_v60 = vrot.slane %v6407_v14, 5  ;;  %v6118_v44 = vshrl.u32 %v12583_v25, 16  ;;  %v6121_v55 = vshll.u32 %v12583_v25, 16  ;;  %v5766_v15 = vadd.f32 %v15273_v0, %v5722_v62  ;;  %10657 = vmatprep.subr.bf16.mxu0 %v13174_v42  ;;  %v6253_v54 = vld [vmem:[#allocation3 + $0x98] sm:$0xff]  ;;  %v13178_v43 = vld [vmem:[#allocation10 + $0x320] ss:$8 sps:$4 sm:$0xff]  }
 0x2b3   :  { %10373 = vmatmul.mubr.bf16.gmra.mxu1 %v12177_v48  ;;  %v6414_v6 = vrot.slane %v6412_v29, 4  ;;  %v6404_v56 = vor.u32 %v6403_v1, %v6400_v46  ;;  %v6417_v23 = vrot.slane %v6415_v2, 5  ;;  %v6423_v36 = vrot.slane %v6421_v34, 5  ;;  %10554 = vmatprep.subr.bf16.mxu1 %v13189_v59  ;;  %v13199_v59 = vld [vmem:[#allocation10 + $0x2c0] ss:$8 sps:$4 sm:$0xff]  }
 0x2b4   :  { %v5675_v8 = vadd.f32 %v15631_v18, %v15459_v28  ;;  %v6120_v10 = vrot.slane %v6118_v44, 7  ;;  %v5798_v53 = vmax.f32 %v5766_v15, 0.0  ;;  %v5677_v37 = vadd.f32 %v15643_v52, %v15466_v57  ;;  %v13201_v18 = vld [vmem:[#allocation10 + $0x2c4] ss:$8 sps:$4 sm:$0xff]   ;;  %v6262_v25 = vld [vmem:[#allocation3 + $0x78] sm:$0x11] }
 0x2b5   :  { %v5679_v3 = vadd.f32 %v5678_v33, %v15469_v61  ;;  %10555 = vmatpush2.bf16.msra.mxu1 %v13187_v17  ;;  %v6405_v30 = vrot.slane %v6404_v56, 4  ;;  %v6418_v38 = vor.u32 %v6417_v23, %v6414_v6  ;;  %10658 = vmatpush1.bf16.msra.mxu0 %v13172_v27  ;;  %v5681_v28 = vadd.f32 %v5680_v51, %v15474_v35  ;;  %v13186_v61 = vld [vmem:[#allocation10 + $0x314] ss:$8 sps:$4 sm:$0xff]   ;;  %v6259_v17 = vld [vmem:[#allocation3 + $0x108] sm:$0xff] }
 0x2b6   :  { %v5723_v63 = vmul.f32 %v15249_v39, %v5675_v8  ;;  %10556 = vmatprep.subr.bf16.mxu1 %v13195_v9  ;;  %v6123_v48 = vor.u32 %v6121_v55, %v6120_v10  ;;  %v6124_v4 = vrot.slane %v6120_v10, 4  ;;  %v12584_v42 = vpack.c.bf16 %v5798_v53, %v5797_v11  ;;  %10659 = vmatprep.subr.bf16.mxu0 %v13180_v5  ;;  %v6322_v34 = vld [vmem:[#allocation3 + $0x38] sm:$0x11]  ;;  %v13506_v15 = vld [vmem:[#allocation2 + $0x110] sm:$0xff]  ;;  %v13192_v51 = vld [vmem:[#allocation10 + $0x304] ss:$8 sps:$4 sm:$0xff]  }
 0x2b7   :  { %v5724_v57 = vmul.f32 %v15262_v21, %v5677_v37  ;;  %v6410_v52 = vsel %vm13810_vm3, %v6405_v30, %v6409_v60  ;;  %v6419_v33 = vrot.slane %v6418_v38, 4  ;;  %v5725_v31 = vmul.f32 %v15249_v39, %v5679_v3  ;;  %v13184_v9 = vld [vmem:[#allocation10 + $0x310] ss:$8 sps:$4 sm:$0xff]   ;;  %v13213_v10 = vld [vmem:[#allocation10 + $0x2a4] ss:$8 sps:$4 sm:$0xff]  }
 0x2b8   :  { %v5767_v58 = vadd.f32 %v15259_v22, %v5723_v63  ;;  %v15692_v35 = vsel %vm13781_vm2, %v6123_v48, %v6253_v54  ;;  %v6257_v16 = vsel %vm13755_vm6, %v6124_v4, %v6256_v12  ;;  %v6126_v11 = vshrl.u32 %v12584_v42, 16  ;;  %v6324_v53 = vld [vmem:[#allocation3 + $0xa0] sm:$0x11]  ;;  %v13198_v48 = vld [vmem:[#allocation10 + $0x3f4] ss:$8 sps:$4 sm:$0xff]  }
 0x2b9   :  { %v6129_v14 = vshll.u32 %v12584_v42, 16  ;;  %10557 = vmatpush2.bf16.msra.mxu1 %v13193_v49  ;;  %6255 = vst [vmem:[#allocation3 + $0x98] sm:$0xff] %v15692_v35  ;;  %6258 = vst [vmem:[#allocation3 + $0x30] sm:$0x11] %v6257_v16  ;;  %v6424_v62 = vsel %vm13810_vm3, %v6419_v33, %v6423_v36  ;;  %v5768_v39 = vadd.f32 %v15273_v0, %v5724_v57  ;;  %10660 = vmatpush1.bf16.msra.mxu0 %v13178_v43  ;;  %v13190_v63 = vld [vmem:[#allocation10 + $0x300] ss:$8 sps:$4 sm:$0xff]  }
 0x2ba   :  { %v5799_v29 = vmax.f32 %v5767_v58, 0.0  ;;  %v5769_v2 = vadd.f32 %v15259_v22, %v5725_v31  ;;  %10558 = vmatprep.subr.bf16.mxu1 %v13201_v18  ;;  %v6128_v27 = vrot.slane %v6126_v11, 7  ;;  %v12161_v46 = vcombine.low %v6410_v52, %v6424_v62  ;;  %10661 = vmatprep.subr.bf16.mxu0 %v13186_v61  ;;  %v13207_v22 = vld [vmem:[#allocation10 + $0x2b4] ss:$8 sps:$4 sm:$0xff]   ;;  %v13211_v33 = vld [vmem:[#allocation10 + $0x2a0] ss:$8 sps:$4 sm:$0xff]  }
 0x2bb   :  { %v12162_v1 = vcombine.high %v6410_v52, %v6424_v62  ;;  %v5726_v60 = vmul.f32 %v15262_v21, %v5681_v28  ;;  %v5800_v44 = vmax.f32 %v5768_v39, 0.0  ;;  %v12195_v6 = vcombine.low %v13506_v15, %v15599_v32  ;;  %v13205_v21 = vld [vmem:[#allocation10 + $0x2b0] ss:$8 sps:$4 sm:$0xff]   ;;  %v6265_v31 = vld [vmem:[#allocation3 + $0xe8] sm:$0xff] }
 0x2bc   :  { %v5801_v55 = vmax.f32 %v5769_v2, 0.0  ;;  %v12196_v5 = vcombine.high %v13506_v15, %v15599_v32  ;;  %v6131_v56 = vor.u32 %v6129_v14, %v6128_v27  ;;  %v6132_v23 = vrot.slane %v6128_v27, 4  ;;  %v6268_v4 = vld [vmem:[#allocation3 + $0x50] sm:$0x11] }
 0x2bd   :  { %10475 = vmatprep.mubr.bf16.mxu0 %v12162_v1  ;;  %v5770_v36 = vadd.f32 %v15273_v0, %v5726_v60  ;;  %v6426_v8 = vshrl.u32 %v15559_v19, 16  ;;  %10559 = vmatpush2.bf16.msra.mxu1 %v13199_v59  ;;  %v12585_v12 = vpack.c.bf16 %v5800_v44, %v5799_v29  ;;  %v6429_v37 = vshll.u32 %v15559_v19, 16  ;;  %v6328_v59 = vld [vmem:[#allocation3 + $0x90] sm:$0x11]  ;;  %v13204_v60 = vld [vmem:[#allocation10 + $0x3e4] ss:$8 sps:$4 sm:$0xff]  }
 0x2be   :  { %10476 = vmatmul.mubr.bf16.gmra.mxu0 %v12161_v46  ;;  %10382 = vmatprep.mubr.bf16.mxu1 %v12196_v5  ;;  %v6435_v3 = vshll.u32 %v6322_v34, 16  ;;  %v6440_v49 = vshrl.u32 %v15571_v7, 16  ;;  %v15710_v54 = vsel %vm13781_vm2, %v6131_v56, %v6259_v17  ;;  %v6263_v0 = vsel %vm13755_vm6, %v6132_v23, %v6262_v25  ;;  %v13219_v25 = vld [vmem:[#allocation10 + $0x294] ss:$8 sps:$4 sm:$0xff]   ;;  %v13217_v15 = vld [vmem:[#allocation10 + $0x290] ss:$8 sps:$4 sm:$0xff]  }
 0x2bf   :  { %v5802_v30 = vmax.f32 %v5770_v36, 0.0  ;;  %10383 = vmatmul.mubr.bf16.gmra.mxu1 %v12195_v6  ;;  %v6428_v38 = vrot.slane %v6426_v8, 4  ;;  %10662 = vmatpush1.bf16.msra.mxu0 %v13184_v9  ;;  %6261 = vst [vmem:[#allocation3 + $0x108] sm:$0xff] %v15710_v54  ;;  %6264 = vst [vmem:[#allocation3 + $0x78] sm:$0x11] %v6263_v0  ;;  %v6134_v43 = vshrl.u32 %v12585_v12, 16  ;;  %v12213_v11 = vcombine.low %v15619_v50, %v15647_v24 }
 0x2c0   :  { %v6137_v19 = vshll.u32 %v12585_v12, 16  ;;  %v6431_v28 = vrot.slane %v6429_v37, 5  ;;  %v6437_v18 = vrot.slane %v6435_v3, 5  ;;  %10663 = vmatprep.subr.bf16.mxu0 %v13192_v51  ;;  %10560 = vmatprep.subr.bf16.mxu1 %v13207_v22  ;;  %v6442_v57 = vrot.slane %v6440_v49, 4  ;;  %v6271_v51 = vld [vmem:[#allocation3 + $0xb8] sm:$0xff] }
 0x2c1   :  { %v12586_v42 = vpack.c.bf16 %v5802_v30, %v5801_v55  ;;  %v6443_v61 = vshll.u32 %v15571_v7, 16  ;;  %v6449_v52 = vshll.u32 %v6324_v53, 16  ;;  %10561 = vmatpush2.bf16.msra.mxu1 %v13205_v21  ;;  %v6136_v58 = vrot.slane %v6134_v43, 7  ;;  %v13196_v7 = vld [vmem:[#allocation10 + $0x3f0] ss:$8 sps:$4 sm:$0xff]  }
 0x2c2   :  { %v6432_v16 = vor.u32 %v6431_v28, %v6428_v38  ;;  %v12214_v14 = vcombine.high %v15619_v50, %v15647_v24  ;;  %10562 = vmatprep.subr.bf16.mxu1 %v13213_v10  ;;  %v6468_v1 = vshrl.u32 %v15599_v32, 16  ;;  %v6471_v44 = vshll.u32 %v15599_v32, 16  ;;  %v6274_v22 = vld [vmem:[#allocation3 + $0xc0] sm:$0x11]  ;;  %v6330_v49 = vld [vmem:[#allocation3 + $0x28] sm:$0x11] }
 0x2c3   :  { %v6142_v62 = vshrl.u32 %v12586_v42, 16  ;;  %v6145_v29 = vshll.u32 %v12586_v42, 16  ;;  %v6445_v39 = vrot.slane %v6443_v61, 5  ;;  %v6451_v2 = vrot.slane %v6449_v52, 5  ;;  %10664 = vmatpush1.bf16.msra.mxu0 %v13190_v63  ;;  %v13225_v36 = vld [vmem:[#allocation10 + $0x284] ss:$8 sps:$4 sm:$0xff]  }
 0x2c4   :  { %v6139_v27 = vor.u32 %v6137_v19, %v6136_v58  ;;  %v6140_v17 = vrot.slane %v6136_v58, 4  ;;  %v6433_v46 = vrot.slane %v6432_v16, 4  ;;  %10392 = vmatprep.mubr.bf16.mxu1 %v12214_v14  ;;  %10665 = vmatprep.subr.bf16.mxu0 %v13198_v48  ;;  %v6477_v55 = vshll.u32 %v6328_v59, 16  ;;  %v13202_v12 = vld [vmem:[#allocation10 + $0x3e0] ss:$8 sps:$4 sm:$0xff]  }
 0x2c5   :  { %v6144_v34 = vrot.slane %v6142_v62, 7  ;;  %v6446_v9 = vor.u32 %v6445_v39, %v6442_v57  ;;  %10563 = vmatpush2.bf16.msra.mxu1 %v13211_v33  ;;  %v6470_v23 = vrot.slane %v6468_v1, 4  ;;  %v6473_v10 = vrot.slane %v6471_v44, 5  ;;  %v13210_v30 = vld [vmem:[#allocation10 + $0x3d4] ss:$8 sps:$4 sm:$0xff]  }
 0x2c6   :  { %v15724_v6 = vsel %vm13781_vm2, %v6139_v27, %v6265_v31  ;;  %v6269_v5 = vsel %vm13755_vm6, %v6140_v17, %v6268_v4  ;;  %v6438_v56 = vsel %vm13810_vm3, %v6433_v46, %v6437_v18  ;;  %10564 = vmatprep.subr.bf16.mxu1 %v13219_v25  ;;  %v6479_v53 = vrot.slane %v6477_v55, 5  ;;  %v6332_v28 = vld [vmem:[#allocation3 + $0x70] sm:$0x11]  ;;  %v13223_v18 = vld [vmem:[#allocation10 + $0x280] ss:$8 sps:$4 sm:$0xff]  }
 0x2c7   :  { %6267 = vst [vmem:[#allocation3 + $0xe8] sm:$0xff] %v15724_v6  ;;  %6270 = vst [vmem:[#allocation3 + $0x50] sm:$0x11] %v6269_v5  ;;  %v6147_v32 = vor.u32 %v6145_v29, %v6144_v34  ;;  %v6148_v8 = vrot.slane %v6144_v34, 4  ;;  %v6447_v21 = vrot.slane %v6446_v9, 4  ;;  %10393 = vmatmul.mubr.bf16.gmra.mxu1 %v12213_v11  ;;  %10666 = vmatpush2.bf16.msra.mxu0 %v13196_v7  ;;  %v6482_v0 = vshrl.u32 %v15619_v50, 16 }
 0x2c8   :  { %10667 = vmatprep.subr.bf16.mxu0 %v13204_v60  ;;  %v12231_v37 = vcombine.low %v15660_v41, %v15692_v35  ;;  %v12232_v3 = vcombine.high %v15660_v41, %v15692_v35  ;;  %v6474_v19 = vor.u32 %v6473_v10, %v6470_v23  ;;  %v6485_v57 = vshll.u32 %v15619_v50, 16  ;;  %v13208_v58 = vld [vmem:[#allocation10 + $0x3d0] ss:$8 sps:$4 sm:$0xff]   ;;  %v13216_v11 = vld [vmem:[#allocation10 + $0x3c4] ss:$8 sps:$4 sm:$0xff]  }
 0x2c9   :  { %v6272_v38 = vsel %vm13781_vm2, %v6147_v32, %v6271_v51  ;;  %v6275_v63 = vsel %vm13755_vm6, %v6148_v8, %v6274_v22  ;;  %v6452_v43 = vsel %vm13810_vm3, %v6447_v21, %v6451_v2  ;;  %10565 = vmatpush2.bf16.msra.mxu1 %v13217_v15  ;;  %v6484_v42 = vrot.slane %v6482_v0, 4  ;;  %v6334_v59 = vld [vmem:[#allocation3 + $0xf8] sm:$0x11]  ;;  %v6336_v39 = vld [vmem:[#allocation3 + $0x30] sm:$0x11] }
 0x2ca   :  { %6273 = vst [vmem:[#allocation3 + $0xb8] sm:$0xff] %v6272_v38  ;;  %6276 = vst [vmem:[#allocation3 + $0xc0] sm:$0x11] %v6275_v63  ;;  %v12179_v48 = vcombine.low %v6438_v56, %v6452_v43  ;;  %v12180_v4 = vcombine.high %v6438_v56, %v6452_v43  ;;  %10402 = vmatprep.mubr.bf16.mxu1 %v12232_v3  ;;  %10566 = vmatprep.subr.bf16.mxu1 %v13225_v36  ;;  %v6475_v61 = vrot.slane %v6474_v19, 4  ;;  %v13214_v46 = vld [vmem:[#allocation10 + $0x3c0] ss:$8 sps:$4 sm:$0xff]  }
 0x2cb   :  { %10668 = vmatpush2.bf16.msra.mxu0 %v13202_v12  ;;  %v6491_v47 = vshll.u32 %v6330_v49, 16  ;;  %v6496_v52 = vshrl.u32 %v15647_v24, 16  ;;  %v6499_v33 = vshll.u32 %v15647_v24, 16  ;;  %v6487_v31 = vrot.slane %v6485_v57, 5  ;;  %v13222_v1 = vld [vmem:[#allocation10 + $0x3b4] ss:$8 sps:$4 sm:$0xff]  }
 0x2cc   :  { %10485 = vmatprep.mubr.bf16.mxu0 %v12180_v4  ;;  %v6505_v16 = vshll.u32 %v6332_v28, 16  ;;  %10669 = vmatprep.subr.bf16.mxu0 %v13210_v30  ;;  %v12249_v14 = vcombine.low %v15710_v54, %v15724_v6  ;;  %v12250_v50 = vcombine.high %v15710_v54, %v15724_v6  ;;  %v6480_v25 = vsel %vm13810_vm3, %v6475_v61, %v6479_v53  ;;  %v6599_v55 = vld [vmem:[#allocation3 + $0x8] sm:$0xee]  ;;  %v6600_v22 = vld [vmem:[#allocation3 + $0xe0] sm:$0x11] }
 0x2cd   :  { %10486 = vmatmul.mubr.bf16.gmra.mxu0 %v12179_v48  ;;  %v6493_v62 = vrot.slane %v6491_v47, 5  ;;  %v6498_v29 = vrot.slane %v6496_v52, 4  ;;  %v6501_v24 = vrot.slane %v6499_v33, 5  ;;  %10567 = vmatpush2.bf16.msra.mxu1 %v13223_v18  ;;  %v12197_v2 = vcombine.low %v15421_v26, %v6480_v25  ;;  %v13220_v3 = vld [vmem:[#allocation10 + $0x3b0] ss:$8 sps:$4 sm:$0xff]  }
 0x2ce   :  { %v12198_v7 = vcombine.high %v15421_v26, %v6480_v25  ;;  %v6488_v27 = vor.u32 %v6487_v31, %v6484_v42  ;;  %v6507_v17 = vrot.slane %v6505_v16, 5  ;;  %10762 = vmatprep.subr.bf16.mxu1 %v13231_v45  ;;  %v6510_v34 = vshrl.u32 %v15660_v41, 16  ;;  %v13228_v38 = vld [vmem:[#allocation10 + $0x3a4] ss:$8 sps:$4 sm:$0xff]   ;;  %v6338_v63 = vld [vmem:[#allocation3 + $0x78] sm:$0x11] }
 0x2cf   :  { %10403 = vmatmul.mubr.bf16.gmra.mxu1 %v12231_v37  ;;  %v6502_v60 = vor.u32 %v6501_v24, %v6498_v29  ;;  %10670 = vmatpush2.bf16.msra.mxu0 %v13208_v58  ;;  %v6513_v9 = vshll.u32 %v15660_v41, 16  ;;  %v6519_v44 = vshll.u32 %v6334_v59, 16  ;;  %v6524_v5 = vshrl.u32 %v15692_v35, 16  ;;  %v13226_v28 = vld [vmem:[#allocation10 + $0x3a0] ss:$8 sps:$4 sm:$0xff]  }
 0x2d0   :  { %10495 = vmatprep.mubr.bf16.mxu0 %v12198_v7  ;;  %v6489_v15 = vrot.slane %v6488_v27, 4  ;;  %10671 = vmatprep.subr.bf16.mxu0 %v13216_v11  ;;  %v6527_v26 = vshll.u32 %v15692_v35, 16  ;;  %v6533_v51 = vshll.u32 %v6336_v39, 16  ;;  %v6512_v23 = vrot.slane %v6510_v34, 4  ;;  %v6340_v18 = vld [vmem:[#allocation3 + $0x50] sm:$0x11] }
 0x2d1   :  { %v6503_v56 = vrot.slane %v6502_v60, 4  ;;  %10412 = vmatprep.mubr.bf16.mxu1 %v12250_v50  ;;  %v6515_v36 = vrot.slane %v6513_v9, 5  ;;  %v6521_v32 = vrot.slane %v6519_v44, 5  ;;  %v6526_v41 = vrot.slane %v6524_v5, 4  ;;  %v6601_v4 = vld [vmem:[#allocation3 + $0x10] sm:$0xee] }
 0x2d2   :  { %v6494_v8 = vsel %vm13810_vm3, %v6489_v15, %v6493_v62  ;;  %v6529_v21 = vrot.slane %v6527_v26, 5  ;;  %v6535_v10 = vrot.slane %v6533_v51, 5  ;;  %v12076_v37 = vrot.slane %v6599_v55, 9  ;;  %v6602_v47 = vld [vmem:[#allocation3] sm:$0x11] }
 0x2d3   :  { %v6508_v12 = vsel %vm13810_vm3, %v6503_v56, %v6507_v17  ;;  %10672 = vmatpush2.bf16.msra.mxu0 %v13214_v46  ;;  %v6516_v53 = vor.u32 %v6515_v36, %v6512_v23  ;;  %v6667_v35 = vrot.slane %v6600_v22, 5  ;;  %v6538_v43 = vshrl.u32 %v15710_v54, 16  ;;  %v6603_v31 = vld [vmem:[#allocation3 + $0x40] sm:$0xee]  ;;  %v13229_v17 = vld [vmem:[#allocation10 + $0x470] ss:$8 sps:$4 sm:$0xff]  }
 0x2d4   :  { %v12215_v49 = vcombine.low %v6494_v8, %v6508_v12  ;;  %v12216_v0 = vcombine.high %v6494_v8, %v6508_v12  ;;  %v6530_v30 = vor.u32 %v6529_v21, %v6526_v41  ;;  %10673 = vmatprep.subr.bf16.mxu0 %v13222_v1  ;;  %v6541_v48 = vshll.u32 %v15710_v54, 16  ;;  %v6604_v54 = vld [vmem:[#allocation3 + $0x80] sm:$0x11]  ;;  %v13232_v1 = vld [vmem:[#allocation10 + $0x390] ss:$8 sps:$4 sm:$0xff]  }
 0x2d5   :  { %10496 = vmatmul.mubr.bf16.gmra.mxu0 %v12197_v2  ;;  %v6668_v19 = vsel %vm14039_vm7, %v12076_v37, %v6667_v35  ;;  %v6517_v42 = vrot.slane %v6516_v53, 4  ;;  %v6540_v61 = vrot.slane %v6538_v43, 4  ;;  %v6547_v33 = vshll.u32 %v6338_v63, 16  ;;  %v6607_v9 = vld [vmem:[#allocation3 + $0x128] sm:$0xee] }
 0x2d6   :  { %10505 = vmatprep.mubr.bf16.mxu0 %v12216_v0  ;;  %v6531_v57 = vrot.slane %v6530_v30, 4  ;;  %v12128_v45 = vcombine.high %v15358_v40, %v6668_v19  ;;  %v6543_v52 = vrot.slane %v6541_v48, 5  ;;  %v6552_v58 = vshrl.u32 %v15724_v6, 16  ;;  %v6608_v44 = vld [vmem:[#allocation3 + $0xd8] sm:$0x11] }
 0x2d7   :  { %10413 = vmatmul.mubr.bf16.gmra.mxu1 %v12249_v14  ;;  %10674 = vmatpush2.bf16.msra.mxu0 %v13220_v3  ;;  %v15772_v16 = vsel %vm13810_vm3, %v6517_v42, %v6521_v32  ;;  %v6555_v50 = vshll.u32 %v15724_v6, 16  ;;  %v6561_v59 = vshll.u32 %v6340_v18, 16  ;;  %v13234_v14 = vld [vmem:[#allocation10 + $0x394] ss:$8 sps:$4 sm:$0xff]   ;;  %v12077_v24 = vrot.slane %v6601_v4, 9 }
 0x2d8   :  { %v6536_v11 = vsel %vm13810_vm3, %v6531_v57, %v6535_v10  ;;  %10568 = vmatprep.mubr.bf16.mxu1 %v12128_v45  ;;  %10675 = vmatprep.subr.bf16.mxu0 %v13228_v38  ;;  %v6554_v29 = vrot.slane %v6552_v58, 4  ;;  %v6544_v39 = vor.u32 %v6543_v52, %v6540_v61  ;;  %v6671_v7 = vrot.slane %v6602_v47, 5  ;;  %v13239_v26 = vld [vmem:[#allocation10 + $0x464] ss:$8 sps:$4 sm:$0xff]   ;;  %v6605_v36 = vld [vmem:[#allocation3 + $0x18] sm:$0xee] }
 0x2d9   :  { %v12233_v25 = vcombine.low %v15772_v16, %v6536_v11  ;;  %v12234_v62 = vcombine.high %v15772_v16, %v6536_v11  ;;  %v6557_v2 = vrot.slane %v6555_v50, 5  ;;  %v12078_v27 = vrot.slane %v6603_v31, 9  ;;  %v13242_v51 = vld [vmem:[#allocation10 + $0x384] ss:$8 sps:$4 sm:$0xff]   ;;  %v13240_v8 = vld [vmem:[#allocation10 + $0x380] ss:$8 sps:$4 sm:$0xff]  }
 0x2da   :  { %v6675_v46 = vrot.slane %v6604_v54, 5  ;;  %v6549_v60 = vrot.slane %v6547_v33, 5  ;;  %v6563_v6 = vrot.slane %v6561_v59, 5  ;;  %v12127_v55 = vcombine.low %v15358_v40, %v6668_v19  ;;  %v6606_v32 = vld [vmem:[#allocation3 + $0xc8] sm:$0x11]  ;;  %v15792_v47 = vld [vmem:[#allocation3 + $0x10] sm:$0xff] }
 0x2db   :  { %10676 = vmatpush2.bf16.msra.mxu0 %v13226_v28  ;;  %v6558_v34 = vor.u32 %v6557_v2, %v6554_v29  ;;  %v6672_v15 = vsel %vm14039_vm7, %v12077_v24, %v6671_v7  ;;  %v6545_v22 = vrot.slane %v6544_v39, 4  ;;  %v12080_v41 = vrot.slane %v6607_v9, 9  ;;  %v13237_v12 = vld [vmem:[#allocation10 + $0x460] ss:$8 sps:$4 sm:$0xff]   ;;  %v13248_v53 = vld [vmem:[#allocation10 + $0x574] ss:$8 sps:$4 sm:$0xff]  }
 0x2dc   :  { %10677 = vmatprep.subr.bf16.mxu0 %v13234_v14  ;;  %v6676_v5 = vsel %vm14039_vm7, %v12078_v27, %v6675_v46  ;;  %v6683_v21 = vrot.slane %v6608_v44, 5  ;;  %v13245_v3 = vld [vmem:[#allocation10 + $0x454] ss:$8 sps:$4 sm:$0xff]   ;;  %v6679_v0 = vrot.slane %v6606_v32, 5  ;;  %v13243_v38 = vld [vmem:[#allocation10 + $0x450] ss:$8 sps:$4 sm:$0xff]  }
 0x2dd   :  { %10506 = vmatmul.mubr.bf16.gmra.mxu0 %v12215_v49  ;;  %v6559_v56 = vrot.slane %v6558_v34, 4  ;;  %v12146_v23 = vcombine.high %v6672_v15, %v6676_v5  ;;  %v6550_v40 = vsel %vm13810_vm3, %v6545_v22, %v6549_v60  ;;  %v12079_v49 = vrot.slane %v6605_v36, 9  ;;  %v6611_v63 = vld [vmem:[#allocation3 + $0x88] sm:$0xee]  ;;  %v6612_v43 = vld [vmem:[#allocation3 + $0xa0] sm:$0x11] }
 0x2de   :  { %10515 = vmatprep.mubr.bf16.mxu0 %v12234_v62  ;;  %v6684_v30 = vsel %vm14039_vm7, %v12080_v41, %v6683_v21  ;;  %v12145_v19 = vcombine.low %v6672_v15, %v6676_v5  ;;  %v13253_v18 = vld [vmem:[#allocation10 + $0x444] ss:$8 sps:$4 sm:$0xff]   ;;  %v6609_v4 = vld [vmem:[#allocation3 + $0xb0] sm:$0xee]  ;;  %v6610_v42 = vld [vmem:[#allocation3 + $0x38] sm:$0x11] }
 0x2df   :  { %10569 = vmatmul.mubr.bf16.vlgmr.msra.gmra.mxu1 %v12127_v55  ;;  %10678 = vmatpush2.bf16.msra.mxu0 %v13232_v1  ;;  %v6564_v10 = vsel %vm13810_vm3, %v6559_v56, %v6563_v6  ;;  %v6680_v28 = vsel %vm14039_vm7, %v12079_v49, %v6679_v0  ;;  %v12082_v57 = vrot.slane %v6611_v63, 9  ;;  %v6691_v45 = vrot.slane %v6612_v43, 5  ;;  %v13251_v61 = vld [vmem:[#allocation10 + $0x440] ss:$8 sps:$4 sm:$0xff]   ;;  %v13259_v52 = vld [vmem:[#allocation10 + $0x434] ss:$8 sps:$4 sm:$0xff]  }
 0x2e0   :  { %10578 = vmatprep.mubr.bf16.mxu1 %v12146_v23  ;;  %10763 = vmatpush1.bf16.msra.mxu1 %v13229_v17  ;;  %v12251_v37 = vcombine.low %v6550_v40, %v6564_v10  ;;  %v12252_v35 = vcombine.high %v6550_v40, %v6564_v10  ;;  %v12164_v48 = vcombine.high %v6680_v28, %v6684_v30  ;;  %v12081_v33 = vrot.slane %v6609_v4, 9  ;;  %v15794_v31 = vld [vmem:[#allocation3 + $0x8] sm:$0xff]  ;;  %v6613_v11 = vld [vmem:[#allocation3 + $0x60] sm:$0xee]  ;;  %v6614_v50 = vld [vmem:[#allocation3 + $0xd0] sm:$0x11] }
 0x2e1   :  { %10764 = vmatprep.subr.bf16.mxu1 %v13239_v26  ;;  %10679 = vmatprep.subr.bf16.mxu0 %v13242_v51  ;;  %v6687_v58 = vrot.slane %v6610_v42, 5  ;;  %v6692_v16 = vsel %vm14039_vm7, %v12082_v57, %v6691_v45  ;;  %v12130_v59 = vcombine.high %v15794_v31, %v15792_v47  ;;  %v13257_v54 = vld [vmem:[#allocation10 + $0x430] ss:$8 sps:$4 sm:$0xff]   ;;  %v12163_v62 = vcombine.low %v6680_v28, %v6684_v30  ;;  %v13267_v24 = vld [vmem:[#allocation10 + $0x424] ss:$8 sps:$4 sm:$0xff]  }
 0x2e2   :  { %v6615_v14 = vld [vmem:[#allocation3 + $0x130] sm:$0xee]  ;;  %v12083_v2 = vrot.slane %v6613_v11, 9  ;;  %v6695_v7 = vrot.slane %v6614_v50, 5  ;;  %v13265_v46 = vld [vmem:[#allocation10 + $0x420] ss:$8 sps:$4 sm:$0xff]   ;;  %v12129_v6 = vcombine.low %v15794_v31, %v15792_v47 }
 0x2e3   :  { %10680 = vmatpush2.bf16.msra.mxu0 %v13240_v8  ;;  %v6688_v29 = vsel %vm14039_vm7, %v12081_v33, %v6687_v58  ;;  %v12084_v27 = vrot.slane %v6615_v14, 9  ;;  %v15802_v1 = vld [vmem:[#allocation3 + $0x18] sm:$0xff]  ;;  %v15806_v9 = vld [vmem:[#allocation3 + $0x40] sm:$0xff]  ;;  %v6620_v22 = vld [vmem:[#allocation3 + $0x70] sm:$0x11] }
 0x2e4   :  { %10765 = vmatpush1.bf16.msra.mxu1 %v13237_v12  ;;  %10875 = vmatprep.subr.bf16.mxu0 %v13248_v53  ;;  %v12182_v39 = vcombine.high %v6688_v29, %v6692_v16  ;;  %v13273_v60 = vld [vmem:[#allocation10 + $0x414] ss:$8 sps:$4 sm:$0xff]   ;;  %v13246_v34 = vld [vmem:[#allocation10 + $0x570] ss:$8 sps:$4 sm:$0xff]   ;;  %v13256_v44 = vld [vmem:[#allocation10 + $0x564] ss:$8 sps:$4 sm:$0xff]   ;;  %v6696_v55 = vsel %vm14039_vm7, %v12083_v2, %v6695_v7  ;;  %v12148_v5 = vcombine.high %v15806_v9, %v15802_v1 }
 0x2e5   :  { %10516 = vmatmul.mubr.bf16.gmra.mxu0 %v12233_v25  ;;  %10766 = vmatprep.subr.bf16.mxu1 %v13245_v3  ;;  %v6616_v25 = vld [vmem:[#allocation3 + $0x90] sm:$0x11]  ;;  %v6619_v51 = vld [vmem:[#allocation3 + $0x120] sm:$0xee]  ;;  %v12181_v56 = vcombine.low %v6688_v29, %v6692_v16  ;;  %v6617_v8 = vld [vmem:[#allocation3 + $0x58] sm:$0xee]  ;;  %v12147_v0 = vcombine.low %v15806_v9, %v15802_v1 }
 0x2e6   :  { %10525 = vmatprep.mubr.bf16.mxu0 %v12252_v35  ;;  %v6699_v17 = vrot.slane %v6616_v25, 5  ;;  %v13271_v26 = vld [vmem:[#allocation10 + $0x410] ss:$8 sps:$4 sm:$0xff]   ;;  %v13281_v23 = vld [vmem:[#allocation10 + $0x404] ss:$8 sps:$4 sm:$0xff]   ;;  %v12086_v40 = vrot.slane %v6619_v51, 9 }
 0x2e7   :  { %10579 = vmatmul.mubr.bf16.gmra.mxu1 %v12145_v19  ;;  %v13254_v36 = vld [vmem:[#allocation10 + $0x560] ss:$8 sps:$4 sm:$0xff]   ;;  %v13262_v21 = vld [vmem:[#allocation10 + $0x554] ss:$8 sps:$4 sm:$0xff]   ;;  %v6707_v10 = vrot.slane %v6620_v22, 5  ;;  %v12085_v35 = vrot.slane %v6617_v8, 9 }
 0x2e8   :  { %10588 = vmatprep.mubr.bf16.mxu1 %v12164_v48  ;;  %10767 = vmatpush1.bf16.msra.mxu1 %v13243_v38  ;;  %v6700_v15 = vsel %vm14039_vm7, %v12084_v27, %v6699_v17  ;;  %v6618_v41 = vld [vmem:[#allocation3 + $0x28] sm:$0x11]  ;;  %v15814_v53 = vld [vmem:[#allocation3 + $0xb0] sm:$0xff]  ;;  %v6623_v28 = vld [vmem:[#allocation3 + $0x98] sm:$0xee]  ;;  %v6836_v7 = vshrl.u32 %v15792_v47, 16 }
 0x2e9   :  { %10768 = vmatprep.subr.bf16.mxu1 %v13253_v18  ;;  %v12200_v32 = vcombine.high %v6696_v55, %v6700_v15  ;;  %v13279_v12 = vld [vmem:[#allocation10 + $0x400] ss:$8 sps:$4 sm:$0xff]   ;;  %v6703_v3 = vrot.slane %v6618_v41, 5  ;;  %v13260_v49 = vld [vmem:[#allocation10 + $0x550] ss:$8 sps:$4 sm:$0xff]   ;;  %v6708_v63 = vsel %vm14039_vm7, %v12086_v40, %v6707_v10  ;;  %v12199_v48 = vcombine.low %v6696_v55, %v6700_v15 }
 0x2ea   :  { %v15818_v30 = vld [vmem:[#allocation3 + $0x128] sm:$0xff]  ;;  %v13285_v19 = vld [vmem:[#allocation10 + $0x4f0] ss:$8 sps:$4 sm:$0xff]   ;;  %v13276_v33 = vld [vmem:[#allocation10 + $0x534] ss:$8 sps:$4 sm:$0xff]   ;;  %v12088_v58 = vrot.slane %v6623_v28, 9 }
 0x2eb   :  { %v13270_v38 = vld [vmem:[#allocation10 + $0x544] ss:$8 sps:$4 sm:$0xff]   ;;  %v12166_v43 = vcombine.high %v15818_v30, %v15814_v53  ;;  %v6624_v18 = vld [vmem:[#allocation3 + $0x30] sm:$0x11]  ;;  %v6704_v4 = vsel %vm14039_vm7, %v12085_v35, %v6703_v3  ;;  %v13268_v57 = vld [vmem:[#allocation10 + $0x540] ss:$8 sps:$4 sm:$0xff]   ;;  %v12165_v29 = vcombine.low %v15818_v30, %v15814_v53 }
 0x2ec   :  { %10769 = vmatpush1.bf16.msra.mxu1 %v13251_v61  ;;  %v13295_v42 = vld [vmem:[#allocation10 + $0x4e4] ss:$8 sps:$4 sm:$0xff]   ;;  %v12218_v45 = vcombine.high %v6704_v4, %v6708_v63  ;;  %v6715_v16 = vrot.slane %v6624_v18, 5  ;;  %v13293_v11 = vld [vmem:[#allocation10 + $0x4e0] ss:$8 sps:$4 sm:$0xff]   ;;  %v15826_v50 = vld [vmem:[#allocation3 + $0x138] sm:$0xff] }
 0x2ed   :  { %10526 = vmatmul.mubr.bf16.gmra.mxu0 %v12251_v37  ;;  %10770 = vmatprep.subr.bf16.mxu1 %v13259_v52  ;;  %v13287_v37 = vld [vmem:[#allocation10 + $0x4f4] ss:$8 sps:$4 sm:$0xff]   ;;  %v6621_v61 = vld [vmem:[#allocation3 + $0x20] sm:$0xee]  ;;  %v13274_v25 = vld [vmem:[#allocation10 + $0x530] ss:$8 sps:$4 sm:$0xff]  }
 0x2ee   :  { %10681 = vmatprep.mubr.bf16.mxu0 %v12130_v59  ;;  %v6622_v52 = vld [vmem:[#allocation3 + $0xf8] sm:$0x11]  ;;  %v15834_v2 = vsel %vm14039_vm7, %v12088_v58, %v6715_v16  ;;  %v6839_v27 = vshll.u32 %v15792_v47, 16  ;;  %v6625_v55 = vld [vmem:[#allocation3 + $0x108] sm:$0xee]  ;;  %v6867_v28 = vshll.u32 %v15802_v1, 16 }
 0x2ef   :  { %10589 = vmatmul.mubr.bf16.gmra.mxu1 %v12163_v62  ;;  %v13301_v59 = vld [vmem:[#allocation10 + $0x4d4] ss:$8 sps:$4 sm:$0xff]   ;;  %v6711_v14 = vrot.slane %v6622_v52, 5  ;;  %v13284_v62 = vld [vmem:[#allocation10 + $0x524] ss:$8 sps:$4 sm:$0xff]   ;;  %v12089_v41 = vrot.slane %v6625_v55, 9 }
 0x2f0   :  { %10598 = vmatprep.mubr.bf16.mxu1 %v12182_v39  ;;  %10771 = vmatpush1.bf16.msra.mxu1 %v13257_v54  ;;  %v12087_v54 = vrot.slane %v6621_v61, 9  ;;  %v13299_v39 = vld [vmem:[#allocation10 + $0x4d0] ss:$8 sps:$4 sm:$0xff]   ;;  %v13282_v47 = vld [vmem:[#allocation10 + $0x520] ss:$8 sps:$4 sm:$0xff]   ;;  %v6850_v52 = vshrl.u32 %v15806_v9, 16 }
 0x2f1   :  { %10772 = vmatprep.subr.bf16.mxu1 %v13267_v24  ;;  %v15830_v24 = vld [vmem:[#allocation3 + $0x88] sm:$0xff]  ;;  %v6626_v15 = vld [vmem:[#allocation3 + $0x78] sm:$0x11]  ;;  %v6790_v3 = vld [vmem:[#allocation3 + $0xe0] sm:$0x11] }
 0x2f2   :  { %v12184_v17 = vcombine.high %v15830_v24, %v15826_v50  ;;  %v13290_v22 = vld [vmem:[#allocation10 + $0x514] ss:$8 sps:$4 sm:$0xff]   ;;  %v13305_v8 = vld [vmem:[#allocation10 + $0x4c0] ss:$8 sps:$4 sm:$0xff]   ;;  %v13288_v35 = vld [vmem:[#allocation10 + $0x510] ss:$8 sps:$4 sm:$0xff]  }
 0x2f3   :  { %v15845_v40 = vld [vmem:[#allocation3 + $0x58] sm:$0xff]  ;;  %v6831_v16 = vshll.u32 %v6790_v3, 16  ;;  %v6794_v55 = vld [vmem:[#allocation3 + $0x80] sm:$0x11] }
 0x2f4   :  { %10773 = vmatpush1.bf16.msra.mxu1 %v13265_v46  ;;  %v13307_v46 = vld [vmem:[#allocation10 + $0x4c4] ss:$8 sps:$4 sm:$0xff]   ;;  %v13333_v3 = vld [vmem:[#allocation10 + $0x480] ss:$8 sps:$4 sm:$0xff]  }
 0x2f5   :  { %10682 = vmatmul.mubr.bf16.vlgmr.msra.gmra.mxu0 %v12129_v6  ;;  %10774 = vmatprep.subr.bf16.mxu1 %v13273_v60  ;;  %v6627_v60 = vld [vmem:[#allocation3 + $0xe8] sm:$0xee]  ;;  %v12217_v6 = vcombine.low %v6704_v4, %v6708_v63  ;;  %v13311_v4 = vld [vmem:[#allocation10 + $0x4b0] ss:$8 sps:$4 sm:$0xff]  }
 0x2f6   :  { %10691 = vmatprep.mubr.bf16.mxu0 %v12148_v5  ;;  %10876 = vmatpush1.bf16.msra.mxu0 %v13246_v34  ;;  %v6628_v34 = vld [vmem:[#allocation3 + $0x50] sm:$0x11]  ;;  %v6822_v5 = vshrl.u32 %v15794_v31, 16 }
 0x2f7   :  { %10877 = vmatprep.subr.bf16.mxu0 %v13256_v44  ;;  %10599 = vmatmul.mubr.bf16.gmra.mxu1 %v12181_v56  ;;  %v6712_v44 = vsel %vm14039_vm7, %v12087_v54, %v6711_v14  ;;  %v12090_v56 = vrot.slane %v6627_v60, 9  ;;  %v6869_v14 = vrot.slane %v6867_v28, 5  ;;  %v6833_v60 = vrot.slane %v6831_v16, 5  ;;  %v13322_v16 = vld [vmem:[#allocation10 + $0x5c0] ss:$8 sps:$4 sm:$0xff]  }
 0x2f8   :  { %10608 = vmatprep.mubr.bf16.mxu1 %v12200_v32  ;;  %10775 = vmatpush1.bf16.msra.mxu1 %v13271_v26  ;;  %v6825_v26 = vshll.u32 %v15794_v31, 16  ;;  %v12236_v51 = vcombine.high %v6712_v44, %v15834_v2  ;;  %v6841_v32 = vrot.slane %v6839_v27, 5  ;;  %v13313_v31 = vld [vmem:[#allocation10 + $0x4b4] ss:$8 sps:$4 sm:$0xff]   ;;  %v6824_v10 = vrot.slane %v6822_v5, 4 }
 0x2f9   :  { %10776 = vmatprep.subr.bf16.mxu1 %v13281_v23  ;;  %v6723_v23 = vrot.slane %v6628_v34, 5  ;;  %v6796_v34 = vld [vmem:[#allocation3 + $0xc8] sm:$0x11]  ;;  %v6892_v5 = vshrl.u32 %v15814_v53, 16 }
 0x2fa   :  { %10878 = vmatpush1.bf16.msra.mxu0 %v13254_v36  ;;  %v6838_v36 = vrot.slane %v6836_v7, 4  ;;  %v6852_v7 = vrot.slane %v6850_v52, 4 }
 0x2fb   :  { %10879 = vmatprep.subr.bf16.mxu0 %v13262_v21  ;;  %v6719_v21 = vrot.slane %v6626_v15, 5  ;;  %v15853_v63 = vsel %vm14039_vm7, %v12090_v56, %v6723_v23  ;;  %v6881_v56 = vshll.u32 %v15818_v30, 16 }
 0x2fc   :  { %10777 = vmatpush1.bf16.msra.mxu1 %v13279_v12  ;;  %v6827_v12 = vrot.slane %v6825_v26, 5  ;;  %v6895_v26 = vshll.u32 %v15814_v53, 16  ;;  %v13308_v53 = vld [vmem:[#allocation10 + $0x5e0] ss:$8 sps:$4 sm:$0xff]  }
 0x2fd   :  { %10692 = vmatmul.mubr.bf16.gmra.mxu0 %v12147_v0  ;;  %10778 = vmatprep.subr.bf16.mxu1 %v13287_v37  ;;  %v12183_v37 = vcombine.low %v15830_v24, %v15826_v50  ;;  %v15849_v0 = vld [vmem:[#allocation3 + $0x130] sm:$0xff] }
 0x2fe   :  { %10701 = vmatprep.mubr.bf16.mxu0 %v12166_v43  ;;  %10880 = vmatpush1.bf16.msra.mxu0 %v13260_v49  ;;  %v6792_v49 = vld [vmem:[#allocation3] sm:$0x11]  ;;  %v6842_v43 = vor.u32 %v6841_v32, %v6838_v36  ;;  %v12202_v18 = vcombine.high %v15849_v0, %v15845_v40 }
 0x2ff   :  { %10881 = vmatprep.subr.bf16.mxu0 %v13270_v38  ;;  %10609 = vmatmul.mubr.bf16.gmra.mxu1 %v12199_v48  ;;  %v13298_v38 = vld [vmem:[#allocation10 + $0x504] ss:$8 sps:$4 sm:$0xff]   ;;  %v12235_v48 = vcombine.low %v6712_v44, %v15834_v2  ;;  %v6845_v61 = vshll.u32 %v6792_v49, 16 }
 0x300   :  { %10618 = vmatprep.mubr.bf16.mxu1 %v12218_v45  ;;  %10779 = vmatpush2.bf16.msra.mxu1 %v13285_v19  ;;  %v6864_v19 = vshrl.u32 %v15802_v1, 16  ;;  %v6828_v45 = vor.u32 %v6827_v12, %v6824_v10  ;;  %v13296_v1 = vld [vmem:[#allocation10 + $0x500] ss:$8 sps:$4 sm:$0xff]   ;;  %v13335_v32 = vld [vmem:[#allocation10 + $0x484] ss:$8 sps:$4 sm:$0xff]   ;;  %v6894_v12 = vrot.slane %v6892_v5, 4 }
 0x301   :  { %10780 = vmatprep.subr.bf16.mxu1 %v13295_v42  ;;  %v6720_v42 = vsel %vm14039_vm7, %v12089_v41, %v6719_v21  ;;  %v6847_v2 = vrot.slane %v6845_v61, 5  ;;  %v6873_v41 = vshll.u32 %v6796_v34, 16  ;;  %v13316_v10 = vld [vmem:[#allocation10 + $0x5d4] ss:$8 sps:$4 sm:$0xff]   ;;  %v7080_v34 = vld [vmem:[#allocation3] sm:$0x11] }
 0x302   :  { %10882 = vmatpush1.bf16.msra.mxu0 %v13268_v57  ;;  %v13321_v57 = vld [vmem:[#allocation10 + $0x4a4] ss:$8 sps:$4 sm:$0xff]   ;;  %v12254_v58 = vcombine.high %v6720_v42, %v15853_v63  ;;  %v6866_v54 = vrot.slane %v6864_v19, 4  ;;  %v12253_v23 = vcombine.low %v6720_v42, %v15853_v63  ;;  %v6800_v42 = vld [vmem:[#allocation3 + $0x38] sm:$0x11] }
 0x303   :  { %10883 = vmatprep.subr.bf16.mxu0 %v13276_v33  ;;  %v6853_v33 = vshll.u32 %v15806_v9, 16  ;;  %v6829_v9 = vrot.slane %v6828_v45, 4  ;;  %v15885_v63 = vld [vmem:[#allocation3 + $0x108] sm:$0xff]  ;;  %v6875_v28 = vrot.slane %v6873_v41, 5  ;;  %v6798_v61 = vld [vmem:[#allocation3 + $0xd8] sm:$0x11] }
 0x304   :  { %10781 = vmatpush2.bf16.msra.mxu1 %v13293_v11  ;;  %v13304_v11 = vld [vmem:[#allocation10 + $0x5f4] ss:$8 sps:$4 sm:$0xff]   ;;  %v6870_v15 = vor.u32 %v6869_v14, %v6866_v54  ;;  %v13328_v5 = vld [vmem:[#allocation10 + $0x5b0] ss:$8 sps:$4 sm:$0xff]   ;;  %v7147_v41 = vrot.slane %v7080_v34, 5 }
 0x305   :  { %10702 = vmatmul.mubr.bf16.gmra.mxu0 %v12165_v29  ;;  %10782 = vmatprep.subr.bf16.mxu1 %v13301_v59  ;;  %v6843_v59 = vrot.slane %v6842_v43, 4  ;;  %v13327_v29 = vld [vmem:[#allocation10 + $0x494] ss:$8 sps:$4 sm:$0xff]   ;;  %v6855_v27 = vrot.slane %v6853_v33, 5  ;;  %v6834_v36 = vsel %vm13810_vm3, %v6829_v9, %v6833_v60  ;;  %v6920_v33 = vshrl.u32 %v15826_v50, 16 }
 0x306   :  { %10711 = vmatprep.mubr.bf16.mxu0 %v12184_v17  ;;  %10884 = vmatpush1.bf16.msra.mxu0 %v13274_v25  ;;  %v13302_v25 = vld [vmem:[#allocation10 + $0x5f0] ss:$8 sps:$4 sm:$0xff]   ;;  %v12201_v17 = vcombine.low %v15849_v0, %v15845_v40  ;;  %v13341_v43 = vld [vmem:[#allocation10 + $0x674] ss:$8 sps:$4 sm:$0xff]   ;;  %v7078_v60 = vld [vmem:[#allocation3 + $0xe0] sm:$0x11] }
 0x307   :  { %10885 = vmatprep.subr.bf16.mxu0 %v13284_v62  ;;  %10619 = vmatmul.mubr.bf16.gmra.mxu1 %v12217_v6  ;;  %v13319_v62 = vld [vmem:[#allocation10 + $0x4a0] ss:$8 sps:$4 sm:$0xff]   ;;  %v15873_v44 = vsel %vm13810_vm3, %v6843_v59, %v6847_v2  ;;  %v13339_v59 = vld [vmem:[#allocation10 + $0x670] ss:$8 sps:$4 sm:$0xff]   ;;  %v13330_v9 = vld [vmem:[#allocation10 + $0x5b4] ss:$8 sps:$4 sm:$0xff]  }
 0x308   :  { %10628 = vmatprep.mubr.bf16.mxu1 %v12236_v51  ;;  %10783 = vmatpush2.bf16.msra.mxu1 %v13299_v39  ;;  %v15865_v39 = vld [vmem:[#allocation3 + $0x20] sm:$0xff]  ;;  %v13325_v51 = vld [vmem:[#allocation10 + $0x490] ss:$8 sps:$4 sm:$0xff]   ;;  %v12132_v21 = vcombine.high %v6834_v36, %v15873_v44 }
 0x309   :  { %10784 = vmatprep.subr.bf16.mxu1 %v13307_v46  ;;  %v13310_v46 = vld [vmem:[#allocation10 + $0x5e4] ss:$8 sps:$4 sm:$0xff]  }
 0x30a   :  { %10886 = vmatpush1.bf16.msra.mxu0 %v13282_v47  ;;  %v15869_v6 = vld [vmem:[#allocation3 + $0x120] sm:$0xff] }
 0x30b   :  { %10887 = vmatprep.subr.bf16.mxu0 %v13290_v22  ;;  %v12220_v47 = vcombine.high %v15869_v6, %v15865_v39  ;;  %v6878_v22 = vshrl.u32 %v15818_v30, 16  ;;  %v6871_v30 = vrot.slane %v6870_v15, 4 }
 0x30c   :  { %10785 = vmatpush2.bf16.msra.mxu1 %v13305_v8  ;;  %v6856_v8 = vor.u32 %v6855_v27, %v6852_v7  ;;  %v7079_v7 = vld [vmem:[#allocation3 + $0x10] sm:$0xee]  ;;  %v6887_v27 = vshll.u32 %v6798_v61, 16 }
 0x30d   :  { %10712 = vmatmul.mubr.bf16.gmra.mxu0 %v12183_v37  ;;  %10786 = vmatprep.subr.bf16.mxu1 %v13313_v31  ;;  %v6859_v31 = vshll.u32 %v6794_v55, 16  ;;  %v6897_v37 = vrot.slane %v6895_v26, 5  ;;  %v6880_v49 = vrot.slane %v6878_v22, 4  ;;  %v15893_v45 = vsel %vm13810_vm3, %v6871_v30, %v6875_v28  ;;  %v13353_v22 = vld [vmem:[#allocation10 + $0x654] ss:$8 sps:$4 sm:$0xff]  }
 0x30e   :  { %10721 = vmatprep.mubr.bf16.mxu0 %v12202_v18  ;;  %10888 = vmatpush1.bf16.msra.mxu0 %v13288_v35  ;;  %v13314_v35 = vld [vmem:[#allocation10 + $0x5d0] ss:$8 sps:$4 sm:$0xff]   ;;  %v6857_v19 = vrot.slane %v6856_v8, 4  ;;  %v12219_v18 = vcombine.low %v15869_v6, %v15865_v39  ;;  %v6922_v55 = vrot.slane %v6920_v33, 4  ;;  %v12092_v8 = vrot.slane %v7079_v7, 9 }
 0x30f   :  { %10889 = vmatprep.subr.bf16.mxu0 %v13298_v38  ;;  %10629 = vmatmul.mubr.bf16.gmra.mxu1 %v12235_v48  ;;  %v6883_v38 = vrot.slane %v6881_v56, 5  ;;  %v13324_v48 = vld [vmem:[#allocation10 + $0x5c4] ss:$8 sps:$4 sm:$0xff]   ;;  %v6898_v52 = vor.u32 %v6897_v37, %v6894_v12  ;;  %v6948_v37 = vshrl.u32 %v15845_v40, 16 }
 0x310   :  { %10638 = vmatprep.mubr.bf16.mxu1 %v12254_v58  ;;  %10787 = vmatpush2.bf16.msra.mxu1 %v13311_v4  ;;  %v6861_v4 = vrot.slane %v6859_v31, 5  ;;  %v13338_v31 = vld [vmem:[#allocation10 + $0x5a4] ss:$8 sps:$4 sm:$0xff]  }
 0x311   :  { %10788 = vmatprep.subr.bf16.mxu1 %v13321_v57  ;;  %v15889_v57 = vld [vmem:[#allocation3 + $0x98] sm:$0xff]  ;;  %v6884_v54 = vor.u32 %v6883_v38, %v6880_v49  ;;  %v6802_v30 = vld [vmem:[#allocation3 + $0xa0] sm:$0x11] }
 0x312   :  { %10890 = vmatpush1.bf16.msra.mxu0 %v13296_v1  ;;  %v6923_v1 = vshll.u32 %v15826_v50, 16  ;;  %v12238_v58 = vcombine.high %v15889_v57, %v15885_v63  ;;  %v15902_v14 = vsel %vm13810_vm3, %v6857_v19, %v6861_v4  ;;  %v6909_v50 = vshll.u32 %v15830_v24, 16  ;;  %v13351_v19 = vld [vmem:[#allocation10 + $0x650] ss:$8 sps:$4 sm:$0xff]  }
 0x313   :  { %10891 = vmatprep.subr.bf16.mxu0 %v13304_v11  ;;  %v12131_v11 = vcombine.low %v6834_v36, %v15873_v44  ;;  %v12150_v2 = vcombine.high %v15902_v14, %v15893_v45  ;;  %v6899_v44 = vrot.slane %v6898_v52, 4  ;;  %v6885_v26 = vrot.slane %v6884_v54, 4  ;;  %v7083_v52 = vld [vmem:[#allocation3 + $0x18] sm:$0xee] }
 0x314   :  { %10789 = vmatpush2.bf16.msra.mxu1 %v13319_v62  ;;  %v6901_v62 = vshll.u32 %v6800_v42, 16  ;;  %v6925_v15 = vrot.slane %v6923_v1, 5  ;;  %v6911_v36 = vrot.slane %v6909_v50, 5  ;;  %v12149_v49 = vcombine.low %v15902_v14, %v15893_v45  ;;  %v13344_v45 = vld [vmem:[#allocation10 + $0x594] ss:$8 sps:$4 sm:$0xff]  }
 0x315   :  { %10722 = vmatmul.mubr.bf16.gmra.mxu0 %v12201_v17  ;;  %10790 = vmatprep.subr.bf16.mxu1 %v13327_v29  ;;  %v6906_v29 = vshrl.u32 %v15830_v24, 16  ;;  %v15908_v17 = vld [vmem:[#allocation3 + $0xb8] sm:$0xff]  ;;  %v13345_v24 = vld [vmem:[#allocation10 + $0x660] ss:$8 sps:$4 sm:$0xff]   ;;  %v6934_v42 = vshrl.u32 %v15849_v0, 16  ;;  %v6915_v33 = vshll.u32 %v6802_v30, 16  ;;  %v15934_v1 = vsel %vm14039_vm7, %v12092_v8, %v7147_v41 }
 0x316   :  { %10731 = vmatprep.mubr.bf16.mxu0 %v12220_v47  ;;  %10892 = vmatpush2.bf16.msra.mxu0 %v13302_v25  ;;  %v13347_v25 = vld [vmem:[#allocation10 + $0x664] ss:$8 sps:$4 sm:$0xff]   ;;  %v12237_v47 = vcombine.low %v15889_v57, %v15885_v63  ;;  %v6903_v56 = vrot.slane %v6901_v62, 5  ;;  %v6926_v12 = vor.u32 %v6925_v15, %v6922_v55  ;;  %v13342_v54 = vld [vmem:[#allocation10 + $0x590] ss:$8 sps:$4 sm:$0xff]   ;;  %v6965_v8 = vshll.u32 %v15869_v6, 16 }
 0x317   :  { %10893 = vmatprep.subr.bf16.mxu0 %v13310_v46  ;;  %10639 = vmatmul.mubr.bf16.gmra.mxu1 %v12253_v23  ;;  %v7077_v46 = vld [vmem:[#allocation3 + $0x8] sm:$0xee]  ;;  %v6908_v23 = vrot.slane %v6906_v29, 4  ;;  %v7082_v62 = vld [vmem:[#allocation3 + $0x80] sm:$0x11]  ;;  %v6936_v7 = vrot.slane %v6934_v42, 4 }
 0x318   :  { %10791 = vmatpush2.bf16.msra.mxu1 %v13325_v51  ;;  %10794 = vmatprep.mubr.bf16.mxu1 %v12132_v21  ;;  %v15912_v51 = vld [vmem:[#allocation3 + $0xe8] sm:$0xff]  ;;  %v12091_v38 = vrot.slane %v7077_v46, 9  ;;  %v13365_v50 = vld [vmem:[#allocation10 + $0x634] ss:$8 sps:$4 sm:$0xff]  }
 0x319   :  { %10792 = vmatprep.subr.bf16.mxu1 %v13335_v32  ;;  %v12256_v32 = vcombine.high %v15912_v51, %v15908_v17  ;;  %v6804_v21 = vld [vmem:[#allocation3 + $0xa8] sm:$0x11] }
 0x31a   :  { %10894 = vmatpush2.bf16.msra.mxu0 %v13308_v53  ;;  %v6889_v53 = vrot.slane %v6887_v27, 5  ;;  %v6929_v4 = vshll.u32 %v6804_v21, 16  ;;  %v13357_v29 = vld [vmem:[#allocation10 + $0x640] ss:$8 sps:$4 sm:$0xff]   ;;  %v13350_v15 = vld [vmem:[#allocation10 + $0x584] ss:$8 sps:$4 sm:$0xff]  }
 0x31b   :  { %10895 = vmatprep.subr.bf16.mxu0 %v13316_v10  ;;  %v15918_v10 = vsel %vm13810_vm3, %v6899_v44, %v6903_v56  ;;  %v6917_v44 = vrot.slane %v6915_v33, 5  ;;  %v6808_v55 = vld [vmem:[#allocation3 + $0x28] sm:$0x11] }
 0x31c   :  { %10793 = vmatpush2.bf16.msra.mxu1 %v13333_v3  ;;  %v13336_v3 = vld [vmem:[#allocation10 + $0x5a0] ss:$8 sps:$4 sm:$0xff]   ;;  %v15926_v28 = vsel %vm13810_vm3, %v6885_v26, %v6889_v53  ;;  %v6957_v30 = vshll.u32 %v6808_v55, 16 }
 0x31d   :  { %10732 = vmatmul.mubr.bf16.gmra.mxu0 %v12219_v18  ;;  %10988 = vmatprep.subr.bf16.mxu1 %v13341_v43  ;;  %v7143_v43 = vrot.slane %v7078_v60, 5  ;;  %v13359_v18 = vld [vmem:[#allocation10 + $0x644] ss:$8 sps:$4 sm:$0xff]   ;;  %v12168_v61 = vcombine.high %v15926_v28, %v15918_v10  ;;  %v12094_v60 = vrot.slane %v7083_v52, 9  ;;  %v13348_v41 = vld [vmem:[#allocation10 + $0x580] ss:$8 sps:$4 sm:$0xff]   ;;  %v12167_v53 = vcombine.low %v15926_v28, %v15918_v10 }
 0x31e   :  { %10741 = vmatprep.mubr.bf16.mxu0 %v12238_v58  ;;  %10896 = vmatpush2.bf16.msra.mxu0 %v13314_v35  ;;  %v6951_v35 = vshll.u32 %v15845_v40, 16  ;;  %v6937_v40 = vshll.u32 %v15849_v0, 16  ;;  %v7084_v58 = vld [vmem:[#allocation3 + $0xc8] sm:$0x11]  ;;  %v12255_v0 = vcombine.low %v15912_v51, %v15908_v17  ;;  %v7085_v28 = vld [vmem:[#allocation3 + $0x128] sm:$0xee] }
 0x31f   :  { %10897 = vmatprep.subr.bf16.mxu0 %v13324_v48  ;;  %10795 = vmatmul.mubr.bf16.vlgmr.msra.gmra.mxu1 %v12131_v11  ;;  %v6912_v48 = vor.u32 %v6911_v36, %v6908_v23  ;;  %v6950_v11 = vrot.slane %v6948_v37, 4  ;;  %v15940_v14 = vsel %vm14039_vm7, %v12091_v38, %v7143_v43  ;;  %v7155_v34 = vrot.slane %v7084_v58, 5  ;;  %v13363_v36 = vld [vmem:[#allocation10 + $0x630] ss:$8 sps:$4 sm:$0xff]   ;;  %v13360_v55 = vld [vmem:[#allocation10 + $0x760] ss:$8 sps:$4 sm:$0xff]  }
 0x320   :  { %10804 = vmatprep.mubr.bf16.mxu1 %v12150_v2  ;;  %10989 = vmatpush1.bf16.msra.mxu1 %v13339_v59  ;;  %v6953_v59 = vrot.slane %v6951_v35, 5  ;;  %v6931_v2 = vrot.slane %v6929_v4, 5  ;;  %v6939_v27 = vrot.slane %v6937_v40, 5  ;;  %v12134_v46 = vcombine.high %v15940_v14, %v15934_v1 }
 0x321   :  { %10990 = vmatprep.subr.bf16.mxu1 %v13347_v25  ;;  %v7081_v25 = vld [vmem:[#allocation3 + $0x40] sm:$0xee]  ;;  %v7151_v23 = vrot.slane %v7082_v62, 5  ;;  %v15962_v10 = vsel %vm14039_vm7, %v12094_v60, %v7155_v34  ;;  %v6967_v4 = vrot.slane %v6965_v8, 5  ;;  %v12133_v42 = vcombine.low %v15940_v14, %v15934_v1  ;;  %v6810_v14 = vld [vmem:[#allocation3 + $0x70] sm:$0x11] }
 0x322   :  { %10898 = vmatpush2.bf16.msra.mxu0 %v13322_v16  ;;  %v6927_v16 = vrot.slane %v6926_v12, 4  ;;  %v6954_v26 = vor.u32 %v6953_v59, %v6950_v11  ;;  %v12093_v56 = vrot.slane %v7081_v25, 9  ;;  %v13356_v12 = vld [vmem:[#allocation10 + $0x774] ss:$8 sps:$4 sm:$0xff]   ;;  %v6959_v33 = vrot.slane %v6957_v30, 5 }
 0x323   :  { %10899 = vmatprep.subr.bf16.mxu0 %v13330_v9  ;;  %v6913_v9 = vrot.slane %v6912_v48, 4  ;;  %v7004_v62 = vshrl.u32 %v15885_v63, 16  ;;  %v13383_v60 = vld [vmem:[#allocation10 + $0x604] ss:$8 sps:$4 sm:$0xff]  }
 0x324   :  { %10991 = vmatpush1.bf16.msra.mxu1 %v13345_v24  ;;  %v6806_v24 = vld [vmem:[#allocation3 + $0x90] sm:$0x11]  ;;  %v15968_v40 = vsel %vm14039_vm7, %v12093_v56, %v7151_v23 }
 0x325   :  { %10742 = vmatmul.mubr.bf16.gmra.mxu0 %v12237_v47  ;;  %10992 = vmatprep.subr.bf16.mxu1 %v13353_v22  ;;  %v6976_v47 = vshrl.u32 %v15865_v39, 16  ;;  %v6979_v22 = vshll.u32 %v15865_v39, 16  ;;  %v15956_v21 = vsel %vm13810_vm3, %v6913_v9, %v6917_v44  ;;  %v6940_v39 = vor.u32 %v6939_v27, %v6936_v7  ;;  %v13375_v7 = vld [vmem:[#allocation10 + $0x610] ss:$8 sps:$4 sm:$0xff]  }
 0x326   :  { %10751 = vmatprep.mubr.bf16.mxu0 %v12256_v32  ;;  %10900 = vmatpush2.bf16.msra.mxu0 %v13328_v5  ;;  %v15946_v5 = vsel %vm13810_vm3, %v6927_v16, %v6931_v2  ;;  %v6962_v32 = vshrl.u32 %v15869_v6, 16  ;;  %v7087_v6 = vld [vmem:[#allocation3 + $0xb0] sm:$0xee]  ;;  %v6943_v35 = vshll.u32 %v6806_v24, 16  ;;  %v12152_v58 = vcombine.high %v15968_v40, %v15962_v10 }
 0x327   :  { %10901 = vmatprep.subr.bf16.mxu0 %v13338_v31  ;;  %10805 = vmatmul.mubr.bf16.gmra.mxu1 %v12149_v49  ;;  %v13371_v31 = vld [vmem:[#allocation10 + $0x624] ss:$8 sps:$4 sm:$0xff]   ;;  %v12186_v37 = vcombine.high %v15956_v21, %v15946_v5  ;;  %v6955_v49 = vrot.slane %v6954_v26, 4  ;;  %v6978_v38 = vrot.slane %v6976_v47, 4  ;;  %v6981_v43 = vrot.slane %v6979_v22, 5 }
 0x328   :  { %10814 = vmatprep.mubr.bf16.mxu1 %v12168_v61  ;;  %10993 = vmatpush1.bf16.msra.mxu1 %v13351_v19  ;;  %v13354_v19 = vld [vmem:[#allocation10 + $0x770] ss:$8 sps:$4 sm:$0xff]   ;;  %v6964_v48 = vrot.slane %v6962_v32, 4  ;;  %v13377_v61 = vld [vmem:[#allocation10 + $0x614] ss:$8 sps:$4 sm:$0xff]   ;;  %v6941_v52 = vrot.slane %v6940_v39, 4  ;;  %v12151_v30 = vcombine.low %v15968_v40, %v15962_v10 }
 0x329   :  { %10994 = vmatprep.subr.bf16.mxu1 %v13359_v18  ;;  %v13369_v18 = vld [vmem:[#allocation10 + $0x620] ss:$8 sps:$4 sm:$0xff]   ;;  %v12096_v16 = vrot.slane %v7087_v6, 9  ;;  %v6945_v59 = vrot.slane %v6943_v35, 5  ;;  %v15974_v1 = vsel %vm13810_vm3, %v6955_v49, %v6959_v33  ;;  %v6982_v25 = vor.u32 %v6981_v43, %v6978_v38  ;;  %v7091_v47 = vld [vmem:[#allocation3 + $0x138] sm:$0xee] }
 0x32a   :  { %10902 = vmatpush2.bf16.msra.mxu0 %v13336_v3  ;;  %v7088_v3 = vld [vmem:[#allocation3 + $0x38] sm:$0x11]  ;;  %v12095_v9 = vrot.slane %v7085_v28, 9  ;;  %v6968_v27 = vor.u32 %v6967_v4, %v6964_v48  ;;  %v6990_v44 = vshrl.u32 %v15889_v57, 16  ;;  %v6971_v24 = vshll.u32 %v6810_v14, 16 }
 0x32b   :  { %10903 = vmatprep.subr.bf16.mxu0 %v13344_v45  ;;  %v7086_v45 = vld [vmem:[#allocation3 + $0xd8] sm:$0x11]  ;;  %v7163_v11 = vrot.slane %v7088_v3, 5  ;;  %v6983_v22 = vrot.slane %v6982_v25, 4  ;;  %v7006_v56 = vrot.slane %v7004_v62, 4  ;;  %v7035_v28 = vshll.u32 %v15908_v17, 16 }
 0x32c   :  { %10995 = vmatpush1.bf16.msra.mxu1 %v13357_v29  ;;  %v7007_v29 = vshll.u32 %v15885_v63, 16  ;;  %v7159_v2 = vrot.slane %v7086_v45, 5  ;;  %v6993_v63 = vshll.u32 %v15889_v57, 16  ;;  %v7092_v57 = vld [vmem:[#allocation3 + $0xa8] sm:$0x11]  ;;  %v6969_v8 = vrot.slane %v6968_v27, 4 }
 0x32d   :  { %10752 = vmatmul.mubr.bf16.gmra.mxu0 %v12255_v0  ;;  %10996 = vmatprep.subr.bf16.mxu1 %v13365_v50  ;;  %v6812_v0 = vld [vmem:[#allocation3 + $0xf8] sm:$0x11]  ;;  %v12185_v50 = vcombine.low %v15956_v21, %v15946_v5  ;;  %v15990_v26 = vsel %vm14039_vm7, %v12096_v16, %v7163_v11  ;;  %v13381_v32 = vld [vmem:[#allocation10 + $0x600] ss:$8 sps:$4 sm:$0xff]   ;;  %v6973_v6 = vrot.slane %v6971_v24, 5  ;;  %v7171_v48 = vrot.slane %v7092_v57, 5 }
 0x32e   :  { %10904 = vmatpush2.bf16.msra.mxu0 %v13342_v54  ;;  %10907 = vmatprep.mubr.bf16.mxu0 %v12134_v46  ;;  %v13362_v54 = vld [vmem:[#allocation10 + $0x764] ss:$8 sps:$4 sm:$0xff]   ;;  %v15982_v46 = vsel %vm13810_vm3, %v6941_v52, %v6945_v59  ;;  %v6985_v34 = vshll.u32 %v6812_v0, 16  ;;  %v7009_v23 = vrot.slane %v7007_v29, 5  ;;  %v6995_v39 = vrot.slane %v6993_v63, 5 }
 0x32f   :  { %10905 = vmatprep.subr.bf16.mxu0 %v13350_v15  ;;  %10815 = vmatmul.mubr.bf16.gmra.mxu1 %v12167_v53  ;;  %v13368_v15 = vld [vmem:[#allocation10 + $0x754] ss:$8 sps:$4 sm:$0xff]   ;;  %v12204_v5 = vcombine.high %v15982_v46, %v15974_v1  ;;  %v7089_v3 = vld [vmem:[#allocation3 + $0x88] sm:$0xee]  ;;  %v7090_v49 = vld [vmem:[#allocation3 + $0xa0] sm:$0x11]  ;;  %v12203_v10 = vcombine.low %v15982_v46, %v15974_v1 }
 0x330   :  { %10824 = vmatprep.mubr.bf16.mxu1 %v12186_v37  ;;  %10997 = vmatpush1.bf16.msra.mxu1 %v13363_v36  ;;  %v13366_v36 = vld [vmem:[#allocation10 + $0x750] ss:$8 sps:$4 sm:$0xff]   ;;  %v13389_v53 = vld [vmem:[#allocation10 + $0x6f4] ss:$8 sps:$4 sm:$0xff]   ;;  %v6987_v21 = vrot.slane %v6985_v34, 5  ;;  %v7010_v43 = vor.u32 %v7009_v23, %v7006_v56  ;;  %v7018_v33 = vshrl.u32 %v15912_v51, 16 }
 0x331   :  { %10998 = vmatprep.subr.bf16.mxu1 %v13371_v31  ;;  %v6992_v31 = vrot.slane %v6990_v44, 4  ;;  %v13374_v37 = vld [vmem:[#allocation10 + $0x744] ss:$8 sps:$4 sm:$0xff]   ;;  %v6816_v35 = vld [vmem:[#allocation3 + $0x78] sm:$0x11]  ;;  %v12097_v16 = vrot.slane %v7089_v3, 9 }
 0x332   :  { %10906 = vmatpush2.bf16.msra.mxu0 %v13348_v41  ;;  %v15994_v41 = vsel %vm14039_vm7, %v12095_v9, %v7159_v2  ;;  %v16002_v38 = vsel %vm13810_vm3, %v6983_v22, %v6987_v21  ;;  %v13387_v4 = vld [vmem:[#allocation10 + $0x6f0] ss:$8 sps:$4 sm:$0xff]   ;;  %v13395_v45 = vld [vmem:[#allocation10 + $0x6e4] ss:$8 sps:$4 sm:$0xff]   ;;  %v7013_v52 = vshll.u32 %v6816_v35, 16  ;;  %v7167_v11 = vrot.slane %v7090_v49, 5 }
 0x333   :  { %11101 = vmatprep.subr.bf16.mxu0 %v13356_v12  ;;  %v12170_v12 = vcombine.high %v15994_v41, %v15990_v26  ;;  %v6814_v40 = vld [vmem:[#allocation3 + $0x30] sm:$0x11]  ;;  %v7011_v1 = vrot.slane %v7010_v43, 4  ;;  %v7037_v25 = vrot.slane %v7035_v28, 5  ;;  %v7096_v29 = vld [vmem:[#allocation3 + $0x28] sm:$0x11] }
 0x334   :  { %10999 = vmatpush1.bf16.msra.mxu1 %v13369_v18  ;;  %v12098_v18 = vrot.slane %v7091_v47, 9  ;;  %v13380_v0 = vld [vmem:[#allocation10 + $0x734] ss:$8 sps:$4 sm:$0xff]   ;;  %v7020_v27 = vrot.slane %v7018_v33, 4  ;;  %v13378_v34 = vld [vmem:[#allocation10 + $0x730] ss:$8 sps:$4 sm:$0xff]  }
 0x335   :  { %10908 = vmatmul.mubr.bf16.vlgmr.msra.gmra.mxu0 %v12133_v42  ;;  %11000 = vmatprep.subr.bf16.mxu1 %v13377_v61  ;;  %v16010_v42 = vsel %vm13810_vm3, %v6969_v8, %v6973_v6  ;;  %v6996_v61 = vor.u32 %v6995_v39, %v6992_v31  ;;  %v13401_v9 = vld [vmem:[#allocation10 + $0x6d4] ss:$8 sps:$4 sm:$0xff]   ;;  %v13386_v44 = vld [vmem:[#allocation10 + $0x724] ss:$8 sps:$4 sm:$0xff]   ;;  %v13384_v31 = vld [vmem:[#allocation10 + $0x720] ss:$8 sps:$4 sm:$0xff]  }
 0x336   :  { %10917 = vmatprep.mubr.bf16.mxu0 %v12152_v58  ;;  %11102 = vmatpush1.bf16.msra.mxu0 %v13354_v19  ;;  %v7032_v19 = vshrl.u32 %v15908_v17, 16  ;;  %v7021_v17 = vshll.u32 %v15912_v51, 16  ;;  %v13372_v58 = vld [vmem:[#allocation10 + $0x740] ss:$8 sps:$4 sm:$0xff]   ;;  %v12222_v59 = vcombine.high %v16010_v42, %v16002_v38  ;;  %v16018_v62 = vsel %vm14039_vm7, %v12098_v18, %v7171_v48  ;;  %v7095_v51 = vld [vmem:[#allocation3 + $0x58] sm:$0xee] }
 0x337   :  { %11103 = vmatprep.subr.bf16.mxu0 %v13362_v54  ;;  %10825 = vmatmul.mubr.bf16.gmra.mxu1 %v12185_v50  ;;  %v6999_v54 = vshll.u32 %v6814_v40, 16  ;;  %v13393_v50 = vld [vmem:[#allocation10 + $0x6e0] ss:$8 sps:$4 sm:$0xff]   ;;  %v6997_v2 = vrot.slane %v6996_v61, 4  ;;  %v12100_v23 = vrot.slane %v7095_v51, 9 }
 0x338   :  { %10834 = vmatprep.mubr.bf16.mxu1 %v12204_v5  ;;  %11001 = vmatpush1.bf16.msra.mxu1 %v13375_v7  ;;  %v7034_v14 = vrot.slane %v7032_v19, 4  ;;  %v7015_v7 = vrot.slane %v7013_v52, 5  ;;  %v7023_v46 = vrot.slane %v7021_v17, 5  ;;  %v6820_v63 = vld [vmem:[#allocation3 + $0xc0] sm:$0x11] }
 0x339   :  { %11002 = vmatprep.subr.bf16.mxu1 %v13383_v60  ;;  %v12169_v60 = vcombine.low %v15994_v41, %v15990_v26  ;;  %v7094_v5 = vld [vmem:[#allocation3 + $0x90] sm:$0x11]  ;;  %v7001_v24 = vrot.slane %v6999_v54, 5  ;;  %v7179_v26 = vrot.slane %v7096_v29, 5  ;;  %v13407_v41 = vld [vmem:[#allocation10 + $0x6c4] ss:$8 sps:$4 sm:$0xff]  }
 0x33a   :  { %11104 = vmatpush1.bf16.msra.mxu0 %v13360_v55  ;;  %v7168_v55 = vsel %vm14039_vm7, %v12097_v16, %v7167_v11  ;;  %v16026_v47 = vsel %vm13810_vm3, %v7011_v1, %v7015_v7  ;;  %v7038_v22 = vor.u32 %v7037_v25, %v7034_v14  ;;  %v6818_v57 = vld [vmem:[#allocation3 + $0x50] sm:$0x11]  ;;  %v7041_v21 = vshll.u32 %v6820_v63, 16  ;;  %v13405_v3 = vld [vmem:[#allocation10 + $0x6c0] ss:$8 sps:$4 sm:$0xff]  }
 0x33b   :  { %11105 = vmatprep.subr.bf16.mxu0 %v13368_v15  ;;  %v7093_v15 = vld [vmem:[#allocation3 + $0x130] sm:$0xee]  ;;  %v12188_v56 = vcombine.high %v7168_v55, %v16018_v62  ;;  %v7002_v8 = vsel %vm13810_vm3, %v6997_v2, %v7001_v24  ;;  %v7027_v6 = vshll.u32 %v6818_v57, 16  ;;  %v7180_v49 = vsel %vm14039_vm7, %v12100_v23, %v7179_v26  ;;  %v7100_v18 = vld [vmem:[#allocation3 + $0xf8] sm:$0x11]  ;;  %v16054_v63 = vld [vmem:[#allocation3 + $0x40] sm:$0xff] }
 0x33c   :  { %11003 = vmatpush1.bf16.msra.mxu1 %v13381_v32  ;;  %v12221_v32 = vcombine.low %v16010_v42, %v16002_v38  ;;  %v12240_v39 = vcombine.high %v7002_v8, %v16026_v47  ;;  %v7039_v35 = vrot.slane %v7038_v22, 4  ;;  %v13413_v38 = vld [vmem:[#allocation10 + $0x6b4] ss:$8 sps:$4 sm:$0xff]   ;;  %v7043_v19 = vrot.slane %v7041_v21, 5  ;;  %v13390_v28 = vld [vmem:[#allocation10 + $0x710] ss:$8 sps:$4 sm:$0xff]  }
 0x33d   :  { %10918 = vmatmul.mubr.bf16.gmra.mxu0 %v12151_v30  ;;  %11004 = vmatprep.subr.bf16.mxu1 %v13389_v53  ;;  %v7024_v53 = vor.u32 %v7023_v46, %v7020_v27  ;;  %v13392_v30 = vld [vmem:[#allocation10 + $0x714] ss:$8 sps:$4 sm:$0xff]   ;;  %v12187_v48 = vcombine.low %v7168_v55, %v16018_v62  ;;  %v13398_v42 = vld [vmem:[#allocation10 + $0x704] ss:$8 sps:$4 sm:$0xff]   ;;  %v7029_v40 = vrot.slane %v7027_v6, 5  ;;  %v7187_v11 = vrot.slane %v7100_v18, 5 }
 0x33e   :  { %10927 = vmatprep.mubr.bf16.mxu0 %v12170_v12  ;;  %11106 = vmatpush1.bf16.msra.mxu0 %v13366_v36  ;;  %v13399_v36 = vld [vmem:[#allocation10 + $0x6d0] ss:$8 sps:$4 sm:$0xff]   ;;  %v12099_v12 = vrot.slane %v7093_v15, 9  ;;  %v7097_v52 = vld [vmem:[#allocation3 + $0x120] sm:$0xee] }
 0x33f   :  { %11107 = vmatprep.subr.bf16.mxu0 %v13374_v37  ;;  %10835 = vmatmul.mubr.bf16.gmra.mxu1 %v12203_v10  ;;  %v7175_v37 = vrot.slane %v7094_v5, 5  ;;  %v7025_v43 = vrot.slane %v7024_v53, 4  ;;  %v7099_v10 = vld [vmem:[#allocation3 + $0x20] sm:$0xee]  ;;  %v7098_v33 = vld [vmem:[#allocation3 + $0x70] sm:$0x11] }
 0x340   :  { %10844 = vmatprep.mubr.bf16.mxu1 %v12222_v59  ;;  %11005 = vmatpush2.bf16.msra.mxu1 %v13387_v4  ;;  %v13411_v17 = vld [vmem:[#allocation10 + $0x6b0] ss:$8 sps:$4 sm:$0xff]   ;;  %v12102_v16 = vrot.slane %v7099_v10, 9  ;;  %v13396_v54 = vld [vmem:[#allocation10 + $0x700] ss:$8 sps:$4 sm:$0xff]   ;;  %v12101_v25 = vrot.slane %v7097_v52, 9 }
 0x341   :  { %11006 = vmatprep.subr.bf16.mxu1 %v13395_v45  ;;  %v7176_v4 = vsel %vm14039_vm7, %v12099_v12, %v7175_v37  ;;  %v7044_v45 = vsel %vm13810_vm3, %v7039_v35, %v7043_v19  ;;  %v7030_v59 = vsel %vm13810_vm3, %v7025_v43, %v7029_v40  ;;  %v13404_v14 = vld [vmem:[#allocation10 + $0x7f4] ss:$8 sps:$4 sm:$0xff]   ;;  %v7183_v62 = vrot.slane %v7098_v33, 5  ;;  %v13417_v29 = vld [vmem:[#allocation10 + $0x6a0] ss:$8 sps:$4 sm:$0xff]  }
 0x342   :  { %11108 = vmatpush1.bf16.msra.mxu0 %v13372_v58  ;;  %v12206_v61 = vcombine.high %v7176_v4, %v7180_v49  ;;  %v12239_v58 = vcombine.low %v7002_v8, %v16026_v47  ;;  %v12258_v1 = vcombine.high %v7030_v59, %v7044_v45  ;;  %v13402_v7 = vld [vmem:[#allocation10 + $0x7f0] ss:$8 sps:$4 sm:$0xff]   ;;  %v7103_v27 = vld [vmem:[#allocation3 + $0x108] sm:$0xee]  ;;  %v12257_v22 = vcombine.low %v7030_v59, %v7044_v45  ;;  %v13439_v35 = vld [vmem:[#allocation10 + $0x874] ss:$8 sps:$4 sm:$0xff]  }
 0x343   :  { %11109 = vmatprep.subr.bf16.mxu0 %v13380_v0  ;;  %v13419_v0 = vld [vmem:[#allocation10 + $0x6a4] ss:$8 sps:$4 sm:$0xff]   ;;  %v7104_v46 = vld [vmem:[#allocation3 + $0x78] sm:$0x11]  ;;  %v7101_v5 = vld [vmem:[#allocation3 + $0x98] sm:$0xee] }
 0x344   :  { %11007 = vmatpush2.bf16.msra.mxu1 %v13393_v50  ;;  %v16048_v50 = vsel %vm14039_vm7, %v12102_v16, %v7187_v11  ;;  %v7102_v24 = vld [vmem:[#allocation3 + $0x30] sm:$0x11]  ;;  %v7195_v23 = vrot.slane %v7104_v46, 5  ;;  %v12103_v53 = vrot.slane %v7101_v5, 9  ;;  %v13422_v18 = vld [vmem:[#allocation10 + $0x7c4] ss:$8 sps:$4 sm:$0xff]  }
 0x345   :  { %10928 = vmatmul.mubr.bf16.gmra.mxu0 %v12169_v60  ;;  %11008 = vmatprep.subr.bf16.mxu1 %v13401_v9  ;;  %v13425_v9 = vld [vmem:[#allocation10 + $0x694] ss:$8 sps:$4 sm:$0xff]   ;;  %v12205_v60 = vcombine.low %v7176_v4, %v7180_v49  ;;  %v13423_v47 = vld [vmem:[#allocation10 + $0x690] ss:$8 sps:$4 sm:$0xff]   ;;  %v7191_v21 = vrot.slane %v7102_v24, 5  ;;  %v16075_v4 = vld [vmem:[#allocation3 + $0x128] sm:$0xff] }
 0x346   :  { %10937 = vmatprep.mubr.bf16.mxu0 %v12188_v56  ;;  %11110 = vmatpush1.bf16.msra.mxu0 %v13378_v34  ;;  %v7184_v34 = vsel %vm14039_vm7, %v12101_v25, %v7183_v62  ;;  %v12104_v56 = vrot.slane %v7103_v27, 9  ;;  %v7238_v26 = vld [vmem:[#allocation3 + $0x10] sm:$0xff]  ;;  %v7108_v49 = vld [vmem:[#allocation3 + $0xc0] sm:$0x11]  ;;  %v16081_v11 = vld [vmem:[#allocation3 + $0x18] sm:$0xff] }
 0x347   :  { %11111 = vmatprep.subr.bf16.mxu0 %v13386_v44  ;;  %10845 = vmatmul.mubr.bf16.gmra.mxu1 %v12221_v32  ;;  %v13410_v44 = vld [vmem:[#allocation10 + $0x7e4] ss:$8 sps:$4 sm:$0xff]   ;;  %v12224_v15 = vcombine.high %v7184_v34, %v16048_v50  ;;  %v13408_v32 = vld [vmem:[#allocation10 + $0x7e0] ss:$8 sps:$4 sm:$0xff]   ;;  %v12136_v8 = vcombine.high %v7238_v26, %v16054_v63  ;;  %v13414_v37 = vld [vmem:[#allocation10 + $0x7d0] ss:$8 sps:$4 sm:$0xff]   ;;  %v7192_v10 = vsel %vm14039_vm7, %v12103_v53, %v7191_v21 }
 0x348   :  { %10854 = vmatprep.mubr.bf16.mxu1 %v12240_v39  ;;  %11009 = vmatpush2.bf16.msra.mxu1 %v13399_v36  ;;  %v13433_v36 = vld [vmem:[#allocation10 + $0x684] ss:$8 sps:$4 sm:$0xff]   ;;  %v7317_v39 = vshrl.u32 %v16054_v63, 16  ;;  %v16068_v6 = vsel %vm14039_vm7, %v12104_v56, %v7195_v23  ;;  %v7306_v43 = vshll.u32 %v7238_v26, 16  ;;  %v7106_v40 = vld [vmem:[#allocation3 + $0x50] sm:$0x11] }
 0x349   :  { %11010 = vmatprep.subr.bf16.mxu1 %v13407_v41  ;;  %v13416_v41 = vld [vmem:[#allocation10 + $0x7d4] ss:$8 sps:$4 sm:$0xff]   ;;  %v13437_v45 = vld [vmem:[#allocation10 + $0x870] ss:$8 sps:$4 sm:$0xff]   ;;  %v7203_v16 = vrot.slane %v7108_v49, 5  ;;  %v16098_v23 = vld [vmem:[#allocation3 + $0x88] sm:$0xff] }
 0x34a   :  { %11112 = vmatpush1.bf16.msra.mxu0 %v13384_v31  ;;  %v13431_v31 = vld [vmem:[#allocation10 + $0x680] ss:$8 sps:$4 sm:$0xff]   ;;  %v13447_v59 = vld [vmem:[#allocation10 + $0x864] ss:$8 sps:$4 sm:$0xff]   ;;  %v13430_v25 = vld [vmem:[#allocation10 + $0x7b4] ss:$8 sps:$4 sm:$0xff]  }
 0x34b   :  { %11113 = vmatprep.subr.bf16.mxu0 %v13392_v30  ;;  %v7320_v30 = vshll.u32 %v16054_v63, 16  ;;  %v13445_v27 = vld [vmem:[#allocation10 + $0x860] ss:$8 sps:$4 sm:$0xff]   ;;  %v13436_v56 = vld [vmem:[#allocation10 + $0x7a4] ss:$8 sps:$4 sm:$0xff]  }
 0x34c   :  { %11011 = vmatpush2.bf16.msra.mxu1 %v13405_v3  ;;  %v7107_v3 = vld [vmem:[#allocation3 + $0xb8] sm:$0xee]  ;;  %v13434_v49 = vld [vmem:[#allocation10 + $0x7a0] ss:$8 sps:$4 sm:$0xff]  }
 0x34d   :  { %10938 = vmatmul.mubr.bf16.gmra.mxu0 %v12187_v48  ;;  %11012 = vmatprep.subr.bf16.mxu1 %v13413_v38  ;;  %v7303_v38 = vshrl.u32 %v7238_v26, 16  ;;  %v7105_v48 = vld [vmem:[#allocation3 + $0xe8] sm:$0xee]  ;;  %v7322_v52 = vrot.slane %v7320_v30, 5  ;;  %v13451_v21 = vld [vmem:[#allocation10 + $0x850] ss:$8 sps:$4 sm:$0xff]  }
 0x34e   :  { %10947 = vmatprep.mubr.bf16.mxu0 %v12206_v61  ;;  %11114 = vmatpush1.bf16.msra.mxu0 %v13390_v28  ;;  %v16044_v51 = vpop.f32.mrf.mxu1  ;;  %v12223_v28 = vcombine.low %v7184_v34, %v16048_v50  ;;  %v7319_v61 = vrot.slane %v7317_v39, 4  ;;  %v12105_v62 = vrot.slane %v7105_v48, 9  ;;  %v7273_v50 = vld [vmem:[#allocation3 + $0x80] sm:$0x11]  ;;  %v13453_v34 = vld [vmem:[#allocation10 + $0x854] ss:$8 sps:$4 sm:$0xff]   ;;  %v12153_v39 = vcombine.low %v16081_v11, %v16075_v4 }
 0x34f   :  { %11115 = vmatprep.subr.bf16.mxu0 %v13398_v42  ;;  %10855 = vmatmul.mubr.bf16.gmra.mxu1 %v12239_v58  ;;  %v12242_v42 = vcombine.high %v7192_v10, %v16068_v6  ;;  %v12106_v58 = vrot.slane %v7107_v3, 9  ;;  %v7326_v24 = vshll.u32 %v7273_v50, 16  ;;  %v13458_v3 = vld [vmem:[#allocation10 + $0x844] ss:$8 sps:$4 sm:$0xff]   ;;  %v7277_v48 = vld [vmem:[#allocation3 + $0xd8] sm:$0x11] }
 0x350   :  { %10864 = vmatprep.mubr.bf16.mxu1 %v12258_v1  ;;  %11013 = vmatpush2.bf16.msra.mxu1 %v13411_v17  ;;  %v16050_v2 = vpop.f32.mrf.mxu1  ;;  %v12135_v17 = vcombine.low %v7238_v26, %v16054_v63  ;;  %v7305_v1 = vrot.slane %v7303_v38, 4  ;;  %v7348_v63 = vshll.u32 %v16075_v4, 16  ;;  %v7331_v26 = vshrl.u32 %v16081_v11, 16 }
 0x351   :  { %11014 = vmatprep.subr.bf16.mxu1 %v13419_v0  ;;  %v13420_v0 = vld [vmem:[#allocation10 + $0x7c0] ss:$8 sps:$4 sm:$0xff]   ;;  %v16089_v46 = vsel %vm14039_vm7, %v12106_v58, %v7203_v16 }
 0x352   :  { %11116 = vmatpush1.bf16.msra.mxu0 %v13396_v54  ;;  %v16056_v55 = vpop.f32.mrf.mxu1  ;;  %v12154_v54 = vcombine.high %v16081_v11, %v16075_v4  ;;  %v7275_v58 = vld [vmem:[#allocation3 + $0xc8] sm:$0x11] }
 0x353   :  { %11117 = vmatprep.subr.bf16.mxu0 %v13404_v14  ;;  %v7308_v14 = vrot.slane %v7306_v43, 5  ;;  %v7328_v43 = vrot.slane %v7326_v24, 5 }
 0x354   :  { %11015 = vmatpush2.bf16.msra.mxu1 %v13417_v29  ;;  %v16059_v57 = vpop.f32.mrf.mxu1  ;;  %v7199_v29 = vrot.slane %v7106_v40, 5 }
 0x355   :  { %10948 = vmatmul.mubr.bf16.gmra.mxu0 %v12205_v60  ;;  %11016 = vmatprep.subr.bf16.mxu1 %v13425_v9  ;;  %v7271_v60 = vld [vmem:[#allocation3] sm:$0x11]  ;;  %v7309_v5 = vor.u32 %v7308_v14, %v7305_v1  ;;  %v13442_v1 = vld [vmem:[#allocation10 + $0x790] ss:$8 sps:$4 sm:$0xff]  }
 0x356   :  { %10957 = vmatprep.mubr.bf16.mxu0 %v12224_v15  ;;  %11118 = vmatpush2.bf16.msra.mxu0 %v13402_v7  ;;  %v7323_v7 = vor.u32 %v7322_v52, %v7319_v61  ;;  %v13428_v15 = vld [vmem:[#allocation10 + $0x7b0] ss:$8 sps:$4 sm:$0xff]   ;;  %v13456_v52 = vld [vmem:[#allocation10 + $0x840] ss:$8 sps:$4 sm:$0xff]  }
 0x357   :  { %11119 = vmatprep.subr.bf16.mxu0 %v13410_v44  ;;  %10865 = vmatmul.mubr.bf16.gmra.mxu1 %v12257_v22  ;;  %v16064_v12 = vpop.f32.mrf.mxu1  ;;  %v7345_v44 = vshrl.u32 %v16075_v4, 16  ;;  %v16096_v22 = vsel %vm14039_vm7, %v12105_v62, %v7199_v29  ;;  %v7310_v38 = vrot.slane %v7309_v5, 4  ;;  %v13450_v29 = vld [vmem:[#allocation10 + $0x784] ss:$8 sps:$4 sm:$0xff]  }
 0x358   :  { %11017 = vmatpush2.bf16.msra.mxu1 %v13423_v47  ;;  %11020 = vmatprep.mubr.bf16.mxu1 %v12136_v8  ;;  %v12241_v47 = vcombine.low %v7192_v10, %v16068_v6  ;;  %v12260_v8 = vcombine.high %v16096_v22, %v16089_v46  ;;  %v7324_v53 = vrot.slane %v7323_v7, 4  ;;  %v16138_v7 = vld [vmem:[#allocation3 + $0x138] sm:$0xff] }
 0x359   :  { %11018 = vmatprep.subr.bf16.mxu1 %v13433_v36  ;;  %v16070_v19 = vpop.f32.mrf.mxu1  ;;  %v7334_v36 = vshll.u32 %v16081_v11, 16  ;;  %v7347_v6 = vrot.slane %v7345_v44, 4  ;;  %v7340_v44 = vshll.u32 %v7275_v58, 16 }
 0x35a   :  { %11120 = vmatpush2.bf16.msra.mxu0 %v13408_v32  ;;  %v16122_v61 = vsel %vm13810_vm3, %v7324_v53, %v7328_v43  ;;  %v7281_v53 = vld [vmem:[#allocation3 + $0xa0] sm:$0x11]  ;;  %v13467_v43 = vld [vmem:[#allocation10 + $0x814] ss:$8 sps:$4 sm:$0xff]  }
 0x35b   :  { %11121 = vmatprep.subr.bf16.mxu0 %v13416_v41  ;;  %v16078_v33 = vpop.f32.mrf.mxu1  ;;  %v7312_v41 = vshll.u32 %v7271_v60, 16  ;;  %v7336_v4 = vrot.slane %v7334_v36, 5  ;;  %v7279_v36 = vld [vmem:[#allocation3 + $0x38] sm:$0x11] }
 0x35c   :  { %11019 = vmatpush2.bf16.msra.mxu1 %v13431_v31 }
 0x35d   :  { %10958 = vmatmul.mubr.bf16.gmra.mxu0 %v12223_v28  ;;  %11214 = vmatprep.subr.bf16.mxu1 %v13439_v35  ;;  %v16085_v9 = vpop.f32.mrf.mxu1  ;;  %v7350_v35 = vrot.slane %v7348_v63, 5  ;;  %v13459_v63 = vld [vmem:[#allocation10 + $0x830] ss:$8 sps:$4 sm:$0xff]  }
 0x35e   :  { %10967 = vmatprep.mubr.bf16.mxu0 %v12242_v42  ;;  %11122 = vmatpush2.bf16.msra.mxu0 %v13414_v37  ;;  %v16111_v37 = vld [vmem:[#allocation3 + $0xb0] sm:$0xff] }
 0x35f   :  { %11123 = vmatprep.subr.bf16.mxu0 %v13422_v18  ;;  %11021 = vmatmul.mubr.bf16.vlgmr.msra.gmra.mxu1 %v12135_v17  ;;  %v12172_v28 = vcombine.high %v16111_v37, %v16098_v23  ;;  %v13444_v18 = vld [vmem:[#allocation10 + $0x794] ss:$8 sps:$4 sm:$0xff]   ;;  %v7351_v16 = vor.u32 %v7350_v35, %v7347_v6  ;;  %v7387_v6 = vshrl.u32 %v16138_v7, 16  ;;  %v7390_v35 = vshll.u32 %v16138_v7, 16 }
 0x360   :  { %11030 = vmatprep.mubr.bf16.mxu1 %v12154_v54  ;;  %11215 = vmatpush1.bf16.msra.mxu1 %v13437_v45  ;;  %v7314_v45 = vrot.slane %v7312_v41, 5  ;;  %v12259_v54 = vcombine.low %v16096_v22, %v16089_v46  ;;  %v7362_v46 = vshll.u32 %v16111_v37, 16  ;;  %v13448_v22 = vld [vmem:[#allocation10 + $0x780] ss:$8 sps:$4 sm:$0xff]  }
 0x361   :  { %11216 = vmatprep.subr.bf16.mxu1 %v13447_v59  ;;  %v13461_v59 = vld [vmem:[#allocation10 + $0x834] ss:$8 sps:$4 sm:$0xff]  }
 0x362   :  { %11124 = vmatpush2.bf16.msra.mxu0 %v13420_v0  ;;  %v7376_v0 = vshll.u32 %v16098_v23, 16  ;;  %v16133_v14 = vsel %vm13810_vm3, %v7310_v38, %v7314_v45 }
 0x363   :  { %11125 = vmatprep.subr.bf16.mxu0 %v13430_v25  ;;  %v16102_v32 = vpop.f32.mrf.mxu1  ;;  %v7354_v25 = vshll.u32 %v7277_v48, 16  ;;  %v7368_v48 = vshll.u32 %v7279_v36, 16 }
 0x364   :  { %11217 = vmatpush1.bf16.msra.mxu1 %v13445_v27  ;;  %v10457_v31 = vpop.f32.mrf.mxu0  ;;  %v7359_v27 = vshrl.u32 %v16111_v37, 16  ;;  %v7378_v24 = vrot.slane %v7376_v0, 5  ;;  %v7285_v0 = vld [vmem:[#allocation3 + $0x48] sm:$0x11] }
 0x365   :  { %10968 = vmatmul.mubr.bf16.gmra.mxu0 %v12241_v47  ;;  %11218 = vmatprep.subr.bf16.mxu1 %v13453_v34  ;;  %v16109_v30 = vadd.f32 %v10457_v31, %v16044_v51  ;;  %v7333_v51 = vrot.slane %v7331_v26, 4  ;;  %v16118_v40 = vpop.f32.mrf.mxu1  ;;  %v12138_v34 = vcombine.high %v16133_v14, %v16122_v61  ;;  %v13464_v47 = vld [vmem:[#allocation10 + $0x824] ss:$8 sps:$4 sm:$0xff]   ;;  %v7356_v41 = vrot.slane %v7354_v25, 5 }
 0x366   :  { %10977 = vmatprep.mubr.bf16.mxu0 %v12260_v8  ;;  %11126 = vmatpush2.bf16.msra.mxu0 %v13428_v15  ;;  %v10459_v10 = vpop.f32.mrf.mxu0  ;;  %v12171_v15 = vcombine.low %v16111_v37, %v16098_v23  ;;  %v13462_v37 = vld [vmem:[#allocation10 + $0x820] ss:$8 sps:$4 sm:$0xff]  }
 0x367   :  { %11127 = vmatprep.subr.bf16.mxu0 %v13436_v56  ;;  %11031 = vmatmul.mubr.bf16.gmra.mxu1 %v12153_v39  ;;  %v16116_v42 = vadd.f32 %v10459_v10, %v16050_v2  ;;  %v7373_v2 = vshrl.u32 %v16098_v23, 16  ;;  %v16142_v60 = vpop.f32.mrf.mxu1  ;;  %v16148_v56 = vld [vmem:[#allocation2 + $0x110] sm:$0xff]  ;;  %v7361_v23 = vrot.slane %v7359_v27, 4  ;;  %v7342_v39 = vrot.slane %v7340_v44, 5 }
 0x368   :  { %11040 = vmatprep.mubr.bf16.mxu1 %v12172_v28  ;;  %11219 = vmatpush1.bf16.msra.mxu1 %v13451_v21  ;;  %v10461_v17 = vpop.f32.mrf.mxu0  ;;  %v12190_v26 = vcombine.high %v16138_v7, %v16148_v56  ;;  %v7364_v21 = vrot.slane %v7362_v46, 5  ;;  %v7401_v28 = vshrl.u32 %v16148_v56, 16  ;;  %v7404_v10 = vshll.u32 %v16148_v56, 16  ;;  %v13472_v46 = vld [vmem:[#allocation10 + $0x804] ss:$8 sps:$4 sm:$0xff]  }
 0x369   :  { %11220 = vmatprep.subr.bf16.mxu1 %v13458_v3  ;;  %v16125_v11 = vadd.f32 %v10461_v17, %v16056_v55  ;;  %v7337_v55 = vor.u32 %v7336_v4, %v7333_v51  ;;  %v7375_v5 = vrot.slane %v7373_v2, 4  ;;  %v16152_v31 = vpop.f32.mrf.mxu1  ;;  %v12137_v51 = vcombine.low %v16133_v14, %v16122_v61 }
 0x36a   :  { %11128 = vmatpush2.bf16.msra.mxu0 %v13434_v49  ;;  %v10463_v62 = vpop.f32.mrf.mxu0  ;;  %v7365_v45 = vor.u32 %v7364_v21, %v7361_v23  ;;  %v7392_v61 = vrot.slane %v7390_v35, 5  ;;  %v7406_v27 = vrot.slane %v7404_v10, 5  ;;  %v16205_v10 = vld [vmem:[#allocation3 + $0x20] sm:$0xff] }
 0x36b   :  { %11129 = vmatprep.subr.bf16.mxu0 %v13444_v18  ;;  %v16136_v50 = vadd.f32 %v10463_v62, %v16059_v57  ;;  %v7352_v57 = vrot.slane %v7351_v16, 4  ;;  %v7338_v8 = vrot.slane %v7337_v55, 4  ;;  %v7379_v38 = vor.u32 %v7378_v24, %v7375_v5  ;;  %v16171_v16 = vld [vmem:[#allocation3 + $0x120] sm:$0xff]  ;;  %v7246_v62 = vld [vmem:[#allocation3 + $0x58] sm:$0xff]  ;;  %v7283_v24 = vld [vmem:[#allocation3 + $0xa8] sm:$0x11] }
 0x36c   :  { %11221 = vmatpush1.bf16.msra.mxu1 %v13456_v52  ;;  %v7382_v52 = vshll.u32 %v7281_v53, 16  ;;  %v7403_v55 = vrot.slane %v7401_v28, 4  ;;  %v7366_v44 = vrot.slane %v7365_v45, 4  ;;  %v7432_v53 = vshll.u32 %v16171_v16, 16  ;;  %v13473_v28 = vld [vmem:[#allocation10 + $0x8f0] ss:$8 sps:$4 sm:$0xff]  }
 0x36d   :  { %10978 = vmatmul.mubr.bf16.gmra.mxu0 %v12259_v54  ;;  %11222 = vmatprep.subr.bf16.mxu1 %v13461_v59  ;;  %v16158_v3 = vsel %vm13810_vm3, %v7352_v57, %v7356_v41  ;;  %v7343_v4 = vsel %vm13810_vm3, %v7338_v8, %v7342_v39  ;;  %v7389_v54 = vrot.slane %v7387_v6, 4  ;;  %v7380_v14 = vrot.slane %v7379_v38, 4  ;;  %v13475_v8 = vld [vmem:[#allocation10 + $0x8f4] ss:$8 sps:$4 sm:$0xff]   ;;  %v13480_v45 = vld [vmem:[#allocation10 + $0x8e4] ss:$8 sps:$4 sm:$0xff]  }
 0x36e   :  { %11130 = vmatpush2.bf16.msra.mxu0 %v13442_v1  ;;  %11133 = vmatprep.mubr.bf16.mxu0 %v12138_v34  ;;  %v12156_v59 = vcombine.high %v7343_v4, %v16158_v3  ;;  %v12189_v1 = vcombine.low %v16138_v7, %v16148_v56  ;;  %v12208_v34 = vcombine.high %v7246_v62, %v16171_v16  ;;  %v7370_v57 = vrot.slane %v7368_v48, 5 }
 0x36f   :  { %11131 = vmatprep.subr.bf16.mxu0 %v13450_v29  ;;  %11041 = vmatmul.mubr.bf16.gmra.mxu1 %v12171_v15  ;;  %v7407_v36 = vor.u32 %v7406_v27, %v7403_v55  ;;  %v7429_v41 = vshrl.u32 %v16171_v16, 16  ;;  %v7396_v21 = vshll.u32 %v7283_v24, 16  ;;  %v7415_v6 = vshrl.u32 %v7246_v62, 16 }
 0x370   :  { %11050 = vmatprep.mubr.bf16.mxu1 %v12190_v26  ;;  %11223 = vmatpush1.bf16.msra.mxu1 %v13459_v63  ;;  %v10467_v49 = vpop.f32.mrf.mxu0  ;;  %v7384_v63 = vrot.slane %v7382_v52, 5  ;;  %v13470_v26 = vld [vmem:[#allocation10 + $0x800] ss:$8 sps:$4 sm:$0xff]   ;;  %v7371_v23 = vsel %vm13810_vm3, %v7366_v44, %v7370_v57  ;;  %v7418_v35 = vshll.u32 %v7246_v62, 16  ;;  %v12207_v38 = vcombine.low %v7246_v62, %v16171_v16  ;;  %v13483_v44 = vld [vmem:[#allocation10 + $0x8d4] ss:$8 sps:$4 sm:$0xff]  }
 0x371   :  { %11224 = vmatprep.subr.bf16.mxu1 %v13464_v47  ;;  %v16163_v18 = vadd.f32 %v10467_v49, %v16064_v12  ;;  %v13465_v12 = vld [vmem:[#allocation10 + $0x810] ss:$8 sps:$4 sm:$0xff]   ;;  %v7393_v47 = vor.u32 %v7392_v61, %v7389_v54  ;;  %v16207_v48 = vrot.slane %v7407_v36, 4  ;;  %v7443_v57 = vshrl.u32 %v16205_v10, 16 }
 0x372   :  { %11132 = vmatpush2.bf16.msra.mxu0 %v13448_v22  ;;  %v10469_v17 = vpop.f32.mrf.mxu0  ;;  %v7410_v22 = vshll.u32 %v7285_v0, 16  ;;  %v7417_v0 = vrot.slane %v7415_v6, 4  ;;  %v7420_v54 = vrot.slane %v7418_v35, 5  ;;  %v7446_v24 = vshll.u32 %v16205_v10, 16 }
 0x373   :  { %v16169_v58 = vpop.f32.mrf.mxu1  ;;  %v16175_v2 = vadd.f32 %v10469_v17, %v16070_v19 }
 0x374   :  { %11225 = vmatpush1.bf16.msra.mxu1 %v13462_v37  ;;  %v10471_v25 = vpop.f32.mrf.mxu0  ;;  %v16201_v37 = vld [vmem:[#allocation3 + $0x98] sm:$0xff] }
 0x375   :  { %11134 = vmatmul.mubr.bf16.vlgmr.msra.gmra.mxu0 %v12137_v51  ;;  %11226 = vmatprep.subr.bf16.mxu1 %v13467_v43  ;;  %v16179_v29 = vpop.f32.mrf.mxu1  ;;  %v16182_v19 = vadd.f32 %v10471_v25, %v16078_v33  ;;  %v16192_v33 = vsel %vm13810_vm3, %v7380_v14, %v7384_v63  ;;  %v7412_v43 = vrot.slane %v7410_v22, 5  ;;  %v7431_v51 = vrot.slane %v7429_v41, 4  ;;  %v13478_v14 = vld [vmem:[#allocation10 + $0x8e0] ss:$8 sps:$4 sm:$0xff]  }
 0x376   :  { %11143 = vmatprep.mubr.bf16.mxu0 %v12156_v59  ;;  %v10473_v15 = vpop.f32.mrf.mxu0  ;;  %v12174_v49 = vcombine.high %v7371_v23, %v16192_v33  ;;  %v12226_v17 = vcombine.high %v16205_v10, %v16201_v37  ;;  %v7398_v59 = vrot.slane %v7396_v21, 5  ;;  %v7457_v25 = vshrl.u32 %v16201_v37, 16 }
 0x377   :  { %11051 = vmatmul.mubr.bf16.gmra.mxu1 %v12189_v1  ;;  %v16185_v7 = vpop.f32.mrf.mxu1  ;;  %v16188_v5 = vadd.f32 %v10473_v15, %v16085_v9  ;;  %v12155_v9 = vcombine.low %v7343_v4, %v16158_v3  ;;  %v7394_v3 = vrot.slane %v7393_v47, 4  ;;  %v7434_v4 = vrot.slane %v7432_v53, 5  ;;  %v7289_v1 = vld [vmem:[#allocation3 + $0x70] sm:$0x11]  ;;  %v7287_v15 = vld [vmem:[#allocation3 + $0x28] sm:$0x11] }
 0x378   :  { %11060 = vmatprep.mubr.bf16.mxu1 %v12208_v34  ;;  %11227 = vmatpush1.bf16.msra.mxu1 %v13465_v12  ;;  %v7460_v62 = vshll.u32 %v16201_v37, 16  ;;  %v12173_v47 = vcombine.low %v7371_v23, %v16192_v33  ;;  %v7438_v36 = vshll.u32 %v7289_v1, 16  ;;  %v7459_v21 = vrot.slane %v7457_v25, 4 }
 0x379   :  { %11228 = vmatprep.subr.bf16.mxu1 %v13472_v46  ;;  %v16199_v39 = vpop.f32.mrf.mxu1  ;;  %v16220_v55 = vsel %vm13810_vm3, %v7394_v3, %v7398_v59  ;;  %v7435_v34 = vor.u32 %v7434_v4, %v7431_v51  ;;  %v7424_v23 = vshll.u32 %v7287_v15, 16  ;;  %v7445_v3 = vrot.slane %v7443_v57, 4  ;;  %v16270_v15 = vld [vmem:[#allocation3 + $0xb8] sm:$0xff] }
 0x37a   :  { %v7462_v6 = vrot.slane %v7460_v62, 5  ;;  %v7448_v51 = vrot.slane %v7446_v24, 5 }
 0x37b   :  { %v7436_v35 = vrot.slane %v7435_v34, 4  ;;  %v7426_v59 = vrot.slane %v7424_v23, 5  ;;  %v13492_v23 = vld [vmem:[#allocation10 + $0x8a4] ss:$8 sps:$4 sm:$0xff]  }
 0x37c   :  { %11229 = vmatpush1.bf16.msra.mxu1 %v13470_v26  ;;  %v7421_v26 = vor.u32 %v7420_v54, %v7417_v0  ;;  %v7449_v25 = vor.u32 %v7448_v51, %v7445_v3  ;;  %v12262_v51 = vcombine.high %v16270_v15, %v16148_v56 }
 0x37d   :  { %11144 = vmatmul.mubr.bf16.gmra.mxu0 %v12155_v9  ;;  %11230 = vmatprep.subr.bf16.mxu1 %v13475_v8  ;;  %v16240_v8 = vld [vmem:[#allocation3 + $0xe8] sm:$0xff]  ;;  %v13481_v9 = vld [vmem:[#allocation10 + $0x8d0] ss:$8 sps:$4 sm:$0xff]  }
 0x37e   :  { %11153 = vmatprep.mubr.bf16.mxu0 %v12174_v49  ;;  %v10477_v52 = vpop.f32.mrf.mxu0  ;;  %v7422_v4 = vrot.slane %v7421_v26, 4  ;;  %v7485_v1 = vshrl.u32 %v16240_v8, 16 }
 0x37f   :  { %v16212_v16 = vadd.f32 %v10477_v52, %v16102_v32  ;;  %v16214_v12 = vpop.f32.mrf.mxu1  ;;  %11061 = vmatmul.mubr.bf16.gmra.mxu1 %v12207_v38  ;;  %v16225_v32 = vsel %vm13810_vm3, %v16207_v48, %v7412_v43  ;;  %v7250_v38 = vld [vmem:[#allocation3 + $0x108] sm:$0xff] }
 0x380   :  { %v10479_v61 = vpop.f32.mrf.mxu0  ;;  %11070 = vmatprep.mubr.bf16.mxu1 %v12226_v17  ;;  %11231 = vmatpush2.bf16.msra.mxu1 %v13473_v28  ;;  %v12192_v41 = vcombine.high %v16220_v55, %v16225_v32  ;;  %v13486_v43 = vld [vmem:[#allocation10 + $0x8c4] ss:$8 sps:$4 sm:$0xff]   ;;  %v12244_v28 = vcombine.high %v7250_v38, %v16240_v8  ;;  %v13484_v17 = vld [vmem:[#allocation10 + $0x8c0] ss:$8 sps:$4 sm:$0xff]   ;;  %v12191_v34 = vcombine.low %v16220_v55, %v16225_v32  ;;  %v7471_v57 = vshrl.u32 %v7250_v38, 16 }
 0x381   :  { %v16228_v27 = vadd.f32 %v10479_v61, %v16118_v40  ;;  %v16230_v46 = vpop.f32.mrf.mxu1  ;;  %11232 = vmatprep.subr.bf16.mxu1 %v13480_v45  ;;  %v7440_v45 = vrot.slane %v7438_v36, 5  ;;  %v13489_v61 = vld [vmem:[#allocation10 + $0x8b4] ss:$8 sps:$4 sm:$0xff]   ;;  %v7474_v24 = vshll.u32 %v7250_v38, 16  ;;  %v12243_v32 = vcombine.low %v7250_v38, %v16240_v8 }
 0x382   :  { %v10481_v63 = vpop.f32.mrf.mxu0  ;;  %v7473_v38 = vrot.slane %v7471_v57, 4 }
 0x383   :  { %v16236_v22 = vadd.f32 %v10481_v63, %v16142_v60  ;;  %v16238_v40 = vpop.f32.mrf.mxu1  ;;  %v12225_v60 = vcombine.low %v16205_v10, %v16201_v37  ;;  %v7291_v37 = vld [vmem:[#allocation3 + $0xf8] sm:$0x11]  ;;  %v7463_v10 = vor.u32 %v7462_v6, %v7459_v21  ;;  %v16256_v0 = vsel %vm13810_vm3, %v7436_v35, %v7440_v45  ;;  %v7558_v35 = vld [vmem:[#allocation3 + $0x10] sm:$0xee] }
 0x384   :  { %v10483_v53 = vpop.f32.mrf.mxu0  ;;  %11233 = vmatpush2.bf16.msra.mxu1 %v13478_v14  ;;  %v7488_v14 = vshll.u32 %v16240_v8, 16  ;;  %v7452_v36 = vshll.u32 %v7291_v37, 16  ;;  %v7487_v6 = vrot.slane %v7485_v1, 4  ;;  %v7295_v8 = vld [vmem:[#allocation3 + $0x78] sm:$0x11]  ;;  %v7476_v37 = vrot.slane %v7474_v24, 5 }
 0x385   :  { %11154 = vmatmul.mubr.bf16.gmra.mxu0 %v12173_v47  ;;  %v16245_v33 = vadd.f32 %v10483_v53, %v16152_v31  ;;  %v16249_v49 = vpop.f32.mrf.mxu1  ;;  %11234 = vmatprep.subr.bf16.mxu1 %v13483_v44  ;;  %v7293_v31 = vld [vmem:[#allocation3 + $0x30] sm:$0x11]  ;;  %v16266_v44 = vsel %vm13810_vm3, %v7422_v4, %v7426_v59  ;;  %v7560_v47 = vld [vmem:[#allocation3 + $0x40] sm:$0xee]  ;;  %v7559_v4 = vld [vmem:[#allocation3] sm:$0x11] }
 0x386   :  { %11163 = vmatprep.mubr.bf16.mxu0 %v12192_v41  ;;  %v7466_v62 = vshll.u32 %v7293_v31, 16  ;;  %v12210_v26 = vcombine.high %v16266_v44, %v16256_v0  ;;  %v7464_v41 = vrot.slane %v7463_v10, 4  ;;  %v13487_v53 = vld [vmem:[#allocation10 + $0x8b0] ss:$8 sps:$4 sm:$0xff]   ;;  %v12108_v10 = vrot.slane %v7560_v47, 9 }
 0x387   :  { %v16252_v52 = vpop.f32.mrf.mxu1  ;;  %11071 = vmatmul.mubr.bf16.gmra.mxu1 %v12225_v60  ;;  %v7490_v60 = vrot.slane %v7488_v14, 5  ;;  %v7297_v1 = vld [vmem:[#allocation3 + $0x50] sm:$0x11]  ;;  %v13490_v14 = vld [vmem:[#allocation10 + $0x8a0] ss:$8 sps:$4 sm:$0xff]   ;;  %v7624_v47 = vrot.slane %v7559_v4, 5 }
 0x388   :  { %11080 = vmatprep.mubr.bf16.mxu1 %v12244_v28  ;;  %11235 = vmatpush2.bf16.msra.mxu1 %v13481_v9  ;;  %v7561_v9 = vld [vmem:[#allocation3 + $0x80] sm:$0x11]  ;;  %v7450_v28 = vrot.slane %v7449_v25, 4  ;;  %v7468_v3 = vrot.slane %v7466_v62, 5  ;;  %v12107_v25 = vrot.slane %v7558_v35, 9 }
 0x389   :  { %v16258_v54 = vpop.f32.mrf.mxu1  ;;  %11236 = vmatprep.subr.bf16.mxu1 %v13486_v43  ;;  %v7491_v57 = vor.u32 %v7490_v60, %v7487_v6  ;;  %v13495_v24 = vld [vmem:[#allocation10 + $0x894] ss:$8 sps:$4 sm:$0xff]   ;;  %v7564_v35 = vld [vmem:[#allocation3 + $0x128] sm:$0xee] }
 0x38b   :  { %v16268_v63 = vpop.f32.mrf.mxu1 }
 0x38c   :  { %11237 = vmatpush2.bf16.msra.mxu1 %v13484_v17  ;;  %v7628_v17 = vrot.slane %v7561_v9, 5 }
 0x38d   :  { %v10487_v55 = vpop.f32.mrf.mxu0  ;;  %11164 = vmatmul.mubr.bf16.gmra.mxu0 %v12191_v34  ;;  %v16275_v21 = vpop.f32.mrf.mxu1  ;;  %11238 = vmatprep.subr.bf16.mxu1 %v13489_v61  ;;  %v16289_v61 = vsel %vm13810_vm3, %v7464_v41, %v7468_v3 }
 0x38e   :  { %v16278_v43 = vadd.f32 %v10487_v55, %v16169_v58  ;;  %11173 = vmatprep.mubr.bf16.mxu0 %v12210_v26  ;;  %v7454_v58 = vrot.slane %v7452_v36, 5  ;;  %v7502_v26 = vshll.u32 %v16270_v15, 16  ;;  %v12209_v36 = vcombine.low %v16266_v44, %v16256_v0 }
 0x38f   :  { %v10489_v45 = vpop.f32.mrf.mxu0  ;;  %v16282_v31 = vpop.f32.mrf.mxu1  ;;  %11081 = vmatmul.mubr.bf16.gmra.mxu1 %v12243_v32  ;;  %v7477_v55 = vor.u32 %v7476_v37, %v7473_v38  ;;  %v7494_v32 = vshll.u32 %v7297_v1, 16  ;;  %v16306_v60 = vsel %vm14039_vm7, %v12108_v10, %v7628_v17  ;;  %v12261_v0 = vcombine.low %v16270_v15, %v16148_v56  ;;  %v13498_v17 = vld [vmem:[#allocation10 + $0x884] ss:$8 sps:$4 sm:$0xff]  }
 0x390   :  { %v16285_v59 = vadd.f32 %v10489_v45, %v16179_v29  ;;  %11090 = vmatprep.mubr.bf16.mxu1 %v12262_v51  ;;  %11239 = vmatpush2.bf16.msra.mxu1 %v13487_v53  ;;  %v7499_v29 = vshrl.u32 %v16270_v15, 16  ;;  %v7455_v9 = vsel %vm13810_vm3, %v7450_v28, %v7454_v58  ;;  %v7480_v44 = vshll.u32 %v7295_v8, 16  ;;  %v13493_v28 = vld [vmem:[#allocation10 + $0x890] ss:$8 sps:$4 sm:$0xff]   ;;  %v7563_v8 = vld [vmem:[#allocation3 + $0xc8] sm:$0x11] }
 0x391   :  { %v10491_v62 = vpop.f32.mrf.mxu0  ;;  %v16291_v34 = vpop.f32.mrf.mxu1  ;;  %11240 = vmatprep.subr.bf16.mxu1 %v13492_v23  ;;  %v7301_v23 = vld [vmem:[#allocation3 + $0x110] sm:$0x11]  ;;  %v7565_v51 = vld [vmem:[#allocation3 + $0xd8] sm:$0x11]  ;;  %v7492_v45 = vrot.slane %v7491_v57, 4  ;;  %v7625_v37 = vsel %vm14039_vm7, %v12107_v25, %v7624_v47  ;;  %v7504_v10 = vrot.slane %v7502_v26, 5 }
 0x392   :  { %v16298_v41 = vadd.f32 %v10491_v62, %v16185_v7  ;;  %v12228_v7 = vcombine.high %v7455_v9, %v16289_v61  ;;  %v12140_v56 = vcombine.high %v7625_v37, %v16306_v60  ;;  %v7562_v15 = vld [vmem:[#allocation3 + $0x18] sm:$0xee]  ;;  %v7496_v62 = vrot.slane %v7494_v32, 5  ;;  %v13496_v26 = vld [vmem:[#allocation10 + $0x880] ss:$8 sps:$4 sm:$0xff]  }
 0x393   :  { %v10493_v53 = vpop.f32.mrf.mxu0  ;;  %v16302_v6 = vpop.f32.mrf.mxu1  ;;  %v7482_v47 = vrot.slane %v7480_v44, 5 }
 0x394   :  { %v16309_v3 = vadd.f32 %v10493_v53, %v16199_v39  ;;  %11241 = vmatpush2.bf16.msra.mxu1 %v13490_v14  ;;  %v7501_v39 = vrot.slane %v7499_v29, 4  ;;  %v7478_v14 = vrot.slane %v7477_v55, 4  ;;  %v7522_v29 = vshll.u32 %v7301_v23, 16 }
 0x395   :  { %v10497_v4 = vpop.f32.mrf.mxu0  ;;  %11174 = vmatmul.mubr.bf16.gmra.mxu0 %v12209_v36  ;;  %v16314_v38 = vpop.f32.mrf.mxu1  ;;  %11242 = vmatprep.subr.bf16.mxu1 %v13495_v24  ;;  %v12110_v24 = vrot.slane %v7564_v35, 9  ;;  %v7636_v36 = vrot.slane %v7565_v51, 5  ;;  %v7632_v35 = vrot.slane %v7563_v8, 5 }
 0x396   :  { %v16319_v58 = vadd.f32 %v10497_v4, %v16214_v12  ;;  %11183 = vmatprep.mubr.bf16.mxu0 %v12228_v7  ;;  %v7299_v12 = vld [vmem:[#allocation3 + $0xc0] sm:$0x11]  ;;  %v7497_v7 = vsel %vm13810_vm3, %v7492_v45, %v7496_v62  ;;  %v7505_v32 = vor.u32 %v7504_v10, %v7501_v39  ;;  %v7483_v23 = vsel %vm13810_vm3, %v7478_v14, %v7482_v47  ;;  %v7566_v62 = vld [vmem:[#allocation3 + $0xb0] sm:$0xee] }
 0x397   :  { %v10499_v1 = vpop.f32.mrf.mxu0  ;;  %v16322_v57 = vpop.f32.mrf.mxu1  ;;  %11091 = vmatmul.mubr.bf16.gmra.mxu1 %v12261_v0  ;;  %v12109_v0 = vrot.slane %v7562_v15, 9  ;;  %v7637_v45 = vsel %vm14039_vm7, %v12110_v24, %v7636_v36  ;;  %v12246_v10 = vcombine.high %v7483_v23, %v7497_v7  ;;  %v7524_v15 = vrot.slane %v7522_v29, 5  ;;  %v7567_v24 = vld [vmem:[#allocation3 + $0x38] sm:$0x11] }
 0x398   :  { %v16325_v25 = vadd.f32 %v10499_v1, %v16230_v46  ;;  %11243 = vmatpush2.bf16.msra.mxu1 %v13493_v28  ;;  %11246 = vmatprep.mubr.bf16.mxu1 %v12140_v56  ;;  %v12227_v46 = vcombine.low %v7455_v9, %v16289_v61  ;;  %v7508_v28 = vshll.u32 %v7299_v12, 16  ;;  %v12139_v61 = vcombine.low %v7625_v37, %v16306_v60 }
 0x399   :  { %v10501_v53 = vpop.f32.mrf.mxu0  ;;  %v16329_v55 = vpop.f32.mrf.mxu1  ;;  %11244 = vmatprep.subr.bf16.mxu1 %v13498_v17  ;;  %v7568_v17 = vld [vmem:[#allocation3 + $0x88] sm:$0xee]  ;;  %v7506_v9 = vrot.slane %v7505_v32, 4  ;;  %v7633_v1 = vsel %vm14039_vm7, %v12109_v0, %v7632_v35  ;;  %v7525_v32 = vsel %vm13810_vm3, %v16207_v48, %v7524_v15  ;;  %v12111_v35 = vrot.slane %v7566_v62, 9 }
 0x39a   :  { %v16332_v51 = vadd.f32 %v10501_v53, %v16238_v40  ;;  %v7569_v40 = vld [vmem:[#allocation3 + $0xa0] sm:$0x11]  ;;  %v7510_v47 = vrot.slane %v7508_v28, 5 }
 0x39b   :  { %v10503_v44 = vpop.f32.mrf.mxu0  ;;  %v16337_v4 = vpop.f32.mrf.mxu1  ;;  %v7644_v60 = vrot.slane %v7569_v40, 5  ;;  %v7570_v40 = vld [vmem:[#allocation3 + $0x138] sm:$0xee] }
 0x39c   :  { %v16342_v39 = vadd.f32 %v10503_v44, %v16249_v49  ;;  %11245 = vmatpush2.bf16.msra.mxu1 %v13496_v26  ;;  %v12158_v49 = vcombine.high %v7633_v1, %v7637_v45  ;;  %v12112_v26 = vrot.slane %v7568_v17, 9 }
 0x39d   :  { %v10507_v56 = vpop.f32.mrf.mxu0  ;;  %11184 = vmatmul.mubr.bf16.gmra.mxu0 %v12227_v46  ;;  %v16345_v8 = vpop.f32.mrf.mxu1  ;;  %v7640_v46 = vrot.slane %v7567_v24, 5 }
 0x39e   :  { %v16350_v14 = vadd.f32 %v10507_v56, %v16252_v52  ;;  %11193 = vmatprep.mubr.bf16.mxu0 %v12246_v10  ;;  %v7511_v52 = vsel %vm13810_vm3, %v7506_v9, %v7510_v47  ;;  %v7645_v17 = vsel %vm14039_vm7, %v12112_v26, %v7644_v60  ;;  %v7573_v9 = vld [vmem:[#allocation3 + $0x48] sm:$0x11] }
 0x39f   :  { %v10509_v36 = vpop.f32.mrf.mxu0  ;;  %v10570_v12 = vpop.f32.mrf.mxu1  ;;  %11247 = vmatmul.mubr.bf16.vlgmr.msra.gmra.mxu1 %v12139_v61  ;;  %v12264_v13 = vcombine.high %v7511_v52, %v7525_v32  ;;  %v7571_v61 = vld [vmem:[#allocation3 + $0xa8] sm:$0x11]  ;;  %v7652_v26 = vrot.slane %v7573_v9, 5 }
 0x3a0   :  { %v16353_v37 = vadd.f32 %v10509_v36, %v16258_v54  ;;  %v16356_v29 = vadd.f32 %v10570_v12, %v16109_v30  ;;  %11256 = vmatprep.mubr.bf16.mxu1 %v12158_v49  ;;  %v12245_v30 = vcombine.low %v7483_v23, %v7497_v7  ;;  %v7641_v23 = vsel %vm14039_vm7, %v12111_v35, %v7640_v46  ;;  %v7575_v9 = vld [vmem:[#allocation3 + $0x28] sm:$0x11] }
 0x3a1   :  { %v10511_v53 = vpop.f32.mrf.mxu0  ;;  %v10572_v0 = vpop.f32.mrf.mxu1  ;;  %v12176_v62 = vcombine.high %v7641_v23, %v7645_v17  ;;  %v12113_v36 = vrot.slane %v7570_v40, 9  ;;  %v7648_v47 = vrot.slane %v7571_v61, 5 }
 0x3a2   :  { %v16364_v44 = vadd.f32 %v10511_v53, %v16268_v63  ;;  %v16367_v54 = vadd.f32 %v10572_v0, %v16116_v42  ;;  %v7572_v63 = vld [vmem:[#allocation3 + $0xf0] sm:$0xee]  ;;  %v12157_v42 = vcombine.low %v7633_v1, %v7637_v45  ;;  %v12263_v0 = vcombine.low %v7511_v52, %v7525_v32 }
 0x3a3   :  { %v10513_v28 = vpop.f32.mrf.mxu0  ;;  %v10574_v10 = vpop.f32.mrf.mxu1  ;;  %v12114_v12 = vrot.slane %v7572_v63, 9  ;;  %v7574_v63 = vld [vmem:[#allocation3 + $0x58] sm:$0xee] }
 0x3a4   :  { %v16372_v56 = vadd.f32 %v10513_v28, %v16275_v21  ;;  %v16375_v48 = vadd.f32 %v10574_v10, %v16125_v11  ;;  %v7577_v10 = vld [vmem:[#allocation3 + $0x70] sm:$0x11] }
 0x3a5   :  { %v10517_v15 = vpop.f32.mrf.mxu0  ;;  %11194 = vmatmul.mubr.bf16.gmra.mxu0 %v12245_v30  ;;  %v10576_v7 = vpop.f32.mrf.mxu1  ;;  %v7649_v30 = vsel %vm14039_vm7, %v12113_v36, %v7648_v47 }
 0x3a6   :  { %v16380_v49 = vadd.f32 %v10517_v15, %v16282_v31  ;;  %11203 = vmatprep.mubr.bf16.mxu0 %v12264_v13  ;;  %v16383_v21 = vadd.f32 %v10576_v7, %v16136_v50 }
 0x3a7   :  { %v10519_v11 = vpop.f32.mrf.mxu0  ;;  %v10580_v24 = vpop.f32.mrf.mxu1  ;;  %11257 = vmatmul.mubr.bf16.gmra.mxu1 %v12157_v42  ;;  %v7660_v42 = vrot.slane %v7577_v10, 5  ;;  %v7579_v10 = vld [vmem:[#allocation3 + $0xf8] sm:$0x11] }
 0x3a8   :  { %v16386_v45 = vadd.f32 %v10519_v11, %v16291_v34  ;;  %v16389_v1 = vadd.f32 %v10580_v24, %v16163_v18  ;;  %11266 = vmatprep.mubr.bf16.mxu1 %v12176_v62  ;;  %v7653_v34 = vsel %vm14039_vm7, %v12114_v12, %v7652_v26  ;;  %v12115_v62 = vrot.slane %v7574_v63, 9  ;;  %v7580_v26 = vld [vmem:[#allocation3 + $0x98] sm:$0xee] }
 0x3a9   :  { %v10521_v31 = vpop.f32.mrf.mxu0  ;;  %v10582_v60 = vpop.f32.mrf.mxu1  ;;  %v12194_v61 = vcombine.high %v7649_v30, %v7653_v34 }
 0x3aa   :  { %v16392_v50 = vadd.f32 %v10521_v31, %v16302_v6  ;;  %v16395_v53 = vadd.f32 %v10582_v60, %v16175_v2  ;;  %v7576_v6 = vld [vmem:[#allocation3 + $0x120] sm:$0xee]  ;;  %v12175_v2 = vcombine.low %v7641_v23, %v7645_v17  ;;  %v7581_v31 = vld [vmem:[#allocation3 + $0x30] sm:$0x11] }
 0x3ab   :  { %v10523_v35 = vpop.f32.mrf.mxu0  ;;  %v10584_v46 = vpop.f32.mrf.mxu1 }
 0x3ac   :  { %v16402_v18 = vadd.f32 %v10523_v35, %v16314_v38  ;;  %v16405_v28 = vadd.f32 %v10584_v46, %v16182_v19  ;;  %v12116_v19 = vrot.slane %v7576_v6, 9 }
 0x3ad   :  { %v10527_v40 = vpop.f32.mrf.mxu0  ;;  %11204 = vmatmul.mubr.bf16.gmra.mxu0 %v12263_v0  ;;  %v10586_v52 = vpop.f32.mrf.mxu1  ;;  %v12193_v0 = vcombine.low %v7649_v30, %v7653_v34 }
 0x3ae   :  { %v16408_v32 = vadd.f32 %v10527_v40, %v16322_v57  ;;  %v16411_v13 = vadd.f32 %v10586_v52, %v16188_v5  ;;  %v7656_v5 = vrot.slane %v7575_v9, 5  ;;  %v7668_v52 = vrot.slane %v7581_v31, 5  ;;  %v7583_v31 = vld [vmem:[#allocation3 + $0x78] sm:$0x11] }
 0x3af   :  { %v10529_v38 = vpop.f32.mrf.mxu0  ;;  %v10590_v15 = vpop.f32.mrf.mxu1  ;;  %11267 = vmatmul.mubr.bf16.gmra.mxu1 %v12175_v2  ;;  %v12118_v2 = vrot.slane %v7580_v26, 9 }
 0x3b0   :  { %v16414_v7 = vadd.f32 %v10529_v38, %v16329_v55  ;;  %v16417_v17 = vadd.f32 %v10590_v15, %v16212_v16  ;;  %11276 = vmatprep.mubr.bf16.mxu1 %v12194_v61  ;;  %v7661_v55 = vsel %vm14039_vm7, %v12116_v19, %v7660_v42 }
 0x3b1   :  { %v10531_v57 = vpop.f32.mrf.mxu0  ;;  %v10592_v23 = vpop.f32.mrf.mxu1 }
 0x3b2   :  { %v16420_v11 = vadd.f32 %v10531_v57, %v16337_v4  ;;  %v16423_v24 = vadd.f32 %v10592_v23, %v16228_v27  ;;  %v7657_v27 = vsel %vm14039_vm7, %v12115_v62, %v7656_v5  ;;  %v7584_v57 = vld [vmem:[#allocation3 + $0xe8] sm:$0xee]  ;;  %v7585_v23 = vld [vmem:[#allocation3 + $0x50] sm:$0x11] }
 0x3b3   :  { %v10533_v36 = vpop.f32.mrf.mxu0  ;;  %v10594_v47 = vpop.f32.mrf.mxu1  ;;  %v12212_v6 = vcombine.high %v7657_v27, %v7661_v55  ;;  %v12211_v5 = vcombine.low %v7657_v27, %v7661_v55 }
 0x3b4   :  { %v16428_v12 = vadd.f32 %v10533_v36, %v16345_v8  ;;  %v16431_v16 = vadd.f32 %v10594_v47, %v16236_v22  ;;  %v7578_v8 = vld [vmem:[#allocation3 + $0x20] sm:$0xee] }
 0x3b5   :  { %v10683_v60 = vpop.f32.mrf.mxu0  ;;  %v10596_v4 = vpop.f32.mrf.mxu1  ;;  %v12117_v63 = vrot.slane %v7578_v8, 9 }
 0x3b6   :  { %v16436_v35 = vadd.f32 %v10683_v60, %v16356_v29  ;;  %v16439_v46 = vadd.f32 %v10596_v4, %v16245_v33  ;;  %v7664_v33 = vrot.slane %v7579_v10, 5  ;;  %v7676_v4 = vrot.slane %v7585_v23, 5 }
 0x3b7   :  { %v10685_v40 = vpop.f32.mrf.mxu0  ;;  %v10600_v22 = vpop.f32.mrf.mxu1  ;;  %11277 = vmatmul.mubr.bf16.gmra.mxu1 %v12193_v0  ;;  %v12120_v0 = vrot.slane %v7584_v57, 9 }
 0x3b8   :  { %v16442_v30 = vadd.f32 %v10685_v40, %v16367_v54  ;;  %v16445_v34 = vadd.f32 %v10600_v22, %v16278_v43  ;;  %11286 = vmatprep.mubr.bf16.mxu1 %v12212_v6  ;;  %v7669_v54 = vsel %vm14039_vm7, %v12118_v2, %v7668_v52  ;;  %v7586_v52 = vld [vmem:[#allocation3 + $0xb8] sm:$0xee] }
 0x3b9   :  { %v10687_v29 = vpop.f32.mrf.mxu0  ;;  %v10602_v61 = vpop.f32.mrf.mxu1 }
 0x3ba   :  { %v16448_v9 = vadd.f32 %v10687_v29, %v16375_v48  ;;  %v16451_v38 = vadd.f32 %v10602_v61, %v16285_v59  ;;  %v7665_v59 = vsel %vm14039_vm7, %v12117_v63, %v7664_v33  ;;  %v7587_v61 = vld [vmem:[#allocation3 + $0xc0] sm:$0x11]  ;;  %v7588_v63 = vld [vmem:[#allocation3 + $0x68] sm:$0xee]  ;;  %v7589_v33 = vld [vmem:[#allocation3 + $0x110] sm:$0x11] }
 0x3bb   :  { %v10689_v15 = vpop.f32.mrf.mxu0  ;;  %v10604_v19 = vpop.f32.mrf.mxu1  ;;  %v12230_v26 = vcombine.high %v7665_v59, %v7669_v54 }
 0x3bc   :  { %v16456_v42 = vadd.f32 %v10689_v15, %v16383_v21  ;;  %v16459_v43 = vadd.f32 %v10604_v19, %v16298_v41  ;;  %v7582_v21 = vld [vmem:[#allocation3 + $0x108] sm:$0xee]  ;;  %v12229_v15 = vcombine.low %v7665_v59, %v7669_v54 }
 0x3bd   :  { %v10693_v62 = vpop.f32.mrf.mxu0  ;;  %v10606_v48 = vpop.f32.mrf.mxu1  ;;  %v12119_v8 = vrot.slane %v7582_v21, 9  ;;  %v7684_v21 = vrot.slane %v7589_v33, 5 }
 0x3be   :  { %v16464_v36 = vadd.f32 %v10693_v62, %v16389_v1  ;;  %v16467_v47 = vadd.f32 %v10606_v48, %v16309_v3  ;;  %v7672_v3 = vrot.slane %v7583_v31, 5  ;;  %v7680_v48 = vrot.slane %v7587_v61, 5 }
 0x3bf   :  { %v10695_v60 = vpop.f32.mrf.mxu0  ;;  %v10610_v41 = vpop.f32.mrf.mxu1  ;;  %11287 = vmatmul.mubr.bf16.gmra.mxu1 %v12211_v5 }
 0x3c0   :  { %v16470_v55 = vadd.f32 %v10695_v60, %v16395_v53  ;;  %v16473_v27 = vadd.f32 %v10610_v41, %v16319_v58  ;;  %11296 = vmatprep.mubr.bf16.mxu1 %v12230_v26  ;;  %v7677_v53 = vsel %vm14039_vm7, %v12120_v0, %v7676_v4  ;;  %v12122_v26 = vrot.slane %v7588_v63, 9 }
 0x3c1   :  { %v10697_v1 = vpop.f32.mrf.mxu0  ;;  %v10612_v6 = vpop.f32.mrf.mxu1 }
 0x3c2   :  { %v16476_v10 = vadd.f32 %v10697_v1, %v16405_v28  ;;  %v16479_v40 = vadd.f32 %v10612_v6, %v16325_v25  ;;  %v7673_v25 = vsel %vm14039_vm7, %v12119_v8, %v7672_v3  ;;  %v7685_v1 = vsel %vm14039_vm7, %v12122_v26, %v7684_v21 }
 0x3c3   :  { %v10699_v22 = vpop.f32.mrf.mxu0  ;;  %v10614_v2 = vpop.f32.mrf.mxu1  ;;  %v12248_v62 = vcombine.high %v7673_v25, %v7677_v53  ;;  %v12247_v8 = vcombine.low %v7673_v25, %v7677_v53 }
 0x3c4   :  { %v16484_v58 = vadd.f32 %v10699_v22, %v16411_v13  ;;  %v16487_v29 = vadd.f32 %v10614_v2, %v16332_v51  ;;  %v12121_v51 = vrot.slane %v7586_v52, 9 }
 0x3c5   :  { %v10703_v28 = vpop.f32.mrf.mxu0  ;;  %v10616_v19 = vpop.f32.mrf.mxu1 }
 0x3c6   :  { %v16492_v57 = vadd.f32 %v10703_v28, %v16417_v17  ;;  %v10617_v23 = vadd.f32 %v10616_v19, %v16342_v39  ;;  %v7681_v4 = vsel %vm14039_vm7, %v12121_v51, %v7680_v48 }
 0x3c7   :  { %v10705_v13 = vpop.f32.mrf.mxu0  ;;  %v10620_v5 = vpop.f32.mrf.mxu1  ;;  %11297 = vmatmul.mubr.bf16.gmra.mxu1 %v12229_v15  ;;  %v12266_v22 = vcombine.high %v7681_v4, %v7685_v1 }
 0x3c8   :  { %v16496_v31 = vadd.f32 %v10705_v13, %v16423_v24  ;;  %v10621_v54 = vadd.f32 %v10620_v5, %v16350_v14  ;;  %11306 = vmatprep.mubr.bf16.mxu1 %v12248_v62 }
 0x3c9   :  { %v10707_v59 = vpop.f32.mrf.mxu0  ;;  %v10622_v60 = vpop.f32.mrf.mxu1 }
 0x3ca   :  { %v16500_v17 = vadd.f32 %v10707_v59, %v16431_v16  ;;  %v10623_v39 = vadd.f32 %v10622_v60, %v16353_v37 }
 0x3cb   :  { %v10709_v41 = vpop.f32.mrf.mxu0  ;;  %v10624_v0 = vpop.f32.mrf.mxu1 }
 0x3cc   :  { %v16508_v24 = vadd.f32 %v10709_v41, %v16439_v46  ;;  %v10625_v14 = vadd.f32 %v10624_v0, %v16364_v44 }
 0x3cd   :  { %v10713_v6 = vpop.f32.mrf.mxu0  ;;  %v10626_v3 = vpop.f32.mrf.mxu1 }
 0x3ce   :  { %v16512_v16 = vadd.f32 %v10713_v6, %v16445_v34  ;;  %v10627_v37 = vadd.f32 %v10626_v3, %v16372_v56 }
 0x3cf   :  { %v10715_v2 = vpop.f32.mrf.mxu0  ;;  %v10630_v52 = vpop.f32.mrf.mxu1  ;;  %11307 = vmatmul.mubr.bf16.gmra.mxu1 %v12247_v8 }
 0x3d0   :  { %v16516_v20 = vadd.f32 %v10715_v2, %v16451_v38  ;;  %v10631_v46 = vadd.f32 %v10630_v52, %v16380_v49  ;;  %11316 = vmatprep.mubr.bf16.mxu1 %v12266_v22  ;;  %v12265_v38 = vcombine.low %v7681_v4, %v7685_v1 }
 0x3d1   :  { %v10717_v61 = vpop.f32.mrf.mxu0  ;;  %v10632_v44 = vpop.f32.mrf.mxu1 }
 0x3d2   :  { %v16520_v53 = vadd.f32 %v10717_v61, %v16459_v43  ;;  %v10633_v34 = vadd.f32 %v10632_v44, %v16386_v45 }
 0x3d3   :  { %v10719_v63 = vpop.f32.mrf.mxu0  ;;  %v10634_v33 = vpop.f32.mrf.mxu1 }
 0x3d4   :  { %v16524_v56 = vadd.f32 %v10719_v63, %v16467_v47  ;;  %v10635_v28 = vadd.f32 %v10634_v33, %v16392_v50 }
 0x3d5   :  { %v10723_v15 = vpop.f32.mrf.mxu0  ;;  %v10636_v19 = vpop.f32.mrf.mxu1 }
 0x3d6   :  { %v16528_v49 = vadd.f32 %v10723_v15, %v16473_v27  ;;  %v10637_v25 = vadd.f32 %v10636_v19, %v16402_v18 }
 0x3d7   :  { %v10725_v62 = vpop.f32.mrf.mxu0  ;;  %v10640_v43 = vpop.f32.mrf.mxu1  ;;  %11317 = vmatmul.mubr.bf16.gmra.mxu1 %v12265_v38 }
 0x3d8   :  { %v16532_v45 = vadd.f32 %v10725_v62, %v16479_v40  ;;  %v10641_v13 = vadd.f32 %v10640_v43, %v16408_v32 }
 0x3d9   :  { %v10727_v47 = vpop.f32.mrf.mxu0  ;;  %v10642_v5 = vpop.f32.mrf.mxu1 }
 0x3da   :  { %v16536_v50 = vadd.f32 %v10727_v47, %v16487_v29  ;;  %v10643_v51 = vadd.f32 %v10642_v5, %v16414_v7 }
 0x3db   :  { %v10729_v48 = vpop.f32.mrf.mxu0  ;;  %v10644_v27 = vpop.f32.mrf.mxu1 }
 0x3dc   :  { %v16539_v26 = vadd.f32 %v10729_v48, %v10617_v23  ;;  %v10645_v18 = vadd.f32 %v10644_v27, %v16420_v11 }
 0x3dd   :  { %v10733_v21 = vpop.f32.mrf.mxu0  ;;  %v10646_v59 = vpop.f32.mrf.mxu1 }
 0x3de   :  { %v16542_v60 = vadd.f32 %v10733_v21, %v10621_v54  ;;  %v10647_v40 = vadd.f32 %v10646_v59, %v16428_v12 }
 0x3df   :  { %v10735_v32 = vpop.f32.mrf.mxu0  ;;  %v10796_v41 = vpop.f32.mrf.mxu1 }
 0x3e0   :  { %v16545_v0 = vadd.f32 %v10735_v32, %v10623_v39  ;;  %v16548_v29 = vadd.f32 %v10796_v41, %v16436_v35 }
 0x3e1   :  { %v10737_v7 = vpop.f32.mrf.mxu0  ;;  %v10798_v4 = vpop.f32.mrf.mxu1 }
 0x3e2   :  { %v16550_v1 = vadd.f32 %v10737_v7, %v10625_v14  ;;  %v16553_v23 = vadd.f32 %v10798_v4, %v16442_v30 }
 0x3e3   :  { %v10739_v11 = vpop.f32.mrf.mxu0  ;;  %v10800_v6 = vpop.f32.mrf.mxu1 }
 0x3e4   :  { %v16555_v54 = vadd.f32 %v10739_v11, %v10627_v37  ;;  %v16558_v12 = vadd.f32 %v10800_v6, %v16448_v9 }
 0x3e5   :  { %v10743_v8 = vpop.f32.mrf.mxu0  ;;  %v10802_v39 = vpop.f32.mrf.mxu1 }
 0x3e6   :  { %v16560_v3 = vadd.f32 %v10743_v8, %v10631_v46  ;;  %v16563_v35 = vadd.f32 %v10802_v39, %v16456_v42 }
 0x3e7   :  { %v10745_v22 = vpop.f32.mrf.mxu0  ;;  %v10806_v14 = vpop.f32.mrf.mxu1 }
 0x3e8   :  { %v16565_v2 = vadd.f32 %v10745_v22, %v10633_v34  ;;  %v16568_v30 = vadd.f32 %v10806_v14, %v16464_v36 }
 0x3e9   :  { %v10747_v52 = vpop.f32.mrf.mxu0  ;;  %v10808_v37 = vpop.f32.mrf.mxu1 }
 0x3ea   :  { %v16570_v61 = vadd.f32 %v10747_v52, %v10635_v28  ;;  %v16573_v9 = vadd.f32 %v10808_v37, %v16470_v55 }
 0x3eb   :  { %v10749_v44 = vpop.f32.mrf.mxu0  ;;  %v10810_v46 = vpop.f32.mrf.mxu1 }
 0x3ec   :  { %v16575_v63 = vadd.f32 %v10749_v44, %v10637_v25  ;;  %v16578_v42 = vadd.f32 %v10810_v46, %v16476_v10 }
 0x3ed   :  { %v10753_v33 = vpop.f32.mrf.mxu0  ;;  %v10812_v34 = vpop.f32.mrf.mxu1 }
 0x3ee   :  { %v16580_v15 = vadd.f32 %v10753_v33, %v10641_v13  ;;  %v16583_v36 = vadd.f32 %v10812_v34, %v16484_v58 }
 0x3ef   :  { %v10755_v38 = vpop.f32.mrf.mxu0  ;;  %v10816_v28 = vpop.f32.mrf.mxu1 }
 0x3f0   :  { %v16585_v19 = vadd.f32 %v10755_v38, %v10643_v51  ;;  %v16588_v55 = vadd.f32 %v10816_v28, %v16492_v57 }
 0x3f1   :  { %v10757_v62 = vpop.f32.mrf.mxu0  ;;  %v10818_v25 = vpop.f32.mrf.mxu1 }
 0x3f2   :  { %v16590_v43 = vadd.f32 %v10757_v62, %v10645_v18  ;;  %v16593_v10 = vadd.f32 %v10818_v25, %v16496_v31 }
 0x3f3   :  { %v10759_v47 = vpop.f32.mrf.mxu0  ;;  %v10820_v13 = vpop.f32.mrf.mxu1 }
 0x3f4   :  { %v16595_v5 = vadd.f32 %v10759_v47, %v10647_v40  ;;  %v16598_v58 = vadd.f32 %v10820_v13, %v16500_v17 }
 0x3f5   :  { %v16600_v48 = vpop.f32.mrf.mxu0  ;;  %v10822_v51 = vpop.f32.mrf.mxu1 }
 0x3f6   :  { %v16603_v57 = vadd.f32 %v10822_v51, %v16508_v24 }
 0x3f7   :  { %v16605_v27 = vpop.f32.mrf.mxu0  ;;  %v10826_v18 = vpop.f32.mrf.mxu1 }
 0x3f8   :  { %v16608_v21 = vadd.f32 %v10826_v18, %v16512_v16 }
 0x3f9   :  { %v16610_v31 = vpop.f32.mrf.mxu0  ;;  %v10828_v59 = vpop.f32.mrf.mxu1 }
 0x3fa   :  { %v16613_v40 = vadd.f32 %v10828_v59, %v16516_v20 }
 0x3fb   :  { %v16615_v17 = vpop.f32.mrf.mxu0  ;;  %v10830_v32 = vpop.f32.mrf.mxu1 }
 0x3fc   :  { %v16618_v41 = vadd.f32 %v10830_v32, %v16520_v53 }
 0x3fd   :  { %v16620_v24 = vpop.f32.mrf.mxu0  ;;  %v10832_v7 = vpop.f32.mrf.mxu1 }
 0x3fe   :  { %v16623_v4 = vadd.f32 %v10832_v7, %v16524_v56 }
 0x3ff   :  { %v16625_v16 = vpop.f32.mrf.mxu0  ;;  %v10836_v11 = vpop.f32.mrf.mxu1 }
 0x400   :  { %17230 = vst [vmem:[#allocation34_spill] sm:$0xff] %v16623_v4  ;;  %v16628_v6 = vadd.f32 %v10836_v11, %v16528_v49 }
 0x401   :  { %v16630_v20 = vpop.f32.mrf.mxu0  ;;  %v10838_v8 = vpop.f32.mrf.mxu1 }
 0x402   :  { %17231 = vst [vmem:[#allocation31_spill] sm:$0xff] %v16628_v6  ;;  %v16633_v39 = vadd.f32 %v10838_v8, %v16532_v45 }
 0x403   :  { %v16635_v53 = vpop.f32.mrf.mxu0  ;;  %v10840_v22 = vpop.f32.mrf.mxu1 }
 0x404   :  { %17232 = vst [vmem:[#allocation35_spill] sm:$0xff] %v16633_v39  ;;  %v16638_v14 = vadd.f32 %v10840_v22, %v16536_v50 }
 0x405   :  { %v16640_v56 = vpop.f32.mrf.mxu0  ;;  %v10842_v52 = vpop.f32.mrf.mxu1 }
 0x406   :  { %17233 = vst [vmem:[#allocation36_spill] sm:$0xff] %v16638_v14  ;;  %v16643_v37 = vadd.f32 %v10842_v52, %v16539_v26 }
 0x407   :  { %v16645_v49 = vpop.f32.mrf.mxu0  ;;  %v10846_v44 = vpop.f32.mrf.mxu1 }
 0x408   :  { %17234 = vst [vmem:[#allocation32_spill] sm:$0xff] %v16643_v37  ;;  %v16648_v46 = vadd.f32 %v10846_v44, %v16542_v60 }
 0x409   :  { %v16650_v45 = vpop.f32.mrf.mxu0  ;;  %v10848_v33 = vpop.f32.mrf.mxu1 }
 0x40a   :  { %17235 = vst [vmem:[#allocation37_spill] sm:$0xff] %v16648_v46  ;;  %v16653_v34 = vadd.f32 %v10848_v33, %v16545_v0 }
 0x40b   :  { %v16655_v50 = vpop.f32.mrf.mxu0  ;;  %v10850_v38 = vpop.f32.mrf.mxu1 }
 0x40c   :  { %17236 = vst [vmem:[#allocation52_spill] sm:$0xff] %v16653_v34  ;;  %v16658_v28 = vadd.f32 %v10850_v38, %v16550_v1 }
 0x40d   :  { %v16660_v26 = vpop.f32.mrf.mxu0  ;;  %v10852_v62 = vpop.f32.mrf.mxu1 }
 0x40e   :  { %17237 = vst [vmem:[#allocation33_spill] sm:$0xff] %v16658_v28  ;;  %v16663_v25 = vadd.f32 %v10852_v62, %v16555_v54 }
 0x40f   :  { %v16665_v60 = vpop.f32.mrf.mxu0  ;;  %v10856_v47 = vpop.f32.mrf.mxu1 }
 0x410   :  { %17238 = vst [vmem:[#allocation38_spill] sm:$0xff] %v16663_v25  ;;  %v16668_v13 = vadd.f32 %v10856_v47, %v16560_v3 }
 0x411   :  { %v16670_v0 = vpop.f32.mrf.mxu0  ;;  %v10858_v51 = vpop.f32.mrf.mxu1 }
 0x412   :  { %17239 = vst [vmem:[#allocation40_spill] sm:$0xff] %v16668_v13  ;;  %17240 = vst [vmem:[#allocation39_spill] sm:$0xff] %v16670_v0  ;;  %v16673_v18 = vadd.f32 %v10858_v51, %v16565_v2 }
 0x413   :  { %v16675_v1 = vpop.f32.mrf.mxu0  ;;  %v10860_v59 = vpop.f32.mrf.mxu1 }
 0x414   :  { %17241 = vst [vmem:[#allocation42_spill] sm:$0xff] %v16673_v18  ;;  %17242 = vst [vmem:[#allocation41_spill] sm:$0xff] %v16675_v1  ;;  %v16678_v32 = vadd.f32 %v10860_v59, %v16570_v61 }
 0x415   :  { %v16680_v54 = vpop.f32.mrf.mxu0  ;;  %v10862_v7 = vpop.f32.mrf.mxu1 }
 0x416   :  { %17243 = vst [vmem:[#allocation44_spill] sm:$0xff] %v16678_v32  ;;  %17244 = vst [vmem:[#allocation43_spill] sm:$0xff] %v16680_v54  ;;  %v16683_v11 = vadd.f32 %v10862_v7, %v16575_v63 }
 0x417   :  { %v16685_v3 = vpop.f32.mrf.mxu0  ;;  %v10866_v8 = vpop.f32.mrf.mxu1 }
 0x418   :  { %17245 = vst [vmem:[#allocation45_spill] sm:$0xff] %v16683_v11  ;;  %17246 = vst [vmem:[#allocation46_spill] sm:$0xff] %v16685_v3  ;;  %v16688_v22 = vadd.f32 %v10866_v8, %v16580_v15 }
 0x419   :  { %v16690_v2 = vpop.f32.mrf.mxu0  ;;  %v10868_v52 = vpop.f32.mrf.mxu1 }
 0x41a   :  { %17247 = vst [vmem:[#allocation51_spill] sm:$0xff] %v16688_v22  ;;  %17248 = vst [vmem:[#allocation47_spill] sm:$0xff] %v16690_v2  ;;  %v16693_v44 = vadd.f32 %v10868_v52, %v16585_v19 }
 0x41b   :  { %v16695_v61 = vpop.f32.mrf.mxu0  ;;  %v10870_v33 = vpop.f32.mrf.mxu1 }
 0x41c   :  { %17249 = vst [vmem:[#allocation48_spill] sm:$0xff] %v16693_v44  ;;  %17250 = vst [vmem:[#allocation49_spill] sm:$0xff] %v16695_v61  ;;  %v16698_v38 = vadd.f32 %v10870_v33, %v16590_v43 }
 0x41d   :  { %v16700_v63 = vpop.f32.mrf.mxu0  ;;  %v10872_v62 = vpop.f32.mrf.mxu1 }
 0x41e   :  { %17251 = vst [vmem:[#allocation50_spill] sm:$0xff] %v16698_v38  ;;  %17252 = vst [vmem:[#allocation24_spill] sm:$0xff] %v16700_v63  ;;  %v16703_v47 = vadd.f32 %v10872_v62, %v16595_v5 }
 0x41f   :  { %v16705_v15 = vpop.f32.mrf.mxu0  ;;  %v11022_v51 = vpop.f32.mrf.mxu1 }
 0x420   :  { %17253 = vst [vmem:[#allocation63_spill] sm:$0xff] %v16703_v47  ;;  %17254 = vst [vmem:[#allocation54_spill] sm:$0xff] %v16705_v15 }
 0x421   :  { %v16707_v59 = vpop.f32.mrf.mxu0  ;;  %v16709_v7 = vpop.f32.mrf.mxu1 }
 0x422   :  { %17255 = vst [vmem:[#allocation53_spill] sm:$0xff] %v16707_v59 }
 0x423   :  { %v16711_v19 = vpop.f32.mrf.mxu0  ;;  %v16713_v8 = vpop.f32.mrf.mxu1 }
 0x424   :  { %17256 = vst [vmem:[#allocation55_spill] sm:$0xff] %v16711_v19 }
 0x425   :  { %v16715_v52 = vpop.f32.mrf.mxu0  ;;  %v16717_v43 = vpop.f32.mrf.mxu1 }
 0x426   :  { %17257 = vst [vmem:[#allocation57_spill] sm:$0xff] %v16715_v52 }
 0x427   :  { %v16719_v33 = vpop.f32.mrf.mxu0  ;;  %v16721_v38 = vpop.f32.mrf.mxu1 }
 0x428   :  { %17258 = vst [vmem:[#allocation58_spill] sm:$0xff] %v16719_v33 }
 0x429   :  { %v16723_v5 = vpop.f32.mrf.mxu0  ;;  %v16725_v62 = vpop.f32.mrf.mxu1 }
 0x42a   :  { %17259 = vst [vmem:[#allocation65_spill] sm:$0xff] %v16723_v5 }
 0x42b   :  { %v16727_v47 = vpop.f32.mrf.mxu0  ;;  %v16729_v44 = vpop.f32.mrf.mxu1 }
 0x42c   :  { %17260 = vst [vmem:[#allocation67_spill] sm:$0xff] %v16727_v47 }
 0x42d   :  { %v16731_v22 = vpop.f32.mrf.mxu0  ;;  %v16733_v11 = vpop.f32.mrf.mxu1 }
 0x42e   :  { %17261 = vst [vmem:[#allocation69_spill] sm:$0xff] %v16731_v22 }
 0x42f   :  { %v16735_v32 = vpop.f32.mrf.mxu0  ;;  %v16737_v18 = vpop.f32.mrf.mxu1 }
 0x430   :  { %17262 = vst [vmem:[#allocation56_spill] sm:$0xff] %v16735_v32 }
 0x431   :  { %v16739_v52 = vpop.f32.mrf.mxu0  ;;  %v16741_v33 = vpop.f32.mrf.mxu1 }
 0x432   :  { %17263 = vst [vmem:[#allocation59_spill] sm:$0xff] %v16739_v52 }
 0x433   :  { %v16743_v13 = vpop.f32.mrf.mxu0  ;;  %v16745_v5 = vpop.f32.mrf.mxu1 }
 0x434   :  { %17264 = vst [vmem:[#allocation60_spill] sm:$0xff] %v16743_v13 }
 0x435   :  { %v11135_v19 = vpop.f32.mrf.mxu0  ;;  %v16747_v47 = vpop.f32.mrf.mxu1 }
 0x437   :  { %v11137_v25 = vpop.f32.mrf.mxu0  ;;  %v16749_v59 = vpop.f32.mrf.mxu1 }
 0x438   :  { %17265 = vst [vmem:[#allocation61_spill] sm:$0xff] %v16749_v59 }
 0x439   :  { %v11139_v22 = vpop.f32.mrf.mxu0  ;;  %v16751_v28 = vpop.f32.mrf.mxu1 }
 0x43a   :  { %17266 = vst [vmem:[#allocation71_spill] sm:$0xff] %v16751_v28 }
 0x43b   :  { %v16753_v32 = vpop.f32.mrf.mxu0  ;;  %v16755_v15 = vpop.f32.mrf.mxu1 }
 0x43c   :  { %17267 = vst [vmem:[#allocation62_spill] sm:$0xff] %v16755_v15 }
 0x43d   :  { %v16757_v52 = vpop.f32.mrf.mxu0  ;;  %v16759_v34 = vpop.f32.mrf.mxu1 }
 0x43e   :  { %17268 = vst [vmem:[#allocation25_spill] sm:$0xff] %v16759_v34 }
 0x43f   :  { %v16761_v13 = vpop.f32.mrf.mxu0  ;;  %v16763_v63 = vpop.f32.mrf.mxu1 }
 0x440   :  { %17269 = vst [vmem:[#allocation77_spill] sm:$0xff] %v16763_v63 }
 0x441   :  { %v16765_v46 = vpop.f32.mrf.mxu0  ;;  %v16767_v61 = vpop.f32.mrf.mxu1 }
 0x442   :  { %17270 = vst [vmem:[#allocation79_spill] sm:$0xff] %v16767_v61 }
 0x443   :  { %v16769_v37 = vpop.f32.mrf.mxu0  ;;  %v16771_v2 = vpop.f32.mrf.mxu1 }
 0x444   :  { %17271 = vst [vmem:[#allocation81_spill] sm:$0xff] %v16771_v2 }
 0x445   :  { %v16773_v14 = vpop.f32.mrf.mxu0  ;;  %v16775_v3 = vpop.f32.mrf.mxu1 }
 0x446   :  { %17272 = vst [vmem:[#allocation64_spill] sm:$0xff] %v16775_v3 }
 0x447   :  { %v16777_v15 = vpop.f32.mrf.mxu0  ;;  %v16779_v39 = vpop.f32.mrf.mxu1 }
 0x448   :  { %17273 = vst [vmem:[#allocation66_spill] sm:$0xff] %v16779_v39 }
 0x449   :  { %v16781_v34 = vpop.f32.mrf.mxu0  ;;  %v16783_v54 = vpop.f32.mrf.mxu1 }
 0x44a   :  { %17274 = vst [vmem:[#allocation68_spill] sm:$0xff] %v16783_v54 }
 0x44b   :  { %v16785_v63 = vpop.f32.mrf.mxu0  ;;  %v16787_v6 = vpop.f32.mrf.mxu1 }
 0x44c   :  { %17275 = vst [vmem:[#allocation70_spill] sm:$0xff] %v16785_v63  ;;  %17276 = vst [vmem:[#allocation73_spill] sm:$0xff] %v16787_v6 }
 0x44d   :  { %v16789_v61 = vpop.f32.mrf.mxu0  ;;  %v16791_v28 = vpop.f32.mrf.mxu1 }
 0x44e   :  { %17277 = vst [vmem:[#allocation72_spill] sm:$0xff] %v16789_v61  ;;  %17278 = vst [vmem:[#allocation74_spill] sm:$0xff] %v16791_v28  ;;  %v10910_v28 = vadd.f32 %v16600_v48, %v16548_v29 }
 0x44f   :  { %v16793_v2 = vpop.f32.mrf.mxu1  ;;  %v16795_v1 = vpop.f32.mrf.mxu0 }
 0x450   :  { %17279 = vst [vmem:[#allocation75_spill] sm:$0xff] %v16793_v2  ;;  %17280 = vst [vmem:[#allocation76_spill] sm:$0xff] %v16795_v1 }
 0x451   :  { %v16797_v3 = vpop.f32.mrf.mxu1  ;;  %v16801_v39 = vpop.f32.mrf.mxu0 }
 0x452   :  { %17281 = vst [vmem:[#allocation78_spill] sm:$0xff] %v16797_v3  ;;  %17283 = vst [vmem:[#allocation83_spill] sm:$0xff] %v16801_v39  ;;  %v11359_v3 = vld [vmem:[%s17049_s5] sm:$0x3]  ;;  %v11023_v39 = vadd.f32 %v11022_v51, %v10910_v28  ;;  %s13669_s5 = smov [#allocation16]  }
 0x453   :  { %v16799_v4 = vpop.f32.mrf.mxu1  ;;  %v16807_v63 = vpop.f32.mrf.mxu0  ;;  %s11548_s28 = sshll.u32 %s13669_s5, 4  ;;  %s11549_s28 = int_to_ptr.vmem [resolvable:$true] %s11548_s28 }
 0x454   :  { %17282 = vst [vmem:[#allocation80_spill] sm:$0xff] %v16799_v4  ;;  %17286 = vst [vmem:[#allocation86_spill] sm:$0xff] %v16807_v63  ;;  %v10912_v4 = vadd.f32 %v16605_v27, %v16553_v23  ;;  %v11136_v48 = vadd.f32 %v11135_v19, %v11023_v39  ;;  %s13628_s9 = scalar_lea.vmem %s11549_s28, 4096  ;;  %p13633_p3 = scmp.lt.s32.totalorder %s11549_s28, %s11549_s28 }
 0x455   :  { %v16803_v59 = vpop.f32.mrf.mxu1  ;;  %p13629_p2 = scmp.ne.s32.totalorder %s11549_s28, %s13628_s9  ;;  %p13634_p4 = scmp.lt.s32.totalorder %s13628_s9, %s13628_s9 }
 0x456   :  { %17284 = vst [vmem:[#allocation82_spill] sm:$0xff] %v16803_v59  ;;  %v16820_v59 = vpop.f32.mrf.mxu0  ;;  %v11025_v29 = vadd.f32 %v16709_v7, %v10912_v4 }
 0x457   :  { %v16805_v54 = vpop.f32.mrf.mxu1  ;;  %17289 = vst [vmem:[#allocation88_spill] sm:$0xff] %v16820_v59  ;;  %p13635_p5 = por %p13634_p4, %p13633_p3 }
 0x458   :  { %17285 = vst [vmem:[#allocation84_spill] sm:$0xff] %v16805_v54  ;;  %v11403_v54 = vld [vmem:[#allocation14] sm:$0x3]  ;;  %v11138_v27 = vadd.f32 %v11137_v25, %v11025_v29  ;;  %v16834_v28 = vpop.f32.mrf.mxu0 }
 0x459   :  { %v16809_v6 = vpop.f32.mrf.mxu1  ;;  %p13636_p6 = pnand %p13635_p5, %p13629_p2 }
 0x45a   :  { %17287 = vst [vmem:[#allocation85_spill] sm:$0xff] %v16809_v6  ;;  %v10914_v6 = vadd.f32 %v16610_v31, %v16558_v12  ;;  %v10916_v12 = vadd.f32 %v16615_v17, %v16563_v35 }
 0x45b   :  { %v16813_v2 = vpop.f32.mrf.mxu1 }
 0x45c   :  { %17288 = vst [vmem:[#allocation87_spill] sm:$0xff] %v16813_v2  ;;  %v17291_v2 = vld [vmem:[#allocation89_spill] sm:$0xff]  ;;  %v11027_v23 = vadd.f32 %v16713_v8, %v10914_v6  ;;  %v10920_v6 = vadd.f32 %v16620_v24, %v16568_v30  ;;  %v11029_v25 = vadd.f32 %v16717_v43, %v10916_v12  ;;  %v16850_v8 = vpop.f32.mrf.mxu0  ;;  %v10926_v30 = vadd.f32 %v16635_v53, %v16583_v36  ;;  %v11328_v43 = vld [vmem:[#allocation5 + $0x8] sm:$0xff] }
 0x45d   :  { %v16822_v1 = vpop.f32.mrf.mxu1  ;;  %v16828_v63 = vrot.slane %v11359_v3, %v17291_v2  ;;  %v16831_v0 = vrot.slane %v11403_v54, %v17291_v2 }
 0x45e   :  { %17290 = vst [vmem:[#allocation26_spill] sm:$0xff] %v16822_v1  ;;  %v17292_v1 = vld [vmem:[#allocation91_spill] sm:$0xff]  ;;  %v11140_v4 = vadd.f32 %v11139_v22, %v11027_v23  ;;  %v11033_v24 = vadd.f32 %v16721_v38, %v10920_v6  ;;  %v11330_v6 = vld [vmem:[#allocation5 + $0x18] sm:$0xff] }
 0x45f   :  { %v11248_v61 = vpop.f32.mrf.mxu1  ;;  %v16837_v59 = vrot.slane %v11359_v3, %v17292_v1  ;;  %v16843_v2 = vrot.slane %v11403_v54, %v17292_v1  ;;  %v10922_v3 = vadd.f32 %v16625_v16, %v16573_v9  ;;  %v10924_v1 = vadd.f32 %v16630_v20, %v16578_v42  ;;  %v11329_v20 = vld [vmem:[#allocation5 + $0x10] sm:$0xff] }
 0x460   :  { %v11249_v51 = vadd.f32 %v11248_v61, %v11136_v48  ;;  %v11327_v61 = vld [vmem:[#allocation5] sm:$0xff]  ;;  %v11142_v54 = vadd.f32 %v16753_v32, %v11029_v25  ;;  %v11146_v36 = vadd.f32 %v16757_v52, %v11033_v24 }
 0x461   :  { %v11250_v31 = vpop.f32.mrf.mxu1  ;;  %v11035_v9 = vadd.f32 %v16725_v62, %v10922_v3  ;;  %v11037_v42 = vadd.f32 %v16729_v44, %v10924_v1 }
 0x462   :  { %v11371_v39 = vmul.f32 %v16828_v63, %v11249_v51  ;;  %v11251_v7 = vadd.f32 %v11250_v31, %v11138_v27  ;;  %v10930_v27 = vadd.f32 %v16640_v56, %v16588_v55  ;;  %v16868_v51 = vpop.f32.mrf.mxu0  ;;  %v11039_v55 = vadd.f32 %v16733_v11, %v10926_v30  ;;  %v11332_v30 = vld [vmem:[#allocation5 + $0x28] sm:$0xff] }
 0x463   :  { %v11252_v19 = vpop.f32.mrf.mxu1  ;;  %v11148_v32 = vadd.f32 %v16761_v13, %v11035_v9 }
 0x464   :  { %v11415_v35 = vadd.f32 %v16831_v0, %v11371_v39  ;;  %v11372_v17 = vmul.f32 %v16837_v59, %v11251_v7  ;;  %v11253_v22 = vadd.f32 %v11252_v19, %v11140_v4  ;;  %v10932_v4 = vadd.f32 %v16645_v49, %v16593_v10 }
 0x465   :  { %v11254_v29 = vpop.f32.mrf.mxu1  ;;  %v11150_v39 = vadd.f32 %v16765_v46, %v11037_v42  ;;  %v10936_v19 = vadd.f32 %v16655_v50, %v16603_v57  ;;  %v11152_v3 = vadd.f32 %v16769_v37, %v11039_v55  ;;  %v11043_v57 = vadd.f32 %v16737_v18, %v10930_v27  ;;  %v17294_v55 = vld [vmem:[#allocation61_spill] sm:$0xff] }
 0x466   :  { %v11447_v16 = vadd.f32 %v11415_v35, %v11327_v61  ;;  %v11416_v48 = vadd.f32 %v16843_v2, %v11372_v17  ;;  %v11373_v23 = vmul.f32 %v16828_v63, %v11253_v22  ;;  %v11255_v53 = vadd.f32 %v11254_v29, %v11142_v54  ;;  %v16883_v35 = vpop.f32.mrf.mxu0  ;;  %v11331_v17 = vld [vmem:[#allocation5 + $0x20] sm:$0xff] }
 0x467   :  { %v11258_v38 = vpop.f32.mrf.mxu1  ;;  %v10934_v61 = vadd.f32 %v16650_v45, %v16598_v58  ;;  %v10940_v58 = vadd.f32 %v16660_v26, %v16608_v21  ;;  %v10942_v37 = vadd.f32 %v16665_v60, %v16613_v40  ;;  %v11045_v9 = vadd.f32 %v16741_v33, %v10932_v4 }
 0x468   :  { %v11479_v62 = vmax.f32 %v11447_v16, 0.0  ;;  %v11448_v12 = vadd.f32 %v11416_v48, %v11328_v43  ;;  %v11417_v31 = vadd.f32 %v16831_v0, %v11373_v23  ;;  %v11374_v56 = vmul.f32 %v16837_v59, %v11255_v53  ;;  %v11333_v16 = vld [vmem:[#allocation5 + $0x30] sm:$0xff]  ;;  %v16897_v27 = vpop.f32.mrf.mxu0 }
 0x469   :  { %v11259_v44 = vadd.f32 %v11258_v38, %v11146_v36  ;;  %v11260_v52 = vpop.f32.mrf.mxu1  ;;  %v11156_v21 = vadd.f32 %v16773_v14, %v11043_v57  ;;  %v11047_v23 = vadd.f32 %v16745_v5, %v10934_v61  ;;  %v11049_v36 = vadd.f32 %v16747_v47, %v10936_v19  ;;  %v11334_v14 = vld [vmem:[#allocation5 + $0x38] sm:$0xff]  ;;  %v17296_v61 = vld [vmem:[#allocation34_spill] sm:$0xff] }
 0x46a   :  { %11511 = vst [vmem:[#allocation16] sm:$0xff] %v11479_v62  ;;  %v11480_v7 = vmax.f32 %v11448_v12, 0.0  ;;  %v11449_v13 = vadd.f32 %v11417_v31, %v11329_v20  ;;  %v11261_v25 = vadd.f32 %v11260_v52, %v11148_v32  ;;  %v11418_v10 = vadd.f32 %v16843_v2, %v11374_v56  ;;  %v17293_v31 = vld [vmem:[#allocation39_spill] sm:$0xff]  ;;  %v17295_v52 = vld [vmem:[#allocation70_spill] sm:$0xff]  ;;  %v17297_v19 = vld [vmem:[#allocation41_spill] sm:$0xff] }
 0x46b   :  { %v11375_v49 = vmul.f32 %v16828_v63, %v11259_v44  ;;  %v11262_v11 = vpop.f32.mrf.mxu1  ;;  %v11158_v20 = vadd.f32 %v16777_v15, %v11045_v9  ;;  %v11160_v32 = vadd.f32 %v16781_v34, %v11047_v23  ;;  %v10944_v4 = vadd.f32 %v17293_v31, %v16618_v41  ;;  %v17298_v41 = vld [vmem:[#allocation71_spill] sm:$0xff] }
 0x46c   :  { %11512 = vst [vmem:[#allocation16 + $0x8] sm:$0xff] %v11480_v7  ;;  %v11481_v46 = vmax.f32 %v11449_v13, 0.0  ;;  %v11376_v22 = vmul.f32 %v16837_v59, %v11261_v25  ;;  %v11263_v1 = vadd.f32 %v11262_v11, %v11150_v39  ;;  %v11450_v45 = vadd.f32 %v11418_v10, %v11330_v6  ;;  %v16910_v7 = vpop.f32.mrf.mxu0  ;;  %v11335_v6 = vld [vmem:[#allocation5 + $0x40] sm:$0xff] }
 0x46d   :  { %v11419_v50 = vadd.f32 %v16831_v0, %v11375_v49  ;;  %v11264_v24 = vpop.f32.mrf.mxu1  ;;  %v11053_v56 = vadd.f32 %v17294_v55, %v10940_v58  ;;  %v11162_v39 = vadd.f32 %v17295_v52, %v11049_v36  ;;  %v10946_v10 = vadd.f32 %v17297_v19, %v17296_v61  ;;  %v11336_v58 = vld [vmem:[#allocation5 + $0x48] sm:$0xff]  ;;  %v17307_v55 = vld [vmem:[#allocation77_spill] sm:$0xff] }
 0x46e   :  { %11513 = vst [vmem:[#allocation16 + $0x10] sm:$0xff] %v11481_v46  ;;  %v11420_v54 = vadd.f32 %v16843_v2, %v11376_v22  ;;  %v11377_v43 = vmul.f32 %v16828_v63, %v11263_v1  ;;  %v11265_v29 = vadd.f32 %v11264_v24, %v11152_v3  ;;  %v11482_v26 = vmax.f32 %v11450_v45, 0.0 }
 0x46f   :  { %v11451_v18 = vadd.f32 %v11419_v50, %v11331_v17  ;;  %v11268_v48 = vpop.f32.mrf.mxu1  ;;  %v11055_v49 = vadd.f32 %v17298_v41, %v10942_v37  ;;  %v17299_v17 = vld [vmem:[#allocation72_spill] sm:$0xff]  ;;  %v17300_v50 = vld [vmem:[#allocation31_spill] sm:$0xff] }
 0x470   :  { %v11452_v42 = vadd.f32 %v11420_v54, %v11332_v30  ;;  %v11421_v40 = vadd.f32 %v16831_v0, %v11377_v43  ;;  %v11378_v60 = vmul.f32 %v16837_v59, %v11265_v29  ;;  %11514 = vst [vmem:[#allocation16 + $0x18] sm:$0xff] %v11482_v26  ;;  %v11269_v53 = vadd.f32 %v11268_v48, %v11156_v21  ;;  %v17301_v30 = vld [vmem:[#allocation43_spill] sm:$0xff]  ;;  %v17303_v43 = vld [vmem:[#allocation46_spill] sm:$0xff]  ;;  %v16925_v48 = vpop.f32.mrf.mxu0 }
 0x471   :  { %v11483_v33 = vmax.f32 %v11451_v18, 0.0  ;;  %v11270_v38 = vpop.f32.mrf.mxu1  ;;  %v11166_v22 = vadd.f32 %v17299_v17, %v11053_v56  ;;  %v10950_v24 = vadd.f32 %v17301_v30, %v17300_v50  ;;  %v17302_v54 = vld [vmem:[#allocation35_spill] sm:$0xff]  ;;  %v17304_v18 = vld [vmem:[#allocation76_spill] sm:$0xff] }
 0x472   :  { %v11484_v62 = vmax.f32 %v11452_v42, 0.0  ;;  %v11453_v5 = vadd.f32 %v11421_v40, %v11333_v16  ;;  %v11422_v12 = vadd.f32 %v16843_v2, %v11378_v60  ;;  %v11379_v47 = vmul.f32 %v16828_v63, %v11269_v53  ;;  %v11337_v21 = vld [vmem:[#allocation5 + $0x50] sm:$0xff]  ;;  %v17305_v60 = vld [vmem:[#allocation62_spill] sm:$0xff] }
 0x473   :  { %11515 = vst [vmem:[#allocation16 + $0x20] sm:$0xff] %v11483_v33  ;;  %v11271_v15 = vadd.f32 %v11270_v38, %v11158_v20  ;;  %v11272_v44 = vpop.f32.mrf.mxu1  ;;  %v10952_v29 = vadd.f32 %v17303_v43, %v17302_v54  ;;  %v11168_v16 = vadd.f32 %v17304_v18, %v11055_v49  ;;  %v11057_v36 = vadd.f32 %v17305_v60, %v10944_v4  ;;  %v17306_v20 = vld [vmem:[#allocation25_spill] sm:$0xff]  ;;  %v17311_v41 = vld [vmem:[#allocation47_spill] sm:$0xff] }
 0x474   :  { %11516 = vst [vmem:[#allocation16 + $0x28] sm:$0xff] %v11484_v62  ;;  %v11485_v34 = vmax.f32 %v11453_v5, 0.0  ;;  %v11454_v13 = vadd.f32 %v11422_v12, %v11334_v14  ;;  %v11273_v25 = vadd.f32 %v11272_v44, %v11160_v32  ;;  %v11423_v11 = vadd.f32 %v16831_v0, %v11379_v47  ;;  %v11338_v38 = vld [vmem:[#allocation5 + $0x58] sm:$0xff]  ;;  %v17308_v47 = vld [vmem:[#allocation83_spill] sm:$0xff]  ;;  %v17309_v44 = vld [vmem:[#allocation86_spill] sm:$0xff] }
 0x475   :  { %v11380_v3 = vmul.f32 %v16837_v59, %v11271_v15  ;;  %v11274_v46 = vpop.f32.mrf.mxu1  ;;  %v11059_v33 = vadd.f32 %v17306_v20, %v10946_v10  ;;  %v11063_v56 = vadd.f32 %v17307_v55, %v10950_v24  ;;  %v11170_v15 = vadd.f32 %v17308_v47, %v11057_v36  ;;  %v17310_v10 = vld [vmem:[#allocation36_spill] sm:$0xff]  ;;  %v17315_v54 = vld [vmem:[#allocation49_spill] sm:$0xff] }
 0x476   :  { %11517 = vst [vmem:[#allocation16 + $0x30] sm:$0xff] %v11485_v34  ;;  %v11486_v1 = vmax.f32 %v11454_v13, 0.0  ;;  %v11381_v57 = vmul.f32 %v16828_v63, %v11273_v25  ;;  %v11275_v45 = vadd.f32 %v11274_v46, %v11162_v39  ;;  %v11455_v37 = vadd.f32 %v11423_v11, %v11335_v6  ;;  %v11339_v39 = vld [vmem:[#allocation5 + $0x60] sm:$0xff]  ;;  %v16936_v13 = vpop.f32.mrf.mxu0  ;;  %v17312_v11 = vld [vmem:[#allocation79_spill] sm:$0xff]  ;;  %v17313_v46 = vld [vmem:[#allocation88_spill] sm:$0xff] }
 0x477   :  { %v11424_v9 = vadd.f32 %v16843_v2, %v11380_v3  ;;  %v11278_v26 = vpop.f32.mrf.mxu1  ;;  %v11172_v52 = vadd.f32 %v17309_v44, %v11059_v33  ;;  %v10954_v49 = vadd.f32 %v17311_v41, %v17310_v10  ;;  %v11065_v3 = vadd.f32 %v17312_v11, %v10952_v29  ;;  %v17314_v24 = vld [vmem:[#allocation32_spill] sm:$0xff]  ;;  %v17317_v36 = vld [vmem:[#allocation37_spill] sm:$0xff] }
 0x478   :  { %11518 = vst [vmem:[#allocation16 + $0x38] sm:$0xff] %v11486_v1  ;;  %v11425_v23 = vadd.f32 %v16831_v0, %v11381_v57  ;;  %v11382_v42 = vmul.f32 %v16837_v59, %v11275_v45  ;;  %v11279_v40 = vadd.f32 %v11278_v26, %v11166_v22  ;;  %v11487_v14 = vmax.f32 %v11455_v37, 0.0  ;;  %v11340_v22 = vld [vmem:[#allocation5 + $0x68] sm:$0xff]  ;;  %v17316_v37 = vld [vmem:[#allocation81_spill] sm:$0xff]  ;;  %v16950_v18 = vpop.f32.mrf.mxu0  ;;  %v17318_v20 = vld [vmem:[#allocation24_spill] sm:$0xff] }
 0x479   :  { %v11456_v53 = vadd.f32 %v11424_v9, %v11336_v58  ;;  %v11280_v32 = vpop.f32.mrf.mxu1  ;;  %v11176_v17 = vadd.f32 %v17313_v46, %v11063_v56  ;;  %v10956_v43 = vadd.f32 %v17315_v54, %v17314_v24  ;;  %v11067_v9 = vadd.f32 %v17316_v37, %v10954_v49  ;;  %v17321_v47 = vld [vmem:[#allocation33_spill] sm:$0xff]  ;;  %v17325_v11 = vld [vmem:[#allocation68_spill] sm:$0xff]  ;;  %v17326_v24 = vld [vmem:[#allocation38_spill] sm:$0xff] }
 0x47a   :  { %v11457_v62 = vadd.f32 %v11425_v23, %v11337_v21  ;;  %v11426_v5 = vadd.f32 %v16843_v2, %v11382_v42  ;;  %v11383_v12 = vmul.f32 %v16828_v63, %v11279_v40  ;;  %v11281_v31 = vadd.f32 %v11280_v32, %v11168_v16  ;;  %11519 = vst [vmem:[#allocation16 + $0x40] sm:$0xff] %v11487_v14  ;;  %v11341_v42 = vld [vmem:[#allocation5 + $0x70] sm:$0xff]  ;;  %v17328_v37 = vld [vmem:[#allocation73_spill] sm:$0xff] }
 0x47b   :  { %v11488_v4 = vmax.f32 %v11456_v53, 0.0  ;;  %v11282_v34 = vpop.f32.mrf.mxu1  ;;  %v11178_v21 = vadd.f32 %v16834_v28, %v11065_v3  ;;  %v10960_v33 = vadd.f32 %v17318_v20, %v17317_v36  ;;  %v17319_v14 = vld [vmem:[#allocation52_spill] sm:$0xff]  ;;  %v17320_v53 = vld [vmem:[#allocation54_spill] sm:$0xff]  ;;  %v11180_v28 = vadd.f32 %v16850_v8, %v11067_v9  ;;  %v17327_v54 = vld [vmem:[#allocation55_spill] sm:$0xff] }
 0x47c   :  { %v11489_v6 = vmax.f32 %v11457_v62, 0.0  ;;  %v11458_v25 = vadd.f32 %v11426_v5, %v11338_v38  ;;  %v11427_v61 = vadd.f32 %v16831_v0, %v11383_v12  ;;  %v11384_v19 = vmul.f32 %v16837_v59, %v11281_v31  ;;  %v11342_v62 = vld [vmem:[#allocation5 + $0x78] sm:$0xff]  ;;  %v11343_v8 = vld [vmem:[#allocation5 + $0x80] sm:$0xff] }
 0x47d   :  { %11520 = vst [vmem:[#allocation16 + $0x48] sm:$0xff] %v11488_v4  ;;  %v11283_v1 = vadd.f32 %v11282_v34, %v11170_v15  ;;  %v11284_v58 = vpop.f32.mrf.mxu1  ;;  %v10962_v38 = vadd.f32 %v17320_v53, %v17319_v14  ;;  %v17322_v15 = vld [vmem:[#allocation53_spill] sm:$0xff] }
 0x47e   :  { %11521 = vst [vmem:[#allocation16 + $0x50] sm:$0xff] %v11489_v6  ;;  %v11490_v57 = vmax.f32 %v11458_v25, 0.0  ;;  %v11459_v45 = vadd.f32 %v11427_v61, %v11339_v39  ;;  %v11428_v50 = vadd.f32 %v16843_v2, %v11384_v19  ;;  %v11285_v30 = vadd.f32 %v11284_v58, %v11172_v52  ;;  %v17323_v52 = vld [vmem:[#allocation64_spill] sm:$0xff]  ;;  %v17324_v39 = vld [vmem:[#allocation66_spill] sm:$0xff]  ;;  %v16965_v61 = vpop.f32.mrf.mxu0  ;;  %v17330_v36 = vld [vmem:[#allocation57_spill] sm:$0xff] }
 0x47f   :  { %v11385_v29 = vmul.f32 %v16828_v63, %v11283_v1  ;;  %v11288_v26 = vpop.f32.mrf.mxu1  ;;  %v10964_v44 = vadd.f32 %v17322_v15, %v17321_v47  ;;  %v11069_v4 = vadd.f32 %v17323_v52, %v10956_v43  ;;  %v11073_v34 = vadd.f32 %v17324_v39, %v10960_v33  ;;  %v11344_v1 = vld [vmem:[#allocation5 + $0x88] sm:$0xff]  ;;  %v17334_v47 = vld [vmem:[#allocation44_spill] sm:$0xff]  ;;  %v17335_v15 = vld [vmem:[#allocation65_spill] sm:$0xff] }
 0x480   :  { %11522 = vst [vmem:[#allocation16 + $0x58] sm:$0xff] %v11490_v57  ;;  %v11491_v16 = vmax.f32 %v11459_v45, 0.0  ;;  %v11460_v23 = vadd.f32 %v11428_v50, %v11340_v22  ;;  %v11386_v40 = vmul.f32 %v16837_v59, %v11285_v30  ;;  %v11289_v60 = vadd.f32 %v11288_v26, %v11176_v17  ;;  %v16978_v26 = vpop.f32.mrf.mxu0  ;;  %v17331_v33 = vld [vmem:[#allocation74_spill] sm:$0xff] }
 0x481   :  { %v11429_v32 = vadd.f32 %v16831_v0, %v11385_v29  ;;  %v11290_v5 = vpop.f32.mrf.mxu1  ;;  %v11075_v3 = vadd.f32 %v17325_v11, %v10962_v38  ;;  %v11182_v46 = vadd.f32 %v16868_v51, %v11069_v4  ;;  %v11186_v17 = vadd.f32 %v16883_v35, %v11073_v34  ;;  %v11345_v51 = vld [vmem:[#allocation5 + $0x90] sm:$0xff]  ;;  %v11347_v4 = vld [vmem:[#allocation5 + $0xa0] sm:$0xff] }
 0x482   :  { %11523 = vst [vmem:[#allocation16 + $0x60] sm:$0xff] %v11491_v16  ;;  %v11492_v12 = vmax.f32 %v11460_v23, 0.0  ;;  %v11430_v31 = vadd.f32 %v16843_v2, %v11386_v40  ;;  %v11387_v55 = vmul.f32 %v16828_v63, %v11289_v60  ;;  %v11291_v56 = vadd.f32 %v11290_v5, %v11178_v21  ;;  %v17329_v60 = vld [vmem:[#allocation40_spill] sm:$0xff]  ;;  %v11205_v34 = vpop.f32.mrf.mxu0  ;;  %v17338_v11 = vld [vmem:[#allocation75_spill] sm:$0xff] }
 0x483   :  { %v11461_v6 = vadd.f32 %v11429_v32, %v11341_v42  ;;  %v11292_v25 = vpop.f32.mrf.mxu1  ;;  %v10966_v43 = vadd.f32 %v17327_v54, %v17326_v24  ;;  %v11077_v9 = vadd.f32 %v17328_v37, %v10964_v44  ;;  %v11188_v21 = vadd.f32 %v16897_v27, %v11075_v3 }
 0x484   :  { %11524 = vst [vmem:[#allocation16 + $0x68] sm:$0xff] %v11492_v12  ;;  %v11462_v19 = vadd.f32 %v11430_v31, %v11342_v62  ;;  %v11431_v10 = vadd.f32 %v16831_v0, %v11387_v55  ;;  %v11388_v41 = vmul.f32 %v16837_v59, %v11291_v56  ;;  %v11293_v49 = vadd.f32 %v11292_v25, %v11180_v28  ;;  %v11346_v62 = vld [vmem:[#allocation5 + $0x98] sm:$0xff]  ;;  %v17332_v31 = vld [vmem:[#allocation42_spill] sm:$0xff] }
 0x485   :  { %v11493_v22 = vmax.f32 %v11461_v6, 0.0  ;;  %v11294_v58 = vpop.f32.mrf.mxu1  ;;  %v10970_v20 = vadd.f32 %v17330_v36, %v17329_v60  ;;  %v11079_v14 = vadd.f32 %v17331_v33, %v10966_v43  ;;  %v11190_v53 = vadd.f32 %v16910_v7, %v11077_v9  ;;  %v17333_v55 = vld [vmem:[#allocation58_spill] sm:$0xff]  ;;  %v11349_v9 = vld [vmem:[#allocation5 + $0xb0] sm:$0xff] }
 0x486   :  { %v11494_v57 = vmax.f32 %v11462_v19, 0.0  ;;  %v11463_v45 = vadd.f32 %v11431_v10, %v11343_v8  ;;  %v11432_v50 = vadd.f32 %v16843_v2, %v11388_v41  ;;  %v11389_v30 = vmul.f32 %v16828_v63, %v11293_v49  ;;  %v17336_v10 = vld [vmem:[#allocation45_spill] sm:$0xff]  ;;  %v17337_v41 = vld [vmem:[#allocation67_spill] sm:$0xff]  ;;  %v17343_v36 = vld [vmem:[#allocation82_spill] sm:$0xff] }
 0x487   :  { %11525 = vst [vmem:[#allocation16 + $0x70] sm:$0xff] %v11493_v22  ;;  %v11295_v29 = vadd.f32 %v11294_v58, %v11182_v46  ;;  %v11298_v35 = vpop.f32.mrf.mxu1  ;;  %v10972_v56 = vadd.f32 %v17333_v55, %v17332_v31  ;;  %v10974_v44 = vadd.f32 %v17335_v15, %v17334_v47  ;;  %v11192_v52 = vadd.f32 %v16925_v48, %v11079_v14  ;;  %v17339_v46 = vld [vmem:[#allocation78_spill] sm:$0xff] }
 0x488   :  { %11526 = vst [vmem:[#allocation16 + $0x78] sm:$0xff] %v11494_v57  ;;  %v11495_v16 = vmax.f32 %v11463_v45, 0.0  ;;  %v11464_v23 = vadd.f32 %v11432_v50, %v11344_v1  ;;  %v11433_v42 = vadd.f32 %v16831_v0, %v11389_v30  ;;  %v11299_v40 = vadd.f32 %v11298_v35, %v11186_v17  ;;  %v11348_v22 = vld [vmem:[#allocation5 + $0xa8] sm:$0xff]  ;;  %v17340_v30 = vld [vmem:[#allocation80_spill] sm:$0xff]  ;;  %v11351_v47 = vld [vmem:[#allocation5 + $0xc0] sm:$0xff] }
 0x489   :  { %v11390_v27 = vmul.f32 %v16837_v59, %v11295_v29  ;;  %v11300_v38 = vpop.f32.mrf.mxu1  ;;  %v10976_v49 = vadd.f32 %v17337_v41, %v17336_v10  ;;  %v11083_v3 = vadd.f32 %v17338_v11, %v10970_v20  ;;  %v11085_v17 = vadd.f32 %v17339_v46, %v10972_v56  ;;  %v17349_v46 = vld [vmem:[#allocation63_spill] sm:$0xff] }
 0x48a   :  { %11527 = vst [vmem:[#allocation16 + $0x80] sm:$0xff] %v11495_v16  ;;  %v11496_v28 = vmax.f32 %v11464_v23, 0.0  ;;  %v11465_v32 = vadd.f32 %v11433_v42, %v11345_v51  ;;  %v11391_v5 = vmul.f32 %v16828_v63, %v11299_v40  ;;  %v11301_v12 = vadd.f32 %v11300_v38, %v11188_v21  ;;  %v11207_v51 = vpop.f32.mrf.mxu0  ;;  %v17341_v42 = vld [vmem:[#allocation51_spill] sm:$0xff]  ;;  %v17342_v40 = vld [vmem:[#allocation69_spill] sm:$0xff] }
 0x48b   :  { %v11434_v7 = vadd.f32 %v16843_v2, %v11390_v27  ;;  %v11302_v39 = vpop.f32.mrf.mxu1  ;;  %v11087_v24 = vadd.f32 %v17340_v30, %v10974_v44  ;;  %v11196_v54 = vadd.f32 %v16936_v13, %v11083_v3  ;;  %v11198_v43 = vadd.f32 %v16950_v18, %v11085_v17  ;;  %v11350_v13 = vld [vmem:[#allocation5 + $0xb8] sm:$0xff] }
 0x48c   :  { %11528 = vst [vmem:[#allocation16 + $0x88] sm:$0xff] %v11496_v28  ;;  %v11497_v6 = vmax.f32 %v11465_v32, 0.0  ;;  %v11435_v8 = vadd.f32 %v16831_v0, %v11391_v5  ;;  %v11392_v25 = vmul.f32 %v16837_v59, %v11301_v12  ;;  %v11303_v19 = vadd.f32 %v11302_v39, %v11190_v53  ;;  %v17344_v32 = vld [vmem:[#allocation84_spill] sm:$0xff]  ;;  %v11209_v55 = vpop.f32.mrf.mxu0  ;;  %v17347_v39 = vld [vmem:[#allocation50_spill] sm:$0xff] }
 0x48d   :  { %v11466_v48 = vadd.f32 %v11434_v7, %v11346_v62  ;;  %v11304_v1 = vpop.f32.mrf.mxu1  ;;  %v10980_v60 = vadd.f32 %v17342_v40, %v17341_v42  ;;  %v11089_v20 = vadd.f32 %v17343_v36, %v10976_v49  ;;  %v11200_v33 = vadd.f32 %v16965_v61, %v11087_v24  ;;  %v17346_v7 = vld [vmem:[#allocation56_spill] sm:$0xff] }
 0x48e   :  { %11529 = vst [vmem:[#allocation16 + $0x90] sm:$0xff] %v11497_v6  ;;  %v11467_v58 = vadd.f32 %v11435_v8, %v11347_v4  ;;  %v11436_v57 = vadd.f32 %v16843_v2, %v11392_v25  ;;  %v11393_v45 = vmul.f32 %v16828_v63, %v11303_v19  ;;  %v11305_v50 = vadd.f32 %v11304_v1, %v11192_v52  ;;  %v17345_v52 = vld [vmem:[#allocation48_spill] sm:$0xff]  ;;  %v17348_v6 = vld [vmem:[#allocation59_spill] sm:$0xff]  ;;  %v11211_v30 = vpop.f32.mrf.mxu0 }
 0x48f   :  { %v11498_v37 = vmax.f32 %v11466_v48, 0.0  ;;  %v11308_v21 = vpop.f32.mrf.mxu1  ;;  %v11093_v62 = vadd.f32 %v17344_v32, %v10980_v60  ;;  %v11202_v5 = vadd.f32 %v16978_v26, %v11089_v20  ;;  %v10982_v4 = vadd.f32 %v17346_v7, %v17345_v52  ;;  %v11352_v19 = vld [vmem:[#allocation5 + $0xc8] sm:$0xff]  ;;  %v17350_v17 = vld [vmem:[#allocation60_spill] sm:$0xff] }
 0x490   :  { %v11499_v29 = vmax.f32 %v11467_v58, 0.0  ;;  %v11468_v35 = vadd.f32 %v11436_v57, %v11348_v22  ;;  %v11437_v16 = vadd.f32 %v16831_v0, %v11393_v45  ;;  %v11394_v23 = vmul.f32 %v16837_v59, %v11305_v50  ;;  %v17351_v22 = vld [vmem:[#allocation85_spill] sm:$0xff]  ;;  %v17352_v58 = vld [vmem:[#allocation87_spill] sm:$0xff] }
 0x491   :  { %11530 = vst [vmem:[#allocation16 + $0x98] sm:$0xff] %v11498_v37  ;;  %v11309_v18 = vadd.f32 %v11308_v21, %v11196_v54  ;;  %v11310_v14 = vpop.f32.mrf.mxu1  ;;  %v10984_v8 = vadd.f32 %v17348_v6, %v17347_v39  ;;  %v11206_v25 = vadd.f32 %v11205_v34, %v11093_v62  ;;  %v10986_v48 = vadd.f32 %v17350_v17, %v17349_v46  ;;  %v11353_v34 = vld [vmem:[#allocation5 + $0xd0] sm:$0xff]  ;;  %v11358_v7 = vld [vmem:[#allocation5 + $0xf8] sm:$0xff] }
 0x492   :  { %11531 = vst [vmem:[#allocation16 + $0xa0] sm:$0xff] %v11499_v29  ;;  %v11500_v53 = vmax.f32 %v11468_v35, 0.0  ;;  %v11469_v27 = vadd.f32 %v11437_v16, %v11349_v9  ;;  %v11438_v38 = vadd.f32 %v16843_v2, %v11394_v23  ;;  %v11311_v28 = vadd.f32 %v11310_v14, %v11198_v43  ;;  %v17353_v9 = vld [vmem:[#allocation26_spill] sm:$0xff]  ;;  %v11354_v23 = vld [vmem:[#allocation5 + $0xd8] sm:$0xff] }
 0x493   :  { %v11395_v12 = vmul.f32 %v16828_v63, %v11309_v18  ;;  %v11312_v31 = vpop.f32.mrf.mxu1  ;;  %v11095_v1 = vadd.f32 %v17351_v22, %v10982_v4  ;;  %v11097_v57 = vadd.f32 %v17352_v58, %v10984_v8  ;;  %v11099_v21 = vadd.f32 %v17353_v9, %v10986_v48 }
 0x494   :  { %11532 = vst [vmem:[#allocation16 + $0xa8] sm:$0xff] %v11500_v53  ;;  %v11501_v61 = vmax.f32 %v11469_v27, 0.0  ;;  %v11470_v56 = vadd.f32 %v11438_v38, %v11350_v13  ;;  %v11396_v15 = vmul.f32 %v16837_v59, %v11311_v28  ;;  %v11313_v44 = vadd.f32 %v11312_v31, %v11200_v33  ;;  %v11355_v13 = vld [vmem:[#allocation5 + $0xe0] sm:$0xff] }
 0x495   :  { %v11439_v26 = vadd.f32 %v16831_v0, %v11395_v12  ;;  %v11314_v10 = vpop.f32.mrf.mxu1  ;;  %v11208_v29 = vadd.f32 %v11207_v51, %v11095_v1  ;;  %v11210_v35 = vadd.f32 %v11209_v55, %v11097_v57  ;;  %v11212_v33 = vadd.f32 %v11211_v30, %v11099_v21  ;;  %v11356_v12 = vld [vmem:[#allocation5 + $0xe8] sm:$0xff] }
 0x496   :  { %11533 = vst [vmem:[#allocation16 + $0xb0] sm:$0xff] %v11501_v61  ;;  %v11502_v41 = vmax.f32 %v11470_v56, 0.0  ;;  %v11440_v49 = vadd.f32 %v16843_v2, %v11396_v15  ;;  %v11397_v11 = vmul.f32 %v16828_v63, %v11313_v44  ;;  %v11315_v3 = vadd.f32 %v11314_v10, %v11202_v5  ;;  %v11357_v56 = vld [vmem:[#allocation5 + $0xf0] sm:$0xff] }
 0x497   :  { %v11471_v45 = vadd.f32 %v11439_v26, %v11351_v47  ;;  %v11318_v50 = vpop.f32.mrf.mxu1 }
 0x498   :  { %11534 = vst [vmem:[#allocation16 + $0xb8] sm:$0xff] %v11502_v41  ;;  %v11472_v24 = vadd.f32 %v11440_v49, %v11352_v19  ;;  %v11441_v54 = vadd.f32 %v16831_v0, %v11397_v11  ;;  %v11398_v43 = vmul.f32 %v16837_v59, %v11315_v3  ;;  %v11319_v37 = vadd.f32 %v11318_v50, %v11206_v25 }
 0x499   :  { %v11503_v16 = vmax.f32 %v11471_v45, 0.0  ;;  %v11320_v42 = vpop.f32.mrf.mxu1 }
 0x49a   :  { %v11504_v40 = vmax.f32 %v11472_v24, 0.0  ;;  %v11473_v60 = vadd.f32 %v11441_v54, %v11353_v34  ;;  %v11442_v36 = vadd.f32 %v16843_v2, %v11398_v43  ;;  %v11399_v20 = vmul.f32 %v16828_v63, %v11319_v37 }
 0x49b   :  { %11535 = vst [vmem:[#allocation16 + $0xc0] sm:$0xff] %v11503_v16  ;;  %v11321_v18 = vadd.f32 %v11320_v42, %v11208_v29  ;;  %v11322_v14 = vpop.f32.mrf.mxu1 }
 0x49c   :  { %11536 = vst [vmem:[#allocation16 + $0xc8] sm:$0xff] %v11504_v40  ;;  %v11505_v53 = vmax.f32 %v11473_v60, 0.0  ;;  %v11474_v27 = vadd.f32 %v11442_v36, %v11354_v23  ;;  %v11443_v51 = vadd.f32 %v16831_v0, %v11399_v20  ;;  %v11323_v38 = vadd.f32 %v11322_v14, %v11210_v35 }
 0x49d   :  { %v11400_v28 = vmul.f32 %v16837_v59, %v11321_v18  ;;  %v11324_v32 = vpop.f32.mrf.mxu1 }
 0x49e   :  { %11537 = vst [vmem:[#allocation16 + $0xd0] sm:$0xff] %v11505_v53  ;;  %v11506_v62 = vmax.f32 %v11474_v27, 0.0  ;;  %v11475_v5 = vadd.f32 %v11443_v51, %v11355_v13  ;;  %v11401_v31 = vmul.f32 %v16828_v63, %v11323_v38  ;;  %v11325_v55 = vadd.f32 %v11324_v32, %v11212_v33 }
 0x49f   :  { %v11444_v61 = vadd.f32 %v16843_v2, %v11400_v28 }
 0x4a0   :  { %11538 = vst [vmem:[#allocation16 + $0xd8] sm:$0xff] %v11506_v62  ;;  %v11507_v47 = vmax.f32 %v11475_v5, 0.0  ;;  %v11445_v15 = vadd.f32 %v16831_v0, %v11401_v31  ;;  %v11402_v44 = vmul.f32 %v16837_v59, %v11325_v55 }
 0x4a1   :  { %v11476_v52 = vadd.f32 %v11444_v61, %v11356_v12 }
 0x4a2   :  { %11539 = vst [vmem:[#allocation16 + $0xe0] sm:$0xff] %v11507_v47  ;;  %v11477_v4 = vadd.f32 %v11445_v15, %v11357_v56  ;;  %v11446_v39 = vadd.f32 %v16843_v2, %v11402_v44 }
 0x4a3   :  { %v11508_v6 = vmax.f32 %v11476_v52, 0.0 }
 0x4a4   :  { %v11509_v63 = vmax.f32 %v11477_v4, 0.0  ;;  %v11478_v8 = vadd.f32 %v11446_v39, %v11358_v7 }
 0x4a5   :  { %11540 = vst [vmem:[#allocation16 + $0xe8] sm:$0xff] %v11508_v6 }
 0x4a6   :  { %11541 = vst [vmem:[#allocation16 + $0xf0] sm:$0xff] %v11509_v63  ;;  %v11510_v25 = vmax.f32 %v11478_v8, 0.0 }
 0x4a8   :  { %11542 = vst [vmem:[#allocation16 + $0xf8] sm:$0xff] %v11510_v25 }
 0x4a9   :  { %13639 = shalt.err (!%p13636_p6)
}
 0x4aa   :  { %11554 = dma.vmem_to_hbm [thread:$0]  %s11549_s28, 4096, %s17051_s7, [#allocation7], %s13663_s1, %s13663_s1, %s13664_s16  }
 0x4ab   :  { %13656 = dma.done.wait [#allocation7], 4096  }
 0x4ac   :  { %13657 = vsyncadd [#allocation7], 4294963200 }
 0x4ad   :  { %11558 = vsyncpa [#allocation6], 1 }
 0x4ae   :  { %11559 = vsyncpa [#allocation9], 1 }
 0x4af   :  { %11560 = vsyncpa [#allocation12], 1 }
 0x4b0   :  { %11561 = vsyncpa [#allocation15], 1 }
 0x4b1   :  { %11562 = vsyncpa [#allocation7], 1 }

</bundles_post_ra>
